<compile_context>
chip_gen: v7x
topology: tpu7x:2x2x1
jax: 0.10.0
libtpu: 0.0.40
codegen_flags: <defaults>
</compile_context>

<pallas_src>
import math

import jax
import jax.numpy as jnp
from jax.experimental import pallas as pl
from jax.experimental.pallas import tpu as pltpu


def _vmem_specs(n):
    return [pl.BlockSpec(memory_space=pltpu.MemorySpace.VMEM) for _ in range(n)]


# ----------------------------------------------------------------------------
# Pallas kernels
# ----------------------------------------------------------------------------
def _conv_relu_kernel(w_ref, p_ref, b_ref, o_ref):
    """o = relu(W @ patches + b), lane-dense output (out_ch, B*Ho*Wo)."""
    y = jnp.dot(w_ref[...], p_ref[...], preferred_element_type=jnp.float32)
    o_ref[...] = jnp.maximum(y + b_ref[...], 0.0)


def conv_relu(w_t, patches_t, b_col):
    """w_t: (oc, C*k*k), patches_t: (C*k*k, M), b_col: (oc, 1) -> (oc, M)."""
    oc, _ = w_t.shape
    m = patches_t.shape[1]
    return pl.pallas_call(
        _conv_relu_kernel,
        out_shape=jax.ShapeDtypeStruct((oc, m), jnp.float32),
        in_specs=_vmem_specs(3),
        out_specs=pl.BlockSpec(memory_space=pltpu.MemorySpace.VMEM),
    )(w_t, patches_t, b_col)


def _lstm_head_kernel(x_ref, wih0_ref, whh0_ref, b0_ref, w1_ref, b1_ref,
                      wd_ref, bd_ref, o_ref):
    """2-layer LSTM over time + fused rnn_dense on the final layer-2 hidden state.

    x_ref: (B, T, F).  Gate order is [i, f, o, g] (permuted once at init).
    Layer 0: g0 = xproj[t] + h0 @ whh0 + b0 (input projection precomputed).
    Layer 1: g1 = [h0, h1] @ w1 + b1 with w1 = [wih1; whh1] stacked at init.
    Output: (B, 32) = h1_final @ Wd + bd  (rnn_dense; dropout = identity, eval).
    """
    B, T, F = x_ref.shape
    H = whh0_ref.shape[0]

    # Precompute the layer-0 input projection for all timesteps: one batched
    # matmul instead of T tiny in-loop matmuls (off the recurrent critical path).
    x = x_ref[...]                                               # (B, T, F)
    w0 = jnp.broadcast_to(wih0_ref[...][None], (B, F, 4 * H))    # (B, F, 4H)
    xproj = jnp.einsum("btf,bfg->btg", x, w0,
                       preferred_element_type=jnp.float32)       # (B, T, 4H)

    whh0 = whh0_ref[...]
    b0 = b0_ref[...]
    w1 = w1_ref[...]
    b1 = b1_ref[...]

    h0 = jnp.zeros((B, H), jnp.float32)
    c0 = jnp.zeros((B, H), jnp.float32)
    h1 = jnp.zeros((B, H), jnp.float32)
    c1 = jnp.zeros((B, H), jnp.float32)

    def cell(gates, c):
        # Gate order [i, f, o, g]: one contiguous sigmoid slice + one tanh slice.
        s = jax.nn.sigmoid(gates[:, :3 * H])
        u = jnp.tanh(gates[:, 3 * H:])
        i, f, o = s[:, :H], s[:, H:2 * H], s[:, 2 * H:]
        c_new = f * c + i * u
        h_new = o * jnp.tanh(c_new)
        return h_new, c_new

    # T is a compile-time constant: fully unroll so the LLO scheduler can overlap
    # MXU pushes, EUP (sigmoid/tanh) and VPU work across steps.
    for t in range(T):
        g0 = xproj[:, t, :] + b0 + jnp.dot(
            h0, whh0, preferred_element_type=jnp.float32)
        h0, c0 = cell(g0, c0)
        g1 = b1 + jnp.dot(jnp.concatenate([h0, h1], axis=1), w1,
                          preferred_element_type=jnp.float32)
        h1, c1 = cell(g1, c1)

    # Fused rnn_dense (== self.rnn_dense(rnn_out[:, -1, :])).
    o_ref[...] = jnp.dot(h1, wd_ref[...],
                         preferred_element_type=jnp.float32) + bd_ref[...]


def lstm_branch(x, lstm_params, rnn_dense_params):
    """x: (B, T, F) -> (B, 32): rnn_dense(last hidden of LSTM layer 2)."""
    wih0, whh0, b0, w1, b1 = lstm_params
    wd, bd = rnn_dense_params
    B = x.shape[0]
    return pl.pallas_call(
        _lstm_head_kernel,
        out_shape=jax.ShapeDtypeStruct((B, wd.shape[1]), jnp.float32),
        in_specs=_vmem_specs(8),
        out_specs=pl.BlockSpec(memory_space=pltpu.MemorySpace.VMEM),
    )(x, wih0, whh0, b0, w1, b1, wd, bd)


def _fc_head_kernel(c3_ref, c4_ref, c5_ref, r_ref,
                    w1a_ref, w1b_ref, w1c_ref, w1d_ref, b1_ref,
                    w2_ref, b2_ref, o_ref):
    """relu(fc2(relu(fc1(concat)))) with the concat folded into 4 row-block dots."""
    bf16 = jnp.bfloat16
    acc = jnp.dot(c3_ref[...].astype(bf16), w1a_ref[...],
                  preferred_element_type=jnp.float32)
    acc = acc + jnp.dot(c4_ref[...].astype(bf16), w1b_ref[...],
                        preferred_element_type=jnp.float32)
    acc = acc + jnp.dot(c5_ref[...].astype(bf16), w1c_ref[...],
                        preferred_element_type=jnp.float32)
    acc = acc + jnp.dot(r_ref[...].astype(bf16), w1d_ref[...],
                        preferred_element_type=jnp.float32)
    h = jnp.maximum(acc + b1_ref[...], 0.0)                      # fc1 + ReLU
    out = jnp.dot(h.astype(bf16), w2_ref[...],
                  preferred_element_type=jnp.float32) + b2_ref[...]   # fc2
    # TODO(synk): dropout(p=0.3) reproduced in inference mode only (identity).
    o_ref[...] = jnp.maximum(out, 0.0)                           # final ReLU


def fc_head(c3, c4, c5, r, fc1_params, fc2_params):
    w1a, w1b, w1c, w1d, b1 = fc1_params
    w2, b2 = fc2_params
    B = c3.shape[0]
    return pl.pallas_call(
        _fc_head_kernel,
        out_shape=jax.ShapeDtypeStruct((B, w2.shape[1]), jnp.float32),
        in_specs=_vmem_specs(11),
        out_specs=pl.BlockSpec(memory_space=pltpu.MemorySpace.VMEM),
    )(c3, c4, c5, r, w1a, w1b, w1c, w1d, b1, w2, b2)


# ----------------------------------------------------------------------------
# JAX glue (im2col, maxpool, parameter init, full forward)
# ----------------------------------------------------------------------------
def im2col_t(x, k):
    """x: (B, C, H, W), conv stride 1, padding k-1 -> (C*k*k, B*Ho*Wo), Ho, Wo.

    Patch ordering along the first axis is C-major, then kh, then kw — matching
    a PyTorch conv weight (oc, C, kh, kw) flattened to (oc, C*k*k).
    """
    B, C, H, W = x.shape
    p = k - 1
    xp = jnp.pad(x, ((0, 0), (0, 0), (p, p), (p, p)))
    Ho, Wo = H + k - 1, W + k - 1
    cols = [xp[:, :, i:i + Ho, j:j + Wo] for i in range(k) for j in range(k)]
    pat = jnp.stack(cols, axis=0).reshape(k, k, B, C, Ho, Wo)
    pat = pat.transpose(3, 0, 1, 2, 4, 5)            # (C, kh, kw, B, Ho, Wo)
    return pat.reshape(C * k * k, B * Ho * Wo), Ho, Wo


def maxpool2x2(x):
    """2x2 max pool, stride 2, floor (matches nn.MaxPool2d) over last two dims."""
    *lead, H, W = x.shape
    Hc, Wc = (H // 2) * 2, (W // 2) * 2
    xc = x[..., :Hc, :Wc].reshape(tuple(lead) + (H // 2, 2, W // 2, 2))
    return xc.max(axis=(-3, -1))


def cnn_branch(x, layers, k):
    """cfg04 = [8, 'M', 16, 'M'] branch; x: (B, T, F) -> flattened (B, 16*Hp*Wp)."""
    B = x.shape[0]
    h = x[:, None, :, :]                             # NCHW, in_channels = 1
    for w_t, b_col in layers:
        pat, Ho, Wo = im2col_t(h, k)
        oc = w_t.shape[0]
        y = conv_relu(w_t, pat, b_col)               # (oc, B*Ho*Wo), lane-dense
        y = maxpool2x2(y.reshape(oc, B, Ho, Wo))     # (oc, B, Hp, Wp)
        h = y.transpose(1, 0, 2, 3)                  # back to NCHW
    return h.reshape(B, -1)                          # .view(B, -1) flatten order


def _uniform(key, shape, fan_in):
    bound = 1.0 / math.sqrt(fan_in)
    return jax.random.uniform(key, shape, jnp.float32, -bound, bound)


def _pack_gate_mat(w_pt):
    """PyTorch LSTM weight (4H, K), gate order [i,f,g,o] -> (K, 4H) in [i,f,o,g]."""
    H = w_pt.shape[0] // 4
    i, f, g, o = (w_pt[j * H:(j + 1) * H] for j in range(4))
    return jnp.concatenate([i, f, o, g], axis=0).T


def _pack_gate_bias(b_ih, b_hh):
    """Fold b_ih + b_hh and permute gate blocks [i,f,g,o] -> [i,f,o,g]; (1, 4H)."""
    b = b_ih + b_hh
    H = b.shape[0] // 4
    i, f, g, o = (b[j * H:(j + 1) * H] for j in range(4))
    return jnp.concatenate([i, f, o, g]).reshape(1, 4 * H)


def init_params(key):
    ks = iter(jax.random.split(key, 32))
    p = {}

    # CNN branches (kernel sizes 3, 4, 5), cfg04 = [8, 'M', 16, 'M'].
    # Weights kept in (out_ch, C*k*k) = PyTorch (oc, C, kh, kw) flattened order.
    for k_sz in (3, 4, 5):
        layers = []
        in_ch = 1
        for out_ch in (8, 16):
            fan_in = in_ch * k_sz * k_sz
            w_pt = _uniform(next(ks), (out_ch, in_ch, k_sz, k_sz), fan_in)
            b = _uniform(next(ks), (out_ch,), fan_in)
            layers.append((w_pt.reshape(out_ch, fan_in), b.reshape(out_ch, 1)))
            in_ch = out_ch
        p[f"cnn{k_sz}"] = layers

    # 2-layer LSTM (input 18, hidden 64).  Initialized in PyTorch layout/gate
    # order [i,f,g,o], then packed for the kernel: transposed, gates reordered
    # to [i,f,o,g], b = b_ih + b_hh, and layer-1 ih/hh weights stacked rowwise.
    H, F = 64, 18
    wih0 = _pack_gate_mat(_uniform(next(ks), (4 * H, F), H))     # (F, 4H)
    whh0 = _pack_gate_mat(_uniform(next(ks), (4 * H, H), H))     # (H, 4H)
    b0 = _pack_gate_bias(_uniform(next(ks), (4 * H,), H),
                         _uniform(next(ks), (4 * H,), H))
    wih1 = _pack_gate_mat(_uniform(next(ks), (4 * H, H), H))
    whh1 = _pack_gate_mat(_uniform(next(ks), (4 * H, H), H))
    b1 = _pack_gate_bias(_uniform(next(ks), (4 * H,), H),
                         _uniform(next(ks), (4 * H,), H))
    p["lstm"] = (wih0, whh0, b0, jnp.concatenate([wih1, whh1], axis=0), b1)

    p["rnn_dense"] = (_uniform(next(ks), (64, 32), 64),
                      _uniform(next(ks), (32,), 64).reshape(1, 32))

    # fc1 weight split along the concat axis [cnn3 | cnn4 | cnn5 | rnn_dense] so
    # the head kernel never needs an explicit concatenation.  Weights in bf16.
    w_fc1 = _uniform(next(ks), (1664, 512), 1664)
    b_fc1 = _uniform(next(ks), (512,), 1664).reshape(1, 512)
    p["fc1"] = (w_fc1[:480].astype(jnp.bfloat16),
                w_fc1[480:960].astype(jnp.bfloat16),
                w_fc1[960:1632].astype(jnp.bfloat16),
                w_fc1[1632:].astype(jnp.bfloat16),
                b_fc1)
    p["fc2"] = (_uniform(next(ks), (512, 64), 512).astype(jnp.bfloat16),
                _uniform(next(ks), (64,), 512).reshape(1, 64))
    return p


def forward(x, params):
    # x: (B, 14, 18)
    cnn_b_3 = cnn_branch(x, params["cnn3"], 3)                    # (B, 480)
    cnn_b_4 = cnn_branch(x, params["cnn4"], 4)                    # (B, 480)
    cnn_b_5 = cnn_branch(x, params["cnn5"], 5)                    # (B, 672)
    out_b1 = lstm_branch(x, params["lstm"], params["rnn_dense"])  # (B, 32)
    # TODO(synk): both dropout(p=0.3) layers reproduced in inference mode (identity).
    return fc_head(cnn_b_3, cnn_b_4, cnn_b_5, out_b1,
                   params["fc1"], params["fc2"])                  # (B, 64)


if __name__ == "__main__":
    B, T, F = 2, 14, 18  # seq=14 so CNN branches give 480+480+672, +32 LSTM = 1664
    root = jax.random.PRNGKey(0)
    k_param, k_x = jax.random.split(root)
    params = init_params(k_param)
    x = jax.random.normal(k_x, (B, T, F), jnp.float32)

    out = jax.jit(lambda xx: forward(xx, params))(x)
    out = jax.block_until_ready(out)
    assert out.shape == (B, 64), out.shape
    assert bool(jnp.all(jnp.isfinite(out)))
    print("KERNEL_OK")
</pallas_src>

<mosaic_0001>
module attributes {stable_mosaic.version = 11 : i64} {
  func.func @_conv_relu_kernel(%arg0: memref<8x25xf32, #tpu.memory_space<vmem>>, %arg1: memref<25x792xf32, #tpu.memory_space<vmem>>, %arg2: memref<8x1xf32, #tpu.memory_space<vmem>>, %arg3: memref<8x792xf32, #tpu.memory_space<vmem>>) attributes {dimension_semantics = [], scalar_prefetch = 0 : i64, scratch_operands = 0 : i64, tpu.core_type = #tpu.core_type<tc>} {
    %c0 = arith.constant 0 : index
    %c0_0 = arith.constant 0 : index
    %0 = vector.load %arg0[%c0, %c0_0] : memref<8x25xf32, #tpu.memory_space<vmem>>, vector<8x25xf32>
    %c0_1 = arith.constant 0 : index
    %c0_2 = arith.constant 0 : index
    %1 = vector.load %arg1[%c0_1, %c0_2] : memref<25x792xf32, #tpu.memory_space<vmem>>, vector<25x792xf32>
    %cst = arith.constant dense<0.000000e+00> : vector<8x792xf32>
    %2 = tpu.matmul %0, %1, %cst {dimension_numbers = #tpu.dot_dimension_numbers<[1], [0], [0], [1], [0, 0, 1, 1], [], []>} : vector<8x25xf32>, vector<25x792xf32>, vector<8x792xf32> -> vector<8x792xf32>
    %c0_3 = arith.constant 0 : index
    %c0_4 = arith.constant 0 : index
    %3 = vector.load %arg2[%c0_3, %c0_4] : memref<8x1xf32, #tpu.memory_space<vmem>>, vector<8x1xf32>
    %4 = vector.broadcast %3 : vector<8x1xf32> to vector<8x792xf32>
    %5 = arith.addf %2, %4 : vector<8x792xf32>
    %cst_5 = arith.constant 0.000000e+00 : f32
    %6 = vector.broadcast %cst_5 : f32 to vector<8x792xf32>
    %7 = arith.maximumf %5, %6 : vector<8x792xf32>
    %c0_6 = arith.constant 0 : index
    %c0_7 = arith.constant 0 : index
    %8 = vector.load %arg3[%c0_6, %c0_7] : memref<8x792xf32, #tpu.memory_space<vmem>>, vector<8x792xf32>
    tpu.vector_store %arg3[%c0_6, %c0_7], %7 {strides = array<i32>} : memref<8x792xf32, #tpu.memory_space<vmem>>, vector<8x792xf32>,
    return
  }
}

module attributes {stable_mosaic.version = 11 : i64} {
  func.func @_conv_relu_kernel(%arg0: memref<16x200xf32, #tpu.memory_space<vmem>>, %arg1: memref<200x390xf32, #tpu.memory_space<vmem>>, %arg2: memref<16x1xf32, #tpu.memory_space<vmem>>, %arg3: memref<16x390xf32, #tpu.memory_space<vmem>>) attributes {dimension_semantics = [], scalar_prefetch = 0 : i64, scratch_operands = 0 : i64, tpu.core_type = #tpu.core_type<tc>} {
    %c0 = arith.constant 0 : index
    %c0_0 = arith.constant 0 : index
    %0 = vector.load %arg0[%c0, %c0_0] : memref<16x200xf32, #tpu.memory_space<vmem>>, vector<16x200xf32>
    %c0_1 = arith.constant 0 : index
    %c0_2 = arith.constant 0 : index
    %1 = vector.load %arg1[%c0_1, %c0_2] : memref<200x390xf32, #tpu.memory_space<vmem>>, vector<200x390xf32>
    %cst = arith.constant dense<0.000000e+00> : vector<16x390xf32>
    %2 = tpu.matmul %0, %1, %cst {dimension_numbers = #tpu.dot_dimension_numbers<[1], [0], [0], [1], [0, 0, 1, 1], [], []>} : vector<16x200xf32>, vector<200x390xf32>, vector<16x390xf32> -> vector<16x390xf32>
    %c0_3 = arith.constant 0 : index
    %c0_4 = arith.constant 0 : index
    %3 = vector.load %arg2[%c0_3, %c0_4] : memref<16x1xf32, #tpu.memory_space<vmem>>, vector<16x1xf32>
    %4 = vector.broadcast %3 : vector<16x1xf32> to vector<16x390xf32>
    %5 = arith.addf %2, %4 : vector<16x390xf32>
    %cst_5 = arith.constant 0.000000e+00 : f32
    %6 = vector.broadcast %cst_5 : f32 to vector<16x390xf32>
    %7 = arith.maximumf %5, %6 : vector<16x390xf32>
    %c0_6 = arith.constant 0 : index
    %c0_7 = arith.constant 0 : index
    %8 = vector.load %arg3[%c0_6, %c0_7] : memref<16x390xf32, #tpu.memory_space<vmem>>, vector<16x390xf32>
    tpu.vector_store %arg3[%c0_6, %c0_7], %7 {strides = array<i32>} : memref<16x390xf32, #tpu.memory_space<vmem>>, vector<16x390xf32>,
    return
  }
}

module attributes {stable_mosaic.version = 11 : i64} {
  func.func @_conv_relu_kernel(%arg0: memref<8x16xf32, #tpu.memory_space<vmem>>, %arg1: memref<16x714xf32, #tpu.memory_space<vmem>>, %arg2: memref<8x1xf32, #tpu.memory_space<vmem>>, %arg3: memref<8x714xf32, #tpu.memory_space<vmem>>) attributes {dimension_semantics = [], scalar_prefetch = 0 : i64, scratch_operands = 0 : i64, tpu.core_type = #tpu.core_type<tc>} {
    %c0 = arith.constant 0 : index
    %c0_0 = arith.constant 0 : index
    %0 = vector.load %arg0[%c0, %c0_0] : memref<8x16xf32, #tpu.memory_space<vmem>>, vector<8x16xf32>
    %c0_1 = arith.constant 0 : index
    %c0_2 = arith.constant 0 : index
    %1 = vector.load %arg1[%c0_1, %c0_2] : memref<16x714xf32, #tpu.memory_space<vmem>>, vector<16x714xf32>
    %cst = arith.constant dense<0.000000e+00> : vector<8x714xf32>
    %2 = tpu.matmul %0, %1, %cst {dimension_numbers = #tpu.dot_dimension_numbers<[1], [0], [0], [1], [0, 0, 1, 1], [], []>} : vector<8x16xf32>, vector<16x714xf32>, vector<8x714xf32> -> vector<8x714xf32>
    %c0_3 = arith.constant 0 : index
    %c0_4 = arith.constant 0 : index
    %3 = vector.load %arg2[%c0_3, %c0_4] : memref<8x1xf32, #tpu.memory_space<vmem>>, vector<8x1xf32>
    %4 = vector.broadcast %3 : vector<8x1xf32> to vector<8x714xf32>
    %5 = arith.addf %2, %4 : vector<8x714xf32>
    %cst_5 = arith.constant 0.000000e+00 : f32
    %6 = vector.broadcast %cst_5 : f32 to vector<8x714xf32>
    %7 = arith.maximumf %5, %6 : vector<8x714xf32>
    %c0_6 = arith.constant 0 : index
    %c0_7 = arith.constant 0 : index
    %8 = vector.load %arg3[%c0_6, %c0_7] : memref<8x714xf32, #tpu.memory_space<vmem>>, vector<8x714xf32>
    tpu.vector_store %arg3[%c0_6, %c0_7], %7 {strides = array<i32>} : memref<8x714xf32, #tpu.memory_space<vmem>>, vector<8x714xf32>,
    return
  }
}

module attributes {stable_mosaic.version = 11 : i64} {
  func.func @_conv_relu_kernel(%arg0: memref<16x128xf32, #tpu.memory_space<vmem>>, %arg1: memref<128x286xf32, #tpu.memory_space<vmem>>, %arg2: memref<16x1xf32, #tpu.memory_space<vmem>>, %arg3: memref<16x286xf32, #tpu.memory_space<vmem>>) attributes {dimension_semantics = [], scalar_prefetch = 0 : i64, scratch_operands = 0 : i64, tpu.core_type = #tpu.core_type<tc>} {
    %c0 = arith.constant 0 : index
    %c0_0 = arith.constant 0 : index
    %0 = vector.load %arg0[%c0, %c0_0] : memref<16x128xf32, #tpu.memory_space<vmem>>, vector<16x128xf32>
    %c0_1 = arith.constant 0 : index
    %c0_2 = arith.constant 0 : index
    %1 = vector.load %arg1[%c0_1, %c0_2] : memref<128x286xf32, #tpu.memory_space<vmem>>, vector<128x286xf32>
    %cst = arith.constant dense<0.000000e+00> : vector<16x286xf32>
    %2 = tpu.matmul %0, %1, %cst {dimension_numbers = #tpu.dot_dimension_numbers<[1], [0], [0], [1], [0, 0, 1, 1], [], []>} : vector<16x128xf32>, vector<128x286xf32>, vector<16x286xf32> -> vector<16x286xf32>
    %c0_3 = arith.constant 0 : index
    %c0_4 = arith.constant 0 : index
    %3 = vector.load %arg2[%c0_3, %c0_4] : memref<16x1xf32, #tpu.memory_space<vmem>>, vector<16x1xf32>
    %4 = vector.broadcast %3 : vector<16x1xf32> to vector<16x286xf32>
    %5 = arith.addf %2, %4 : vector<16x286xf32>
    %cst_5 = arith.constant 0.000000e+00 : f32
    %6 = vector.broadcast %cst_5 : f32 to vector<16x286xf32>
    %7 = arith.maximumf %5, %6 : vector<16x286xf32>
    %c0_6 = arith.constant 0 : index
    %c0_7 = arith.constant 0 : index
    %8 = vector.load %arg3[%c0_6, %c0_7] : memref<16x286xf32, #tpu.memory_space<vmem>>, vector<16x286xf32>
    tpu.vector_store %arg3[%c0_6, %c0_7], %7 {strides = array<i32>} : memref<16x286xf32, #tpu.memory_space<vmem>>, vector<16x286xf32>,
    return
  }
}

module attributes {stable_mosaic.version = 11 : i64} {
  func.func @_conv_relu_kernel(%arg0: memref<8x9xf32, #tpu.memory_space<vmem>>, %arg1: memref<9x640xf32, #tpu.memory_space<vmem>>, %arg2: memref<8x1xf32, #tpu.memory_space<vmem>>, %arg3: memref<8x640xf32, #tpu.memory_space<vmem>>) attributes {dimension_semantics = [], scalar_prefetch = 0 : i64, scratch_operands = 0 : i64, tpu.core_type = #tpu.core_type<tc>} {
    %c0 = arith.constant 0 : index
    %c0_0 = arith.constant 0 : index
    %0 = vector.load %arg0[%c0, %c0_0] : memref<8x9xf32, #tpu.memory_space<vmem>>, vector<8x9xf32>
    %c0_1 = arith.constant 0 : index
    %c0_2 = arith.constant 0 : index
    %1 = vector.load %arg1[%c0_1, %c0_2] : memref<9x640xf32, #tpu.memory_space<vmem>>, vector<9x640xf32>
    %cst = arith.constant dense<0.000000e+00> : vector<8x640xf32>
    %2 = tpu.matmul %0, %1, %cst {dimension_numbers = #tpu.dot_dimension_numbers<[1], [0], [0], [1], [0, 0, 1, 1], [], []>} : vector<8x9xf32>, vector<9x640xf32>, vector<8x640xf32> -> vector<8x640xf32>
    %c0_3 = arith.constant 0 : index
    %c0_4 = arith.constant 0 : index
    %3 = vector.load %arg2[%c0_3, %c0_4] : memref<8x1xf32, #tpu.memory_space<vmem>>, vector<8x1xf32>
    %4 = vector.broadcast %3 : vector<8x1xf32> to vector<8x640xf32>
    %5 = arith.addf %2, %4 : vector<8x640xf32>
    %cst_5 = arith.constant 0.000000e+00 : f32
    %6 = vector.broadcast %cst_5 : f32 to vector<8x640xf32>
    %7 = arith.maximumf %5, %6 : vector<8x640xf32>
    %c0_6 = arith.constant 0 : index
    %c0_7 = arith.constant 0 : index
    %8 = vector.load %arg3[%c0_6, %c0_7] : memref<8x640xf32, #tpu.memory_space<vmem>>, vector<8x640xf32>
    tpu.vector_store %arg3[%c0_6, %c0_7], %7 {strides = array<i32>} : memref<8x640xf32, #tpu.memory_space<vmem>>, vector<8x640xf32>,
    return
  }
}

module attributes {stable_mosaic.version = 11 : i64} {
  func.func @_conv_relu_kernel(%arg0: memref<16x72xf32, #tpu.memory_space<vmem>>, %arg1: memref<72x240xf32, #tpu.memory_space<vmem>>, %arg2: memref<16x1xf32, #tpu.memory_space<vmem>>, %arg3: memref<16x240xf32, #tpu.memory_space<vmem>>) attributes {dimension_semantics = [], scalar_prefetch = 0 : i64, scratch_operands = 0 : i64, tpu.core_type = #tpu.core_type<tc>} {
    %c0 = arith.constant 0 : index
    %c0_0 = arith.constant 0 : index
    %0 = vector.load %arg0[%c0, %c0_0] : memref<16x72xf32, #tpu.memory_space<vmem>>, vector<16x72xf32>
    %c0_1 = arith.constant 0 : index
    %c0_2 = arith.constant 0 : index
    %1 = vector.load %arg1[%c0_1, %c0_2] : memref<72x240xf32, #tpu.memory_space<vmem>>, vector<72x240xf32>
    %cst = arith.constant dense<0.000000e+00> : vector<16x240xf32>
    %2 = tpu.matmul %0, %1, %cst {dimension_numbers = #tpu.dot_dimension_numbers<[1], [0], [0], [1], [0, 0, 1, 1], [], []>} : vector<16x72xf32>, vector<72x240xf32>, vector<16x240xf32> -> vector<16x240xf32>
    %c0_3 = arith.constant 0 : index
    %c0_4 = arith.constant 0 : index
    %3 = vector.load %arg2[%c0_3, %c0_4] : memref<16x1xf32, #tpu.memory_space<vmem>>, vector<16x1xf32>
    %4 = vector.broadcast %3 : vector<16x1xf32> to vector<16x240xf32>
    %5 = arith.addf %2, %4 : vector<16x240xf32>
    %cst_5 = arith.constant 0.000000e+00 : f32
    %6 = vector.broadcast %cst_5 : f32 to vector<16x240xf32>
    %7 = arith.maximumf %5, %6 : vector<16x240xf32>
    %c0_6 = arith.constant 0 : index
    %c0_7 = arith.constant 0 : index
    %8 = vector.load %arg3[%c0_6, %c0_7] : memref<16x240xf32, #tpu.memory_space<vmem>>, vector<16x240xf32>
    tpu.vector_store %arg3[%c0_6, %c0_7], %7 {strides = array<i32>} : memref<16x240xf32, #tpu.memory_space<vmem>>, vector<16x240xf32>,
    return
  }
}

module attributes {stable_mosaic.version = 11 : i64} {
  func.func @_fc_head_kernel(%arg0: memref<2x480xf32, #tpu.memory_space<vmem>>, %arg1: memref<2x480xf32, #tpu.memory_space<vmem>>, %arg2: memref<2x672xf32, #tpu.memory_space<vmem>>, %arg3: memref<2x32xf32, #tpu.memory_space<vmem>>, %arg4: memref<480x512xbf16, #tpu.memory_space<vmem>>, %arg5: memref<480x512xbf16, #tpu.memory_space<vmem>>, %arg6: memref<672x512xbf16, #tpu.memory_space<vmem>>, %arg7: memref<32x512xbf16, #tpu.memory_space<vmem>>, %arg8: memref<1x512xf32, #tpu.memory_space<vmem>>, %arg9: memref<512x64xbf16, #tpu.memory_space<vmem>>, %arg10: memref<1x64xf32, #tpu.memory_space<vmem>>, %arg11: memref<2x64xf32, #tpu.memory_space<vmem>>) attributes {dimension_semantics = [], scalar_prefetch = 0 : i64, scratch_operands = 0 : i64, tpu.core_type = #tpu.core_type<tc>} {
    %c0 = arith.constant 0 : index
    %c0_0 = arith.constant 0 : index
    %0 = vector.load %arg0[%c0, %c0_0] : memref<2x480xf32, #tpu.memory_space<vmem>>, vector<2x480xf32>
    %1 = arith.truncf %0 : vector<2x480xf32> to vector<2x480xbf16>
    %c0_1 = arith.constant 0 : index
    %c0_2 = arith.constant 0 : index
    %2 = vector.load %arg4[%c0_1, %c0_2] : memref<480x512xbf16, #tpu.memory_space<vmem>>, vector<480x512xbf16>
    %cst = arith.constant dense<0.000000e+00> : vector<2x512xf32>
    %3 = tpu.matmul %1, %2, %cst {dimension_numbers = #tpu.dot_dimension_numbers<[1], [0], [0], [1], [0, 0, 1, 1], [], []>} : vector<2x480xbf16>, vector<480x512xbf16>, vector<2x512xf32> -> vector<2x512xf32>
    %c0_3 = arith.constant 0 : index
    %c0_4 = arith.constant 0 : index
    %4 = vector.load %arg1[%c0_3, %c0_4] : memref<2x480xf32, #tpu.memory_space<vmem>>, vector<2x480xf32>
    %5 = arith.truncf %4 : vector<2x480xf32> to vector<2x480xbf16>
    %c0_5 = arith.constant 0 : index
    %c0_6 = arith.constant 0 : index
    %6 = vector.load %arg5[%c0_5, %c0_6] : memref<480x512xbf16, #tpu.memory_space<vmem>>, vector<480x512xbf16>
    %cst_7 = arith.constant dense<0.000000e+00> : vector<2x512xf32>
    %7 = tpu.matmul %5, %6, %cst_7 {dimension_numbers = #tpu.dot_dimension_numbers<[1], [0], [0], [1], [0, 0, 1, 1], [], []>} : vector<2x480xbf16>, vector<480x512xbf16>, vector<2x512xf32> -> vector<2x512xf32>
    %8 = arith.addf %3, %7 : vector<2x512xf32>
    %c0_8 = arith.constant 0 : index
    %c0_9 = arith.constant 0 : index
    %9 = vector.load %arg2[%c0_8, %c0_9] : memref<2x672xf32, #tpu.memory_space<vmem>>, vector<2x672xf32>
    %10 = arith.truncf %9 : vector<2x672xf32> to vector<2x672xbf16>
    %c0_10 = arith.constant 0 : index
    %c0_11 = arith.constant 0 : index
    %11 = vector.load %arg6[%c0_10, %c0_11] : memref<672x512xbf16, #tpu.memory_space<vmem>>, vector<672x512xbf16>
    %cst_12 = arith.constant dense<0.000000e+00> : vector<2x512xf32>
    %12 = tpu.matmul %10, %11, %cst_12 {dimension_numbers = #tpu.dot_dimension_numbers<[1], [0], [0], [1], [0, 0, 1, 1], [], []>} : vector<2x672xbf16>, vector<672x512xbf16>, vector<2x512xf32> -> vector<2x512xf32>
    %13 = arith.addf %8, %12 : vector<2x512xf32>
    %c0_13 = arith.constant 0 : index
    %c0_14 = arith.constant 0 : index
    %14 = vector.load %arg3[%c0_13, %c0_14] : memref<2x32xf32, #tpu.memory_space<vmem>>, vector<2x32xf32>
    %15 = arith.truncf %14 : vector<2x32xf32> to vector<2x32xbf16>
    %c0_15 = arith.constant 0 : index
    %c0_16 = arith.constant 0 : index
    %16 = vector.load %arg7[%c0_15, %c0_16] : memref<32x512xbf16, #tpu.memory_space<vmem>>, vector<32x512xbf16>
    %cst_17 = arith.constant dense<0.000000e+00> : vector<2x512xf32>
    %17 = tpu.matmul %15, %16, %cst_17 {dimension_numbers = #tpu.dot_dimension_numbers<[1], [0], [0], [1], [0, 0, 1, 1], [], []>} : vector<2x32xbf16>, vector<32x512xbf16>, vector<2x512xf32> -> vector<2x512xf32>
    %18 = arith.addf %13, %17 : vector<2x512xf32>
    %c0_18 = arith.constant 0 : index
    %c0_19 = arith.constant 0 : index
    %19 = vector.load %arg8[%c0_18, %c0_19] : memref<1x512xf32, #tpu.memory_space<vmem>>, vector<1x512xf32>
    %20 = vector.broadcast %19 : vector<1x512xf32> to vector<2x512xf32>
    %21 = arith.addf %18, %20 : vector<2x512xf32>
    %cst_20 = arith.constant 0.000000e+00 : f32
    %22 = vector.broadcast %cst_20 : f32 to vector<2x512xf32>
    %23 = arith.maximumf %21, %22 : vector<2x512xf32>
    %24 = arith.truncf %23 : vector<2x512xf32> to vector<2x512xbf16>
    %c0_21 = arith.constant 0 : index
    %c0_22 = arith.constant 0 : index
    %25 = vector.load %arg9[%c0_21, %c0_22] : memref<512x64xbf16, #tpu.memory_space<vmem>>, vector<512x64xbf16>
    %cst_23 = arith.constant dense<0.000000e+00> : vector<2x64xf32>
    %26 = tpu.matmul %24, %25, %cst_23 {dimension_numbers = #tpu.dot_dimension_numbers<[1], [0], [0], [1], [0, 0, 1, 1], [], []>} : vector<2x512xbf16>, vector<512x64xbf16>, vector<2x64xf32> -> vector<2x64xf32>
    %c0_24 = arith.constant 0 : index
    %c0_25 = arith.constant 0 : index
    %27 = vector.load %arg10[%c0_24, %c0_25] : memref<1x64xf32, #tpu.memory_space<vmem>>, vector<1x64xf32>
    %28 = vector.broadcast %27 : vector<1x64xf32> to vector<2x64xf32>
    %29 = arith.addf %26, %28 : vector<2x64xf32>
    %cst_26 = arith.constant 0.000000e+00 : f32
    %30 = vector.broadcast %cst_26 : f32 to vector<2x64xf32>
    %31 = arith.maximumf %29, %30 : vector<2x64xf32>
    %c0_27 = arith.constant 0 : index
    %c0_28 = arith.constant 0 : index
    %32 = vector.load %arg11[%c0_27, %c0_28] : memref<2x64xf32, #tpu.memory_space<vmem>>, vector<2x64xf32>
    tpu.vector_store %arg11[%c0_27, %c0_28], %31 {strides = array<i32>} : memref<2x64xf32, #tpu.memory_space<vmem>>, vector<2x64xf32>,
    return
  }
}

module attributes {stable_mosaic.version = 11 : i64} {
  func.func @_lstm_head_kernel(%arg0: memref<2x14x18xf32, #tpu.memory_space<vmem>>, %arg1: memref<18x256xf32, #tpu.memory_space<vmem>>, %arg2: memref<64x256xf32, #tpu.memory_space<vmem>>, %arg3: memref<1x256xf32, #tpu.memory_space<vmem>>, %arg4: memref<128x256xf32, #tpu.memory_space<vmem>>, %arg5: memref<1x256xf32, #tpu.memory_space<vmem>>, %arg6: memref<64x32xf32, #tpu.memory_space<vmem>>, %arg7: memref<1x32xf32, #tpu.memory_space<vmem>>, %arg8: memref<2x32xf32, #tpu.memory_space<vmem>>) attributes {dimension_semantics = [], scalar_prefetch = 0 : i64, scratch_operands = 0 : i64, tpu.core_type = #tpu.core_type<tc>} {
    %c0 = arith.constant 0 : index
    %c0_0 = arith.constant 0 : index
    %c0_1 = arith.constant 0 : index
    %0 = vector.load %arg0[%c0, %c0_0, %c0_1] : memref<2x14x18xf32, #tpu.memory_space<vmem>>, vector<2x14x18xf32>
    %c0_2 = arith.constant 0 : index
    %c0_3 = arith.constant 0 : index
    %1 = vector.load %arg1[%c0_2, %c0_3] : memref<18x256xf32, #tpu.memory_space<vmem>>, vector<18x256xf32>
    %2 = vector.shape_cast %1 : vector<18x256xf32> to vector<1x18x256xf32>
    %3 = vector.shape_cast %2 : vector<1x18x256xf32> to vector<1x18x256xf32>
    %4 = vector.broadcast %3 : vector<1x18x256xf32> to vector<2x18x256xf32>
    "tpu.trace_start"() <{level = 10 : i32, message = "btf,bfg->btg"}> : () -> ()
    %cst = arith.constant dense<0.000000e+00> : vector<2x14x256xf32>
    %5 = tpu.matmul %0, %4, %cst {dimension_numbers = #tpu.dot_dimension_numbers<[2], [1], [1], [2], [0, 0, 0, 1, 1, 2], [0], [0]>} : vector<2x14x18xf32>, vector<2x18x256xf32>, vector<2x14x256xf32> -> vector<2x14x256xf32>
    "tpu.trace_stop"() : () -> ()
    %c0_4 = arith.constant 0 : index
    %c0_5 = arith.constant 0 : index
    %6 = vector.load %arg2[%c0_4, %c0_5] : memref<64x256xf32, #tpu.memory_space<vmem>>, vector<64x256xf32>
    %c0_6 = arith.constant 0 : index
    %c0_7 = arith.constant 0 : index
    %7 = vector.load %arg3[%c0_6, %c0_7] : memref<1x256xf32, #tpu.memory_space<vmem>>, vector<1x256xf32>
    %c0_8 = arith.constant 0 : index
    %c0_9 = arith.constant 0 : index
    %8 = vector.load %arg4[%c0_8, %c0_9] : memref<128x256xf32, #tpu.memory_space<vmem>>, vector<128x256xf32>
    %c0_10 = arith.constant 0 : index
    %c0_11 = arith.constant 0 : index
    %9 = vector.load %arg5[%c0_10, %c0_11] : memref<1x256xf32, #tpu.memory_space<vmem>>, vector<1x256xf32>
    %cst_12 = arith.constant 0.000000e+00 : f32
    %10 = vector.broadcast %cst_12 : f32 to vector<2x64xf32>
    %cst_13 = arith.constant 0.000000e+00 : f32
    %11 = vector.broadcast %cst_13 : f32 to vector<2x64xf32>
    %cst_14 = arith.constant 0.000000e+00 : f32
    %12 = vector.broadcast %cst_14 : f32 to vector<2x64xf32>
    %cst_15 = arith.constant 0.000000e+00 : f32
    %13 = vector.broadcast %cst_15 : f32 to vector<2x64xf32>
    %14 = vector.extract_strided_slice %5 {offsets = [0, 0, 0], sizes = [2, 1, 256], strides = [1, 1, 1]} : vector<2x14x256xf32> to vector<2x1x256xf32>
    %15 = vector.shape_cast %14 : vector<2x1x256xf32> to vector<2x256xf32>
    %16 = vector.broadcast %7 : vector<1x256xf32> to vector<2x256xf32>
    %17 = arith.addf %15, %16 : vector<2x256xf32>
    %cst_16 = arith.constant dense<0.000000e+00> : vector<2x256xf32>
    %18 = tpu.matmul %10, %6, %cst_16 {dimension_numbers = #tpu.dot_dimension_numbers<[1], [0], [0], [1], [0, 0, 1, 1], [], []>} : vector<2x64xf32>, vector<64x256xf32>, vector<2x256xf32> -> vector<2x256xf32>
    %19 = arith.addf %17, %18 : vector<2x256xf32>
    %20 = vector.extract_strided_slice %19 {offsets = [0, 0], sizes = [2, 192], strides = [1, 1]} : vector<2x256xf32> to vector<2x192xf32>
    %21 = arith.negf %20 : vector<2x192xf32>
    %22 = math.exp %21 : vector<2x192xf32>
    %cst_17 = arith.constant 1.000000e+00 : f32
    %23 = vector.broadcast %cst_17 : f32 to vector<2x192xf32>
    %24 = arith.addf %23, %22 : vector<2x192xf32>
    %25 = arith.divf %23, %24 : vector<2x192xf32>
    %26 = vector.extract_strided_slice %19 {offsets = [0, 192], sizes = [2, 64], strides = [1, 1]} : vector<2x256xf32> to vector<2x64xf32>
    %27 = math.tanh %26 : vector<2x64xf32>
    %28 = vector.extract_strided_slice %25 {offsets = [0, 0], sizes = [2, 64], strides = [1, 1]} : vector<2x192xf32> to vector<2x64xf32>
    %29 = vector.extract_strided_slice %25 {offsets = [0, 64], sizes = [2, 64], strides = [1, 1]} : vector<2x192xf32> to vector<2x64xf32>
    %30 = vector.extract_strided_slice %25 {offsets = [0, 128], sizes = [2, 64], strides = [1, 1]} : vector<2x192xf32> to vector<2x64xf32>
    %31 = arith.mulf %29, %11 : vector<2x64xf32>
    %32 = arith.mulf %28, %27 : vector<2x64xf32>
    %33 = arith.addf %31, %32 : vector<2x64xf32>
    %34 = math.tanh %33 : vector<2x64xf32>
    %35 = arith.mulf %30, %34 : vector<2x64xf32>
    %36 = tpu.concatenate %35, %12 in 1 : vector<2x64xf32>, vector<2x64xf32> -> vector<2x128xf32>
    %cst_18 = arith.constant dense<0.000000e+00> : vector<2x256xf32>
    %37 = tpu.matmul %36, %8, %cst_18 {dimension_numbers = #tpu.dot_dimension_numbers<[1], [0], [0], [1], [0, 0, 1, 1], [], []>} : vector<2x128xf32>, vector<128x256xf32>, vector<2x256xf32> -> vector<2x256xf32>
    %38 = vector.broadcast %9 : vector<1x256xf32> to vector<2x256xf32>
    %39 = arith.addf %38, %37 : vector<2x256xf32>
    %40 = vector.extract_strided_slice %39 {offsets = [0, 0], sizes = [2, 192], strides = [1, 1]} : vector<2x256xf32> to vector<2x192xf32>
    %41 = arith.negf %40 : vector<2x192xf32>
    %42 = math.exp %41 : vector<2x192xf32>
    %cst_19 = arith.constant 1.000000e+00 : f32
    %43 = vector.broadcast %cst_19 : f32 to vector<2x192xf32>
    %44 = arith.addf %43, %42 : vector<2x192xf32>
    %45 = arith.divf %43, %44 : vector<2x192xf32>
    %46 = vector.extract_strided_slice %39 {offsets = [0, 192], sizes = [2, 64], strides = [1, 1]} : vector<2x256xf32> to vector<2x64xf32>
    %47 = math.tanh %46 : vector<2x64xf32>
    %48 = vector.extract_strided_slice %45 {offsets = [0, 0], sizes = [2, 64], strides = [1, 1]} : vector<2x192xf32> to vector<2x64xf32>
    %49 = vector.extract_strided_slice %45 {offsets = [0, 64], sizes = [2, 64], strides = [1, 1]} : vector<2x192xf32> to vector<2x64xf32>
    %50 = vector.extract_strided_slice %45 {offsets = [0, 128], sizes = [2, 64], strides = [1, 1]} : vector<2x192xf32> to vector<2x64xf32>
    %51 = arith.mulf %49, %13 : vector<2x64xf32>
    %52 = arith.mulf %48, %47 : vector<2x64xf32>
    %53 = arith.addf %51, %52 : vector<2x64xf32>
    %54 = math.tanh %53 : vector<2x64xf32>
    %55 = arith.mulf %50, %54 : vector<2x64xf32>
    %56 = vector.extract_strided_slice %5 {offsets = [0, 1, 0], sizes = [2, 1, 256], strides = [1, 1, 1]} : vector<2x14x256xf32> to vector<2x1x256xf32>
    %57 = vector.shape_cast %56 : vector<2x1x256xf32> to vector<2x256xf32>
    %58 = vector.broadcast %7 : vector<1x256xf32> to vector<2x256xf32>
    %59 = arith.addf %57, %58 : vector<2x256xf32>
    %cst_20 = arith.constant dense<0.000000e+00> : vector<2x256xf32>
    %60 = tpu.matmul %35, %6, %cst_20 {dimension_numbers = #tpu.dot_dimension_numbers<[1], [0], [0], [1], [0, 0, 1, 1], [], []>} : vector<2x64xf32>, vector<64x256xf32>, vector<2x256xf32> -> vector<2x256xf32>
    %61 = arith.addf %59, %60 : vector<2x256xf32>
    %62 = vector.extract_strided_slice %61 {offsets = [0, 0], sizes = [2, 192], strides = [1, 1]} : vector<2x256xf32> to vector<2x192xf32>
    %63 = arith.negf %62 : vector<2x192xf32>
    %64 = math.exp %63 : vector<2x192xf32>
    %cst_21 = arith.constant 1.000000e+00 : f32
    %65 = vector.broadcast %cst_21 : f32 to vector<2x192xf32>
    %66 = arith.addf %65, %64 : vector<2x192xf32>
    %67 = arith.divf %65, %66 : vector<2x192xf32>
    %68 = vector.extract_strided_slice %61 {offsets = [0, 192], sizes = [2, 64], strides = [1, 1]} : vector<2x256xf32> to vector<2x64xf32>
    %69 = math.tanh %68 : vector<2x64xf32>
    %70 = vector.extract_strided_slice %67 {offsets = [0, 0], sizes = [2, 64], strides = [1, 1]} : vector<2x192xf32> to vector<2x64xf32>
    %71 = vector.extract_strided_slice %67 {offsets = [0, 64], sizes = [2, 64], strides = [1, 1]} : vector<2x192xf32> to vector<2x64xf32>
    %72 = vector.extract_strided_slice %67 {offsets = [0, 128], sizes = [2, 64], strides = [1, 1]} : vector<2x192xf32> to vector<2x64xf32>
    %73 = arith.mulf %71, %33 : vector<2x64xf32>
    %74 = arith.mulf %70, %69 : vector<2x64xf32>
    %75 = arith.addf %73, %74 : vector<2x64xf32>
    %76 = math.tanh %75 : vector<2x64xf32>
    %77 = arith.mulf %72, %76 : vector<2x64xf32>
    %78 = tpu.concatenate %77, %55 in 1 : vector<2x64xf32>, vector<2x64xf32> -> vector<2x128xf32>
    %cst_22 = arith.constant dense<0.000000e+00> : vector<2x256xf32>
    %79 = tpu.matmul %78, %8, %cst_22 {dimension_numbers = #tpu.dot_dimension_numbers<[1], [0], [0], [1], [0, 0, 1, 1], [], []>} : vector<2x128xf32>, vector<128x256xf32>, vector<2x256xf32> -> vector<2x256xf32>
    %80 = vector.broadcast %9 : vector<1x256xf32> to vector<2x256xf32>
    %81 = arith.addf %80, %79 : vector<2x256xf32>
    %82 = vector.extract_strided_slice %81 {offsets = [0, 0], sizes = [2, 192], strides = [1, 1]} : vector<2x256xf32> to vector<2x192xf32>
    %83 = arith.negf %82 : vector<2x192xf32>
    %84 = math.exp %83 : vector<2x192xf32>
    %cst_23 = arith.constant 1.000000e+00 : f32
    %85 = vector.broadcast %cst_23 : f32 to vector<2x192xf32>
    %86 = arith.addf %85, %84 : vector<2x192xf32>
    %87 = arith.divf %85, %86 : vector<2x192xf32>
    %88 = vector.extract_strided_slice %81 {offsets = [0, 192], sizes = [2, 64], strides = [1, 1]} : vector<2x256xf32> to vector<2x64xf32>
    %89 = math.tanh %88 : vector<2x64xf32>
    %90 = vector.extract_strided_slice %87 {offsets = [0, 0], sizes = [2, 64], strides = [1, 1]} : vector<2x192xf32> to vector<2x64xf32>
    %91 = vector.extract_strided_slice %87 {offsets = [0, 64], sizes = [2, 64], strides = [1, 1]} : vector<2x192xf32> to vector<2x64xf32>
    %92 = vector.extract_strided_slice %87 {offsets = [0, 128], sizes = [2, 64], strides = [1, 1]} : vector<2x192xf32> to vector<2x64xf32>
    %93 = arith.mulf %91, %53 : vector<2x64xf32>
    %94 = arith.mulf %90, %89 : vector<2x64xf32>
    %95 = arith.addf %93, %94 : vector<2x64xf32>
    %96 = math.tanh %95 : vector<2x64xf32>
    %97 = arith.mulf %92, %96 : vector<2x64xf32>
    %98 = vector.extract_strided_slice %5 {offsets = [0, 2, 0], sizes = [2, 1, 256], strides = [1, 1, 1]} : vector<2x14x256xf32> to vector<2x1x256xf32>
    %99 = vector.shape_cast %98 : vector<2x1x256xf32> to vector<2x256xf32>
    %100 = vector.broadcast %7 : vector<1x256xf32> to vector<2x256xf32>
    %101 = arith.addf %99, %100 : vector<2x256xf32>
    %cst_24 = arith.constant dense<0.000000e+00> : vector<2x256xf32>
    %102 = tpu.matmul %77, %6, %cst_24 {dimension_numbers = #tpu.dot_dimension_numbers<[1], [0], [0], [1], [0, 0, 1, 1], [], []>} : vector<2x64xf32>, vector<64x256xf32>, vector<2x256xf32> -> vector<2x256xf32>
    %103 = arith.addf %101, %102 : vector<2x256xf32>
    %104 = vector.extract_strided_slice %103 {offsets = [0, 0], sizes = [2, 192], strides = [1, 1]} : vector<2x256xf32> to vector<2x192xf32>
    %105 = arith.negf %104 : vector<2x192xf32>
    %106 = math.exp %105 : vector<2x192xf32>
    %cst_25 = arith.constant 1.000000e+00 : f32
    %107 = vector.broadcast %cst_25 : f32 to vector<2x192xf32>
    %108 = arith.addf %107, %106 : vector<2x192xf32>
    %109 = arith.divf %107, %108 : vector<2x192xf32>
    %110 = vector.extract_strided_slice %103 {offsets = [0, 192], sizes = [2, 64], strides = [1, 1]} : vector<2x256xf32> to vector<2x64xf32>
    %111 = math.tanh %110 : vector<2x64xf32>
    %112 = vector.extract_strided_slice %109 {offsets = [0, 0], sizes = [2, 64], strides = [1, 1]} : vector<2x192xf32> to vector<2x64xf32>
    %113 = vector.extract_strided_slice %109 {offsets = [0, 64], sizes = [2, 64], strides = [1, 1]} : vector<2x192xf32> to vector<2x64xf32>
    %114 = vector.extract_strided_slice %109 {offsets = [0, 128], sizes = [2, 64], strides = [1, 1]} : vector<2x192xf32> to vector<2x64xf32>
    %115 = arith.mulf %113, %75 : vector<2x64xf32>
    %116 = arith.mulf %112, %111 : vector<2x64xf32>
    %117 = arith.addf %115, %116 : vector<2x64xf32>
    %118 = math.tanh %117 : vector<2x64xf32>
    %119 = arith.mulf %114, %118 : vector<2x64xf32>
    %120 = tpu.concatenate %119, %97 in 1 : vector<2x64xf32>, vector<2x64xf32> -> vector<2x128xf32>
    %cst_26 = arith.constant dense<0.000000e+00> : vector<2x256xf32>
    %121 = tpu.matmul %120, %8, %cst_26 {dimension_numbers = #tpu.dot_dimension_numbers<[1], [0], [0], [1], [0, 0, 1, 1], [], []>} : vector<2x128xf32>, vector<128x256xf32>, vector<2x256xf32> -> vector<2x256xf32>
    %122 = vector.broadcast %9 : vector<1x256xf32> to vector<2x256xf32>
    %123 = arith.addf %122, %121 : vector<2x256xf32>
    %124 = vector.extract_strided_slice %123 {offsets = [0, 0], sizes = [2, 192], strides = [1, 1]} : vector<2x256xf32> to vector<2x192xf32>
    %125 = arith.negf %124 : vector<2x192xf32>
    %126 = math.exp %125 : vector<2x192xf32>
    %cst_27 = arith.constant 1.000000e+00 : f32
    %127 = vector.broadcast %cst_27 : f32 to vector<2x192xf32>
    %128 = arith.addf %127, %126 : vector<2x192xf32>
    %129 = arith.divf %127, %128 : vector<2x192xf32>
    %130 = vector.extract_strided_slice %123 {offsets = [0, 192], sizes = [2, 64], strides = [1, 1]} : vector<2x256xf32> to vector<2x64xf32>
    %131 = math.tanh %130 : vector<2x64xf32>
    %132 = vector.extract_strided_slice %129 {offsets = [0, 0], sizes = [2, 64], strides = [1, 1]} : vector<2x192xf32> to vector<2x64xf32>
    %133 = vector.extract_strided_slice %129 {offsets = [0, 64], sizes = [2, 64], strides = [1, 1]} : vector<2x192xf32> to vector<2x64xf32>
    %134 = vector.extract_strided_slice %129 {offsets = [0, 128], sizes = [2, 64], strides = [1, 1]} : vector<2x192xf32> to vector<2x64xf32>
    %135 = arith.mulf %133, %95 : vector<2x64xf32>
    %136 = arith.mulf %132, %131 : vector<2x64xf32>
    %137 = arith.addf %135, %136 : vector<2x64xf32>
    %138 = math.tanh %137 : vector<2x64xf32>
    %139 = arith.mulf %134, %138 : vector<2x64xf32>
    %140 = vector.extract_strided_slice %5 {offsets = [0, 3, 0], sizes = [2, 1, 256], strides = [1, 1, 1]} : vector<2x14x256xf32> to vector<2x1x256xf32>
    %141 = vector.shape_cast %140 : vector<2x1x256xf32> to vector<2x256xf32>
    %142 = vector.broadcast %7 : vector<1x256xf32> to vector<2x256xf32>
    %143 = arith.addf %141, %142 : vector<2x256xf32>
    %cst_28 = arith.constant dense<0.000000e+00> : vector<2x256xf32>
    %144 = tpu.matmul %119, %6, %cst_28 {dimension_numbers = #tpu.dot_dimension_numbers<[1], [0], [0], [1], [0, 0, 1, 1], [], []>} : vector<2x64xf32>, vector<64x256xf32>, vector<2x256xf32> -> vector<2x256xf32>
    %145 = arith.addf %143, %144 : vector<2x256xf32>
    %146 = vector.extract_strided_slice %145 {offsets = [0, 0], sizes = [2, 192], strides = [1, 1]} : vector<2x256xf32> to vector<2x192xf32>
    %147 = arith.negf %146 : vector<2x192xf32>
    %148 = math.exp %147 : vector<2x192xf32>
    %cst_29 = arith.constant 1.000000e+00 : f32
    %149 = vector.broadcast %cst_29 : f32 to vector<2x192xf32>
    %150 = arith.addf %149, %148 : vector<2x192xf32>
    %151 = arith.divf %149, %150 : vector<2x192xf32>
    %152 = vector.extract_strided_slice %145 {offsets = [0, 192], sizes = [2, 64], strides = [1, 1]} : vector<2x256xf32> to vector<2x64xf32>
    %153 = math.tanh %152 : vector<2x64xf32>
    %154 = vector.extract_strided_slice %151 {offsets = [0, 0], sizes = [2, 64], strides = [1, 1]} : vector<2x192xf32> to vector<2x64xf32>
    %155 = vector.extract_strided_slice %151 {offsets = [0, 64], sizes = [2, 64], strides = [1, 1]} : vector<2x192xf32> to vector<2x64xf32>
    %156 = vector.extract_strided_slice %151 {offsets = [0, 128], sizes = [2, 64], strides = [1, 1]} : vector<2x192xf32> to vector<2x64xf32>
    %157 = arith.mulf %155, %117 : vector<2x64xf32>
    %158 = arith.mulf %154, %153 : vector<2x64xf32>
    %159 = arith.addf %157, %158 : vector<2x64xf32>
    %160 = math.tanh %159 : vector<2x64xf32>
    %161 = arith.mulf %156, %160 : vector<2x64xf32>
    %162 = tpu.concatenate %161, %139 in 1 : vector<2x64xf32>, vector<2x64xf32> -> vector<2x128xf32>
    %cst_30 = arith.constant dense<0.000000e+00> : vector<2x256xf32>
    %163 = tpu.matmul %162, %8, %cst_30 {dimension_numbers = #tpu.dot_dimension_numbers<[1], [0], [0], [1], [0, 0, 1, 1], [], []>} : vector<2x128xf32>, vector<128x256xf32>, vector<2x256xf32> -> vector<2x256xf32>
    %164 = vector.broadcast %9 : vector<1x256xf32> to vector<2x256xf32>
    %165 = arith.addf %164, %163 : vector<2x256xf32>
    %166 = vector.extract_strided_slice %165 {offsets = [0, 0], sizes = [2, 192], strides = [1, 1]} : vector<2x256xf32> to vector<2x192xf32>
    %167 = arith.negf %166 : vector<2x192xf32>
    %168 = math.exp %167 : vector<2x192xf32>
    %cst_31 = arith.constant 1.000000e+00 : f32
    %169 = vector.broadcast %cst_31 : f32 to vector<2x192xf32>
    %170 = arith.addf %169, %168 : vector<2x192xf32>
    %171 = arith.divf %169, %170 : vector<2x192xf32>
    %172 = vector.extract_strided_slice %165 {offsets = [0, 192], sizes = [2, 64], strides = [1, 1]} : vector<2x256xf32> to vector<2x64xf32>
    %173 = math.tanh %172 : vector<2x64xf32>
    %174 = vector.extract_strided_slice %171 {offsets = [0, 0], sizes = [2, 64], strides = [1, 1]} : vector<2x192xf32> to vector<2x64xf32>
    %175 = vector.extract_strided_slice %171 {offsets = [0, 64], sizes = [2, 64], strides = [1, 1]} : vector<2x192xf32> to vector<2x64xf32>
    %176 = vector.extract_strided_slice %171 {offsets = [0, 128], sizes = [2, 64], strides = [1, 1]} : vector<2x192xf32> to vector<2x64xf32>
    %177 = arith.mulf %175, %137 : vector<2x64xf32>
    %178 = arith.mulf %174, %173 : vector<2x64xf32>
    %179 = arith.addf %177, %178 : vector<2x64xf32>
    %180 = math.tanh %179 : vector<2x64xf32>
    %181 = arith.mulf %176, %180 : vector<2x64xf32>
    %182 = vector.extract_strided_slice %5 {offsets = [0, 4, 0], sizes = [2, 1, 256], strides = [1, 1, 1]} : vector<2x14x256xf32> to vector<2x1x256xf32>
    %183 = vector.shape_cast %182 : vector<2x1x256xf32> to vector<2x256xf32>
    %184 = vector.broadcast %7 : vector<1x256xf32> to vector<2x256xf32>
    %185 = arith.addf %183, %184 : vector<2x256xf32>
    %cst_32 = arith.constant dense<0.000000e+00> : vector<2x256xf32>
    %186 = tpu.matmul %161, %6, %cst_32 {dimension_numbers = #tpu.dot_dimension_numbers<[1], [0], [0], [1], [0, 0, 1, 1], [], []>} : vector<2x64xf32>, vector<64x256xf32>, vector<2x256xf32> -> vector<2x256xf32>
    %187 = arith.addf %185, %186 : vector<2x256xf32>
    %188 = vector.extract_strided_slice %187 {offsets = [0, 0], sizes = [2, 192], strides = [1, 1]} : vector<2x256xf32> to vector<2x192xf32>
    %189 = arith.negf %188 : vector<2x192xf32>
    %190 = math.exp %189 : vector<2x192xf32>
    %cst_33 = arith.constant 1.000000e+00 : f32
    %191 = vector.broadcast %cst_33 : f32 to vector<2x192xf32>
    %192 = arith.addf %191, %190 : vector<2x192xf32>
    %193 = arith.divf %191, %192 : vector<2x192xf32>
    %194 = vector.extract_strided_slice %187 {offsets = [0, 192], sizes = [2, 64], strides = [1, 1]} : vector<2x256xf32> to vector<2x64xf32>
    %195 = math.tanh %194 : vector<2x64xf32>
    %196 = vector.extract_strided_slice %193 {offsets = [0, 0], sizes = [2, 64], strides = [1, 1]} : vector<2x192xf32> to vector<2x64xf32>
    %197 = vector.extract_strided_slice %193 {offsets = [0, 64], sizes = [2, 64], strides = [1, 1]} : vector<2x192xf32> to vector<2x64xf32>
    %198 = vector.extract_strided_slice %193 {offsets = [0, 128], sizes = [2, 64], strides = [1, 1]} : vector<2x192xf32> to vector<2x64xf32>
    %199 = arith.mulf %197, %159 : vector<2x64xf32>
    %200 = arith.mulf %196, %195 : vector<2x64xf32>
    %201 = arith.addf %199, %200 : vector<2x64xf32>
    %202 = math.tanh %201 : vector<2x64xf32>
    %203 = arith.mulf %198, %202 : vector<2x64xf32>
    %204 = tpu.concatenate %203, %181 in 1 : vector<2x64xf32>, vector<2x64xf32> -> vector<2x128xf32>
    %cst_34 = arith.constant dense<0.000000e+00> : vector<2x256xf32>
    %205 = tpu.matmul %204, %8, %cst_34 {dimension_numbers = #tpu.dot_dimension_numbers<[1], [0], [0], [1], [0, 0, 1, 1], [], []>} : vector<2x128xf32>, vector<128x256xf32>, vector<2x256xf32> -> vector<2x256xf32>
    %206 = vector.broadcast %9 : vector<1x256xf32> to vector<2x256xf32>
    %207 = arith.addf %206, %205 : vector<2x256xf32>
    %208 = vector.extract_strided_slice %207 {offsets = [0, 0], sizes = [2, 192], strides = [1, 1]} : vector<2x256xf32> to vector<2x192xf32>
    %209 = arith.negf %208 : vector<2x192xf32>
    %210 = math.exp %209 : vector<2x192xf32>
    %cst_35 = arith.constant 1.000000e+00 : f32
    %211 = vector.broadcast %cst_35 : f32 to vector<2x192xf32>
    %212 = arith.addf %211, %210 : vector<2x192xf32>
    %213 = arith.divf %211, %212 : vector<2x192xf32>
    %214 = vector.extract_strided_slice %207 {offsets = [0, 192], sizes = [2, 64], strides = [1, 1]} : vector<2x256xf32> to vector<2x64xf32>
    %215 = math.tanh %214 : vector<2x64xf32>
    %216 = vector.extract_strided_slice %213 {offsets = [0, 0], sizes = [2, 64], strides = [1, 1]} : vector<2x192xf32> to vector<2x64xf32>
    %217 = vector.extract_strided_slice %213 {offsets = [0, 64], sizes = [2, 64], strides = [1, 1]} : vector<2x192xf32> to vector<2x64xf32>
    %218 = vector.extract_strided_slice %213 {offsets = [0, 128], sizes = [2, 64], strides = [1, 1]} : vector<2x192xf32> to vector<2x64xf32>
    %219 = arith.mulf %217, %179 : vector<2x64xf32>
    %220 = arith.mulf %216, %215 : vector<2x64xf32>
    %221 = arith.addf %219, %220 : vector<2x64xf32>
    %222 = math.tanh %221 : vector<2x64xf32>
    %223 = arith.mulf %218, %222 : vector<2x64xf32>
    %224 = vector.extract_strided_slice %5 {offsets = [0, 5, 0], sizes = [2, 1, 256], strides = [1, 1, 1]} : vector<2x14x256xf32> to vector<2x1x256xf32>
    %225 = vector.shape_cast %224 : vector<2x1x256xf32> to vector<2x256xf32>
    %226 = vector.broadcast %7 : vector<1x256xf32> to vector<2x256xf32>
    %227 = arith.addf %225, %226 : vector<2x256xf32>
    %cst_36 = arith.constant dense<0.000000e+00> : vector<2x256xf32>
    %228 = tpu.matmul %203, %6, %cst_36 {dimension_numbers = #tpu.dot_dimension_numbers<[1], [0], [0], [1], [0, 0, 1, 1], [], []>} : vector<2x64xf32>, vector<64x256xf32>, vector<2x256xf32> -> vector<2x256xf32>
    %229 = arith.addf %227, %228 : vector<2x256xf32>
    %230 = vector.extract_strided_slice %229 {offsets = [0, 0], sizes = [2, 192], strides = [1, 1]} : vector<2x256xf32> to vector<2x192xf32>
    %231 = arith.negf %230 : vector<2x192xf32>
    %232 = math.exp %231 : vector<2x192xf32>
    %cst_37 = arith.constant 1.000000e+00 : f32
    %233 = vector.broadcast %cst_37 : f32 to vector<2x192xf32>
    %234 = arith.addf %233, %232 : vector<2x192xf32>
    %235 = arith.divf %233, %234 : vector<2x192xf32>
    %236 = vector.extract_strided_slice %229 {offsets = [0, 192], sizes = [2, 64], strides = [1, 1]} : vector<2x256xf32> to vector<2x64xf32>
    %237 = math.tanh %236 : vector<2x64xf32>
    %238 = vector.extract_strided_slice %235 {offsets = [0, 0], sizes = [2, 64], strides = [1, 1]} : vector<2x192xf32> to vector<2x64xf32>
    %239 = vector.extract_strided_slice %235 {offsets = [0, 64], sizes = [2, 64], strides = [1, 1]} : vector<2x192xf32> to vector<2x64xf32>
    %240 = vector.extract_strided_slice %235 {offsets = [0, 128], sizes = [2, 64], strides = [1, 1]} : vector<2x192xf32> to vector<2x64xf32>
    %241 = arith.mulf %239, %201 : vector<2x64xf32>
    %242 = arith.mulf %238, %237 : vector<2x64xf32>
    %243 = arith.addf %241, %242 : vector<2x64xf32>
    %244 = math.tanh %243 : vector<2x64xf32>
    %245 = arith.mulf %240, %244 : vector<2x64xf32>
    %246 = tpu.concatenate %245, %223 in 1 : vector<2x64xf32>, vector<2x64xf32> -> vector<2x128xf32>
    %cst_38 = arith.constant dense<0.000000e+00> : vector<2x256xf32>
    %247 = tpu.matmul %246, %8, %cst_38 {dimension_numbers = #tpu.dot_dimension_numbers<[1], [0], [0], [1], [0, 0, 1, 1], [], []>} : vector<2x128xf32>, vector<128x256xf32>, vector<2x256xf32> -> vector<2x256xf32>
    %248 = vector.broadcast %9 : vector<1x256xf32> to vector<2x256xf32>
    %249 = arith.addf %248, %247 : vector<2x256xf32>
    %250 = vector.extract_strided_slice %249 {offsets = [0, 0], sizes = [2, 192], strides = [1, 1]} : vector<2x256xf32> to vector<2x192xf32>
    %251 = arith.negf %250 : vector<2x192xf32>
    %252 = math.exp %251 : vector<2x192xf32>
    %cst_39 = arith.constant 1.000000e+00 : f32
    %253 = vector.broadcast %cst_39 : f32 to vector<2x192xf32>
    %254 = arith.addf %253, %252 : vector<2x192xf32>
    %255 = arith.divf %253, %254 : vector<2x192xf32>
    %256 = vector.extract_strided_slice %249 {offsets = [0, 192], sizes = [2, 64], strides = [1, 1]} : vector<2x256xf32> to vector<2x64xf32>
    %257 = math.tanh %256 : vector<2x64xf32>
    %258 = vector.extract_strided_slice %255 {offsets = [0, 0], sizes = [2, 64], strides = [1, 1]} : vector<2x192xf32> to vector<2x64xf32>
    %259 = vector.extract_strided_slice %255 {offsets = [0, 64], sizes = [2, 64], strides = [1, 1]} : vector<2x192xf32> to vector<2x64xf32>
    %260 = vector.extract_strided_slice %255 {offsets = [0, 128], sizes = [2, 64], strides = [1, 1]} : vector<2x192xf32> to vector<2x64xf32>
    %261 = arith.mulf %259, %221 : vector<2x64xf32>
    %262 = arith.mulf %258, %257 : vector<2x64xf32>
    %263 = arith.addf %261, %262 : vector<2x64xf32>
    %264 = math.tanh %263 : vector<2x64xf32>
    %265 = arith.mulf %260, %264 : vector<2x64xf32>
    %266 = vector.extract_strided_slice %5 {offsets = [0, 6, 0], sizes = [2, 1, 256], strides = [1, 1, 1]} : vector<2x14x256xf32> to vector<2x1x256xf32>
    %267 = vector.shape_cast %266 : vector<2x1x256xf32> to vector<2x256xf32>
    %268 = vector.broadcast %7 : vector<1x256xf32> to vector<2x256xf32>
    %269 = arith.addf %267, %268 : vector<2x256xf32>
    %cst_40 = arith.constant dense<0.000000e+00> : vector<2x256xf32>
    %270 = tpu.matmul %245, %6, %cst_40 {dimension_numbers = #tpu.dot_dimension_numbers<[1], [0], [0], [1], [0, 0, 1, 1], [], []>} : vector<2x64xf32>, vector<64x256xf32>, vector<2x256xf32> -> vector<2x256xf32>
    %271 = arith.addf %269, %270 : vector<2x256xf32>
    %272 = vector.extract_strided_slice %271 {offsets = [0, 0], sizes = [2, 192], strides = [1, 1]} : vector<2x256xf32> to vector<2x192xf32>
    %273 = arith.negf %272 : vector<2x192xf32>
    %274 = math.exp %273 : vector<2x192xf32>
    %cst_41 = arith.constant 1.000000e+00 : f32
    %275 = vector.broadcast %cst_41 : f32 to vector<2x192xf32>
    %276 = arith.addf %275, %274 : vector<2x192xf32>
    %277 = arith.divf %275, %276 : vector<2x192xf32>
    %278 = vector.extract_strided_slice %271 {offsets = [0, 192], sizes = [2, 64], strides = [1, 1]} : vector<2x256xf32> to vector<2x64xf32>
    %279 = math.tanh %278 : vector<2x64xf32>
    %280 = vector.extract_strided_slice %277 {offsets = [0, 0], sizes = [2, 64], strides = [1, 1]} : vector<2x192xf32> to vector<2x64xf32>
    %281 = vector.extract_strided_slice %277 {offsets = [0, 64], sizes = [2, 64], strides = [1, 1]} : vector<2x192xf32> to vector<2x64xf32>
    %282 = vector.extract_strided_slice %277 {offsets = [0, 128], sizes = [2, 64], strides = [1, 1]} : vector<2x192xf32> to vector<2x64xf32>
    %283 = arith.mulf %281, %243 : vector<2x64xf32>
    %284 = arith.mulf %280, %279 : vector<2x64xf32>
    %285 = arith.addf %283, %284 : vector<2x64xf32>
    %286 = math.tanh %285 : vector<2x64xf32>
    %287 = arith.mulf %282, %286 : vector<2x64xf32>
    %288 = tpu.concatenate %287, %265 in 1 : vector<2x64xf32>, vector<2x64xf32> -> vector<2x128xf32>
    %cst_42 = arith.constant dense<0.000000e+00> : vector<2x256xf32>
    %289 = tpu.matmul %288, %8, %cst_42 {dimension_numbers = #tpu.dot_dimension_numbers<[1], [0], [0], [1], [0, 0, 1, 1], [], []>} : vector<2x128xf32>, vector<128x256xf32>, vector<2x256xf32> -> vector<2x256xf32>
    %290 = vector.broadcast %9 : vector<1x256xf32> to vector<2x256xf32>
    %291 = arith.addf %290, %289 : vector<2x256xf32>
    %292 = vector.extract_strided_slice %291 {offsets = [0, 0], sizes = [2, 192], strides = [1, 1]} : vector<2x256xf32> to vector<2x192xf32>
    %293 = arith.negf %292 : vector<2x192xf32>
    %294 = math.exp %293 : vector<2x192xf32>
    %cst_43 = arith.constant 1.000000e+00 : f32
    %295 = vector.broadcast %cst_43 : f32 to vector<2x192xf32>
    %296 = arith.addf %295, %294 : vector<2x192xf32>
    %297 = arith.divf %295, %296 : vector<2x192xf32>
    %298 = vector.extract_strided_slice %291 {offsets = [0, 192], sizes = [2, 64], strides = [1, 1]} : vector<2x256xf32> to vector<2x64xf32>
    %299 = math.tanh %298 : vector<2x64xf32>
    %300 = vector.extract_strided_slice %297 {offsets = [0, 0], sizes = [2, 64], strides = [1, 1]} : vector<2x192xf32> to vector<2x64xf32>
    %301 = vector.extract_strided_slice %297 {offsets = [0, 64], sizes = [2, 64], strides = [1, 1]} : vector<2x192xf32> to vector<2x64xf32>
    %302 = vector.extract_strided_slice %297 {offsets = [0, 128], sizes = [2, 64], strides = [1, 1]} : vector<2x192xf32> to vector<2x64xf32>
    %303 = arith.mulf %301, %263 : vector<2x64xf32>
    %304 = arith.mulf %300, %299 : vector<2x64xf32>
    %305 = arith.addf %303, %304 : vector<2x64xf32>
    %306 = math.tanh %305 : vector<2x64xf32>
    %307 = arith.mulf %302, %306 : vector<2x64xf32>
    %308 = vector.extract_strided_slice %5 {offsets = [0, 7, 0], sizes = [2, 1, 256], strides = [1, 1, 1]} : vector<2x14x256xf32> to vector<2x1x256xf32>
    %309 = vector.shape_cast %308 : vector<2x1x256xf32> to vector<2x256xf32>
    %310 = vector.broadcast %7 : vector<1x256xf32> to vector<2x256xf32>
    %311 = arith.addf %309, %310 : vector<2x256xf32>
    %cst_44 = arith.constant dense<0.000000e+00> : vector<2x256xf32>
    %312 = tpu.matmul %287, %6, %cst_44 {dimension_numbers = #tpu.dot_dimension_numbers<[1], [0], [0], [1], [0, 0, 1, 1], [], []>} : vector<2x64xf32>, vector<64x256xf32>, vector<2x256xf32> -> vector<2x256xf32>
    %313 = arith.addf %311, %312 : vector<2x256xf32>
    %314 = vector.extract_strided_slice %313 {offsets = [0, 0], sizes = [2, 192], strides = [1, 1]} : vector<2x256xf32> to vector<2x192xf32>
    %315 = arith.negf %314 : vector<2x192xf32>
    %316 = math.exp %315 : vector<2x192xf32>
    %cst_45 = arith.constant 1.000000e+00 : f32
    %317 = vector.broadcast %cst_45 : f32 to vector<2x192xf32>
    %318 = arith.addf %317, %316 : vector<2x192xf32>
    %319 = arith.divf %317, %318 : vector<2x192xf32>
    %320 = vector.extract_strided_slice %313 {offsets = [0, 192], sizes = [2, 64], strides = [1, 1]} : vector<2x256xf32> to vector<2x64xf32>
    %321 = math.tanh %320 : vector<2x64xf32>
    %322 = vector.extract_strided_slice %319 {offsets = [0, 0], sizes = [2, 64], strides = [1, 1]} : vector<2x192xf32> to vector<2x64xf32>
    %323 = vector.extract_strided_slice %319 {offsets = [0, 64], sizes = [2, 64], strides = [1, 1]} : vector<2x192xf32> to vector<2x64xf32>
    %324 = vector.extract_strided_slice %319 {offsets = [0, 128], sizes = [2, 64], strides = [1, 1]} : vector<2x192xf32> to vector<2x64xf32>
    %325 = arith.mulf %323, %285 : vector<2x64xf32>
    %326 = arith.mulf %322, %321 : vector<2x64xf32>
    %327 = arith.addf %325, %326 : vector<2x64xf32>
    %328 = math.tanh %327 : vector<2x64xf32>
    %329 = arith.mulf %324, %328 : vector<2x64xf32>
    %330 = tpu.concatenate %329, %307 in 1 : vector<2x64xf32>, vector<2x64xf32> -> vector<2x128xf32>
    %cst_46 = arith.constant dense<0.000000e+00> : vector<2x256xf32>
    %331 = tpu.matmul %330, %8, %cst_46 {dimension_numbers = #tpu.dot_dimension_numbers<[1], [0], [0], [1], [0, 0, 1, 1], [], []>} : vector<2x128xf32>, vector<128x256xf32>, vector<2x256xf32> -> vector<2x256xf32>
    %332 = vector.broadcast %9 : vector<1x256xf32> to vector<2x256xf32>
    %333 = arith.addf %332, %331 : vector<2x256xf32>
    %334 = vector.extract_strided_slice %333 {offsets = [0, 0], sizes = [2, 192], strides = [1, 1]} : vector<2x256xf32> to vector<2x192xf32>
    %335 = arith.negf %334 : vector<2x192xf32>
    %336 = math.exp %335 : vector<2x192xf32>
    %cst_47 = arith.constant 1.000000e+00 : f32
    %337 = vector.broadcast %cst_47 : f32 to vector<2x192xf32>
    %338 = arith.addf %337, %336 : vector<2x192xf32>
    %339 = arith.divf %337, %338 : vector<2x192xf32>
    %340 = vector.extract_strided_slice %333 {offsets = [0, 192], sizes = [2, 64], strides = [1, 1]} : vector<2x256xf32> to vector<2x64xf32>
    %341 = math.tanh %340 : vector<2x64xf32>
    %342 = vector.extract_strided_slice %339 {offsets = [0, 0], sizes = [2, 64], strides = [1, 1]} : vector<2x192xf32> to vector<2x64xf32>
    %343 = vector.extract_strided_slice %339 {offsets = [0, 64], sizes = [2, 64], strides = [1, 1]} : vector<2x192xf32> to vector<2x64xf32>
    %344 = vector.extract_strided_slice %339 {offsets = [0, 128], sizes = [2, 64], strides = [1, 1]} : vector<2x192xf32> to vector<2x64xf32>
    %345 = arith.mulf %343, %305 : vector<2x64xf32>
    %346 = arith.mulf %342, %341 : vector<2x64xf32>
    %347 = arith.addf %345, %346 : vector<2x64xf32>
    %348 = math.tanh %347 : vector<2x64xf32>
    %349 = arith.mulf %344, %348 : vector<2x64xf32>
    %350 = vector.extract_strided_slice %5 {offsets = [0, 8, 0], sizes = [2, 1, 256], strides = [1, 1, 1]} : vector<2x14x256xf32> to vector<2x1x256xf32>
    %351 = vector.shape_cast %350 : vector<2x1x256xf32> to vector<2x256xf32>
    %352 = vector.broadcast %7 : vector<1x256xf32> to vector<2x256xf32>
    %353 = arith.addf %351, %352 : vector<2x256xf32>
    %cst_48 = arith.constant dense<0.000000e+00> : vector<2x256xf32>
    %354 = tpu.matmul %329, %6, %cst_48 {dimension_numbers = #tpu.dot_dimension_numbers<[1], [0], [0], [1], [0, 0, 1, 1], [], []>} : vector<2x64xf32>, vector<64x256xf32>, vector<2x256xf32> -> vector<2x256xf32>
    %355 = arith.addf %353, %354 : vector<2x256xf32>
    %356 = vector.extract_strided_slice %355 {offsets = [0, 0], sizes = [2, 192], strides = [1, 1]} : vector<2x256xf32> to vector<2x192xf32>
    %357 = arith.negf %356 : vector<2x192xf32>
    %358 = math.exp %357 : vector<2x192xf32>
    %cst_49 = arith.constant 1.000000e+00 : f32
    %359 = vector.broadcast %cst_49 : f32 to vector<2x192xf32>
    %360 = arith.addf %359, %358 : vector<2x192xf32>
    %361 = arith.divf %359, %360 : vector<2x192xf32>
    %362 = vector.extract_strided_slice %355 {offsets = [0, 192], sizes = [2, 64], strides = [1, 1]} : vector<2x256xf32> to vector<2x64xf32>
    %363 = math.tanh %362 : vector<2x64xf32>
    %364 = vector.extract_strided_slice %361 {offsets = [0, 0], sizes = [2, 64], strides = [1, 1]} : vector<2x192xf32> to vector<2x64xf32>
    %365 = vector.extract_strided_slice %361 {offsets = [0, 64], sizes = [2, 64], strides = [1, 1]} : vector<2x192xf32> to vector<2x64xf32>
    %366 = vector.extract_strided_slice %361 {offsets = [0, 128], sizes = [2, 64], strides = [1, 1]} : vector<2x192xf32> to vector<2x64xf32>
    %367 = arith.mulf %365, %327 : vector<2x64xf32>
    %368 = arith.mulf %364, %363 : vector<2x64xf32>
    %369 = arith.addf %367, %368 : vector<2x64xf32>
    %370 = math.tanh %369 : vector<2x64xf32>
    %371 = arith.mulf %366, %370 : vector<2x64xf32>
    %372 = tpu.concatenate %371, %349 in 1 : vector<2x64xf32>, vector<2x64xf32> -> vector<2x128xf32>
    %cst_50 = arith.constant dense<0.000000e+00> : vector<2x256xf32>
    %373 = tpu.matmul %372, %8, %cst_50 {dimension_numbers = #tpu.dot_dimension_numbers<[1], [0], [0], [1], [0, 0, 1, 1], [], []>} : vector<2x128xf32>, vector<128x256xf32>, vector<2x256xf32> -> vector<2x256xf32>
    %374 = vector.broadcast %9 : vector<1x256xf32> to vector<2x256xf32>
    %375 = arith.addf %374, %373 : vector<2x256xf32>
    %376 = vector.extract_strided_slice %375 {offsets = [0, 0], sizes = [2, 192], strides = [1, 1]} : vector<2x256xf32> to vector<2x192xf32>
    %377 = arith.negf %376 : vector<2x192xf32>
    %378 = math.exp %377 : vector<2x192xf32>
    %cst_51 = arith.constant 1.000000e+00 : f32
    %379 = vector.broadcast %cst_51 : f32 to vector<2x192xf32>
    %380 = arith.addf %379, %378 : vector<2x192xf32>
    %381 = arith.divf %379, %380 : vector<2x192xf32>
    %382 = vector.extract_strided_slice %375 {offsets = [0, 192], sizes = [2, 64], strides = [1, 1]} : vector<2x256xf32> to vector<2x64xf32>
    %383 = math.tanh %382 : vector<2x64xf32>
    %384 = vector.extract_strided_slice %381 {offsets = [0, 0], sizes = [2, 64], strides = [1, 1]} : vector<2x192xf32> to vector<2x64xf32>
    %385 = vector.extract_strided_slice %381 {offsets = [0, 64], sizes = [2, 64], strides = [1, 1]} : vector<2x192xf32> to vector<2x64xf32>
    %386 = vector.extract_strided_slice %381 {offsets = [0, 128], sizes = [2, 64], strides = [1, 1]} : vector<2x192xf32> to vector<2x64xf32>
    %387 = arith.mulf %385, %347 : vector<2x64xf32>
    %388 = arith.mulf %384, %383 : vector<2x64xf32>
    %389 = arith.addf %387, %388 : vector<2x64xf32>
    %390 = math.tanh %389 : vector<2x64xf32>
    %391 = arith.mulf %386, %390 : vector<2x64xf32>
    %392 = vector.extract_strided_slice %5 {offsets = [0, 9, 0], sizes = [2, 1, 256], strides = [1, 1, 1]} : vector<2x14x256xf32> to vector<2x1x256xf32>
    %393 = vector.shape_cast %392 : vector<2x1x256xf32> to vector<2x256xf32>
    %394 = vector.broadcast %7 : vector<1x256xf32> to vector<2x256xf32>
    %395 = arith.addf %393, %394 : vector<2x256xf32>
    %cst_52 = arith.constant dense<0.000000e+00> : vector<2x256xf32>
    %396 = tpu.matmul %371, %6, %cst_52 {dimension_numbers = #tpu.dot_dimension_numbers<[1], [0], [0], [1], [0, 0, 1, 1], [], []>} : vector<2x64xf32>, vector<64x256xf32>, vector<2x256xf32> -> vector<2x256xf32>
    %397 = arith.addf %395, %396 : vector<2x256xf32>
    %398 = vector.extract_strided_slice %397 {offsets = [0, 0], sizes = [2, 192], strides = [1, 1]} : vector<2x256xf32> to vector<2x192xf32>
    %399 = arith.negf %398 : vector<2x192xf32>
    %400 = math.exp %399 : vector<2x192xf32>
    %cst_53 = arith.constant 1.000000e+00 : f32
    %401 = vector.broadcast %cst_53 : f32 to vector<2x192xf32>
    %402 = arith.addf %401, %400 : vector<2x192xf32>
    %403 = arith.divf %401, %402 : vector<2x192xf32>
    %404 = vector.extract_strided_slice %397 {offsets = [0, 192], sizes = [2, 64], strides = [1, 1]} : vector<2x256xf32> to vector<2x64xf32>
    %405 = math.tanh %404 : vector<2x64xf32>
    %406 = vector.extract_strided_slice %403 {offsets = [0, 0], sizes = [2, 64], strides = [1, 1]} : vector<2x192xf32> to vector<2x64xf32>
    %407 = vector.extract_strided_slice %403 {offsets = [0, 64], sizes = [2, 64], strides = [1, 1]} : vector<2x192xf32> to vector<2x64xf32>
    %408 = vector.extract_strided_slice %403 {offsets = [0, 128], sizes = [2, 64], strides = [1, 1]} : vector<2x192xf32> to vector<2x64xf32>
    %409 = arith.mulf %407, %369 : vector<2x64xf32>
    %410 = arith.mulf %406, %405 : vector<2x64xf32>
    %411 = arith.addf %409, %410 : vector<2x64xf32>
    %412 = math.tanh %411 : vector<2x64xf32>
    %413 = arith.mulf %408, %412 : vector<2x64xf32>
    %414 = tpu.concatenate %413, %391 in 1 : vector<2x64xf32>, vector<2x64xf32> -> vector<2x128xf32>
    %cst_54 = arith.constant dense<0.000000e+00> : vector<2x256xf32>
    %415 = tpu.matmul %414, %8, %cst_54 {dimension_numbers = #tpu.dot_dimension_numbers<[1], [0], [0], [1], [0, 0, 1, 1], [], []>} : vector<2x128xf32>, vector<128x256xf32>, vector<2x256xf32> -> vector<2x256xf32>
    %416 = vector.broadcast %9 : vector<1x256xf32> to vector<2x256xf32>
    %417 = arith.addf %416, %415 : vector<2x256xf32>
    %418 = vector.extract_strided_slice %417 {offsets = [0, 0], sizes = [2, 192], strides = [1, 1]} : vector<2x256xf32> to vector<2x192xf32>
    %419 = arith.negf %418 : vector<2x192xf32>
    %420 = math.exp %419 : vector<2x192xf32>
    %cst_55 = arith.constant 1.000000e+00 : f32
    %421 = vector.broadcast %cst_55 : f32 to vector<2x192xf32>
    %422 = arith.addf %421, %420 : vector<2x192xf32>
    %423 = arith.divf %421, %422 : vector<2x192xf32>
    %424 = vector.extract_strided_slice %417 {offsets = [0, 192], sizes = [2, 64], strides = [1, 1]} : vector<2x256xf32> to vector<2x64xf32>
    %425 = math.tanh %424 : vector<2x64xf32>
    %426 = vector.extract_strided_slice %423 {offsets = [0, 0], sizes = [2, 64], strides = [1, 1]} : vector<2x192xf32> to vector<2x64xf32>
    %427 = vector.extract_strided_slice %423 {offsets = [0, 64], sizes = [2, 64], strides = [1, 1]} : vector<2x192xf32> to vector<2x64xf32>
    %428 = vector.extract_strided_slice %423 {offsets = [0, 128], sizes = [2, 64], strides = [1, 1]} : vector<2x192xf32> to vector<2x64xf32>
    %429 = arith.mulf %427, %389 : vector<2x64xf32>
    %430 = arith.mulf %426, %425 : vector<2x64xf32>
    %431 = arith.addf %429, %430 : vector<2x64xf32>
    %432 = math.tanh %431 : vector<2x64xf32>
    %433 = arith.mulf %428, %432 : vector<2x64xf32>
    %434 = vector.extract_strided_slice %5 {offsets = [0, 10, 0], sizes = [2, 1, 256], strides = [1, 1, 1]} : vector<2x14x256xf32> to vector<2x1x256xf32>
    %435 = vector.shape_cast %434 : vector<2x1x256xf32> to vector<2x256xf32>
    %436 = vector.broadcast %7 : vector<1x256xf32> to vector<2x256xf32>
    %437 = arith.addf %435, %436 : vector<2x256xf32>
    %cst_56 = arith.constant dense<0.000000e+00> : vector<2x256xf32>
    %438 = tpu.matmul %413, %6, %cst_56 {dimension_numbers = #tpu.dot_dimension_numbers<[1], [0], [0], [1], [0, 0, 1, 1], [], []>} : vector<2x64xf32>, vector<64x256xf32>, vector<2x256xf32> -> vector<2x256xf32>
    %439 = arith.addf %437, %438 : vector<2x256xf32>
    %440 = vector.extract_strided_slice %439 {offsets = [0, 0], sizes = [2, 192], strides = [1, 1]} : vector<2x256xf32> to vector<2x192xf32>
    %441 = arith.negf %440 : vector<2x192xf32>
    %442 = math.exp %441 : vector<2x192xf32>
    %cst_57 = arith.constant 1.000000e+00 : f32
    %443 = vector.broadcast %cst_57 : f32 to vector<2x192xf32>
    %444 = arith.addf %443, %442 : vector<2x192xf32>
    %445 = arith.divf %443, %444 : vector<2x192xf32>
    %446 = vector.extract_strided_slice %439 {offsets = [0, 192], sizes = [2, 64], strides = [1, 1]} : vector<2x256xf32> to vector<2x64xf32>
    %447 = math.tanh %446 : vector<2x64xf32>
    %448 = vector.extract_strided_slice %445 {offsets = [0, 0], sizes = [2, 64], strides = [1, 1]} : vector<2x192xf32> to vector<2x64xf32>
    %449 = vector.extract_strided_slice %445 {offsets = [0, 64], sizes = [2, 64], strides = [1, 1]} : vector<2x192xf32> to vector<2x64xf32>
    %450 = vector.extract_strided_slice %445 {offsets = [0, 128], sizes = [2, 64], strides = [1, 1]} : vector<2x192xf32> to vector<2x64xf32>
    %451 = arith.mulf %449, %411 : vector<2x64xf32>
    %452 = arith.mulf %448, %447 : vector<2x64xf32>
    %453 = arith.addf %451, %452 : vector<2x64xf32>
    %454 = math.tanh %453 : vector<2x64xf32>
    %455 = arith.mulf %450, %454 : vector<2x64xf32>
    %456 = tpu.concatenate %455, %433 in 1 : vector<2x64xf32>, vector<2x64xf32> -> vector<2x128xf32>
    %cst_58 = arith.constant dense<0.000000e+00> : vector<2x256xf32>
    %457 = tpu.matmul %456, %8, %cst_58 {dimension_numbers = #tpu.dot_dimension_numbers<[1], [0], [0], [1], [0, 0, 1, 1], [], []>} : vector<2x128xf32>, vector<128x256xf32>, vector<2x256xf32> -> vector<2x256xf32>
    %458 = vector.broadcast %9 : vector<1x256xf32> to vector<2x256xf32>
    %459 = arith.addf %458, %457 : vector<2x256xf32>
    %460 = vector.extract_strided_slice %459 {offsets = [0, 0], sizes = [2, 192], strides = [1, 1]} : vector<2x256xf32> to vector<2x192xf32>
    %461 = arith.negf %460 : vector<2x192xf32>
    %462 = math.exp %461 : vector<2x192xf32>
    %cst_59 = arith.constant 1.000000e+00 : f32
    %463 = vector.broadcast %cst_59 : f32 to vector<2x192xf32>
    %464 = arith.addf %463, %462 : vector<2x192xf32>
    %465 = arith.divf %463, %464 : vector<2x192xf32>
    %466 = vector.extract_strided_slice %459 {offsets = [0, 192], sizes = [2, 64], strides = [1, 1]} : vector<2x256xf32> to vector<2x64xf32>
    %467 = math.tanh %466 : vector<2x64xf32>
    %468 = vector.extract_strided_slice %465 {offsets = [0, 0], sizes = [2, 64], strides = [1, 1]} : vector<2x192xf32> to vector<2x64xf32>
    %469 = vector.extract_strided_slice %465 {offsets = [0, 64], sizes = [2, 64], strides = [1, 1]} : vector<2x192xf32> to vector<2x64xf32>
    %470 = vector.extract_strided_slice %465 {offsets = [0, 128], sizes = [2, 64], strides = [1, 1]} : vector<2x192xf32> to vector<2x64xf32>
    %471 = arith.mulf %469, %431 : vector<2x64xf32>
    %472 = arith.mulf %468, %467 : vector<2x64xf32>
    %473 = arith.addf %471, %472 : vector<2x64xf32>
    %474 = math.tanh %473 : vector<2x64xf32>
    %475 = arith.mulf %470, %474 : vector<2x64xf32>
    %476 = vector.extract_strided_slice %5 {offsets = [0, 11, 0], sizes = [2, 1, 256], strides = [1, 1, 1]} : vector<2x14x256xf32> to vector<2x1x256xf32>
    %477 = vector.shape_cast %476 : vector<2x1x256xf32> to vector<2x256xf32>
    %478 = vector.broadcast %7 : vector<1x256xf32> to vector<2x256xf32>
    %479 = arith.addf %477, %478 : vector<2x256xf32>
    %cst_60 = arith.constant dense<0.000000e+00> : vector<2x256xf32>
    %480 = tpu.matmul %455, %6, %cst_60 {dimension_numbers = #tpu.dot_dimension_numbers<[1], [0], [0], [1], [0, 0, 1, 1], [], []>} : vector<2x64xf32>, vector<64x256xf32>, vector<2x256xf32> -> vector<2x256xf32>
    %481 = arith.addf %479, %480 : vector<2x256xf32>
    %482 = vector.extract_strided_slice %481 {offsets = [0, 0], sizes = [2, 192], strides = [1, 1]} : vector<2x256xf32> to vector<2x192xf32>
    %483 = arith.negf %482 : vector<2x192xf32>
    %484 = math.exp %483 : vector<2x192xf32>
    %cst_61 = arith.constant 1.000000e+00 : f32
    %485 = vector.broadcast %cst_61 : f32 to vector<2x192xf32>
    %486 = arith.addf %485, %484 : vector<2x192xf32>
    %487 = arith.divf %485, %486 : vector<2x192xf32>
    %488 = vector.extract_strided_slice %481 {offsets = [0, 192], sizes = [2, 64], strides = [1, 1]} : vector<2x256xf32> to vector<2x64xf32>
    %489 = math.tanh %488 : vector<2x64xf32>
    %490 = vector.extract_strided_slice %487 {offsets = [0, 0], sizes = [2, 64], strides = [1, 1]} : vector<2x192xf32> to vector<2x64xf32>
    %491 = vector.extract_strided_slice %487 {offsets = [0, 64], sizes = [2, 64], strides = [1, 1]} : vector<2x192xf32> to vector<2x64xf32>
    %492 = vector.extract_strided_slice %487 {offsets = [0, 128], sizes = [2, 64], strides = [1, 1]} : vector<2x192xf32> to vector<2x64xf32>
    %493 = arith.mulf %491, %453 : vector<2x64xf32>
    %494 = arith.mulf %490, %489 : vector<2x64xf32>
    %495 = arith.addf %493, %494 : vector<2x64xf32>
    %496 = math.tanh %495 : vector<2x64xf32>
    %497 = arith.mulf %492, %496 : vector<2x64xf32>
    %498 = tpu.concatenate %497, %475 in 1 : vector<2x64xf32>, vector<2x64xf32> -> vector<2x128xf32>
    %cst_62 = arith.constant dense<0.000000e+00> : vector<2x256xf32>
    %499 = tpu.matmul %498, %8, %cst_62 {dimension_numbers = #tpu.dot_dimension_numbers<[1], [0], [0], [1], [0, 0, 1, 1], [], []>} : vector<2x128xf32>, vector<128x256xf32>, vector<2x256xf32> -> vector<2x256xf32>
    %500 = vector.broadcast %9 : vector<1x256xf32> to vector<2x256xf32>
    %501 = arith.addf %500, %499 : vector<2x256xf32>
    %502 = vector.extract_strided_slice %501 {offsets = [0, 0], sizes = [2, 192], strides = [1, 1]} : vector<2x256xf32> to vector<2x192xf32>
    %503 = arith.negf %502 : vector<2x192xf32>
    %504 = math.exp %503 : vector<2x192xf32>
    %cst_63 = arith.constant 1.000000e+00 : f32
    %505 = vector.broadcast %cst_63 : f32 to vector<2x192xf32>
    %506 = arith.addf %505, %504 : vector<2x192xf32>
    %507 = arith.divf %505, %506 : vector<2x192xf32>
    %508 = vector.extract_strided_slice %501 {offsets = [0, 192], sizes = [2, 64], strides = [1, 1]} : vector<2x256xf32> to vector<2x64xf32>
    %509 = math.tanh %508 : vector<2x64xf32>
    %510 = vector.extract_strided_slice %507 {offsets = [0, 0], sizes = [2, 64], strides = [1, 1]} : vector<2x192xf32> to vector<2x64xf32>
    %511 = vector.extract_strided_slice %507 {offsets = [0, 64], sizes = [2, 64], strides = [1, 1]} : vector<2x192xf32> to vector<2x64xf32>
    %512 = vector.extract_strided_slice %507 {offsets = [0, 128], sizes = [2, 64], strides = [1, 1]} : vector<2x192xf32> to vector<2x64xf32>
    %513 = arith.mulf %511, %473 : vector<2x64xf32>
    %514 = arith.mulf %510, %509 : vector<2x64xf32>
    %515 = arith.addf %513, %514 : vector<2x64xf32>
    %516 = math.tanh %515 : vector<2x64xf32>
    %517 = arith.mulf %512, %516 : vector<2x64xf32>
    %518 = vector.extract_strided_slice %5 {offsets = [0, 12, 0], sizes = [2, 1, 256], strides = [1, 1, 1]} : vector<2x14x256xf32> to vector<2x1x256xf32>
    %519 = vector.shape_cast %518 : vector<2x1x256xf32> to vector<2x256xf32>
    %520 = vector.broadcast %7 : vector<1x256xf32> to vector<2x256xf32>
    %521 = arith.addf %519, %520 : vector<2x256xf32>
    %cst_64 = arith.constant dense<0.000000e+00> : vector<2x256xf32>
    %522 = tpu.matmul %497, %6, %cst_64 {dimension_numbers = #tpu.dot_dimension_numbers<[1], [0], [0], [1], [0, 0, 1, 1], [], []>} : vector<2x64xf32>, vector<64x256xf32>, vector<2x256xf32> -> vector<2x256xf32>
    %523 = arith.addf %521, %522 : vector<2x256xf32>
    %524 = vector.extract_strided_slice %523 {offsets = [0, 0], sizes = [2, 192], strides = [1, 1]} : vector<2x256xf32> to vector<2x192xf32>
    %525 = arith.negf %524 : vector<2x192xf32>
    %526 = math.exp %525 : vector<2x192xf32>
    %cst_65 = arith.constant 1.000000e+00 : f32
    %527 = vector.broadcast %cst_65 : f32 to vector<2x192xf32>
    %528 = arith.addf %527, %526 : vector<2x192xf32>
    %529 = arith.divf %527, %528 : vector<2x192xf32>
    %530 = vector.extract_strided_slice %523 {offsets = [0, 192], sizes = [2, 64], strides = [1, 1]} : vector<2x256xf32> to vector<2x64xf32>
    %531 = math.tanh %530 : vector<2x64xf32>
    %532 = vector.extract_strided_slice %529 {offsets = [0, 0], sizes = [2, 64], strides = [1, 1]} : vector<2x192xf32> to vector<2x64xf32>
    %533 = vector.extract_strided_slice %529 {offsets = [0, 64], sizes = [2, 64], strides = [1, 1]} : vector<2x192xf32> to vector<2x64xf32>
    %534 = vector.extract_strided_slice %529 {offsets = [0, 128], sizes = [2, 64], strides = [1, 1]} : vector<2x192xf32> to vector<2x64xf32>
    %535 = arith.mulf %533, %495 : vector<2x64xf32>
    %536 = arith.mulf %532, %531 : vector<2x64xf32>
    %537 = arith.addf %535, %536 : vector<2x64xf32>
    %538 = math.tanh %537 : vector<2x64xf32>
    %539 = arith.mulf %534, %538 : vector<2x64xf32>
    %540 = tpu.concatenate %539, %517 in 1 : vector<2x64xf32>, vector<2x64xf32> -> vector<2x128xf32>
    %cst_66 = arith.constant dense<0.000000e+00> : vector<2x256xf32>
    %541 = tpu.matmul %540, %8, %cst_66 {dimension_numbers = #tpu.dot_dimension_numbers<[1], [0], [0], [1], [0, 0, 1, 1], [], []>} : vector<2x128xf32>, vector<128x256xf32>, vector<2x256xf32> -> vector<2x256xf32>
    %542 = vector.broadcast %9 : vector<1x256xf32> to vector<2x256xf32>
    %543 = arith.addf %542, %541 : vector<2x256xf32>
    %544 = vector.extract_strided_slice %543 {offsets = [0, 0], sizes = [2, 192], strides = [1, 1]} : vector<2x256xf32> to vector<2x192xf32>
    %545 = arith.negf %544 : vector<2x192xf32>
    %546 = math.exp %545 : vector<2x192xf32>
    %cst_67 = arith.constant 1.000000e+00 : f32
    %547 = vector.broadcast %cst_67 : f32 to vector<2x192xf32>
    %548 = arith.addf %547, %546 : vector<2x192xf32>
    %549 = arith.divf %547, %548 : vector<2x192xf32>
    %550 = vector.extract_strided_slice %543 {offsets = [0, 192], sizes = [2, 64], strides = [1, 1]} : vector<2x256xf32> to vector<2x64xf32>
    %551 = math.tanh %550 : vector<2x64xf32>
    %552 = vector.extract_strided_slice %549 {offsets = [0, 0], sizes = [2, 64], strides = [1, 1]} : vector<2x192xf32> to vector<2x64xf32>
    %553 = vector.extract_strided_slice %549 {offsets = [0, 64], sizes = [2, 64], strides = [1, 1]} : vector<2x192xf32> to vector<2x64xf32>
    %554 = vector.extract_strided_slice %549 {offsets = [0, 128], sizes = [2, 64], strides = [1, 1]} : vector<2x192xf32> to vector<2x64xf32>
    %555 = arith.mulf %553, %515 : vector<2x64xf32>
    %556 = arith.mulf %552, %551 : vector<2x64xf32>
    %557 = arith.addf %555, %556 : vector<2x64xf32>
    %558 = math.tanh %557 : vector<2x64xf32>
    %559 = arith.mulf %554, %558 : vector<2x64xf32>
    %560 = vector.extract_strided_slice %5 {offsets = [0, 13, 0], sizes = [2, 1, 256], strides = [1, 1, 1]} : vector<2x14x256xf32> to vector<2x1x256xf32>
    %561 = vector.shape_cast %560 : vector<2x1x256xf32> to vector<2x256xf32>
    %562 = vector.broadcast %7 : vector<1x256xf32> to vector<2x256xf32>
    %563 = arith.addf %561, %562 : vector<2x256xf32>
    %cst_68 = arith.constant dense<0.000000e+00> : vector<2x256xf32>
    %564 = tpu.matmul %539, %6, %cst_68 {dimension_numbers = #tpu.dot_dimension_numbers<[1], [0], [0], [1], [0, 0, 1, 1], [], []>} : vector<2x64xf32>, vector<64x256xf32>, vector<2x256xf32> -> vector<2x256xf32>
    %565 = arith.addf %563, %564 : vector<2x256xf32>
    %566 = vector.extract_strided_slice %565 {offsets = [0, 0], sizes = [2, 192], strides = [1, 1]} : vector<2x256xf32> to vector<2x192xf32>
    %567 = arith.negf %566 : vector<2x192xf32>
    %568 = math.exp %567 : vector<2x192xf32>
    %cst_69 = arith.constant 1.000000e+00 : f32
    %569 = vector.broadcast %cst_69 : f32 to vector<2x192xf32>
    %570 = arith.addf %569, %568 : vector<2x192xf32>
    %571 = arith.divf %569, %570 : vector<2x192xf32>
    %572 = vector.extract_strided_slice %565 {offsets = [0, 192], sizes = [2, 64], strides = [1, 1]} : vector<2x256xf32> to vector<2x64xf32>
    %573 = math.tanh %572 : vector<2x64xf32>
    %574 = vector.extract_strided_slice %571 {offsets = [0, 0], sizes = [2, 64], strides = [1, 1]} : vector<2x192xf32> to vector<2x64xf32>
    %575 = vector.extract_strided_slice %571 {offsets = [0, 64], sizes = [2, 64], strides = [1, 1]} : vector<2x192xf32> to vector<2x64xf32>
    %576 = vector.extract_strided_slice %571 {offsets = [0, 128], sizes = [2, 64], strides = [1, 1]} : vector<2x192xf32> to vector<2x64xf32>
    %577 = arith.mulf %575, %537 : vector<2x64xf32>
    %578 = arith.mulf %574, %573 : vector<2x64xf32>
    %579 = arith.addf %577, %578 : vector<2x64xf32>
    %580 = math.tanh %579 : vector<2x64xf32>
    %581 = arith.mulf %576, %580 : vector<2x64xf32>
    %582 = tpu.concatenate %581, %559 in 1 : vector<2x64xf32>, vector<2x64xf32> -> vector<2x128xf32>
    %cst_70 = arith.constant dense<0.000000e+00> : vector<2x256xf32>
    %583 = tpu.matmul %582, %8, %cst_70 {dimension_numbers = #tpu.dot_dimension_numbers<[1], [0], [0], [1], [0, 0, 1, 1], [], []>} : vector<2x128xf32>, vector<128x256xf32>, vector<2x256xf32> -> vector<2x256xf32>
    %584 = vector.broadcast %9 : vector<1x256xf32> to vector<2x256xf32>
    %585 = arith.addf %584, %583 : vector<2x256xf32>
    %586 = vector.extract_strided_slice %585 {offsets = [0, 0], sizes = [2, 192], strides = [1, 1]} : vector<2x256xf32> to vector<2x192xf32>
    %587 = arith.negf %586 : vector<2x192xf32>
    %588 = math.exp %587 : vector<2x192xf32>
    %cst_71 = arith.constant 1.000000e+00 : f32
    %589 = vector.broadcast %cst_71 : f32 to vector<2x192xf32>
    %590 = arith.addf %589, %588 : vector<2x192xf32>
    %591 = arith.divf %589, %590 : vector<2x192xf32>
    %592 = vector.extract_strided_slice %585 {offsets = [0, 192], sizes = [2, 64], strides = [1, 1]} : vector<2x256xf32> to vector<2x64xf32>
    %593 = math.tanh %592 : vector<2x64xf32>
    %594 = vector.extract_strided_slice %591 {offsets = [0, 0], sizes = [2, 64], strides = [1, 1]} : vector<2x192xf32> to vector<2x64xf32>
    %595 = vector.extract_strided_slice %591 {offsets = [0, 64], sizes = [2, 64], strides = [1, 1]} : vector<2x192xf32> to vector<2x64xf32>
    %596 = vector.extract_strided_slice %591 {offsets = [0, 128], sizes = [2, 64], strides = [1, 1]} : vector<2x192xf32> to vector<2x64xf32>
    %597 = arith.mulf %595, %557 : vector<2x64xf32>
    %598 = arith.mulf %594, %593 : vector<2x64xf32>
    %599 = arith.addf %597, %598 : vector<2x64xf32>
    %600 = math.tanh %599 : vector<2x64xf32>
    %601 = arith.mulf %596, %600 : vector<2x64xf32>
    %c0_72 = arith.constant 0 : index
    %c0_73 = arith.constant 0 : index
    %602 = vector.load %arg6[%c0_72, %c0_73] : memref<64x32xf32, #tpu.memory_space<vmem>>, vector<64x32xf32>
    %cst_74 = arith.constant dense<0.000000e+00> : vector<2x32xf32>
    %603 = tpu.matmul %601, %602, %cst_74 {dimension_numbers = #tpu.dot_dimension_numbers<[1], [0], [0], [1], [0, 0, 1, 1], [], []>} : vector<2x64xf32>, vector<64x32xf32>, vector<2x32xf32> -> vector<2x32xf32>
    %c0_75 = arith.constant 0 : index
    %c0_76 = arith.constant 0 : index
    %604 = vector.load %arg7[%c0_75, %c0_76] : memref<1x32xf32, #tpu.memory_space<vmem>>, vector<1x32xf32>
    %605 = vector.broadcast %604 : vector<1x32xf32> to vector<2x32xf32>
    %606 = arith.addf %603, %605 : vector<2x32xf32>
    %c0_77 = arith.constant 0 : index
    %c0_78 = arith.constant 0 : index
    %607 = vector.load %arg8[%c0_77, %c0_78] : memref<2x32xf32, #tpu.memory_space<vmem>>, vector<2x32xf32>
    tpu.vector_store %arg8[%c0_77, %c0_78], %606 {strides = array<i32>} : memref<2x32xf32, #tpu.memory_space<vmem>>, vector<2x32xf32>,
    return
  }
}

</mosaic_0001>

<bundles_post_ra>
// kernel: _lambda_.12
= control target key start
LH: loop header
LB: loop body
LE: loop exit
PB: predicated region body
PF: predicated region fallthrough
CT: control target
= control target key end

     0   :  { %8 = vsyncpa [#allocation3], 0  ;;  %s705_s0 = inlined_call_operand.hbm [shape: f32[8,25], index: 0, kind: input, shape index: {}]   ;;  %s706_s1 = inlined_call_operand.vmem [shape: f32[25,792], index: 1, kind: input, shape index: {}]   ;;  %s707_s2 = inlined_call_operand.hbm [shape: f32[8,1], index: 2, kind: input, shape index: {}]   ;;  %s708_s3 = inlined_call_operand.vmem [shape: f32[8,792], index: 3, kind: output, shape index: {}]  }
   0x1   :  { %9 = vsyncpa [#allocation5], 0  ;;  %s523_s12 = smov [#allocation2]   ;;  %s524_s14 = smov [#allocation4]  }
   0x2   :  { %s16_s13 = sshll.u32 %s523_s12, 4  ;;  %s28_s15 = sshll.u32 %s524_s14, 4  ;;  %s17_s13 = int_to_ptr.vmem [resolvable:$true] %s16_s13  ;;  %s29_s15 = int_to_ptr.vmem [resolvable:$true] %s28_s15 }
   0x3   :  { %s475_s18 = scalar_lea.hbm %s705_s0, 128 }
   0x4   :  { %p476_p0 = scmp.ne.s32.totalorder %s705_s0, %s475_s18  ;;  %p479_p1 = scmp.lt.u32.totalorder %s475_s18, %s705_s0 }
   0x6   :  { %p481_p2 = pnand %p479_p1, %p476_p0 }
   0x8   :  { %484 = shalt.err (!%p481_p2)
}
   0x9   :  { %s485_s23 = scalar_lea.vmem %s17_s13, 128  ;;  %p490_p4 = scmp.lt.s32.totalorder %s17_s13, %s17_s13 }
   0xa   :  { %p486_p3 = scmp.ne.s32.totalorder %s17_s13, %s485_s23  ;;  %p491_p5 = scmp.lt.s32.totalorder %s485_s23, %s485_s23 }
   0xc   :  { %p492_p6 = por %p491_p5, %p490_p4 }
   0xe   :  { %p493_p7 = pnand %p492_p6, %p486_p3 }
  0x10   :  { %496 = shalt.err (!%p493_p7)
}
  0x11   :  { %19 = dma.hbm_to_vmem [thread:$0]  %s705_s0, 128, %s17_s13, [#allocation3]  }
  0x12   :  { %s497_s28 = scalar_lea.hbm %s707_s2, 128 }
  0x13   :  { %p498_p8 = scmp.ne.s32.totalorder %s707_s2, %s497_s28  ;;  %p501_p9 = scmp.lt.u32.totalorder %s497_s28, %s707_s2 }
  0x15   :  { %p503_p10 = pnand %p501_p9, %p498_p8 }
  0x17   :  { %506 = shalt.err (!%p503_p10)
}
  0x18   :  { %s507_s6 = scalar_lea.vmem %s29_s15, 128  ;;  %p512_p12 = scmp.lt.s32.totalorder %s29_s15, %s29_s15 }
  0x19   :  { %p508_p11 = scmp.ne.s32.totalorder %s29_s15, %s507_s6  ;;  %p513_p13 = scmp.lt.s32.totalorder %s507_s6, %s507_s6 }
  0x1b   :  { %p514_p0 = por %p513_p13, %p512_p12 }
  0x1d   :  { %p515_p1 = pnand %p514_p0, %p508_p11 }
  0x1f   :  { %518 = shalt.err (!%p515_p1)
}
  0x20   :  { %31 = dma.hbm_to_vmem [thread:$0]  %s707_s2, 128, %s29_s15, [#allocation5]  }
  0x21   :  { %519 = dma.done.wait [#allocation3], 128  }
  0x22   :  { %520 = vsyncadd [#allocation3], 4294967168 }
  0x23   :  { %521 = dma.done.wait [#allocation5], 128  }
  0x24   :  { %522 = vsyncadd [#allocation5], 4294967168  ;;  %v525_v0 = vmov 0.0   ;;  %v526_v1 = vmov 0   ;;  %vm77_vm0 = vcmask 1040384   ;;  %vm527_vm1 = vmmov 1  }
  0x25   :  { %163 = vmatprep.mubr.f32.mxu0 %v525_v0  ;;  %234 = vmatprep.mubr.f32.mxu1 %v525_v0  ;;  %vm576_vm2 = vmpackc.low %vm77_vm0, %vm527_vm1  ;;  %v40_v3 = vld [vmem:[%s706_s1 + $0x8] sm:$0xff]  ;;  %v47_v4 = vld [vmem:[%s706_s1 + $0x40] sm:$0xff]  ;;  %vm73_vm3 = vcmask 203776   ;;  %v528_v43 = vmov 0.0|0.0   ;;  %vm529_vm4 = vmmov 0   ;;  %vm395_vm5 = vcmask 195584  }
  0x26   :  { %474 = vset.pattern.permute.xlu0 %v526_v1  ;;  %v42_v5 = vld [vmem:[%s706_s1 + $0x18] sm:$0xff]  ;;  %v430_v6 = vpack.c.bf16 %v47_v4, %v40_v3  ;;  %v49_v7 = vld [vmem:[%s706_s1 + $0x50] sm:$0xff]  ;;  %v39_v8 = vld [vmem:[%s706_s1] sm:$0xff] }
  0x27   :  { %v46_v9 = vld [vmem:[%s706_s1 + $0x38] sm:$0xff]  ;;  %v440_v10 = vpack.c.bf16 %v49_v7, %v42_v5  ;;  %v41_v12 = vld [vmem:[%s706_s1 + $0x10] sm:$0xff]  ;;  %v48_v13 = vld [vmem:[%s706_s1 + $0x48] sm:$0xff] }
  0x28   :  { %v432_v11 = vpack.c.bf16 %v46_v9, %v39_v8  ;;  %v54_v14 = vld [vmem:[%s706_s1 + $0x78] sm:$0xff]  ;;  %431 = vmatprep.subr.bf16.mxu0 %v430_v6  ;;  %v442_v15 = vpack.c.bf16 %v48_v13, %v41_v12  ;;  %v61_v16 = vld [vmem:[%s706_s1 + $0xb0] sm:$0x1]  ;;  %v56_v17 = vld [vmem:[%s706_s1 + $0x88] sm:$0xff] }
  0x29   :  { %v63_v18 = vld [vmem:[%s706_s1 + $0xc0] sm:$0x1]  ;;  %441 = vmatprep.subr.bf16.mxu1 %v440_v10  ;;  %v434_v19 = vpack.c.bf16 %v61_v16, %v54_v14  ;;  %v53_v21 = vld [vmem:[%s706_s1 + $0x70] sm:$0xff]  ;;  %v60_v22 = vld [vmem:[%s706_s1 + $0xa8] sm:$0x1] }
  0x2a   :  { %433 = vmatpush1.bf16.msra.mxu0 %v432_v11  ;;  %v444_v20 = vpack.c.bf16 %v63_v18, %v56_v17  ;;  %v55_v23 = vld [vmem:[%s706_s1 + $0x80] sm:$0xff]  ;;  %443 = vmatpush1.bf16.msra.mxu1 %v442_v15  ;;  %v437_v24 = vpack.c.bf16 %v60_v22, %v53_v21  ;;  %v62_v25 = vld [vmem:[%s706_s1 + $0xb8] sm:$0x1]  ;;  %v44_v26 = vld [vmem:[%s706_s1 + $0x28] sm:$0xff] }
  0x2b   :  { %436 = vmatprep.subr.msk.bf16.mxu0 %vm576_vm2, %v434_v19  ;;  %v447_v27 = vpack.c.bf16 %v62_v25, %v55_v23  ;;  %v51_v28 = vld [vmem:[%s706_s1 + $0x60] sm:$0xff]  ;;  %v50_v30 = vld [vmem:[%s706_s1 + $0x58] sm:$0xff]  ;;  %v45_v32 = vld [vmem:[%s706_s1 + $0x30] sm:$0xff] }
  0x2c   :  { %446 = vmatprep.subr.msk.bf16.mxu1 %vm576_vm2, %v444_v20  ;;  %v43_v29 = vld [vmem:[%s706_s1 + $0x20] sm:$0xff]  ;;  %v450_v31 = vpack.c.bf16 %v51_v28, %v44_v26  ;;  %v52_v33 = vld [vmem:[%s706_s1 + $0x68] sm:$0xff]  ;;  %v58_v34 = vld [vmem:[%s706_s1 + $0x98] sm:$0xff] }
  0x2d   :  { %v38_v35 = vld [vmem:[#allocation2] sm:$0xff]  ;;  %v452_v36 = vpack.c.bf16 %v50_v30, %v43_v29  ;;  %v65_v37 = vld [vmem:[%s706_s1 + $0xd0] sm:$0x1]  ;;  %v461_v38 = vpack.c.bf16 %v52_v33, %v45_v32  ;;  %v64_v41 = vld [vmem:[%s706_s1 + $0xc8] sm:$0x1] }
  0x2e   :  { %439 = vmatpush1.bf16.msk.msra.mxu0 %vm576_vm2, %v437_v24  ;;  %449 = vmatpush1.bf16.msk.msra.mxu1 %vm576_vm2, %v447_v27  ;;  %v454_v39 = vpack.c.bf16 %v65_v37, %v58_v34  ;;  %v57_v40 = vld [vmem:[%s706_s1 + $0x90] sm:$0xff]  ;;  %v67_v42 = vld [vmem:[#allocation4] sm:$0xff]  ;;  %v59_v44 = vld [vmem:[%s706_s1 + $0xa0] sm:$0xff] }
  0x2f   :  { %451 = vmatprep.subr.bf16.mxu0 %v450_v31  ;;  %460 = vmatprep.subr.bf16.mxu1 %v528_v43  ;;  %v66_v45 = vld [vmem:[%s706_s1 + $0xd8] sm:$0x1]  ;;  %v457_v46 = vpack.c.bf16 %v64_v41, %v57_v40 }
  0x30   :  { %70 = vperm.xlu0 %474, %v67_v42   ;;  %v464_v47 = vpack.c.bf16 %v66_v45, %v59_v44 }
  0x31   :  { %405 = vmatmul.mubr.msk.f32.vlgmr.msra.gmra.mrb[0].mxu0 %vm73_vm3, %v38_v35  ;;  %408 = vmatmul.mubr.msk.f32.vlgmr.msra.gmra.mrb[0].mxu1 %vm73_vm3, %v38_v35 }
  0x32   :  { %453 = vmatpush1.bf16.msra.mxu0 %v452_v36  ;;  %462 = vmatpush3.bf16.msra.mxu1 %v461_v38 }
  0x33   :  { %456 = vmatprep.subr.msk.bf16.mxu0 %vm576_vm2, %v454_v39  ;;  %463 = vmatprep.subr.bf16.mxu1 %v528_v43 }
  0x34   :  { %305 = vmatprep.mubr.f32.mxu0 %v525_v0  ;;  %427 = vmatprep.mubr.msk.f32.mxu1 %vm529_vm4, %v525_v0 }
  0x36   :  { %459 = vmatpush1.bf16.msk.msra.mxu0 %vm576_vm2, %v457_v46  ;;  %466 = vmatpush3.bf16.msk.msra.mxu1 %vm576_vm2, %v464_v47 }
  0x39   :  { %411 = vmatmul.mubr.msk.f32.vlgmr.msra.gmra.mrb[2].mxu0 %vm73_vm3, %v38_v35  ;;  %428 = vmatmul.mubr.msk.f32.vlgmr.msra.gmra.mrb[2].mxu1 %vm73_vm3, %v38_v35 }
  0xaf   :  { %v71_v48 = vpop.permute.xlu0 %70 }
 0x104   :  { %v165_v49 = vpop.f32.mrb[0].mxu0  ;;  %v236_v52 = vpop.f32.mrb[0].mxu1 }
 0x105   :  { %v166_v50 = vadd.f32 %v165_v49, %v71_v48  ;;  %v167_v51 = vpop.f32.mrb[1].mxu0  ;;  %v237_v54 = vadd.f32 %v236_v52, %v71_v48  ;;  %v238_v55 = vpop.f32.mrb[1].mxu1 }
 0x106   :  { %v168_v53 = vadd.f32 %v167_v51, %v71_v48  ;;  %v239_v57 = vadd.f32 %v238_v55, %v71_v48 }
 0x107   :  { %v382_v56 = vmax.f32 %v166_v50, 0.0  ;;  %v384_v59 = vmax.f32 %v237_v54, 0.0 }
 0x108   :  { %v383_v58 = vmax.f32 %v168_v53, 0.0  ;;  %v385_v60 = vmax.f32 %v239_v57, 0.0 }
 0x109   :  { %389 = vst [vmem:[%s708_s3] sm:$0xff] %v382_v56  ;;  %391 = vst [vmem:[%s708_s3 + $0x10] sm:$0xff] %v384_v59 }
 0x10a   :  { %390 = vst [vmem:[%s708_s3 + $0x8] sm:$0xff] %v383_v58  ;;  %392 = vst [vmem:[%s708_s3 + $0x18] sm:$0xff] %v385_v60 }
 0x10c   :  { %v307_v61 = vpop.f32.mrb[2].mxu0  ;;  %v378_v63 = vpop.f32.mrb[2].mxu1 }
 0x10d   :  { %v308_v62 = vadd.f32 %v307_v61, %v71_v48  ;;  %v309_v0 = vpop.f32.mrb[3].mxu0  ;;  %v379_v1 = vadd.f32 %v378_v63, %v71_v48  ;;  %v429_v3 = vpop.f32.mrb[3].mxu1 }
 0x10e   :  { %v310_v2 = vadd.f32 %v309_v0, %v71_v48 }
 0x10f   :  { %v386_v4 = vmax.f32 %v308_v62, 0.0  ;;  %v388_v5 = vmax.f32 %v379_v1, 0.0 }
 0x110   :  { %v387_v6 = vmax.f32 %v310_v2, 0.0 }
 0x111   :  { %393 = vst [vmem:[%s708_s3 + $0x20] sm:$0xff] %v386_v4  ;;  %396 = vst.msk [vmem:[%s708_s3 + $0x30] sm:$0xff] %vm395_vm5, %v388_v5 }
 0x112   :  { %394 = vst [vmem:[%s708_s3 + $0x28] sm:$0xff] %v387_v6 }
 0x113   :  { %401 = vsyncpa [#allocation3], 1 }
 0x114   :  { %402 = vsyncpa [#allocation5], 1 }

// kernel: _lambda_.13
= control target key start
LH: loop header
LB: loop body
LE: loop exit
PB: predicated region body
PF: predicated region fallthrough
CT: control target
= control target key end

     0   :  { %v414_v3 = vmov 0   ;;  %vm130_vm0 = vcmask 588800   ;;  %vm302_vm1 = vcmask 48128   ;;  %s783_s1 = inlined_call_operand.vmem [shape: f32[200,390], index: 1, kind: input, shape index: {}]   ;;  %s784_s0 = inlined_call_operand.vmem [shape: f32[16,200], index: 0, kind: input, shape index: {}]   ;;  %s785_s2 = inlined_call_operand.vmem [shape: f32[16,1], index: 2, kind: input, shape index: {}]   ;;  %s786_s3 = inlined_call_operand.vmem [shape: f32[16,390], index: 3, kind: output, shape index: {}]  }
   0x1   :  { %v19_v0 = vld [vmem:[%s783_s1 + $0x8] sm:$0xff]  ;;  %v21_v2 = vld [vmem:[%s783_s1 + $0x18] sm:$0xff]  ;;  %413 = vset.pattern.permute.xlu0 %v414_v3  ;;  %v18_v6 = vld [vmem:[%s783_s1] sm:$0xff] }
   0x2   :  { %v23_v1 = vld [vmem:[%s783_s1 + $0x28] sm:$0xff]  ;;  %v25_v5 = vld [vmem:[%s783_s1 + $0x38] sm:$0xff]  ;;  %v22_v7 = vld [vmem:[%s783_s1 + $0x20] sm:$0xff] }
   0x3   :  { %v316_v4 = vpack.c.bf16 %v23_v1, %v19_v0  ;;  %v364_v8 = vpack.c.bf16 %v25_v5, %v21_v2  ;;  %v318_v9 = vpack.c.bf16 %v22_v7, %v18_v6  ;;  %v20_v10 = vld [vmem:[%s783_s1 + $0x10] sm:$0xff]  ;;  %v27_v12 = vld [vmem:[%s783_s1 + $0x48] sm:$0xff]  ;;  %v29_v15 = vld [vmem:[%s783_s1 + $0x58] sm:$0xff] }
   0x4   :  { %v24_v11 = vld [vmem:[%s783_s1 + $0x30] sm:$0xff]  ;;  %v31_v14 = vld [vmem:[%s783_s1 + $0x68] sm:$0xff]  ;;  %v33_v16 = vld [vmem:[%s783_s1 + $0x78] sm:$0xff] }
   0x5   :  { %317 = vmatprep.subr.bf16.mxu0 %v316_v4  ;;  %v366_v13 = vpack.c.bf16 %v24_v11, %v20_v10  ;;  %365 = vmatprep.subr.bf16.mxu1 %v364_v8  ;;  %v320_v17 = vpack.c.bf16 %v31_v14, %v27_v12  ;;  %v368_v18 = vpack.c.bf16 %v33_v16, %v29_v15  ;;  %v26_v19 = vld [vmem:[%s783_s1 + $0x40] sm:$0xff]  ;;  %v28_v21 = vld [vmem:[%s783_s1 + $0x50] sm:$0xff]  ;;  %v35_v24 = vld [vmem:[%s783_s1 + $0x88] sm:$0xff] }
   0x6   :  { %319 = vmatpush1.bf16.msra.mxu0 %v318_v9  ;;  %v30_v20 = vld [vmem:[%s783_s1 + $0x60] sm:$0xff]  ;;  %v32_v23 = vld [vmem:[%s783_s1 + $0x70] sm:$0xff]  ;;  %v39_v25 = vld [vmem:[%s783_s1 + $0xa8] sm:$0xff] }
   0x7   :  { %367 = vmatpush1.bf16.msra.mxu1 %v366_v13  ;;  %v322_v22 = vpack.c.bf16 %v30_v20, %v26_v19  ;;  %321 = vmatprep.subr.bf16.mxu0 %v320_v17  ;;  %v370_v26 = vpack.c.bf16 %v32_v23, %v28_v21  ;;  %v324_v27 = vpack.c.bf16 %v39_v25, %v35_v24  ;;  %v37_v28 = vld [vmem:[%s783_s1 + $0x98] sm:$0xff]  ;;  %v34_v30 = vld [vmem:[%s783_s1 + $0x80] sm:$0xff]  ;;  %v36_v33 = vld [vmem:[%s783_s1 + $0x90] sm:$0xff] }
   0x8   :  { %369 = vmatprep.subr.bf16.mxu1 %v368_v18  ;;  %v41_v29 = vld [vmem:[%s783_s1 + $0xb8] sm:$0xff]  ;;  %v38_v32 = vld [vmem:[%s783_s1 + $0xa0] sm:$0xff]  ;;  %v40_v34 = vld [vmem:[%s783_s1 + $0xb0] sm:$0xff] }
   0x9   :  { %v372_v31 = vpack.c.bf16 %v41_v29, %v37_v28  ;;  %v326_v35 = vpack.c.bf16 %v38_v32, %v34_v30  ;;  %v43_v36 = vld [vmem:[%s783_s1 + $0xc8] sm:$0xff]  ;;  %v45_v38 = vld [vmem:[%s783_s1 + $0xd8] sm:$0xff]  ;;  %v374_v39 = vpack.c.bf16 %v40_v34, %v36_v33  ;;  %v42_v42 = vld [vmem:[%s783_s1 + $0xc0] sm:$0xff] }
   0xa   :  { %323 = vmatpush1.bf16.msra.mxu0 %v322_v22  ;;  %v47_v37 = vld [vmem:[%s783_s1 + $0xe8] sm:$0xff]  ;;  %v49_v41 = vld [vmem:[%s783_s1 + $0xf8] sm:$0xff]  ;;  %v46_v43 = vld [vmem:[%s783_s1 + $0xe0] sm:$0xff] }
   0xb   :  { %371 = vmatpush1.bf16.msra.mxu1 %v370_v26  ;;  %325 = vmatprep.subr.bf16.mxu0 %v324_v27  ;;  %v328_v40 = vpack.c.bf16 %v47_v37, %v43_v36  ;;  %v376_v44 = vpack.c.bf16 %v49_v41, %v45_v38  ;;  %v44_v45 = vld [vmem:[%s783_s1 + $0xd0] sm:$0xff]  ;;  %v51_v47 = vld [vmem:[%s783_s1 + $0x108] sm:$0xff]  ;;  %v53_v49 = vld [vmem:[%s783_s1 + $0x118] sm:$0xff]  ;;  %v330_v51 = vpack.c.bf16 %v46_v43, %v42_v42 }
   0xc   :  { %373 = vmatprep.subr.bf16.mxu1 %v372_v31  ;;  %v48_v46 = vld [vmem:[%s783_s1 + $0xf0] sm:$0xff]  ;;  %v55_v48 = vld [vmem:[%s783_s1 + $0x128] sm:$0xff]  ;;  %v57_v50 = vld [vmem:[%s783_s1 + $0x138] sm:$0xff] }
   0xd   :  { %v378_v52 = vpack.c.bf16 %v48_v46, %v44_v45  ;;  %v332_v53 = vpack.c.bf16 %v55_v48, %v51_v47  ;;  %v50_v54 = vld [vmem:[%s783_s1 + $0x100] sm:$0xff]  ;;  %v52_v56 = vld [vmem:[%s783_s1 + $0x110] sm:$0xff]  ;;  %v380_v57 = vpack.c.bf16 %v57_v50, %v53_v49  ;;  %v59_v59 = vld [vmem:[%s783_s1 + $0x148] sm:$0xff] }
   0xe   :  { %327 = vmatpush1.bf16.msra.mxu0 %v326_v35  ;;  %v54_v55 = vld [vmem:[%s783_s1 + $0x120] sm:$0xff]  ;;  %v56_v58 = vld [vmem:[%s783_s1 + $0x130] sm:$0xff]  ;;  %v63_v60 = vld [vmem:[%s783_s1 + $0x168] sm:$0xff] }
   0xf   :  { %375 = vmatpush1.bf16.msra.mxu1 %v374_v39  ;;  %329 = vmatprep.subr.bf16.mxu0 %v328_v40  ;;  %v61_v61 = vld [vmem:[%s783_s1 + $0x158] sm:$0xff]  ;;  %v334_v63 = vpack.c.bf16 %v54_v55, %v50_v54  ;;  %v382_v0 = vpack.c.bf16 %v56_v58, %v52_v56  ;;  %v336_v1 = vpack.c.bf16 %v63_v60, %v59_v59  ;;  %v58_v2 = vld [vmem:[%s783_s1 + $0x140] sm:$0xff]  ;;  %v60_v4 = vld [vmem:[%s783_s1 + $0x150] sm:$0xff] }
  0x10   :  { %377 = vmatprep.subr.bf16.mxu1 %v376_v44  ;;  %v65_v62 = vld [vmem:[%s783_s1 + $0x178] sm:$0xff]  ;;  %v62_v3 = vld [vmem:[%s783_s1 + $0x160] sm:$0xff]  ;;  %v64_v6 = vld [vmem:[%s783_s1 + $0x170] sm:$0xff] }
  0x11   :  { %v384_v5 = vpack.c.bf16 %v65_v62, %v61_v61  ;;  %v67_v7 = vld [vmem:[%s783_s1 + $0x188] sm:$0xff]  ;;  %v69_v9 = vld [vmem:[%s783_s1 + $0x198] sm:$0xff]  ;;  %v338_v11 = vpack.c.bf16 %v62_v3, %v58_v2  ;;  %v386_v12 = vpack.c.bf16 %v64_v6, %v60_v4  ;;  %v66_v14 = vld [vmem:[%s783_s1 + $0x180] sm:$0xff] }
  0x12   :  { %331 = vmatpush1.bf16.msra.mxu0 %v330_v51  ;;  %v71_v8 = vld [vmem:[%s783_s1 + $0x1a8] sm:$0xff]  ;;  %v73_v10 = vld [vmem:[%s783_s1 + $0x1b8] sm:$0xff]  ;;  %v70_v15 = vld [vmem:[%s783_s1 + $0x1a0] sm:$0xff] }
  0x13   :  { %379 = vmatpush1.bf16.msra.mxu1 %v378_v52  ;;  %333 = vmatprep.subr.bf16.mxu0 %v332_v53  ;;  %v340_v13 = vpack.c.bf16 %v71_v8, %v67_v7  ;;  %v68_v16 = vld [vmem:[%s783_s1 + $0x190] sm:$0xff]  ;;  %v388_v17 = vpack.c.bf16 %v73_v10, %v69_v9  ;;  %v75_v19 = vld [vmem:[%s783_s1 + $0x1c8] sm:$0xff]  ;;  %v77_v21 = vld [vmem:[%s783_s1 + $0x1d8] sm:$0xff]  ;;  %v342_v23 = vpack.c.bf16 %v70_v15, %v66_v14 }
  0x14   :  { %381 = vmatprep.subr.bf16.mxu1 %v380_v57  ;;  %v72_v18 = vld [vmem:[%s783_s1 + $0x1b0] sm:$0xff]  ;;  %v79_v20 = vld [vmem:[%s783_s1 + $0x1e8] sm:$0xff]  ;;  %v81_v22 = vld [vmem:[%s783_s1 + $0x1f8] sm:$0xff] }
  0x15   :  { %v390_v24 = vpack.c.bf16 %v72_v18, %v68_v16  ;;  %v344_v25 = vpack.c.bf16 %v79_v20, %v75_v19  ;;  %v74_v26 = vld [vmem:[%s783_s1 + $0x1c0] sm:$0xff]  ;;  %v76_v28 = vld [vmem:[%s783_s1 + $0x1d0] sm:$0xff]  ;;  %v392_v29 = vpack.c.bf16 %v81_v22, %v77_v21  ;;  %v83_v31 = vld [vmem:[%s783_s1 + $0x208] sm:$0xff] }
  0x16   :  { %335 = vmatpush1.bf16.msra.mxu0 %v334_v63  ;;  %v78_v27 = vld [vmem:[%s783_s1 + $0x1e0] sm:$0xff]  ;;  %v80_v30 = vld [vmem:[%s783_s1 + $0x1f0] sm:$0xff]  ;;  %v87_v32 = vld [vmem:[%s783_s1 + $0x228] sm:$0xff] }
  0x17   :  { %383 = vmatpush1.bf16.msra.mxu1 %v382_v0  ;;  %337 = vmatprep.subr.bf16.mxu0 %v336_v1  ;;  %v85_v33 = vld [vmem:[%s783_s1 + $0x218] sm:$0xff]  ;;  %v346_v35 = vpack.c.bf16 %v78_v27, %v74_v26  ;;  %v394_v36 = vpack.c.bf16 %v80_v30, %v76_v28  ;;  %v348_v37 = vpack.c.bf16 %v87_v32, %v83_v31  ;;  %v82_v38 = vld [vmem:[%s783_s1 + $0x200] sm:$0xff]  ;;  %v84_v40 = vld [vmem:[%s783_s1 + $0x210] sm:$0xff] }
  0x18   :  { %385 = vmatprep.subr.bf16.mxu1 %v384_v5  ;;  %v89_v34 = vld [vmem:[%s783_s1 + $0x238] sm:$0xff]  ;;  %v86_v39 = vld [vmem:[%s783_s1 + $0x220] sm:$0xff]  ;;  %v88_v42 = vld [vmem:[%s783_s1 + $0x230] sm:$0xff] }
  0x19   :  { %v396_v41 = vpack.c.bf16 %v89_v34, %v85_v33  ;;  %v91_v43 = vld [vmem:[%s783_s1 + $0x248] sm:$0xff]  ;;  %v93_v45 = vld [vmem:[%s783_s1 + $0x258] sm:$0xff]  ;;  %v350_v47 = vpack.c.bf16 %v86_v39, %v82_v38  ;;  %v90_v48 = vld [vmem:[%s783_s1 + $0x240] sm:$0xff]  ;;  %v398_v50 = vpack.c.bf16 %v88_v42, %v84_v40 }
  0x1a   :  { %339 = vmatpush1.bf16.msra.mxu0 %v338_v11  ;;  %v95_v44 = vld [vmem:[%s783_s1 + $0x268] sm:$0xff]  ;;  %v97_v46 = vld [vmem:[%s783_s1 + $0x278] sm:$0xff]  ;;  %v94_v49 = vld [vmem:[%s783_s1 + $0x260] sm:$0xff] }
  0x1b   :  { %387 = vmatpush1.bf16.msra.mxu1 %v386_v12  ;;  %341 = vmatprep.subr.bf16.mxu0 %v340_v13  ;;  %v352_v51 = vpack.c.bf16 %v95_v44, %v91_v43  ;;  %v92_v52 = vld [vmem:[%s783_s1 + $0x250] sm:$0xff]  ;;  %v15_v54 = vld [vmem:[%s784_s0 + $0x8] sm:$0xff]  ;;  %v400_v55 = vpack.c.bf16 %v97_v46, %v93_v45  ;;  %v118_v58 = vld [vmem:[%s785_s2] sm:$0xff]  ;;  %v354_v61 = vpack.c.bf16 %v94_v49, %v90_v48 }
  0x1c   :  { %389 = vmatprep.subr.bf16.mxu1 %v388_v17  ;;  %v96_v53 = vld [vmem:[%s783_s1 + $0x270] sm:$0xff]  ;;  %v99_v56 = vld [vmem:[%s783_s1 + $0x288] sm:$0xff]  ;;  %312 = vmatprep.mubr.msk.f32.mxu0 %vm130_vm0, %v15_v54  ;;  %v101_v59 = vld [vmem:[%s783_s1 + $0x298] sm:$0xff] }
  0x1d   :  { %v103_v57 = vld [vmem:[%s783_s1 + $0x2a8] sm:$0xff]  ;;  %v105_v60 = vld [vmem:[%s783_s1 + $0x2b8] sm:$0xff]  ;;  %314 = vmatprep.mubr.msk.f32.mxu1 %vm130_vm0, %v15_v54  ;;  %122 = vperm.xlu0 %413, %v118_v58   ;;  %v402_v63 = vpack.c.bf16 %v96_v53, %v92_v52  ;;  %v98_v1 = vld [vmem:[%s783_s1 + $0x280] sm:$0xff] }
  0x1e   :  { %343 = vmatpush1.bf16.msra.mxu0 %v342_v23  ;;  %v119_v62 = vld [vmem:[%s785_s2 + $0x8] sm:$0xff]  ;;  %v356_v0 = vpack.c.bf16 %v103_v57, %v99_v56  ;;  %v102_v2 = vld [vmem:[%s783_s1 + $0x2a0] sm:$0xff]  ;;  %v100_v3 = vld [vmem:[%s783_s1 + $0x290] sm:$0xff]  ;;  %v404_v4 = vpack.c.bf16 %v105_v60, %v101_v59 }
  0x1f   :  { %391 = vmatpush1.bf16.msra.mxu1 %v390_v24  ;;  %345 = vmatprep.subr.bf16.mxu0 %v344_v25  ;;  %v104_v5 = vld [vmem:[%s783_s1 + $0x2b0] sm:$0xff]  ;;  %v107_v6 = vld [vmem:[%s783_s1 + $0x2c8] sm:$0xff]  ;;  %v109_v8 = vld [vmem:[%s783_s1 + $0x2d8] sm:$0xff]  ;;  %v358_v10 = vpack.c.bf16 %v102_v2, %v98_v1 }
  0x20   :  { %393 = vmatprep.subr.bf16.mxu1 %v392_v29  ;;  %v111_v7 = vld [vmem:[%s783_s1 + $0x2e8] sm:$0xff]  ;;  %v113_v9 = vld [vmem:[%s783_s1 + $0x2f8] sm:$0xff]  ;;  %v406_v11 = vpack.c.bf16 %v104_v5, %v100_v3  ;;  %v106_v13 = vld [vmem:[%s783_s1 + $0x2c0] sm:$0xff] }
  0x21   :  { %127 = vperm.xlu0 %413, %v119_v62   ;;  %v360_v12 = vpack.c.bf16 %v111_v7, %v107_v6  ;;  %v110_v14 = vld [vmem:[%s783_s1 + $0x2e0] sm:$0xff]  ;;  %v408_v15 = vpack.c.bf16 %v113_v9, %v109_v8  ;;  %v108_v16 = vld [vmem:[%s783_s1 + $0x2d0] sm:$0xff]  ;;  %v115_v20 = vld [vmem:[%s783_s1 + $0x308] sm:$0xff] }
  0x22   :  { %347 = vmatpush1.bf16.msra.mxu0 %v346_v35  ;;  %v112_v17 = vld [vmem:[%s783_s1 + $0x2f0] sm:$0xff]  ;;  %v362_v18 = vpack.c.bf16 %v110_v14, %v106_v13  ;;  %v117_v21 = vld [vmem:[%s783_s1 + $0x318] sm:$0xff]  ;;  %v114_v22 = vld [vmem:[%s783_s1 + $0x300] sm:$0xff] }
  0x23   :  { %395 = vmatpush1.bf16.msra.mxu1 %v394_v36  ;;  %349 = vmatprep.subr.bf16.mxu0 %v348_v37  ;;  %v410_v19 = vpack.c.bf16 %v112_v17, %v108_v16  ;;  %v116_v23 = vld [vmem:[%s783_s1 + $0x310] sm:$0xff]  ;;  %v14_v24 = vld [vmem:[%s784_s0] sm:$0xff]  ;;  %v17_v25 = vld [vmem:[%s784_s0 + $0x18] sm:$0xff] }
  0x24   :  { %397 = vmatprep.subr.bf16.mxu1 %v396_v41  ;;  %v16_v26 = vld [vmem:[%s784_s0 + $0x10] sm:$0xff] }
  0x26   :  { %351 = vmatpush1.bf16.msra.mxu0 %v350_v47 }
  0x27   :  { %399 = vmatpush1.bf16.msra.mxu1 %v398_v50  ;;  %353 = vmatprep.subr.bf16.mxu0 %v352_v51 }
  0x28   :  { %401 = vmatprep.subr.bf16.mxu1 %v400_v55 }
  0x2a   :  { %355 = vmatpush1.bf16.msra.mxu0 %v354_v61 }
  0x2b   :  { %403 = vmatpush1.bf16.msra.mxu1 %v402_v63  ;;  %357 = vmatprep.subr.bf16.mxu0 %v356_v0 }
  0x2c   :  { %405 = vmatprep.subr.bf16.mxu1 %v404_v4 }
  0x2e   :  { %359 = vmatpush1.bf16.msra.mxu0 %v358_v10 }
  0x2f   :  { %407 = vmatpush1.bf16.msra.mxu1 %v406_v11  ;;  %361 = vmatprep.subr.bf16.mxu0 %v360_v12 }
  0x30   :  { %409 = vmatprep.subr.bf16.mxu1 %v408_v15 }
  0x32   :  { %363 = vmatpush1.bf16.msra.mxu0 %v362_v18 }
  0x33   :  { %411 = vmatpush1.bf16.msra.mxu1 %v410_v19  ;;  %185 = vmatprep.subr.mxu0 %v115_v20 }
  0x34   :  { %262 = vmatprep.subr.mxu1 %v117_v21 }
  0x36   :  { %186 = vmatpush1.msra.mxu0 %v114_v22 }
  0x37   :  { %263 = vmatpush1.msra.mxu1 %v116_v23  ;;  %202 = vmatmul.mubr.f32.vlgmr.msra.gmra.mrb[0].mxu0 %v14_v24 }
  0x38   :  { %279 = vmatmul.mubr.f32.vlgmr.msra.gmra.mrb[0].mxu1 %v14_v24  ;;  %313 = vmatprep.mubr.msk.f32.mxu0 %vm130_vm0, %v17_v25 }
  0x39   :  { %315 = vmatprep.mubr.msk.f32.mxu1 %vm130_vm0, %v17_v25 }
  0x3b   :  { %208 = vmatmul.mubr.f32.gmra.mrb[2].mxu0 %v16_v26 }
  0x3c   :  { %285 = vmatmul.mubr.f32.gmra.mrb[2].mxu1 %v16_v26 }
  0x9c   :  { %v123_v27 = vpop.permute.xlu0 %122 }
  0xa0   :  { %v128_v38 = vpop.permute.xlu0 %127 }
 0x10a   :  { %v203_v28 = vpop.f32.mrb[0].mxu0 }
 0x10b   :  { %v204_v29 = vadd.f32 %v203_v28, %v123_v27  ;;  %v280_v30 = vpop.f32.mrb[0].mxu1  ;;  %v205_v31 = vpop.f32.mrb[1].mxu0 }
 0x10c   :  { %v281_v32 = vadd.f32 %v280_v30, %v123_v27  ;;  %v206_v33 = vadd.f32 %v205_v31, %v123_v27  ;;  %v282_v34 = vpop.f32.mrb[1].mxu1 }
 0x10d   :  { %v291_v35 = vmax.f32 %v204_v29, 0.0  ;;  %v283_v36 = vadd.f32 %v282_v34, %v123_v27 }
 0x10e   :  { %v293_v37 = vmax.f32 %v281_v32, 0.0  ;;  %v292_v39 = vmax.f32 %v206_v33, 0.0  ;;  %v209_v40 = vpop.f32.mrb[2].mxu0 }
 0x10f   :  { %299 = vst [vmem:[%s786_s3] sm:$0xff] %v291_v35  ;;  %v294_v41 = vmax.f32 %v283_v36, 0.0  ;;  %v210_v42 = vadd.f32 %v209_v40, %v128_v38  ;;  %v286_v43 = vpop.f32.mrb[2].mxu1  ;;  %v211_v44 = vpop.f32.mrb[3].mxu0 }
 0x110   :  { %301 = vst [vmem:[%s786_s3 + $0x10] sm:$0xff] %v293_v37  ;;  %300 = vst [vmem:[%s786_s3 + $0x8] sm:$0xff] %v292_v39  ;;  %v287_v45 = vadd.f32 %v286_v43, %v128_v38  ;;  %v212_v46 = vadd.f32 %v211_v44, %v128_v38  ;;  %v288_v47 = vpop.f32.mrb[3].mxu1 }
 0x111   :  { %303 = vst.msk [vmem:[%s786_s3 + $0x18] sm:$0xff] %vm302_vm1, %v294_v41  ;;  %v295_v48 = vmax.f32 %v210_v42, 0.0  ;;  %v289_v49 = vadd.f32 %v288_v47, %v128_v38 }
 0x112   :  { %v297_v50 = vmax.f32 %v287_v45, 0.0  ;;  %v296_v51 = vmax.f32 %v212_v46, 0.0 }
 0x113   :  { %304 = vst [vmem:[%s786_s3 + $0x20] sm:$0xff] %v295_v48  ;;  %v298_v52 = vmax.f32 %v289_v49, 0.0 }
 0x114   :  { %306 = vst [vmem:[%s786_s3 + $0x30] sm:$0xff] %v297_v50  ;;  %305 = vst [vmem:[%s786_s3 + $0x28] sm:$0xff] %v296_v51 }
 0x115   :  { %307 = vst.msk [vmem:[%s786_s3 + $0x38] sm:$0xff] %vm302_vm1, %v298_v52 }

// kernel: _lambda_.10
= control target key start
LH: loop header
LB: loop body
LE: loop exit
PB: predicated region body
PF: predicated region fallthrough
CT: control target
= control target key end

     0   :  { %v285_v3 = vmov 0.0   ;;  %v286_v7 = vmov 0   ;;  %vm33_vm0 = vcmask 130048   ;;  %vm261_vm1 = vcmask 605184   ;;  %s367_s1 = inlined_call_operand.vmem [shape: f32[16,714], index: 1, kind: input, shape index: {}]   ;;  %s368_s0 = inlined_call_operand.vmem [shape: f32[8,16], index: 0, kind: input, shape index: {}]   ;;  %s369_s2 = inlined_call_operand.vmem [shape: f32[8,1], index: 2, kind: input, shape index: {}]   ;;  %s370_s3 = inlined_call_operand.vmem [shape: f32[8,714], index: 3, kind: output, shape index: {}]  }
   0x1   :  { %v16_v0 = vld [vmem:[%s367_s1 + $0x8] sm:$0xff]  ;;  %v22_v1 = vld [vmem:[%s367_s1 + $0x38] sm:$0xff]  ;;  %v15_v2 = vld [vmem:[%s367_s1] sm:$0xff]  ;;  %101 = vmatprep.mubr.f32.mxu0 %v285_v3  ;;  %172 = vmatprep.mubr.f32.mxu1 %v285_v3 }
   0x2   :  { %v270_v4 = vpack.c.bf16 %v22_v1, %v16_v0  ;;  %v21_v5 = vld [vmem:[%s367_s1 + $0x30] sm:$0xff]  ;;  %v18_v6 = vld [vmem:[%s367_s1 + $0x18] sm:$0xff]  ;;  %284 = vset.pattern.permute.xlu0 %v286_v7  ;;  %v24_v9 = vld [vmem:[%s367_s1 + $0x48] sm:$0xff] }
   0x3   :  { %v272_v8 = vpack.c.bf16 %v21_v5, %v15_v2  ;;  %v20_v10 = vld [vmem:[%s367_s1 + $0x28] sm:$0xff]  ;;  %v26_v11 = vld [vmem:[%s367_s1 + $0x58] sm:$0xff]  ;;  %v274_v12 = vpack.c.bf16 %v24_v9, %v18_v6  ;;  %v17_v14 = vld [vmem:[%s367_s1 + $0x10] sm:$0xff] }
   0x4   :  { %271 = vmatprep.subr.bf16.mxu0 %v270_v4  ;;  %v278_v13 = vpack.c.bf16 %v26_v11, %v20_v10  ;;  %v23_v15 = vld [vmem:[%s367_s1 + $0x40] sm:$0xff]  ;;  %v25_v19 = vld [vmem:[%s367_s1 + $0x50] sm:$0xff] }
   0x5   :  { %v19_v16 = vld [vmem:[%s367_s1 + $0x20] sm:$0xff]  ;;  %273 = vmatpush1.bf16.msra.mxu0 %v272_v8  ;;  %v276_v18 = vpack.c.bf16 %v23_v15, %v17_v14  ;;  %275 = vmatprep.subr.bf16.mxu1 %v274_v12 }
   0x6   :  { %v14_v17 = vld [vmem:[%s368_s0] sm:$0xff]  ;;  %279 = vmatprep.subr.bf16.mxu0 %v278_v13  ;;  %v280_v21 = vpack.c.bf16 %v25_v19, %v19_v16 }
   0x7   :  { %v27_v20 = vld [vmem:[%s369_s2] sm:$0xff]  ;;  %277 = vmatpush1.bf16.msra.mxu1 %v276_v18 }
   0x8   :  { %30 = vperm.xlu0 %284, %v27_v20   ;;  %267 = vmatmul.mubr.msk.f32.vlgmr.msra.gmra.mrb[0].mxu0 %vm33_vm0, %v14_v17 }
   0x9   :  { %281 = vmatpush1.bf16.msra.mxu0 %v280_v21  ;;  %243 = vmatprep.mubr.f32.mxu0 %v285_v3 }
   0xa   :  { %268 = vmatmul.mubr.msk.f32.vlgmr.msra.gmra.mrb[0].mxu1 %vm33_vm0, %v14_v17 }
   0xc   :  { %269 = vmatmul.mubr.msk.f32.vlgmr.msra.gmra.mrb[2].mxu0 %vm33_vm0, %v14_v17 }
  0x87   :  { %v31_v22 = vpop.permute.xlu0 %30 }
  0xdb   :  { %v103_v23 = vpop.f32.mrb[0].mxu0 }
  0xdc   :  { %v104_v24 = vadd.f32 %v103_v23, %v31_v22  ;;  %v105_v25 = vpop.f32.mrb[1].mxu0 }
  0xdd   :  { %v106_v26 = vadd.f32 %v105_v25, %v31_v22  ;;  %v174_v27 = vpop.f32.mrb[0].mxu1 }
  0xde   :  { %v250_v28 = vmax.f32 %v104_v24, 0.0  ;;  %v175_v29 = vadd.f32 %v174_v27, %v31_v22  ;;  %v176_v30 = vpop.f32.mrb[1].mxu1 }
  0xdf   :  { %v251_v31 = vmax.f32 %v106_v26, 0.0  ;;  %v245_v32 = vpop.f32.mrb[2].mxu0  ;;  %v177_v33 = vadd.f32 %v176_v30, %v31_v22 }
  0xe0   :  { %256 = vst [vmem:[%s370_s3] sm:$0xff] %v250_v28  ;;  %v252_v34 = vmax.f32 %v175_v29, 0.0  ;;  %v246_v35 = vadd.f32 %v245_v32, %v31_v22  ;;  %v247_v36 = vpop.f32.mrb[3].mxu0 }
  0xe1   :  { %257 = vst [vmem:[%s370_s3 + $0x8] sm:$0xff] %v251_v31  ;;  %v253_v37 = vmax.f32 %v177_v33, 0.0  ;;  %v248_v38 = vadd.f32 %v247_v36, %v31_v22 }
  0xe2   :  { %258 = vst [vmem:[%s370_s3 + $0x10] sm:$0xff] %v252_v34  ;;  %v254_v39 = vmax.f32 %v246_v35, 0.0 }
  0xe3   :  { %259 = vst [vmem:[%s370_s3 + $0x18] sm:$0xff] %v253_v37  ;;  %v255_v40 = vmax.f32 %v248_v38, 0.0 }
  0xe4   :  { %260 = vst [vmem:[%s370_s3 + $0x20] sm:$0xff] %v254_v39 }
  0xe5   :  { %262 = vst.msk [vmem:[%s370_s3 + $0x28] sm:$0xff] %vm261_vm1, %v255_v40 }

// kernel: _lambda_.11
= control target key start
LH: loop header
LB: loop body
LE: loop exit
PB: predicated region body
PF: predicated region fallthrough
CT: control target
= control target key end

     0   :  { %v365_v3 = vmov 0.0   ;;  %v366_v4 = vmov 0   ;;  %vm236_vm0 = vcmask 244736   ;;  %s563_s1 = inlined_call_operand.vmem [shape: f32[128,286], index: 1, kind: input, shape index: {}]   ;;  %s564_s0 = inlined_call_operand.vmem [shape: f32[16,128], index: 0, kind: input, shape index: {}]   ;;  %s565_s2 = inlined_call_operand.vmem [shape: f32[16,1], index: 2, kind: input, shape index: {}]   ;;  %s566_s3 = inlined_call_operand.vmem [shape: f32[16,286], index: 3, kind: output, shape index: {}]  }
   0x1   :  { %v17_v0 = vld [vmem:[%s563_s1 + $0x8] sm:$0xff]  ;;  %v20_v1 = vld [vmem:[%s563_s1 + $0x20] sm:$0xff]  ;;  %v18_v2 = vld [vmem:[%s563_s1 + $0x10] sm:$0xff]  ;;  %140 = vmatprep.mubr.f32.mxu0 %v365_v3  ;;  %364 = vset.pattern.permute.xlu0 %v366_v4 }
   0x2   :  { %v298_v5 = vpack.c.bf16 %v20_v1, %v17_v0  ;;  %v21_v6 = vld [vmem:[%s563_s1 + $0x28] sm:$0xff]  ;;  %v16_v7 = vld [vmem:[%s563_s1] sm:$0xff]  ;;  %v19_v8 = vld [vmem:[%s563_s1 + $0x18] sm:$0xff] }
   0x3   :  { %v330_v9 = vpack.c.bf16 %v21_v6, %v18_v2  ;;  %v300_v10 = vpack.c.bf16 %v19_v8, %v16_v7  ;;  %v23_v11 = vld [vmem:[%s563_s1 + $0x38] sm:$0xff]  ;;  %v26_v12 = vld [vmem:[%s563_s1 + $0x50] sm:$0xff]  ;;  %v24_v13 = vld [vmem:[%s563_s1 + $0x40] sm:$0xff] }
   0x4   :  { %299 = vmatprep.subr.bf16.mxu0 %v298_v5  ;;  %v302_v14 = vpack.c.bf16 %v26_v12, %v23_v11  ;;  %v27_v15 = vld [vmem:[%s563_s1 + $0x58] sm:$0xff]  ;;  %v22_v16 = vld [vmem:[%s563_s1 + $0x30] sm:$0xff]  ;;  %v25_v17 = vld [vmem:[%s563_s1 + $0x48] sm:$0xff] }
   0x5   :  { %331 = vmatprep.subr.bf16.mxu1 %v330_v9  ;;  %301 = vmatpush1.bf16.msra.mxu0 %v300_v10  ;;  %v334_v18 = vpack.c.bf16 %v27_v15, %v24_v13  ;;  %v304_v19 = vpack.c.bf16 %v25_v17, %v22_v16  ;;  %v29_v20 = vld [vmem:[%s563_s1 + $0x68] sm:$0xff]  ;;  %v32_v21 = vld [vmem:[%s563_s1 + $0x80] sm:$0xff]  ;;  %v30_v22 = vld [vmem:[%s563_s1 + $0x70] sm:$0xff] }
   0x6   :  { %333 = vmatpush3.bf16.msra.mxu1 %v330_v9  ;;  %303 = vmatprep.subr.bf16.mxu0 %v302_v14  ;;  %v306_v23 = vpack.c.bf16 %v32_v21, %v29_v20  ;;  %v33_v24 = vld [vmem:[%s563_s1 + $0x88] sm:$0xff]  ;;  %v28_v25 = vld [vmem:[%s563_s1 + $0x60] sm:$0xff]  ;;  %v31_v26 = vld [vmem:[%s563_s1 + $0x78] sm:$0xff] }
   0x7   :  { %335 = vmatprep.subr.bf16.mxu1 %v334_v18  ;;  %v338_v27 = vpack.c.bf16 %v33_v24, %v30_v22  ;;  %v35_v28 = vld [vmem:[%s563_s1 + $0x98] sm:$0xff]  ;;  %v38_v29 = vld [vmem:[%s563_s1 + $0xb0] sm:$0xff]  ;;  %v36_v30 = vld [vmem:[%s563_s1 + $0xa0] sm:$0xff]  ;;  %v308_v32 = vpack.c.bf16 %v31_v26, %v28_v25 }
   0x8   :  { %v39_v31 = vld [vmem:[%s563_s1 + $0xb8] sm:$0xff]  ;;  %v310_v33 = vpack.c.bf16 %v38_v29, %v35_v28  ;;  %v34_v34 = vld [vmem:[%s563_s1 + $0x90] sm:$0xff]  ;;  %v37_v35 = vld [vmem:[%s563_s1 + $0xa8] sm:$0xff] }
   0x9   :  { %305 = vmatpush1.bf16.msra.mxu0 %v304_v19  ;;  %v342_v36 = vpack.c.bf16 %v39_v31, %v36_v30  ;;  %v41_v37 = vld [vmem:[%s563_s1 + $0xc8] sm:$0xff]  ;;  %v44_v38 = vld [vmem:[%s563_s1 + $0xe0] sm:$0xff]  ;;  %v42_v39 = vld [vmem:[%s563_s1 + $0xd0] sm:$0xff]  ;;  %v312_v41 = vpack.c.bf16 %v37_v35, %v34_v34 }
   0xa   :  { %337 = vmatpush3.bf16.msra.mxu1 %v334_v18  ;;  %307 = vmatprep.subr.bf16.mxu0 %v306_v23  ;;  %v45_v40 = vld [vmem:[%s563_s1 + $0xe8] sm:$0xff]  ;;  %v314_v42 = vpack.c.bf16 %v44_v38, %v41_v37  ;;  %v40_v43 = vld [vmem:[%s563_s1 + $0xc0] sm:$0xff]  ;;  %v43_v44 = vld [vmem:[%s563_s1 + $0xd8] sm:$0xff] }
   0xb   :  { %339 = vmatprep.subr.bf16.mxu1 %v338_v27  ;;  %v346_v45 = vpack.c.bf16 %v45_v40, %v42_v39  ;;  %v47_v46 = vld [vmem:[%s563_s1 + $0xf8] sm:$0xff]  ;;  %v50_v47 = vld [vmem:[%s563_s1 + $0x110] sm:$0xff]  ;;  %v48_v48 = vld [vmem:[%s563_s1 + $0x100] sm:$0xff]  ;;  %v316_v50 = vpack.c.bf16 %v43_v44, %v40_v43 }
   0xc   :  { %v51_v49 = vld [vmem:[%s563_s1 + $0x118] sm:$0xff]  ;;  %v14_v51 = vld [vmem:[%s564_s0] sm:$0xff]  ;;  %v318_v53 = vpack.c.bf16 %v50_v47, %v47_v46  ;;  %v46_v54 = vld [vmem:[%s563_s1 + $0xf0] sm:$0xff] }
   0xd   :  { %309 = vmatpush1.bf16.msra.mxu0 %v308_v32  ;;  %v64_v52 = vld [vmem:[%s565_s2] sm:$0xff]  ;;  %v49_v55 = vld [vmem:[%s563_s1 + $0x108] sm:$0xff]  ;;  %v350_v56 = vpack.c.bf16 %v51_v49, %v48_v48  ;;  %295 = vmatprep.mubr.f32.mxu1 %v14_v51  ;;  %v54_v59 = vld [vmem:[%s563_s1 + $0x130] sm:$0xff] }
   0xe   :  { %341 = vmatpush3.bf16.msra.mxu1 %v338_v27  ;;  %311 = vmatprep.subr.bf16.mxu0 %v310_v33  ;;  %v53_v57 = vld [vmem:[%s563_s1 + $0x128] sm:$0xff]  ;;  %v56_v58 = vld [vmem:[%s563_s1 + $0x140] sm:$0xff]  ;;  %v320_v61 = vpack.c.bf16 %v49_v55, %v46_v54  ;;  %v55_v1 = vld [vmem:[%s563_s1 + $0x138] sm:$0xff] }
   0xf   :  { %343 = vmatprep.subr.bf16.mxu1 %v342_v36  ;;  %v57_v60 = vld [vmem:[%s563_s1 + $0x148] sm:$0xff]  ;;  %68 = vperm.xlu0 %364, %v64_v52   ;;  %v322_v63 = vpack.c.bf16 %v56_v58, %v53_v57  ;;  %v52_v0 = vld [vmem:[%s563_s1 + $0x120] sm:$0xff]  ;;  %v59_v4 = vld [vmem:[%s563_s1 + $0x158] sm:$0xff] }
  0x10   :  { %v65_v62 = vld [vmem:[%s565_s2 + $0x8] sm:$0xff]  ;;  %v354_v2 = vpack.c.bf16 %v57_v60, %v54_v59  ;;  %v62_v5 = vld [vmem:[%s563_s1 + $0x170] sm:$0xff]  ;;  %v60_v6 = vld [vmem:[%s563_s1 + $0x160] sm:$0xff]  ;;  %v324_v8 = vpack.c.bf16 %v55_v1, %v52_v0 }
  0x11   :  { %313 = vmatpush1.bf16.msra.mxu0 %v312_v41  ;;  %v63_v7 = vld [vmem:[%s563_s1 + $0x178] sm:$0xff]  ;;  %v326_v9 = vpack.c.bf16 %v62_v5, %v59_v4  ;;  %v58_v10 = vld [vmem:[%s563_s1 + $0x150] sm:$0xff]  ;;  %v61_v11 = vld [vmem:[%s563_s1 + $0x168] sm:$0xff] }
  0x12   :  { %345 = vmatpush3.bf16.msra.mxu1 %v342_v36  ;;  %315 = vmatprep.subr.bf16.mxu0 %v314_v42  ;;  %v358_v12 = vpack.c.bf16 %v63_v7, %v60_v6  ;;  %v328_v13 = vpack.c.bf16 %v61_v11, %v58_v10  ;;  %v15_v14 = vld [vmem:[%s564_s0 + $0x8] sm:$0xff] }
  0x13   :  { %347 = vmatprep.subr.bf16.mxu1 %v346_v45  ;;  %73 = vperm.xlu0 %364, %v65_v62  }
  0x15   :  { %317 = vmatpush1.bf16.msra.mxu0 %v316_v50 }
  0x16   :  { %349 = vmatpush3.bf16.msra.mxu1 %v346_v45  ;;  %319 = vmatprep.subr.bf16.mxu0 %v318_v53 }
  0x17   :  { %351 = vmatprep.subr.bf16.mxu1 %v350_v56 }
  0x19   :  { %321 = vmatpush1.bf16.msra.mxu0 %v320_v61 }
  0x1a   :  { %353 = vmatpush3.bf16.msra.mxu1 %v350_v56  ;;  %323 = vmatprep.subr.bf16.mxu0 %v322_v63 }
  0x1b   :  { %355 = vmatprep.subr.bf16.mxu1 %v354_v2 }
  0x1d   :  { %325 = vmatpush1.bf16.msra.mxu0 %v324_v8 }
  0x1e   :  { %357 = vmatpush3.bf16.msra.mxu1 %v354_v2  ;;  %327 = vmatprep.subr.bf16.mxu0 %v326_v9 }
  0x1f   :  { %359 = vmatprep.subr.bf16.mxu1 %v358_v12 }
  0x21   :  { %329 = vmatpush1.bf16.msra.mxu0 %v328_v13 }
  0x22   :  { %361 = vmatpush3.bf16.msra.mxu1 %v358_v12 }
  0x24   :  { %141 = vmatmul.mubr.f32.vlgmr.msra.gmra.mrb[0].mxu0 %v14_v51 }
  0x25   :  { %296 = vmatmul.mubr.f32.vlgmr.msra.gmra.mrb[0].mxu1 %v15_v14  ;;  %146 = vmatprep.mubr.f32.mxu0 %v365_v3 }
  0x28   :  { %147 = vmatmul.mubr.f32.gmra.mrb[2].mxu0 %v15_v14 }
  0x8e   :  { %v69_v15 = vpop.permute.xlu0 %68 }
  0x92   :  { %v74_v16 = vpop.permute.xlu0 %73 }
  0xf7   :  { %v142_v17 = vpop.f32.mrb[0].mxu0 }
  0xf8   :  { %v143_v18 = vadd.f32 %v142_v17, %v69_v15  ;;  %v297_v19 = vpop.f32.mrb[0].mxu1  ;;  %v144_v20 = vpop.f32.mrb[1].mxu0 }
  0xf9   :  { %v225_v21 = vadd.f32 %v297_v19, %v74_v16  ;;  %v145_v22 = vadd.f32 %v144_v20, %v69_v15  ;;  %v219_v23 = vpop.f32.mrb[1].mxu1 }
  0xfa   :  { %v228_v24 = vmax.f32 %v143_v18, 0.0  ;;  %v220_v25 = vadd.f32 %v219_v23, %v69_v15 }
  0xfb   :  { %v233_v26 = vmax.f32 %v225_v21, 0.0  ;;  %v229_v27 = vmax.f32 %v145_v22, 0.0  ;;  %v148_v28 = vpop.f32.mrb[2].mxu0 }
  0xfc   :  { %234 = vst [vmem:[%s566_s3] sm:$0xff] %v228_v24  ;;  %v230_v3 = vmax.f32 %v220_v25, 0.0  ;;  %v149_v29 = vadd.f32 %v148_v28, %v74_v16  ;;  %v150_v30 = vpop.f32.mrb[3].mxu0 }
  0xfd   :  { %240 = vst.msk [vmem:[%s566_s3 + $0x28] sm:$0xff] %vm236_vm0, %v233_v26  ;;  %235 = vst [vmem:[%s566_s3 + $0x8] sm:$0xff] %v229_v27  ;;  %v151_v31 = vadd.f32 %v150_v30, %v74_v16 }
  0xfe   :  { %237 = vst.msk [vmem:[%s566_s3 + $0x10] sm:$0xff] %vm236_vm0, %v230_v3  ;;  %v231_v32 = vmax.f32 %v149_v29, 0.0 }
  0xff   :  { %v232_v33 = vmax.f32 %v151_v31, 0.0 }
 0x100   :  { %238 = vst [vmem:[%s566_s3 + $0x18] sm:$0xff] %v231_v32 }
 0x101   :  { %239 = vst [vmem:[%s566_s3 + $0x20] sm:$0xff] %v232_v33 }

// kernel: _lambda_.8
= control target key start
LH: loop header
LB: loop body
LE: loop exit
PB: predicated region body
PF: predicated region fallthrough
CT: control target
= control target key end

     0   :  { %vm35_vm0 = vcmask 1040384   ;;  %vm317_vm1 = vmmov 1   ;;  %v318_v3 = vmov 0.0   ;;  %v319_v8 = vmov 0   ;;  %s407_s1 = inlined_call_operand.vmem [shape: f32[9,640], index: 1, kind: input, shape index: {}]   ;;  %s408_s0 = inlined_call_operand.vmem [shape: f32[8,9], index: 0, kind: input, shape index: {}]   ;;  %s409_s2 = inlined_call_operand.vmem [shape: f32[8,1], index: 2, kind: input, shape index: {}]   ;;  %s410_s3 = inlined_call_operand.vmem [shape: f32[8,640], index: 3, kind: output, shape index: {}]  }
   0x1   :  { %v16_v0 = vld [vmem:[%s407_s1 + $0x8] sm:$0xff]  ;;  %v21_v1 = vld [vmem:[%s407_s1 + $0x30] sm:$0x1]  ;;  %vm348_vm2 = vmpackc.low %vm35_vm0, %vm317_vm1  ;;  %115 = vmatprep.mubr.f32.mxu0 %v318_v3  ;;  %186 = vmatprep.mubr.f32.mxu1 %v318_v3  ;;  %vm31_vm3 = vcmask 72704   ;;  %v320_v20 = vmov 0.0|0.0   ;;  %vm321_vm4 = vmmov 0  }
   0x2   :  { %v295_v4 = vpack.c.bf16 %v21_v1, %v16_v0  ;;  %v15_v5 = vld [vmem:[%s407_s1] sm:$0xff]  ;;  %v20_v6 = vld [vmem:[%s407_s1 + $0x28] sm:$0x1]  ;;  %v18_v7 = vld [vmem:[%s407_s1 + $0x18] sm:$0xff]  ;;  %316 = vset.pattern.permute.xlu0 %v319_v8 }
   0x3   :  { %v298_v9 = vpack.c.bf16 %v20_v6, %v15_v5  ;;  %v23_v10 = vld [vmem:[%s407_s1 + $0x40] sm:$0x1]  ;;  %v17_v11 = vld [vmem:[%s407_s1 + $0x10] sm:$0xff]  ;;  %v22_v13 = vld [vmem:[%s407_s1 + $0x38] sm:$0x1] }
   0x4   :  { %297 = vmatprep.subr.msk.bf16.mxu0 %vm348_vm2, %v295_v4  ;;  %v301_v12 = vpack.c.bf16 %v23_v10, %v18_v7  ;;  %v19_v14 = vld [vmem:[%s407_s1 + $0x20] sm:$0xff]  ;;  %v24_v15 = vld [vmem:[%s407_s1 + $0x48] sm:$0x1]  ;;  %v304_v17 = vpack.c.bf16 %v22_v13, %v17_v11 }
   0x5   :  { %300 = vmatpush1.bf16.msk.msra.mxu0 %vm348_vm2, %v298_v9  ;;  %v14_v16 = vld [vmem:[%s408_s0] sm:$0xff]  ;;  %v308_v18 = vpack.c.bf16 %v24_v15, %v19_v14 }
   0x6   :  { %v25_v19 = vld [vmem:[%s409_s2] sm:$0xff]  ;;  %303 = vmatprep.subr.msk.bf16.mxu1 %vm348_vm2, %v301_v12  ;;  %307 = vmatprep.subr.bf16.mxu0 %v320_v20 }
   0x7   :  { %306 = vmatpush1.bf16.msk.msra.mxu1 %vm348_vm2, %v304_v17  ;;  %28 = vperm.xlu0 %316, %v25_v19  }
   0x8   :  { %279 = vmatmul.mubr.msk.f32.vlgmr.msra.gmra.mrb[0].mxu0 %vm31_vm3, %v14_v16 }
   0x9   :  { %310 = vmatpush3.bf16.msk.msra.mxu0 %vm348_vm2, %v308_v18  ;;  %292 = vmatprep.mubr.msk.f32.mxu0 %vm321_vm4, %v318_v3 }
   0xa   :  { %282 = vmatmul.mubr.msk.f32.vlgmr.msra.gmra.mrb[0].mxu1 %vm31_vm3, %v14_v16 }
   0xc   :  { %293 = vmatmul.mubr.msk.f32.vlgmr.msra.gmra.mrb[2].mxu0 %vm31_vm3, %v14_v16 }
  0x86   :  { %v29_v21 = vpop.permute.xlu0 %28 }
  0xdb   :  { %v117_v22 = vpop.f32.mrb[0].mxu0 }
  0xdc   :  { %v118_v23 = vadd.f32 %v117_v22, %v29_v21  ;;  %v119_v24 = vpop.f32.mrb[1].mxu0 }
  0xdd   :  { %v120_v25 = vadd.f32 %v119_v24, %v29_v21  ;;  %v188_v26 = vpop.f32.mrb[0].mxu1 }
  0xde   :  { %v263_v27 = vmax.f32 %v118_v23, 0.0  ;;  %v189_v28 = vadd.f32 %v188_v26, %v29_v21  ;;  %v190_v29 = vpop.f32.mrb[1].mxu1 }
  0xdf   :  { %v264_v30 = vmax.f32 %v120_v25, 0.0  ;;  %v191_v31 = vadd.f32 %v190_v29, %v29_v21  ;;  %v259_v32 = vpop.f32.mrb[2].mxu0 }
  0xe0   :  { %268 = vst [vmem:[%s410_s3] sm:$0xff] %v263_v27  ;;  %v265_v33 = vmax.f32 %v189_v28, 0.0  ;;  %v260_v34 = vadd.f32 %v259_v32, %v29_v21  ;;  %v294_v35 = vpop.f32.mrb[3].mxu0 }
  0xe1   :  { %269 = vst [vmem:[%s410_s3 + $0x8] sm:$0xff] %v264_v30  ;;  %v266_v36 = vmax.f32 %v191_v31, 0.0 }
  0xe2   :  { %270 = vst [vmem:[%s410_s3 + $0x10] sm:$0xff] %v265_v33  ;;  %v267_v37 = vmax.f32 %v260_v34, 0.0 }
  0xe3   :  { %271 = vst [vmem:[%s410_s3 + $0x18] sm:$0xff] %v266_v36 }
  0xe4   :  { %272 = vst [vmem:[%s410_s3 + $0x20] sm:$0xff] %v267_v37 }

// kernel: _lambda_.9
= control target key start
LH: loop header
LB: loop body
LE: loop exit
PB: predicated region body
PF: predicated region fallthrough
CT: control target
= control target key end

     0   :  { %v174_v3 = vmov 0.0   ;;  %v175_v8 = vmov 0   ;;  %vm46_vm0 = vcmask 588800   ;;  %vm135_vm1 = vcmask 916480   ;;  %s274_s1 = inlined_call_operand.vmem [shape: f32[72,240], index: 1, kind: input, shape index: {}]   ;;  %s275_s2 = inlined_call_operand.vmem [shape: f32[16,1], index: 2, kind: input, shape index: {}]   ;;  %s276_s0 = inlined_call_operand.vmem [shape: f32[16,72], index: 0, kind: input, shape index: {}]   ;;  %s277_s3 = inlined_call_operand.vmem [shape: f32[16,240], index: 3, kind: output, shape index: {}]  }
   0x1   :  { %v17_v0 = vld [vmem:[%s274_s1 + $0x8] sm:$0xff]  ;;  %v19_v1 = vld [vmem:[%s274_s1 + $0x18] sm:$0xff]  ;;  %v16_v2 = vld [vmem:[%s274_s1] sm:$0xff]  ;;  %117 = vmatprep.mubr.f32.mxu0 %v174_v3  ;;  %123 = vmatprep.mubr.f32.mxu1 %v174_v3 }
   0x2   :  { %v145_v4 = vpack.c.bf16 %v19_v1, %v17_v0  ;;  %v18_v5 = vld [vmem:[%s274_s1 + $0x10] sm:$0xff]  ;;  %v21_v6 = vld [vmem:[%s274_s1 + $0x28] sm:$0xff]  ;;  %v23_v7 = vld [vmem:[%s274_s1 + $0x38] sm:$0xff]  ;;  %173 = vset.pattern.permute.xlu0 %v175_v8 }
   0x3   :  { %v147_v9 = vpack.c.bf16 %v18_v5, %v16_v2  ;;  %v149_v10 = vpack.c.bf16 %v23_v7, %v21_v6  ;;  %v20_v11 = vld [vmem:[%s274_s1 + $0x20] sm:$0xff]  ;;  %v22_v12 = vld [vmem:[%s274_s1 + $0x30] sm:$0xff]  ;;  %v25_v13 = vld [vmem:[%s274_s1 + $0x48] sm:$0xff] }
   0x4   :  { %146 = vmatprep.subr.bf16.mxu0 %v145_v4  ;;  %161 = vmatprep.subr.bf16.mxu1 %v145_v4  ;;  %v27_v14 = vld [vmem:[%s274_s1 + $0x58] sm:$0xff]  ;;  %v151_v15 = vpack.c.bf16 %v22_v12, %v20_v11  ;;  %v24_v17 = vld [vmem:[%s274_s1 + $0x40] sm:$0xff]  ;;  %v26_v18 = vld [vmem:[%s274_s1 + $0x50] sm:$0xff] }
   0x5   :  { %148 = vmatpush1.bf16.msra.mxu0 %v147_v9  ;;  %166 = vmatpush1.bf16.msra.mxu1 %v147_v9  ;;  %v153_v16 = vpack.c.bf16 %v27_v14, %v25_v13  ;;  %v29_v19 = vld [vmem:[%s274_s1 + $0x68] sm:$0xff]  ;;  %v31_v20 = vld [vmem:[%s274_s1 + $0x78] sm:$0xff]  ;;  %v34_v21 = vld [vmem:[%s275_s2] sm:$0xff]  ;;  %v155_v22 = vpack.c.bf16 %v26_v18, %v24_v17 }
   0x6   :  { %150 = vmatprep.subr.bf16.mxu0 %v149_v10  ;;  %162 = vmatprep.subr.bf16.mxu1 %v149_v10  ;;  %v35_v23 = vld [vmem:[%s275_s2 + $0x8] sm:$0xff]  ;;  %v157_v24 = vpack.c.bf16 %v31_v20, %v29_v19  ;;  %v28_v25 = vld [vmem:[%s274_s1 + $0x60] sm:$0xff]  ;;  %v30_v26 = vld [vmem:[%s274_s1 + $0x70] sm:$0xff] }
   0x7   :  { %38 = vperm.xlu0 %173, %v34_v21   ;;  %v159_v27 = vpack.c.bf16 %v30_v26, %v28_v25  ;;  %v33_v28 = vld [vmem:[%s274_s1 + $0x88] sm:$0xff]  ;;  %v32_v29 = vld [vmem:[%s274_s1 + $0x80] sm:$0xff] }
   0x8   :  { %v14_v30 = vld [vmem:[%s276_s0] sm:$0xff]  ;;  %v15_v31 = vld [vmem:[%s276_s0 + $0x8] sm:$0xff] }
   0x9   :  { %152 = vmatpush1.bf16.msra.mxu0 %v151_v15  ;;  %167 = vmatpush1.bf16.msra.mxu1 %v151_v15 }
   0xa   :  { %154 = vmatprep.subr.bf16.mxu0 %v153_v16  ;;  %163 = vmatprep.subr.bf16.mxu1 %v153_v16 }
   0xb   :  { %43 = vperm.xlu0 %173, %v35_v23  }
   0xd   :  { %156 = vmatpush1.bf16.msra.mxu0 %v155_v22  ;;  %168 = vmatpush1.bf16.msra.mxu1 %v155_v22 }
   0xe   :  { %158 = vmatprep.subr.bf16.mxu0 %v157_v24  ;;  %164 = vmatprep.subr.bf16.mxu1 %v157_v24 }
  0x11   :  { %160 = vmatpush1.bf16.msra.mxu0 %v159_v27  ;;  %169 = vmatpush1.bf16.msra.mxu1 %v159_v27 }
  0x12   :  { %69 = vmatprep.subr.mxu0 %v33_v28  ;;  %165 = vmatprep.subr.mxu1 %v33_v28 }
  0x15   :  { %70 = vmatpush1.msra.mxu0 %v32_v29  ;;  %170 = vmatpush1.msra.mxu1 %v32_v29 }
  0x16   :  { %143 = vmatmul.mubr.msk.f32.vlgmr.msra.gmra.mrb[0].mxu0 %vm46_vm0, %v14_v30  ;;  %144 = vmatmul.mubr.msk.f32.vlgmr.msra.gmra.mrb[0].mxu1 %vm46_vm0, %v15_v31 }
  0x86   :  { %v39_v32 = vpop.permute.xlu0 %38 }
  0x8a   :  { %v44_v33 = vpop.permute.xlu0 %43 }
  0xe9   :  { %v119_v34 = vpop.f32.mrb[0].mxu0  ;;  %v125_v35 = vpop.f32.mrb[0].mxu1 }
  0xea   :  { %v120_v36 = vadd.f32 %v119_v34, %v39_v32  ;;  %v126_v37 = vadd.f32 %v125_v35, %v44_v33  ;;  %v121_v38 = vpop.f32.mrb[1].mxu0  ;;  %v127_v39 = vpop.f32.mrb[1].mxu1 }
  0xeb   :  { %v122_v40 = vadd.f32 %v121_v38, %v39_v32  ;;  %v128_v41 = vadd.f32 %v127_v39, %v44_v33 }
  0xec   :  { %v130_v42 = vmax.f32 %v120_v36, 0.0  ;;  %v132_v43 = vmax.f32 %v126_v37, 0.0 }
  0xed   :  { %v131_v44 = vmax.f32 %v122_v40, 0.0  ;;  %v133_v45 = vmax.f32 %v128_v41, 0.0 }
  0xee   :  { %134 = vst [vmem:[%s277_s3] sm:$0xff] %v130_v42  ;;  %137 = vst [vmem:[%s277_s3 + $0x10] sm:$0xff] %v132_v43 }
  0xef   :  { %136 = vst.msk [vmem:[%s277_s3 + $0x8] sm:$0xff] %vm135_vm1, %v131_v44  ;;  %138 = vst.msk [vmem:[%s277_s3 + $0x18] sm:$0xff] %vm135_vm1, %v133_v45 }

// kernel: _lambda_.15
= control target key start
LH: loop header
LB: loop body
LE: loop exit
PB: predicated region body
PF: predicated region fallthrough
CT: control target
= control target key end

     0   :  { %v4893_v33 = vmov 1983009808   ;;  %v46_v35 = vlaneseq  ;;  %vm934_vm0 = vcmask 785408   ;;  %s6458_s0 = inlined_call_operand.vmem [shape: f32[2,480], index: 0, kind: input, shape index: {}]   ;;  %s6459_s1 = inlined_call_operand.vmem [shape: f32[2,480], index: 1, kind: input, shape index: {}]   ;;  %s6460_s2 = inlined_call_operand.vmem [shape: f32[2,672], index: 2, kind: input, shape index: {}]   ;;  %s6461_s3 = inlined_call_operand.vmem [shape: f32[2,32], index: 3, kind: input, shape index: {}]   ;;  %s6462_s4 = inlined_call_operand.vmem [shape: bf16[480,512], index: 4, kind: input, shape index: {}]   ;;  %s6463_s5 = inlined_call_operand.vmem [shape: bf16[480,512], index: 5, kind: input, shape index: {}]   ;;  %s6464_s6 = inlined_call_operand.vmem [shape: bf16[672,512], index: 6, kind: input, shape index: {}]   ;;  %s6465_s7 = inlined_call_operand.vmem [shape: bf16[32,512], index: 7, kind: input, shape index: {}]   ;;  %s6466_s8 = inlined_call_operand.vmem [shape: f32[1,512], index: 8, kind: input, shape index: {}]   ;;  %s6467_s9 = inlined_call_operand.vmem [shape: bf16[512,64], index: 9, kind: input, shape index: {}]   ;;  %s6468_s10 = inlined_call_operand.vmem [shape: f32[1,64], index: 10, kind: input, shape index: {}]   ;;  %s6469_s11 = inlined_call_operand.hbm [shape: f32[2,64], index: 11, kind: output, shape index: {}]  }
   0x1   :  { %v4210_v0 = vld [vmem:[%s6463_s5 + $0x4] ss:$16 sps:$4 sm:$0xff]   ;;  %v4214_v2 = vld [vmem:[%s6463_s5] ss:$16 sps:$4 sm:$0xff]   ;;  %v44_v34 = vunpack.c.l.s4 %v4893_v33  ;;  %v4336_v33 = vld [vmem:[%s6463_s5 + $0x28c] ss:$16 sps:$4 sm:$0xff]  }
   0x2   :  { %v4212_v1 = vld [vmem:[%s6463_s5 + $0x204] ss:$16 sps:$4 sm:$0xff]   ;;  %938 = vmatprep.subr.bf16.mxu0 %v4210_v0  ;;  %v4215_v3 = vld [vmem:[%s6463_s5 + $0x200] ss:$16 sps:$4 sm:$0xff]   ;;  %v5067_v41 = vshrl.u32 %v46_v35, 7 }
   0x3   :  { %979 = vmatprep.subr.bf16.mxu1 %v4212_v1  ;;  %v4216_v4 = vld [vmem:[%s6463_s5 + $0x24] ss:$16 sps:$4 sm:$0xff]   ;;  %939 = vmatpush1.bf16.msra.mxu0 %v4214_v2  ;;  %v4220_v6 = vld [vmem:[%s6463_s5 + $0x20] ss:$16 sps:$4 sm:$0xff]   ;;  %v45_v40 = vunpack.c.0.s8 %v44_v34  ;;  %v4331_v34 = vld [vmem:[%s6463_s5 + $0xc8] ss:$16 sps:$4 sm:$0xff]  }
   0x4   :  { %980 = vmatpush1.bf16.msra.mxu1 %v4215_v3  ;;  %v4218_v5 = vld [vmem:[%s6463_s5 + $0x224] ss:$16 sps:$4 sm:$0xff]   ;;  %940 = vmatprep.subr.bf16.mxu0 %v4216_v4  ;;  %v4221_v7 = vld [vmem:[%s6463_s5 + $0x220] ss:$16 sps:$4 sm:$0xff]   ;;  %v4334_v35 = vld [vmem:[%s6463_s5 + $0x288] ss:$16 sps:$4 sm:$0xff]  }
   0x5   :  { %981 = vmatprep.subr.bf16.mxu1 %v4218_v5  ;;  %v4222_v8 = vld [vmem:[%s6463_s5 + $0x44] ss:$16 sps:$4 sm:$0xff]   ;;  %v4226_v10 = vld [vmem:[%s6463_s5 + $0x40] ss:$16 sps:$4 sm:$0xff]   ;;  %v5082_v46 = vsub.s32 %v45_v40, %v5067_v41  ;;  %v4345_v40 = vld [vmem:[%s6463_s5 + $0x10c] ss:$16 sps:$4 sm:$0xff]  }
   0x6   :  { %v4224_v9 = vld [vmem:[%s6463_s5 + $0x244] ss:$16 sps:$4 sm:$0xff]   ;;  %v4227_v11 = vld [vmem:[%s6463_s5 + $0x240] ss:$16 sps:$4 sm:$0xff]  }
   0x7   :  { %941 = vmatpush1.bf16.msra.mxu0 %v4220_v6  ;;  %v4228_v12 = vld [vmem:[%s6463_s5 + $0x64] ss:$16 sps:$4 sm:$0xff]   ;;  %v4232_v14 = vld [vmem:[%s6463_s5 + $0x60] ss:$16 sps:$4 sm:$0xff]  }
   0x8   :  { %982 = vmatpush1.bf16.msra.mxu1 %v4221_v7  ;;  %942 = vmatprep.subr.bf16.mxu0 %v4222_v8  ;;  %v4230_v13 = vld [vmem:[%s6463_s5 + $0x264] ss:$16 sps:$4 sm:$0xff]   ;;  %v4233_v15 = vld [vmem:[%s6463_s5 + $0x260] ss:$16 sps:$4 sm:$0xff]   ;;  %v4299_v7 = vld [vmem:[%s6463_s5 + $0xc] ss:$16 sps:$4 sm:$0xff]  }
   0x9   :  { %983 = vmatprep.subr.bf16.mxu1 %v4224_v9  ;;  %v4234_v16 = vld [vmem:[%s6463_s5 + $0x84] ss:$16 sps:$4 sm:$0xff]   ;;  %v4238_v18 = vld [vmem:[%s6463_s5 + $0x80] ss:$16 sps:$4 sm:$0xff]   ;;  %v4297_v9 = vld [vmem:[%s6463_s5 + $0x8] ss:$16 sps:$4 sm:$0xff]  }
   0xa   :  { %v4236_v17 = vld [vmem:[%s6463_s5 + $0x284] ss:$16 sps:$4 sm:$0xff]   ;;  %v4239_v19 = vld [vmem:[%s6463_s5 + $0x280] ss:$16 sps:$4 sm:$0xff]  }
   0xb   :  { %943 = vmatpush1.bf16.msra.mxu0 %v4226_v10  ;;  %v4240_v20 = vld [vmem:[%s6463_s5 + $0xa4] ss:$16 sps:$4 sm:$0xff]   ;;  %v4244_v22 = vld [vmem:[%s6463_s5 + $0xa0] ss:$16 sps:$4 sm:$0xff]  }
   0xc   :  { %984 = vmatpush1.bf16.msra.mxu1 %v4227_v11  ;;  %944 = vmatprep.subr.bf16.mxu0 %v4228_v12  ;;  %v4242_v21 = vld [vmem:[%s6463_s5 + $0x2a4] ss:$16 sps:$4 sm:$0xff]   ;;  %v4245_v23 = vld [vmem:[%s6463_s5 + $0x2a0] ss:$16 sps:$4 sm:$0xff]   ;;  %v4305_v12 = vld [vmem:[%s6463_s5 + $0x2c] ss:$16 sps:$4 sm:$0xff]  }
   0xd   :  { %985 = vmatprep.subr.bf16.mxu1 %v4230_v13  ;;  %v4246_v24 = vld [vmem:[%s6463_s5 + $0xc4] ss:$16 sps:$4 sm:$0xff]   ;;  %v4250_v26 = vld [vmem:[%s6463_s5 + $0xc0] ss:$16 sps:$4 sm:$0xff]   ;;  %v4303_v13 = vld [vmem:[%s6463_s5 + $0x28] ss:$16 sps:$4 sm:$0xff]  }
   0xe   :  { %v4248_v25 = vld [vmem:[%s6463_s5 + $0x2c4] ss:$16 sps:$4 sm:$0xff]   ;;  %v4251_v27 = vld [vmem:[%s6463_s5 + $0x2c0] ss:$16 sps:$4 sm:$0xff]  }
   0xf   :  { %945 = vmatpush1.bf16.msra.mxu0 %v4232_v14  ;;  %v4252_v28 = vld [vmem:[%s6463_s5 + $0xe4] ss:$16 sps:$4 sm:$0xff]   ;;  %v4256_v30 = vld [vmem:[%s6463_s5 + $0xe0] ss:$16 sps:$4 sm:$0xff]  }
  0x10   :  { %986 = vmatpush1.bf16.msra.mxu1 %v4233_v15  ;;  %946 = vmatprep.subr.bf16.mxu0 %v4234_v16  ;;  %v4254_v29 = vld [vmem:[%s6463_s5 + $0x2e4] ss:$16 sps:$4 sm:$0xff]   ;;  %v4257_v31 = vld [vmem:[%s6463_s5 + $0x2e0] ss:$16 sps:$4 sm:$0xff]   ;;  %v4309_v15 = vld [vmem:[%s6463_s5 + $0x4c] ss:$16 sps:$4 sm:$0xff]  }
  0x11   :  { %987 = vmatprep.subr.bf16.mxu1 %v4236_v17  ;;  %v4258_v32 = vld [vmem:[%s6463_s5 + $0x104] ss:$16 sps:$4 sm:$0xff]   ;;  %v4262_v37 = vld [vmem:[%s6463_s5 + $0x100] ss:$16 sps:$4 sm:$0xff]   ;;  %v4312_v16 = vld [vmem:[%s6463_s5 + $0x20c] ss:$16 sps:$4 sm:$0xff]  }
  0x12   :  { %v4260_v36 = vld [vmem:[%s6463_s5 + $0x304] ss:$16 sps:$4 sm:$0xff]   ;;  %v4263_v38 = vld [vmem:[%s6463_s5 + $0x300] ss:$16 sps:$4 sm:$0xff]  }
  0x13   :  { %947 = vmatpush1.bf16.msra.mxu0 %v4238_v18  ;;  %v4264_v39 = vld [vmem:[%s6463_s5 + $0x124] ss:$16 sps:$4 sm:$0xff]   ;;  %v4268_v43 = vld [vmem:[%s6463_s5 + $0x120] ss:$16 sps:$4 sm:$0xff]   ;;  %v4307_v18 = vld [vmem:[%s6463_s5 + $0x48] ss:$16 sps:$4 sm:$0xff]  }
  0x14   :  { %988 = vmatpush1.bf16.msra.mxu1 %v4239_v19  ;;  %948 = vmatprep.subr.bf16.mxu0 %v4240_v20  ;;  %v4266_v42 = vld [vmem:[%s6463_s5 + $0x324] ss:$16 sps:$4 sm:$0xff]   ;;  %v4269_v44 = vld [vmem:[%s6463_s5 + $0x320] ss:$16 sps:$4 sm:$0xff]   ;;  %v4310_v19 = vld [vmem:[%s6463_s5 + $0x208] ss:$16 sps:$4 sm:$0xff]  }
  0x15   :  { %989 = vmatprep.subr.bf16.mxu1 %v4242_v21  ;;  %v4270_v45 = vld [vmem:[%s6463_s5 + $0x144] ss:$16 sps:$4 sm:$0xff]   ;;  %v4274_v51 = vld [vmem:[%s6463_s5 + $0x140] ss:$16 sps:$4 sm:$0xff]   ;;  %v4315_v20 = vld [vmem:[%s6463_s5 + $0x6c] ss:$16 sps:$4 sm:$0xff]  }
  0x16   :  { %v4272_v47 = vld [vmem:[%s6463_s5 + $0x344] ss:$16 sps:$4 sm:$0xff]   ;;  %v4275_v52 = vld [vmem:[%s6463_s5 + $0x340] ss:$16 sps:$4 sm:$0xff]   ;;  %v4318_v21 = vld [vmem:[%s6463_s5 + $0x22c] ss:$16 sps:$4 sm:$0xff]  }
  0x17   :  { %949 = vmatpush1.bf16.msra.mxu0 %v4244_v22  ;;  %v187_v48 = vld [vmem:[%s6459_s1] sm:$0xff]  ;;  %v4313_v22 = vld [vmem:[%s6463_s5 + $0x68] ss:$16 sps:$4 sm:$0xff]  }
  0x18   :  { %990 = vmatpush1.bf16.msra.mxu1 %v4245_v23  ;;  %950 = vmatprep.subr.bf16.mxu0 %v4246_v24  ;;  %v189_v49 = vcombine.high %v187_v48, %v187_v48  ;;  %v196_v50 = vrot.slane %v187_v48, %v5082_v46  ;;  %v4276_v53 = vld [vmem:[%s6463_s5 + $0x164] ss:$16 sps:$4 sm:$0xff]   ;;  %v4280_v59 = vld [vmem:[%s6463_s5 + $0x160] ss:$16 sps:$4 sm:$0xff]   ;;  %v4316_v23 = vld [vmem:[%s6463_s5 + $0x228] ss:$16 sps:$4 sm:$0xff]  }
  0x19   :  { %991 = vmatprep.subr.bf16.mxu1 %v4248_v25  ;;  %v4278_v56 = vld [vmem:[%s6463_s5 + $0x364] ss:$16 sps:$4 sm:$0xff]   ;;  %v4281_v60 = vld [vmem:[%s6463_s5 + $0x360] ss:$16 sps:$4 sm:$0xff]   ;;  %v4321_v24 = vld [vmem:[%s6463_s5 + $0x8c] ss:$16 sps:$4 sm:$0xff]  }
  0x1a   :  { %v203_v54 = vrot.slane %v189_v49, %v5082_v46  ;;  %v204_v55 = vcombine.high %v196_v50, %v196_v50  ;;  %v4282_v62 = vld [vmem:[%s6463_s5 + $0x184] ss:$16 sps:$4 sm:$0xff]   ;;  %v4286_v0 = vld [vmem:[%s6463_s5 + $0x180] ss:$16 sps:$4 sm:$0xff]   ;;  %v5168_v17 = vpack.c.bf16 %v196_v50, %v196_v50  ;;  %v4324_v25 = vld [vmem:[%s6463_s5 + $0x24c] ss:$16 sps:$4 sm:$0xff]  }
  0x1b   :  { %951 = vmatpush1.bf16.msra.mxu0 %v4250_v26  ;;  %v4284_v63 = vld [vmem:[%s6463_s5 + $0x384] ss:$16 sps:$4 sm:$0xff]   ;;  %v4287_v1 = vld [vmem:[%s6463_s5 + $0x380] ss:$16 sps:$4 sm:$0xff]   ;;  %v4319_v26 = vld [vmem:[%s6463_s5 + $0x88] ss:$16 sps:$4 sm:$0xff]  }
  0x1c   :  { %992 = vmatpush1.bf16.msra.mxu1 %v4251_v27  ;;  %952 = vmatprep.subr.bf16.mxu0 %v4252_v28  ;;  %v205_v57 = vcombine.high %v203_v54, %v203_v54  ;;  %v211_v58 = vpack.c.bf16 %v204_v55, %v204_v55  ;;  %v4288_v2 = vld [vmem:[%s6463_s5 + $0x1a4] ss:$16 sps:$4 sm:$0xff]   ;;  %v4292_v4 = vld [vmem:[%s6463_s5 + $0x1a0] ss:$16 sps:$4 sm:$0xff]   ;;  %v5141_v8 = vpack.c.bf16 %v203_v54, %v203_v54  ;;  %v4322_v27 = vld [vmem:[%s6463_s5 + $0x248] ss:$16 sps:$4 sm:$0xff]  }
  0x1d   :  { %993 = vmatprep.subr.bf16.mxu1 %v4254_v29  ;;  %v4290_v3 = vld [vmem:[%s6463_s5 + $0x3a4] ss:$16 sps:$4 sm:$0xff]   ;;  %v4293_v5 = vld [vmem:[%s6463_s5 + $0x3a0] ss:$16 sps:$4 sm:$0xff]   ;;  %v4327_v28 = vld [vmem:[%s6463_s5 + $0xac] ss:$16 sps:$4 sm:$0xff]  }
  0x1e   :  { %v213_v61 = vpack.c.bf16 %v205_v57, %v205_v57  ;;  %970 = vmatprep.mubr.bf16.mxu0 %v211_v58  ;;  %v4295_v6 = vld [vmem:[%s6463_s5 + $0x1c4] ss:$16 sps:$4 sm:$0xff]   ;;  %v4300_v10 = vld [vmem:[%s6463_s5 + $0x1c0] ss:$16 sps:$4 sm:$0xff]   ;;  %v4330_v29 = vld [vmem:[%s6463_s5 + $0x26c] ss:$16 sps:$4 sm:$0xff]  }
  0x1f   :  { %953 = vmatpush1.bf16.msra.mxu0 %v4256_v30  ;;  %v4301_v11 = vld [vmem:[%s6463_s5 + $0x1e4] ss:$16 sps:$4 sm:$0xff]   ;;  %v4306_v14 = vld [vmem:[%s6463_s5 + $0x1e0] ss:$16 sps:$4 sm:$0xff]   ;;  %v4325_v30 = vld [vmem:[%s6463_s5 + $0xa8] ss:$16 sps:$4 sm:$0xff]  }
  0x20   :  { %994 = vmatpush1.bf16.msra.mxu1 %v4257_v31  ;;  %954 = vmatprep.subr.bf16.mxu0 %v4258_v32  ;;  %v4328_v31 = vld [vmem:[%s6463_s5 + $0x268] ss:$16 sps:$4 sm:$0xff]   ;;  %v4333_v32 = vld [vmem:[%s6463_s5 + $0xcc] ss:$16 sps:$4 sm:$0xff]  }
  0x21   :  { %995 = vmatprep.subr.bf16.mxu1 %v4260_v36  ;;  %3825 = vmatprep.mubr.msk.bf16.mxu1 %vm934_vm0, %v213_v61  ;;  %v4339_v36 = vld [vmem:[%s6463_s5 + $0xec] ss:$16 sps:$4 sm:$0xff]   ;;  %v4349_v48 = vld [vmem:[%s6463_s5 + $0x128] ss:$16 sps:$4 sm:$0xff]  }
  0x22   :  { %v4352_v49 = vld [vmem:[%s6463_s5 + $0x2e8] ss:$16 sps:$4 sm:$0xff]   ;;  %v4357_v50 = vld [vmem:[%s6463_s5 + $0x14c] ss:$16 sps:$4 sm:$0xff]  }
  0x23   :  { %955 = vmatpush1.bf16.msra.mxu0 %v4262_v37  ;;  %v4342_v37 = vld [vmem:[%s6463_s5 + $0x2ac] ss:$16 sps:$4 sm:$0xff]   ;;  %v4364_v57 = vld [vmem:[%s6463_s5 + $0x328] ss:$16 sps:$4 sm:$0xff]  }
  0x24   :  { %996 = vmatpush1.bf16.msra.mxu1 %v4263_v38  ;;  %956 = vmatprep.subr.bf16.mxu0 %v4264_v39  ;;  %v4337_v38 = vld [vmem:[%s6463_s5 + $0xe8] ss:$16 sps:$4 sm:$0xff]   ;;  %v4363_v54 = vld [vmem:[%s6463_s5 + $0x16c] ss:$16 sps:$4 sm:$0xff]  }
  0x25   :  { %997 = vmatprep.subr.bf16.mxu1 %v4266_v42  ;;  %v4340_v39 = vld [vmem:[%s6463_s5 + $0x2a8] ss:$16 sps:$4 sm:$0xff]   ;;  %v4348_v42 = vld [vmem:[%s6463_s5 + $0x2cc] ss:$16 sps:$4 sm:$0xff]  }
  0x26   :  { %v4366_v55 = vld [vmem:[%s6463_s5 + $0x32c] ss:$16 sps:$4 sm:$0xff]  }
  0x27   :  { %957 = vmatpush1.bf16.msra.mxu0 %v4268_v43  ;;  %v4343_v43 = vld [vmem:[%s6463_s5 + $0x108] ss:$16 sps:$4 sm:$0xff]  }
  0x28   :  { %998 = vmatpush1.bf16.msra.mxu1 %v4269_v44  ;;  %958 = vmatprep.subr.bf16.mxu0 %v4270_v45  ;;  %v4346_v44 = vld [vmem:[%s6463_s5 + $0x2c8] ss:$16 sps:$4 sm:$0xff]   ;;  %v4351_v45 = vld [vmem:[%s6463_s5 + $0x12c] ss:$16 sps:$4 sm:$0xff]  }
  0x29   :  { %999 = vmatprep.subr.bf16.mxu1 %v4272_v47  ;;  %v4354_v47 = vld [vmem:[%s6463_s5 + $0x2ec] ss:$16 sps:$4 sm:$0xff]  }
  0x2b   :  { %959 = vmatpush1.bf16.msra.mxu0 %v4274_v51  ;;  %v4360_v51 = vld [vmem:[%s6463_s5 + $0x30c] ss:$16 sps:$4 sm:$0xff]  }
  0x2c   :  { %1000 = vmatpush1.bf16.msra.mxu1 %v4275_v52  ;;  %960 = vmatprep.subr.bf16.mxu0 %v4276_v53  ;;  %v4355_v52 = vld [vmem:[%s6463_s5 + $0x148] ss:$16 sps:$4 sm:$0xff]  }
  0x2d   :  { %1001 = vmatprep.subr.bf16.mxu1 %v4278_v56  ;;  %v4358_v53 = vld [vmem:[%s6463_s5 + $0x308] ss:$16 sps:$4 sm:$0xff]  }
  0x2e   :  { %v4361_v56 = vld [vmem:[%s6463_s5 + $0x168] ss:$16 sps:$4 sm:$0xff]  }
  0x2f   :  { %961 = vmatpush1.bf16.msra.mxu0 %v4280_v59  ;;  %v4372_v59 = vld [vmem:[%s6463_s5 + $0x34c] ss:$16 sps:$4 sm:$0xff]  }
  0x30   :  { %1002 = vmatpush1.bf16.msra.mxu1 %v4281_v60  ;;  %962 = vmatprep.subr.bf16.mxu0 %v4282_v62  ;;  %v4367_v60 = vld [vmem:[%s6463_s5 + $0x188] ss:$16 sps:$4 sm:$0xff]   ;;  %v4375_v62 = vld [vmem:[%s6463_s5 + $0x1ac] ss:$16 sps:$4 sm:$0xff]  }
  0x31   :  { %1003 = vmatprep.subr.bf16.mxu1 %v4284_v63  ;;  %v4378_v63 = vld [vmem:[%s6463_s5 + $0x36c] ss:$16 sps:$4 sm:$0xff]  }
  0x33   :  { %963 = vmatpush1.bf16.msra.mxu0 %v4286_v0  ;;  %v4373_v0 = vld [vmem:[%s6463_s5 + $0x1a8] ss:$16 sps:$4 sm:$0xff]  }
  0x34   :  { %1004 = vmatpush1.bf16.msra.mxu1 %v4287_v1  ;;  %964 = vmatprep.subr.bf16.mxu0 %v4288_v2  ;;  %v4376_v1 = vld [vmem:[%s6463_s5 + $0x368] ss:$16 sps:$4 sm:$0xff]   ;;  %v4381_v2 = vld [vmem:[%s6463_s5 + $0x1cc] ss:$16 sps:$4 sm:$0xff]  }
  0x35   :  { %1005 = vmatprep.subr.bf16.mxu1 %v4290_v3  ;;  %v4384_v3 = vld [vmem:[%s6463_s5 + $0x38c] ss:$16 sps:$4 sm:$0xff]  }
  0x37   :  { %965 = vmatpush1.bf16.msra.mxu0 %v4292_v4  ;;  %v4379_v4 = vld [vmem:[%s6463_s5 + $0x1c8] ss:$16 sps:$4 sm:$0xff]  }
  0x38   :  { %1006 = vmatpush1.bf16.msra.mxu1 %v4293_v5  ;;  %966 = vmatprep.subr.bf16.mxu0 %v4295_v6  ;;  %v4382_v5 = vld [vmem:[%s6463_s5 + $0x388] ss:$16 sps:$4 sm:$0xff]   ;;  %v4387_v6 = vld [vmem:[%s6463_s5 + $0x1ec] ss:$16 sps:$4 sm:$0xff]  }
  0x39   :  { %1020 = vmatprep.subr.bf16.mxu1 %v4299_v7  ;;  %v4390_v7 = vld [vmem:[%s6463_s5 + $0x3ac] ss:$16 sps:$4 sm:$0xff]  }
  0x3b   :  { %1012 = vmatmul.mubr.bf16.vlgmr.msra.gmra.mrb[0].mxu1 %v5141_v8  ;;  %967 = vmatpush1.bf16.msra.mxu0 %v4300_v10  ;;  %v4388_v10 = vld [vmem:[%s6463_s5 + $0x3a8] ss:$16 sps:$4 sm:$0xff]  }
  0x3c   :  { %1021 = vmatpush1.bf16.msra.mxu1 %v4297_v9  ;;  %968 = vmatprep.subr.bf16.mxu0 %v4301_v11  ;;  %v4385_v9 = vld [vmem:[%s6463_s5 + $0x1e8] ss:$16 sps:$4 sm:$0xff]   ;;  %v4393_v11 = vld [vmem:[%s6462_s4 + $0x4] ss:$16 sps:$4 sm:$0xff]  }
  0x3d   :  { %1022 = vmatprep.subr.bf16.mxu1 %v4305_v12  ;;  %1052 = vmatprep.mubr.bf16.mxu1 %v211_v58  ;;  %v4369_v58 = vld [vmem:[%s6463_s5 + $0x18c] ss:$16 sps:$4 sm:$0xff]   ;;  %v4396_v12 = vld [vmem:[%s6462_s4 + $0x204] ss:$16 sps:$4 sm:$0xff]  }
  0x3f   :  { %969 = vmatpush1.bf16.msra.mxu0 %v4306_v14 }
  0x40   :  { %1023 = vmatpush1.bf16.msra.mxu1 %v4303_v13  ;;  %1061 = vmatprep.subr.bf16.mxu0 %v4312_v16  ;;  %v40_v13 = vld [vmem:[%s6458_s0] sm:$0xff] }
  0x41   :  { %1024 = vmatprep.subr.bf16.mxu1 %v4309_v15  ;;  %v42_v14 = vcombine.high %v40_v13, %v40_v13  ;;  %v5344_v15 = vrot.slane %v40_v13, %v5082_v46  ;;  %v4391_v16 = vld [vmem:[%s6462_s4] ss:$16 sps:$4 sm:$0xff]   ;;  %v4478_v13 = vld [vmem:[%s6462_s4 + $0x1c4] ss:$16 sps:$4 sm:$0xff]  }
  0x42   :  { %971 = vmatmul.mubr.bf16.vlgmr.msra.gmra.mrb[0].mxu0 %v5168_v17 }
  0x43   :  { %1062 = vmatpush1.bf16.msra.mxu0 %v4310_v19  ;;  %3826 = vmatprep.mubr.msk.bf16.mxu0 %vm934_vm0, %v213_v61  ;;  %v4370_v61 = vld [vmem:[%s6463_s5 + $0x348] ss:$16 sps:$4 sm:$0xff]   ;;  %v5353_v19 = vrot.slane %v42_v14, %v5082_v46  ;;  %v4481_v14 = vld [vmem:[%s6462_s4 + $0xc] ss:$16 sps:$4 sm:$0xff]  }
  0x44   :  { %1025 = vmatpush1.bf16.msra.mxu1 %v4307_v18  ;;  %1063 = vmatprep.subr.bf16.mxu0 %v4318_v21  ;;  %v4394_v18 = vld [vmem:[%s6462_s4 + $0x200] ss:$16 sps:$4 sm:$0xff]   ;;  %v4399_v21 = vld [vmem:[%s6462_s4 + $0x24] ss:$16 sps:$4 sm:$0xff]  }
  0x45   :  { %1026 = vmatprep.subr.bf16.mxu1 %v4315_v20  ;;  %v57_v20 = vcombine.high %v5344_v15, %v5344_v15 }
  0x47   :  { %1064 = vmatpush1.bf16.msra.mxu0 %v4316_v23  ;;  %v58_v23 = vcombine.high %v5353_v19, %v5353_v19 }
  0x48   :  { %1027 = vmatpush1.bf16.msra.mxu1 %v4313_v22  ;;  %1065 = vmatprep.subr.bf16.mxu0 %v4324_v25  ;;  %v4402_v22 = vld [vmem:[%s6462_s4 + $0x224] ss:$16 sps:$4 sm:$0xff]   ;;  %v4397_v25 = vld [vmem:[%s6462_s4 + $0x20] ss:$16 sps:$4 sm:$0xff]  }
  0x49   :  { %1028 = vmatprep.subr.bf16.mxu1 %v4321_v24  ;;  %v5365_v24 = vpack.c.bf16 %v57_v20, %v57_v20  ;;  %v4479_v20 = vld [vmem:[%s6462_s4 + $0x8] ss:$16 sps:$4 sm:$0xff]  }
  0x4b   :  { %1066 = vmatpush1.bf16.msra.mxu0 %v4322_v27  ;;  %v5375_v27 = vpack.c.bf16 %v58_v23, %v58_v23  ;;  %v4485_v23 = vld [vmem:[%s6462_s4 + $0x28] ss:$16 sps:$4 sm:$0xff]  }
  0x4c   :  { %1029 = vmatpush1.bf16.msra.mxu1 %v4319_v26  ;;  %1067 = vmatprep.subr.bf16.mxu0 %v4330_v29  ;;  %v4400_v26 = vld [vmem:[%s6462_s4 + $0x220] ss:$16 sps:$4 sm:$0xff]  }
  0x4d   :  { %1030 = vmatprep.subr.bf16.mxu1 %v4327_v28  ;;  %v4403_v28 = vld [vmem:[%s6462_s4 + $0x40] ss:$16 sps:$4 sm:$0xff]  }
  0x4e   :  { %v4406_v29 = vld [vmem:[%s6462_s4 + $0x240] ss:$16 sps:$4 sm:$0xff]  }
  0x4f   :  { %1068 = vmatpush1.bf16.msra.mxu0 %v4328_v31  ;;  %v4414_v31 = vld [vmem:[%s6462_s4 + $0x264] ss:$16 sps:$4 sm:$0xff]  }
  0x50   :  { %1031 = vmatpush1.bf16.msra.mxu1 %v4325_v30  ;;  %1069 = vmatprep.subr.bf16.mxu0 %v4336_v33  ;;  %v4411_v30 = vld [vmem:[%s6462_s4 + $0x64] ss:$16 sps:$4 sm:$0xff]   ;;  %v4412_v33 = vld [vmem:[%s6462_s4 + $0x260] ss:$16 sps:$4 sm:$0xff]  }
  0x51   :  { %1032 = vmatprep.subr.bf16.mxu1 %v4333_v32  ;;  %v4409_v32 = vld [vmem:[%s6462_s4 + $0x60] ss:$16 sps:$4 sm:$0xff]  }
  0x53   :  { %1070 = vmatpush1.bf16.msra.mxu0 %v4334_v35  ;;  %v4420_v35 = vld [vmem:[%s6462_s4 + $0x284] ss:$16 sps:$4 sm:$0xff]  }
  0x54   :  { %1033 = vmatpush1.bf16.msra.mxu1 %v4331_v34  ;;  %1071 = vmatprep.subr.bf16.mxu0 %v4342_v37  ;;  %v4417_v34 = vld [vmem:[%s6462_s4 + $0x84] ss:$16 sps:$4 sm:$0xff]   ;;  %v4418_v37 = vld [vmem:[%s6462_s4 + $0x280] ss:$16 sps:$4 sm:$0xff]  }
  0x55   :  { %1034 = vmatprep.subr.bf16.mxu1 %v4339_v36  ;;  %v4415_v36 = vld [vmem:[%s6462_s4 + $0x80] ss:$16 sps:$4 sm:$0xff]  }
  0x57   :  { %1072 = vmatpush1.bf16.msra.mxu0 %v4340_v39  ;;  %v4426_v39 = vld [vmem:[%s6462_s4 + $0x2a4] ss:$16 sps:$4 sm:$0xff]  }
  0x58   :  { %1035 = vmatpush1.bf16.msra.mxu1 %v4337_v38  ;;  %1073 = vmatprep.subr.bf16.mxu0 %v4348_v42  ;;  %v4423_v38 = vld [vmem:[%s6462_s4 + $0xa4] ss:$16 sps:$4 sm:$0xff]   ;;  %v4424_v42 = vld [vmem:[%s6462_s4 + $0x2a0] ss:$16 sps:$4 sm:$0xff]  }
  0x59   :  { %1036 = vmatprep.subr.bf16.mxu1 %v4345_v40  ;;  %v4421_v40 = vld [vmem:[%s6462_s4 + $0xa0] ss:$16 sps:$4 sm:$0xff]  }
  0x5b   :  { %1074 = vmatpush1.bf16.msra.mxu0 %v4346_v44  ;;  %v4432_v44 = vld [vmem:[%s6462_s4 + $0x2c4] ss:$16 sps:$4 sm:$0xff]  }
  0x5c   :  { %1037 = vmatpush1.bf16.msra.mxu1 %v4343_v43  ;;  %1075 = vmatprep.subr.bf16.mxu0 %v4354_v47  ;;  %v4429_v43 = vld [vmem:[%s6462_s4 + $0xc4] ss:$16 sps:$4 sm:$0xff]   ;;  %v4430_v47 = vld [vmem:[%s6462_s4 + $0x2c0] ss:$16 sps:$4 sm:$0xff]  }
  0x5d   :  { %1038 = vmatprep.subr.bf16.mxu1 %v4351_v45  ;;  %v4427_v45 = vld [vmem:[%s6462_s4 + $0xc0] ss:$16 sps:$4 sm:$0xff]  }
  0x5f   :  { %1076 = vmatpush1.bf16.msra.mxu0 %v4352_v49  ;;  %v4438_v49 = vld [vmem:[%s6462_s4 + $0x2e4] ss:$16 sps:$4 sm:$0xff]  }
  0x60   :  { %1039 = vmatpush1.bf16.msra.mxu1 %v4349_v48  ;;  %1077 = vmatprep.subr.bf16.mxu0 %v4360_v51  ;;  %v4435_v48 = vld [vmem:[%s6462_s4 + $0xe4] ss:$16 sps:$4 sm:$0xff]   ;;  %v4436_v51 = vld [vmem:[%s6462_s4 + $0x2e0] ss:$16 sps:$4 sm:$0xff]  }
  0x61   :  { %1040 = vmatprep.subr.bf16.mxu1 %v4357_v50  ;;  %v4433_v50 = vld [vmem:[%s6462_s4 + $0xe0] ss:$16 sps:$4 sm:$0xff]  }
  0x63   :  { %1078 = vmatpush1.bf16.msra.mxu0 %v4358_v53  ;;  %v4444_v53 = vld [vmem:[%s6462_s4 + $0x304] ss:$16 sps:$4 sm:$0xff]  }
  0x64   :  { %1041 = vmatpush1.bf16.msra.mxu1 %v4355_v52  ;;  %1079 = vmatprep.subr.bf16.mxu0 %v4366_v55  ;;  %v4441_v52 = vld [vmem:[%s6462_s4 + $0x104] ss:$16 sps:$4 sm:$0xff]   ;;  %v4442_v55 = vld [vmem:[%s6462_s4 + $0x300] ss:$16 sps:$4 sm:$0xff]  }
  0x65   :  { %1042 = vmatprep.subr.bf16.mxu1 %v4363_v54  ;;  %v4439_v54 = vld [vmem:[%s6462_s4 + $0x100] ss:$16 sps:$4 sm:$0xff]  }
  0x67   :  { %1080 = vmatpush1.bf16.msra.mxu0 %v4364_v57  ;;  %v4450_v57 = vld [vmem:[%s6462_s4 + $0x324] ss:$16 sps:$4 sm:$0xff]  }
  0x68   :  { %1043 = vmatpush1.bf16.msra.mxu1 %v4361_v56  ;;  %1081 = vmatprep.subr.bf16.mxu0 %v4372_v59  ;;  %v4447_v56 = vld [vmem:[%s6462_s4 + $0x124] ss:$16 sps:$4 sm:$0xff]   ;;  %v4448_v59 = vld [vmem:[%s6462_s4 + $0x320] ss:$16 sps:$4 sm:$0xff]  }
  0x69   :  { %1044 = vmatprep.subr.bf16.mxu1 %v4369_v58  ;;  %v4445_v58 = vld [vmem:[%s6462_s4 + $0x120] ss:$16 sps:$4 sm:$0xff]  }
  0x6b   :  { %1082 = vmatpush1.bf16.msra.mxu0 %v4370_v61  ;;  %v4456_v61 = vld [vmem:[%s6462_s4 + $0x344] ss:$16 sps:$4 sm:$0xff]  }
  0x6c   :  { %1045 = vmatpush1.bf16.msra.mxu1 %v4367_v60  ;;  %1083 = vmatprep.subr.bf16.mxu0 %v4378_v63  ;;  %v4453_v60 = vld [vmem:[%s6462_s4 + $0x144] ss:$16 sps:$4 sm:$0xff]   ;;  %v4454_v63 = vld [vmem:[%s6462_s4 + $0x340] ss:$16 sps:$4 sm:$0xff]  }
  0x6d   :  { %1046 = vmatprep.subr.bf16.mxu1 %v4375_v62  ;;  %v4451_v62 = vld [vmem:[%s6462_s4 + $0x140] ss:$16 sps:$4 sm:$0xff]  }
  0x6f   :  { %1084 = vmatpush1.bf16.msra.mxu0 %v4376_v1  ;;  %v4462_v1 = vld [vmem:[%s6462_s4 + $0x364] ss:$16 sps:$4 sm:$0xff]  }
  0x70   :  { %1047 = vmatpush1.bf16.msra.mxu1 %v4373_v0  ;;  %1085 = vmatprep.subr.bf16.mxu0 %v4384_v3  ;;  %v4459_v0 = vld [vmem:[%s6462_s4 + $0x164] ss:$16 sps:$4 sm:$0xff]   ;;  %v4460_v3 = vld [vmem:[%s6462_s4 + $0x360] ss:$16 sps:$4 sm:$0xff]  }
  0x71   :  { %1048 = vmatprep.subr.bf16.mxu1 %v4381_v2  ;;  %v4457_v2 = vld [vmem:[%s6462_s4 + $0x160] ss:$16 sps:$4 sm:$0xff]  }
  0x73   :  { %1086 = vmatpush1.bf16.msra.mxu0 %v4382_v5  ;;  %v4468_v5 = vld [vmem:[%s6462_s4 + $0x384] ss:$16 sps:$4 sm:$0xff]  }
  0x74   :  { %1049 = vmatpush1.bf16.msra.mxu1 %v4379_v4  ;;  %1087 = vmatprep.subr.bf16.mxu0 %v4390_v7  ;;  %v4465_v4 = vld [vmem:[%s6462_s4 + $0x184] ss:$16 sps:$4 sm:$0xff]   ;;  %v4466_v7 = vld [vmem:[%s6462_s4 + $0x380] ss:$16 sps:$4 sm:$0xff]  }
  0x75   :  { %1050 = vmatprep.subr.bf16.mxu1 %v4387_v6  ;;  %v4463_v6 = vld [vmem:[%s6462_s4 + $0x180] ss:$16 sps:$4 sm:$0xff]  }
  0x77   :  { %1088 = vmatpush1.bf16.msra.mxu0 %v4388_v10  ;;  %v4474_v10 = vld [vmem:[%s6462_s4 + $0x3a4] ss:$16 sps:$4 sm:$0xff]  }
  0x78   :  { %1051 = vmatpush1.bf16.msra.mxu1 %v4385_v9  ;;  %1705 = vmatprep.subr.bf16.mxu0 %v4393_v11  ;;  %v4471_v9 = vld [vmem:[%s6462_s4 + $0x1a4] ss:$16 sps:$4 sm:$0xff]   ;;  %v4469_v11 = vld [vmem:[%s6462_s4 + $0x1a0] ss:$16 sps:$4 sm:$0xff]  }
  0x79   :  { %1746 = vmatprep.subr.bf16.mxu1 %v4396_v12  ;;  %v4472_v12 = vld [vmem:[%s6462_s4 + $0x3a0] ss:$16 sps:$4 sm:$0xff]  }
  0x7a   :  { %1094 = vmatmul.mubr.bf16.vlgmr.msra.gmra.mrb[4].mxu0 %v5141_v8  ;;  %v4408_v8 = vld [vmem:[%s6462_s4 + $0x244] ss:$16 sps:$4 sm:$0xff]  }
  0x7b   :  { %1053 = vmatmul.mubr.bf16.vlgmr.msra.gmra.mrb[4].mxu1 %v5168_v17  ;;  %1706 = vmatpush1.bf16.msra.mxu0 %v4391_v16  ;;  %v4405_v17 = vld [vmem:[%s6462_s4 + $0x44] ss:$16 sps:$4 sm:$0xff]   ;;  %v5532_v16 = vpack.c.bf16 %v5353_v19, %v5353_v19  ;;  %v4487_v19 = vld [vmem:[%s6462_s4 + $0x2c] ss:$16 sps:$4 sm:$0xff]  }
  0x7c   :  { %1747 = vmatpush1.bf16.msra.mxu1 %v4394_v18  ;;  %1707 = vmatprep.subr.bf16.mxu0 %v4399_v21  ;;  %v4476_v18 = vld [vmem:[%s6462_s4 + $0x1c0] ss:$16 sps:$4 sm:$0xff]   ;;  %v4484_v21 = vld [vmem:[%s6462_s4 + $0x1e4] ss:$16 sps:$4 sm:$0xff]  }
  0x7d   :  { %1748 = vmatprep.subr.bf16.mxu1 %v4402_v22  ;;  %3947 = vmatprep.mubr.msk.bf16.mxu1 %vm934_vm0, %v5375_v27  ;;  %v4482_v22 = vld [vmem:[%s6462_s4 + $0x1e0] ss:$16 sps:$4 sm:$0xff]  }
  0x7e   :  { %1737 = vmatprep.mubr.bf16.mxu0 %v5365_v24 }
  0x7f   :  { %1708 = vmatpush1.bf16.msra.mxu0 %v4397_v25  ;;  %v4490_v25 = vld [vmem:[%s6462_s4 + $0x4c] ss:$16 sps:$4 sm:$0xff]  }
  0x80   :  { %1749 = vmatpush1.bf16.msra.mxu1 %v4400_v26  ;;  %1709 = vmatprep.subr.bf16.mxu0 %v4405_v17  ;;  %v4493_v26 = vld [vmem:[%s6462_s4 + $0x20c] ss:$16 sps:$4 sm:$0xff]   ;;  %v5562_v17 = vpack.c.bf16 %v5344_v15, %v5344_v15 }
  0x81   :  { %1750 = vmatprep.subr.bf16.mxu1 %v4408_v8  ;;  %v4488_v8 = vld [vmem:[%s6462_s4 + $0x48] ss:$16 sps:$4 sm:$0xff]   ;;  %v4499_v15 = vld [vmem:[%s6462_s4 + $0x22c] ss:$16 sps:$4 sm:$0xff]  }
  0x83   :  { %1710 = vmatpush1.bf16.msra.mxu0 %v4403_v28  ;;  %v4491_v28 = vld [vmem:[%s6462_s4 + $0x208] ss:$16 sps:$4 sm:$0xff]  }
  0x84   :  { %1751 = vmatpush1.bf16.msra.mxu1 %v4406_v29  ;;  %1711 = vmatprep.subr.bf16.mxu0 %v4411_v30  ;;  %v4494_v29 = vld [vmem:[%s6462_s4 + $0x68] ss:$16 sps:$4 sm:$0xff]  }
  0x85   :  { %1752 = vmatprep.subr.bf16.mxu1 %v4414_v31  ;;  %v4497_v30 = vld [vmem:[%s6462_s4 + $0x228] ss:$16 sps:$4 sm:$0xff]   ;;  %v4502_v31 = vld [vmem:[%s6462_s4 + $0x8c] ss:$16 sps:$4 sm:$0xff]  }
  0x87   :  { %1712 = vmatpush1.bf16.msra.mxu0 %v4409_v32  ;;  %v4505_v32 = vld [vmem:[%s6462_s4 + $0x24c] ss:$16 sps:$4 sm:$0xff]  }
  0x88   :  { %1753 = vmatpush1.bf16.msra.mxu1 %v4412_v33  ;;  %1713 = vmatprep.subr.bf16.mxu0 %v4417_v34  ;;  %v4500_v33 = vld [vmem:[%s6462_s4 + $0x88] ss:$16 sps:$4 sm:$0xff]  }
  0x89   :  { %1754 = vmatprep.subr.bf16.mxu1 %v4420_v35  ;;  %v4503_v34 = vld [vmem:[%s6462_s4 + $0x248] ss:$16 sps:$4 sm:$0xff]   ;;  %v4508_v35 = vld [vmem:[%s6462_s4 + $0xac] ss:$16 sps:$4 sm:$0xff]  }
  0x8b   :  { %1714 = vmatpush1.bf16.msra.mxu0 %v4415_v36  ;;  %v4506_v36 = vld [vmem:[%s6462_s4 + $0xa8] ss:$16 sps:$4 sm:$0xff]  }
  0x8c   :  { %1755 = vmatpush1.bf16.msra.mxu1 %v4418_v37  ;;  %1715 = vmatprep.subr.bf16.mxu0 %v4423_v38  ;;  %v4509_v37 = vld [vmem:[%s6462_s4 + $0x268] ss:$16 sps:$4 sm:$0xff]   ;;  %v4514_v38 = vld [vmem:[%s6462_s4 + $0xcc] ss:$16 sps:$4 sm:$0xff]  }
  0x8d   :  { %1756 = vmatprep.subr.bf16.mxu1 %v4426_v39  ;;  %v4517_v39 = vld [vmem:[%s6462_s4 + $0x28c] ss:$16 sps:$4 sm:$0xff]  }
  0x8f   :  { %1716 = vmatpush1.bf16.msra.mxu0 %v4421_v40  ;;  %v4512_v40 = vld [vmem:[%s6462_s4 + $0xc8] ss:$16 sps:$4 sm:$0xff]  }
  0x90   :  { %1757 = vmatpush1.bf16.msra.mxu1 %v4424_v42  ;;  %1717 = vmatprep.subr.bf16.mxu0 %v4429_v43  ;;  %v4515_v42 = vld [vmem:[%s6462_s4 + $0x288] ss:$16 sps:$4 sm:$0xff]   ;;  %v4520_v43 = vld [vmem:[%s6462_s4 + $0xec] ss:$16 sps:$4 sm:$0xff]  }
  0x91   :  { %1758 = vmatprep.subr.bf16.mxu1 %v4432_v44  ;;  %v4523_v44 = vld [vmem:[%s6462_s4 + $0x2ac] ss:$16 sps:$4 sm:$0xff]  }
  0x93   :  { %1718 = vmatpush1.bf16.msra.mxu0 %v4427_v45  ;;  %v4518_v45 = vld [vmem:[%s6462_s4 + $0xe8] ss:$16 sps:$4 sm:$0xff]  }
  0x94   :  { %1759 = vmatpush1.bf16.msra.mxu1 %v4430_v47  ;;  %1719 = vmatprep.subr.bf16.mxu0 %v4435_v48  ;;  %v4521_v47 = vld [vmem:[%s6462_s4 + $0x2a8] ss:$16 sps:$4 sm:$0xff]   ;;  %v4526_v48 = vld [vmem:[%s6462_s4 + $0x10c] ss:$16 sps:$4 sm:$0xff]  }
  0x95   :  { %1760 = vmatprep.subr.bf16.mxu1 %v4438_v49  ;;  %v4529_v49 = vld [vmem:[%s6462_s4 + $0x2cc] ss:$16 sps:$4 sm:$0xff]  }
  0x97   :  { %1720 = vmatpush1.bf16.msra.mxu0 %v4433_v50  ;;  %v4524_v50 = vld [vmem:[%s6462_s4 + $0x108] ss:$16 sps:$4 sm:$0xff]  }
  0x98   :  { %1761 = vmatpush1.bf16.msra.mxu1 %v4436_v51  ;;  %1721 = vmatprep.subr.bf16.mxu0 %v4441_v52  ;;  %v4527_v51 = vld [vmem:[%s6462_s4 + $0x2c8] ss:$16 sps:$4 sm:$0xff]   ;;  %v4532_v52 = vld [vmem:[%s6462_s4 + $0x12c] ss:$16 sps:$4 sm:$0xff]  }
  0x99   :  { %1762 = vmatprep.subr.bf16.mxu1 %v4444_v53  ;;  %v4535_v53 = vld [vmem:[%s6462_s4 + $0x2ec] ss:$16 sps:$4 sm:$0xff]  }
  0x9b   :  { %1722 = vmatpush1.bf16.msra.mxu0 %v4439_v54  ;;  %v4530_v54 = vld [vmem:[%s6462_s4 + $0x128] ss:$16 sps:$4 sm:$0xff]  }
  0x9c   :  { %1763 = vmatpush1.bf16.msra.mxu1 %v4442_v55  ;;  %1723 = vmatprep.subr.bf16.mxu0 %v4447_v56  ;;  %v4533_v55 = vld [vmem:[%s6462_s4 + $0x2e8] ss:$16 sps:$4 sm:$0xff]   ;;  %v4538_v56 = vld [vmem:[%s6462_s4 + $0x14c] ss:$16 sps:$4 sm:$0xff]  }
  0x9d   :  { %1764 = vmatprep.subr.bf16.mxu1 %v4450_v57  ;;  %v4541_v57 = vld [vmem:[%s6462_s4 + $0x30c] ss:$16 sps:$4 sm:$0xff]  }
  0x9f   :  { %1724 = vmatpush1.bf16.msra.mxu0 %v4445_v58  ;;  %v4536_v58 = vld [vmem:[%s6462_s4 + $0x148] ss:$16 sps:$4 sm:$0xff]  }
  0xa0   :  { %1765 = vmatpush1.bf16.msra.mxu1 %v4448_v59  ;;  %1725 = vmatprep.subr.bf16.mxu0 %v4453_v60  ;;  %v4539_v59 = vld [vmem:[%s6462_s4 + $0x308] ss:$16 sps:$4 sm:$0xff]   ;;  %v4544_v60 = vld [vmem:[%s6462_s4 + $0x16c] ss:$16 sps:$4 sm:$0xff]  }
  0xa1   :  { %1766 = vmatprep.subr.bf16.mxu1 %v4456_v61  ;;  %v4547_v61 = vld [vmem:[%s6462_s4 + $0x32c] ss:$16 sps:$4 sm:$0xff]  }
  0xa3   :  { %1726 = vmatpush1.bf16.msra.mxu0 %v4451_v62  ;;  %v4542_v62 = vld [vmem:[%s6462_s4 + $0x168] ss:$16 sps:$4 sm:$0xff]  }
  0xa4   :  { %1767 = vmatpush1.bf16.msra.mxu1 %v4454_v63  ;;  %1727 = vmatprep.subr.bf16.mxu0 %v4459_v0  ;;  %v4545_v63 = vld [vmem:[%s6462_s4 + $0x328] ss:$16 sps:$4 sm:$0xff]   ;;  %v4550_v0 = vld [vmem:[%s6462_s4 + $0x18c] ss:$16 sps:$4 sm:$0xff]  }
  0xa5   :  { %1768 = vmatprep.subr.bf16.mxu1 %v4462_v1  ;;  %v4553_v1 = vld [vmem:[%s6462_s4 + $0x34c] ss:$16 sps:$4 sm:$0xff]  }
  0xa7   :  { %1728 = vmatpush1.bf16.msra.mxu0 %v4457_v2  ;;  %v4548_v2 = vld [vmem:[%s6462_s4 + $0x188] ss:$16 sps:$4 sm:$0xff]  }
  0xa8   :  { %1769 = vmatpush1.bf16.msra.mxu1 %v4460_v3  ;;  %1729 = vmatprep.subr.bf16.mxu0 %v4465_v4  ;;  %v4551_v3 = vld [vmem:[%s6462_s4 + $0x348] ss:$16 sps:$4 sm:$0xff]   ;;  %v4556_v4 = vld [vmem:[%s6462_s4 + $0x1ac] ss:$16 sps:$4 sm:$0xff]  }
  0xa9   :  { %1770 = vmatprep.subr.bf16.mxu1 %v4468_v5  ;;  %v4559_v5 = vld [vmem:[%s6462_s4 + $0x36c] ss:$16 sps:$4 sm:$0xff]  }
  0xab   :  { %1730 = vmatpush1.bf16.msra.mxu0 %v4463_v6  ;;  %v4554_v6 = vld [vmem:[%s6462_s4 + $0x1a8] ss:$16 sps:$4 sm:$0xff]  }
  0xac   :  { %1771 = vmatpush1.bf16.msra.mxu1 %v4466_v7  ;;  %1731 = vmatprep.subr.bf16.mxu0 %v4471_v9  ;;  %v1869_v7 = vld [vmem:[%s6460_s2] sm:$0xff]  ;;  %v4557_v9 = vld [vmem:[%s6462_s4 + $0x368] ss:$16 sps:$4 sm:$0xff]  }
  0xad   :  { %1772 = vmatprep.subr.bf16.mxu1 %v4474_v10  ;;  %v4562_v10 = vld [vmem:[%s6462_s4 + $0x1cc] ss:$16 sps:$4 sm:$0xff]  }
  0xaf   :  { %1732 = vmatpush1.bf16.msra.mxu0 %v4469_v11  ;;  %v4565_v11 = vld [vmem:[%s6462_s4 + $0x38c] ss:$16 sps:$4 sm:$0xff]  }
  0xb0   :  { %1773 = vmatpush1.bf16.msra.mxu1 %v4472_v12  ;;  %1733 = vmatprep.subr.bf16.mxu0 %v4478_v13  ;;  %v1873_v12 = vcombine.high %v1869_v7, %v1869_v7  ;;  %v4560_v13 = vld [vmem:[%s6462_s4 + $0x1c8] ss:$16 sps:$4 sm:$0xff]  }
  0xb1   :  { %1787 = vmatprep.subr.bf16.mxu1 %v4481_v14  ;;  %v4563_v14 = vld [vmem:[%s6462_s4 + $0x388] ss:$16 sps:$4 sm:$0xff]  }
  0xb3   :  { %1779 = vmatmul.mubr.bf16.vlgmr.msra.gmra.mrb[8].mxu1 %v5532_v16  ;;  %1734 = vmatpush1.bf16.msra.mxu0 %v4476_v18  ;;  %v4568_v18 = vld [vmem:[%s6462_s4 + $0x1ec] ss:$16 sps:$4 sm:$0xff]  }
  0xb4   :  { %1788 = vmatpush1.bf16.msra.mxu1 %v4479_v20  ;;  %1735 = vmatprep.subr.bf16.mxu0 %v4484_v21  ;;  %v4571_v20 = vld [vmem:[%s6462_s4 + $0x3ac] ss:$16 sps:$4 sm:$0xff]   ;;  %v5727_v21 = vrot.slane %v1869_v7, %v5082_v46 }
  0xb5   :  { %1789 = vmatprep.subr.bf16.mxu1 %v4487_v19  ;;  %1819 = vmatprep.mubr.bf16.mxu1 %v5365_v24  ;;  %v4496_v24 = vld [vmem:[%s6462_s4 + $0x6c] ss:$16 sps:$4 sm:$0xff]   ;;  %v5730_v19 = vrot.slane %v1873_v12, %v5082_v46  ;;  %v4577_v46 = vld [vmem:[%s6464_s6 + $0x204] ss:$16 sps:$4 sm:$0xff]  }
  0xb7   :  { %1736 = vmatpush1.bf16.msra.mxu0 %v4482_v22  ;;  %v4566_v22 = vld [vmem:[%s6462_s4 + $0x1e8] ss:$16 sps:$4 sm:$0xff]  }
  0xb8   :  { %1790 = vmatpush1.bf16.msra.mxu1 %v4485_v23  ;;  %1828 = vmatprep.subr.bf16.mxu0 %v4493_v26  ;;  %v4569_v23 = vld [vmem:[%s6462_s4 + $0x3a8] ss:$16 sps:$4 sm:$0xff]   ;;  %v1888_v26 = vcombine.high %v5727_v21, %v5727_v21 }
  0xb9   :  { %1791 = vmatprep.subr.bf16.mxu1 %v4490_v25  ;;  %v4574_v25 = vld [vmem:[%s6464_s6 + $0x4] ss:$16 sps:$4 sm:$0xff]  }
  0xba   :  { %1738 = vmatmul.mubr.bf16.vlgmr.msra.gmra.mrb[8].mxu0 %v5562_v17 }
  0xbb   :  { %1829 = vmatpush1.bf16.msra.mxu0 %v4491_v28  ;;  %3948 = vmatprep.mubr.msk.bf16.mxu0 %vm934_vm0, %v5375_v27  ;;  %v4511_v27 = vld [vmem:[%s6462_s4 + $0x26c] ss:$16 sps:$4 sm:$0xff]   ;;  %v4572_v28 = vld [vmem:[%s6464_s6] ss:$16 sps:$4 sm:$0xff]  }
  0xbc   :  { %1792 = vmatpush1.bf16.msra.mxu1 %v4488_v8  ;;  %1830 = vmatprep.subr.bf16.mxu0 %v4499_v15  ;;  %v1889_v8 = vcombine.high %v5730_v19, %v5730_v19  ;;  %v4580_v15 = vld [vmem:[%s6464_s6 + $0x24] ss:$16 sps:$4 sm:$0xff]  }
  0xbd   :  { %1793 = vmatprep.subr.bf16.mxu1 %v4496_v24  ;;  %v4575_v24 = vld [vmem:[%s6464_s6 + $0x200] ss:$16 sps:$4 sm:$0xff]  }
  0xbf   :  { %1831 = vmatpush1.bf16.msra.mxu0 %v4497_v30  ;;  %v5760_v30 = vpack.c.bf16 %v1888_v26, %v1888_v26  ;;  %v4649_v26 = vld [vmem:[%s6464_s6 + $0x384] ss:$16 sps:$4 sm:$0xff]  }
  0xc0   :  { %1794 = vmatpush1.bf16.msra.mxu1 %v4494_v29  ;;  %1832 = vmatprep.subr.bf16.mxu0 %v4505_v32  ;;  %v4583_v29 = vld [vmem:[%s6464_s6 + $0x224] ss:$16 sps:$4 sm:$0xff]   ;;  %v4578_v32 = vld [vmem:[%s6464_s6 + $0x20] ss:$16 sps:$4 sm:$0xff]  }
  0xc1   :  { %1795 = vmatprep.subr.bf16.mxu1 %v4502_v31  ;;  %v5762_v31 = vpack.c.bf16 %v1889_v8, %v1889_v8  ;;  %v4644_v8 = vld [vmem:[%s6464_s6 + $0x180] ss:$16 sps:$4 sm:$0xff]  }
  0xc3   :  { %1833 = vmatpush1.bf16.msra.mxu0 %v4503_v34  ;;  %v4586_v34 = vld [vmem:[%s6464_s6 + $0x44] ss:$16 sps:$4 sm:$0xff]  }
  0xc4   :  { %1796 = vmatpush1.bf16.msra.mxu1 %v4500_v33  ;;  %1834 = vmatprep.subr.bf16.mxu0 %v4511_v27  ;;  %v4581_v33 = vld [vmem:[%s6464_s6 + $0x220] ss:$16 sps:$4 sm:$0xff]   ;;  %v4592_v27 = vld [vmem:[%s6464_s6 + $0x64] ss:$16 sps:$4 sm:$0xff]  }
  0xc5   :  { %1797 = vmatprep.subr.bf16.mxu1 %v4508_v35  ;;  %v4587_v35 = vld [vmem:[%s6464_s6 + $0x240] ss:$16 sps:$4 sm:$0xff]  }
  0xc7   :  { %1835 = vmatpush1.bf16.msra.mxu0 %v4509_v37  ;;  %v4590_v37 = vld [vmem:[%s6464_s6 + $0x60] ss:$16 sps:$4 sm:$0xff]  }
  0xc8   :  { %1798 = vmatpush1.bf16.msra.mxu1 %v4506_v36  ;;  %1836 = vmatprep.subr.bf16.mxu0 %v4517_v39  ;;  %v4595_v36 = vld [vmem:[%s6464_s6 + $0x264] ss:$16 sps:$4 sm:$0xff]  }
  0xc9   :  { %1799 = vmatprep.subr.bf16.mxu1 %v4514_v38  ;;  %v4593_v38 = vld [vmem:[%s6464_s6 + $0x260] ss:$16 sps:$4 sm:$0xff]   ;;  %v4598_v39 = vld [vmem:[%s6464_s6 + $0x84] ss:$16 sps:$4 sm:$0xff]  }
  0xcb   :  { %1837 = vmatpush1.bf16.msra.mxu0 %v4515_v42  ;;  %v4596_v42 = vld [vmem:[%s6464_s6 + $0x80] ss:$16 sps:$4 sm:$0xff]  }
  0xcc   :  { %1800 = vmatpush1.bf16.msra.mxu1 %v4512_v40  ;;  %1838 = vmatprep.subr.bf16.mxu0 %v4523_v44  ;;  %v4601_v40 = vld [vmem:[%s6464_s6 + $0x284] ss:$16 sps:$4 sm:$0xff]  }
  0xcd   :  { %1801 = vmatprep.subr.bf16.mxu1 %v4520_v43  ;;  %v4599_v43 = vld [vmem:[%s6464_s6 + $0x280] ss:$16 sps:$4 sm:$0xff]   ;;  %v4604_v44 = vld [vmem:[%s6464_s6 + $0xa4] ss:$16 sps:$4 sm:$0xff]  }
  0xcf   :  { %1839 = vmatpush1.bf16.msra.mxu0 %v4521_v47  ;;  %v4602_v47 = vld [vmem:[%s6464_s6 + $0xa0] ss:$16 sps:$4 sm:$0xff]  }
  0xd0   :  { %1802 = vmatpush1.bf16.msra.mxu1 %v4518_v45  ;;  %1840 = vmatprep.subr.bf16.mxu0 %v4529_v49  ;;  %v4607_v45 = vld [vmem:[%s6464_s6 + $0x2a4] ss:$16 sps:$4 sm:$0xff]  }
  0xd1   :  { %1803 = vmatprep.subr.bf16.mxu1 %v4526_v48  ;;  %v4605_v48 = vld [vmem:[%s6464_s6 + $0x2a0] ss:$16 sps:$4 sm:$0xff]   ;;  %v4610_v49 = vld [vmem:[%s6464_s6 + $0xc4] ss:$16 sps:$4 sm:$0xff]  }
  0xd3   :  { %1841 = vmatpush1.bf16.msra.mxu0 %v4527_v51  ;;  %v4608_v51 = vld [vmem:[%s6464_s6 + $0xc0] ss:$16 sps:$4 sm:$0xff]  }
  0xd4   :  { %1804 = vmatpush1.bf16.msra.mxu1 %v4524_v50  ;;  %1842 = vmatprep.subr.bf16.mxu0 %v4535_v53  ;;  %v4613_v50 = vld [vmem:[%s6464_s6 + $0x2c4] ss:$16 sps:$4 sm:$0xff]  }
  0xd5   :  { %1805 = vmatprep.subr.bf16.mxu1 %v4532_v52  ;;  %v4611_v52 = vld [vmem:[%s6464_s6 + $0x2c0] ss:$16 sps:$4 sm:$0xff]   ;;  %v4616_v53 = vld [vmem:[%s6464_s6 + $0xe4] ss:$16 sps:$4 sm:$0xff]  }
  0xd7   :  { %1843 = vmatpush1.bf16.msra.mxu0 %v4533_v55  ;;  %v4614_v55 = vld [vmem:[%s6464_s6 + $0xe0] ss:$16 sps:$4 sm:$0xff]  }
  0xd8   :  { %1806 = vmatpush1.bf16.msra.mxu1 %v4530_v54  ;;  %1844 = vmatprep.subr.bf16.mxu0 %v4541_v57  ;;  %v4619_v54 = vld [vmem:[%s6464_s6 + $0x2e4] ss:$16 sps:$4 sm:$0xff]  }
  0xd9   :  { %1807 = vmatprep.subr.bf16.mxu1 %v4538_v56  ;;  %v4617_v56 = vld [vmem:[%s6464_s6 + $0x2e0] ss:$16 sps:$4 sm:$0xff]   ;;  %v4622_v57 = vld [vmem:[%s6464_s6 + $0x104] ss:$16 sps:$4 sm:$0xff]  }
  0xdb   :  { %1845 = vmatpush1.bf16.msra.mxu0 %v4539_v59 }
  0xdc   :  { %1808 = vmatpush1.bf16.msra.mxu1 %v4536_v58  ;;  %1846 = vmatprep.subr.bf16.mxu0 %v4547_v61  ;;  %v4625_v58 = vld [vmem:[%s6464_s6 + $0x304] ss:$16 sps:$4 sm:$0xff]   ;;  %v4623_v61 = vld [vmem:[%s6464_s6 + $0x300] ss:$16 sps:$4 sm:$0xff]  }
  0xdd   :  { %1809 = vmatprep.subr.bf16.mxu1 %v4544_v60  ;;  %v4620_v60 = vld [vmem:[%s6464_s6 + $0x100] ss:$16 sps:$4 sm:$0xff]  }
  0xdf   :  { %1847 = vmatpush1.bf16.msra.mxu0 %v4545_v63 }
  0xe0   :  { %1810 = vmatpush1.bf16.msra.mxu1 %v4542_v62  ;;  %1848 = vmatprep.subr.bf16.mxu0 %v4553_v1  ;;  %v4628_v1 = vld [vmem:[%s6464_s6 + $0x124] ss:$16 sps:$4 sm:$0xff]  }
  0xe1   :  { %1811 = vmatprep.subr.bf16.mxu1 %v4550_v0 }
  0xe3   :  { %1849 = vmatpush1.bf16.msra.mxu0 %v4551_v3  ;;  %v4626_v3 = vld [vmem:[%s6464_s6 + $0x120] ss:$16 sps:$4 sm:$0xff]  }
  0xe4   :  { %1812 = vmatpush1.bf16.msra.mxu1 %v4548_v2  ;;  %1850 = vmatprep.subr.bf16.mxu0 %v4559_v5  ;;  %v4631_v2 = vld [vmem:[%s6464_s6 + $0x324] ss:$16 sps:$4 sm:$0xff]  }
  0xe5   :  { %1813 = vmatprep.subr.bf16.mxu1 %v4556_v4  ;;  %v4629_v4 = vld [vmem:[%s6464_s6 + $0x320] ss:$16 sps:$4 sm:$0xff]   ;;  %v4634_v5 = vld [vmem:[%s6464_s6 + $0x144] ss:$16 sps:$4 sm:$0xff]  }
  0xe7   :  { %1851 = vmatpush1.bf16.msra.mxu0 %v4557_v9  ;;  %v4632_v9 = vld [vmem:[%s6464_s6 + $0x140] ss:$16 sps:$4 sm:$0xff]  }
  0xe8   :  { %1814 = vmatpush1.bf16.msra.mxu1 %v4554_v6  ;;  %1852 = vmatprep.subr.bf16.mxu0 %v4565_v11  ;;  %v4637_v6 = vld [vmem:[%s6464_s6 + $0x344] ss:$16 sps:$4 sm:$0xff]  }
  0xe9   :  { %1815 = vmatprep.subr.bf16.mxu1 %v4562_v10  ;;  %v4635_v10 = vld [vmem:[%s6464_s6 + $0x340] ss:$16 sps:$4 sm:$0xff]  }
  0xeb   :  { %1853 = vmatpush1.bf16.msra.mxu0 %v4563_v14 }
  0xec   :  { %1816 = vmatpush1.bf16.msra.mxu1 %v4560_v13  ;;  %1854 = vmatprep.subr.bf16.mxu0 %v4571_v20  ;;  %v4640_v20 = vld [vmem:[%s6464_s6 + $0x164] ss:$16 sps:$4 sm:$0xff]  }
  0xed   :  { %1817 = vmatprep.subr.bf16.mxu1 %v4568_v18 }
  0xef   :  { %1855 = vmatpush1.bf16.msra.mxu0 %v4569_v23  ;;  %v4638_v23 = vld [vmem:[%s6464_s6 + $0x160] ss:$16 sps:$4 sm:$0xff]  }
  0xf0   :  { %1818 = vmatpush1.bf16.msra.mxu1 %v4566_v22  ;;  %2922 = vmatprep.subr.bf16.mxu0 %v4574_v25  ;;  %v4643_v22 = vld [vmem:[%s6464_s6 + $0x364] ss:$16 sps:$4 sm:$0xff]   ;;  %v4641_v25 = vld [vmem:[%s6464_s6 + $0x360] ss:$16 sps:$4 sm:$0xff]  }
  0xf1   :  { %2963 = vmatprep.subr.bf16.mxu1 %v4577_v46  ;;  %v4646_v46 = vld [vmem:[%s6464_s6 + $0x184] ss:$16 sps:$4 sm:$0xff]  }
  0xf2   :  { %1861 = vmatmul.mubr.bf16.vlgmr.msra.gmra.mrb[12].mxu0 %v5532_v16  ;;  %v4589_v16 = vld [vmem:[%s6464_s6 + $0x244] ss:$16 sps:$4 sm:$0xff]  }
  0xf3   :  { %1820 = vmatmul.mubr.bf16.vlgmr.msra.gmra.mrb[12].mxu1 %v5562_v17  ;;  %2923 = vmatpush1.bf16.msra.mxu0 %v4572_v28  ;;  %v4584_v17 = vld [vmem:[%s6464_s6 + $0x40] ss:$16 sps:$4 sm:$0xff]  }
  0xf4   :  { %2964 = vmatpush1.bf16.msra.mxu1 %v4575_v24  ;;  %2924 = vmatprep.subr.bf16.mxu0 %v4580_v15  ;;  %v4647_v28 = vld [vmem:[%s6464_s6 + $0x380] ss:$16 sps:$4 sm:$0xff]   ;;  %v4652_v24 = vld [vmem:[%s6464_s6 + $0x1a4] ss:$16 sps:$4 sm:$0xff]  }
  0xf5   :  { %2965 = vmatprep.subr.bf16.mxu1 %v4583_v29  ;;  %2954 = vmatprep.mubr.bf16.mxu0 %v5760_v30  ;;  %v4655_v15 = vld [vmem:[%s6464_s6 + $0x3a4] ss:$16 sps:$4 sm:$0xff]   ;;  %v4650_v29 = vld [vmem:[%s6464_s6 + $0x1a0] ss:$16 sps:$4 sm:$0xff]  }
  0xf6   :  { %2995 = vmatprep.mubr.bf16.mxu1 %v5762_v31 }
  0xf7   :  { %2925 = vmatpush1.bf16.msra.mxu0 %v4578_v32  ;;  %v4653_v32 = vld [vmem:[%s6464_s6 + $0x3a0] ss:$16 sps:$4 sm:$0xff]  }
  0xf8   :  { %2966 = vmatpush1.bf16.msra.mxu1 %v4581_v33  ;;  %2926 = vmatprep.subr.bf16.mxu0 %v4586_v34  ;;  %v4658_v33 = vld [vmem:[%s6464_s6 + $0x1c4] ss:$16 sps:$4 sm:$0xff]  }
  0xf9   :  { %2967 = vmatprep.subr.bf16.mxu1 %v4589_v16  ;;  %v4661_v34 = vld [vmem:[%s6464_s6 + $0x3c4] ss:$16 sps:$4 sm:$0xff]   ;;  %v4656_v16 = vld [vmem:[%s6464_s6 + $0x1c0] ss:$16 sps:$4 sm:$0xff]  }
  0xfb   :  { %2927 = vmatpush1.bf16.msra.mxu0 %v4584_v17  ;;  %v4659_v17 = vld [vmem:[%s6464_s6 + $0x3c0] ss:$16 sps:$4 sm:$0xff]  }
  0xfc   :  { %2968 = vmatpush1.bf16.msra.mxu1 %v4587_v35  ;;  %2928 = vmatprep.subr.bf16.mxu0 %v4592_v27  ;;  %v4664_v35 = vld [vmem:[%s6464_s6 + $0x1e4] ss:$16 sps:$4 sm:$0xff]  }
  0xfd   :  { %2969 = vmatprep.subr.bf16.mxu1 %v4595_v36  ;;  %v4667_v27 = vld [vmem:[%s6464_s6 + $0x3e4] ss:$16 sps:$4 sm:$0xff]   ;;  %v5943_v36 = vld.sshfl [vmem:[%s6460_s2 + $0x8] sm:$0x33 pattern:$0x76325410] }
  0xff   :  { %2929 = vmatpush1.bf16.msra.mxu0 %v4590_v37  ;;  %v4662_v37 = vld [vmem:[%s6464_s6 + $0x1e0] ss:$16 sps:$4 sm:$0xff]  }
 0x100   :  { %2970 = vmatpush1.bf16.msra.mxu1 %v4593_v38  ;;  %2930 = vmatprep.subr.bf16.mxu0 %v4598_v39  ;;  %v4665_v38 = vld [vmem:[%s6464_s6 + $0x3e0] ss:$16 sps:$4 sm:$0xff]   ;;  %v4671_v39 = vld [vmem:[%s6464_s6 + $0x404] ss:$16 sps:$4 sm:$0xff]  }
 0x101   :  { %2971 = vmatprep.subr.bf16.mxu1 %v4601_v40  ;;  %v4674_v40 = vld [vmem:[%s6464_s6 + $0xc] ss:$16 sps:$4 sm:$0xff]  }
 0x103   :  { %2931 = vmatpush1.bf16.msra.mxu0 %v4596_v42  ;;  %v1897_v42 = vcombine.high %v5943_v36, %v5943_v36 }
 0x104   :  { %2972 = vmatpush1.bf16.msra.mxu1 %v4599_v43  ;;  %2932 = vmatprep.subr.bf16.mxu0 %v4604_v44 }
 0x105   :  { %2973 = vmatprep.subr.bf16.mxu1 %v4607_v45 }
 0x107   :  { %2933 = vmatpush1.bf16.msra.mxu0 %v4602_v47 }
 0x108   :  { %2974 = vmatpush1.bf16.msra.mxu1 %v4605_v48  ;;  %2934 = vmatprep.subr.bf16.mxu0 %v4610_v49 }
 0x109   :  { %2975 = vmatprep.subr.bf16.mxu1 %v4613_v50 }
 0x10b   :  { %2935 = vmatpush1.bf16.msra.mxu0 %v4608_v51 }
 0x10c   :  { %2976 = vmatpush1.bf16.msra.mxu1 %v4611_v52  ;;  %2936 = vmatprep.subr.bf16.mxu0 %v4616_v53 }
 0x10d   :  { %2977 = vmatprep.subr.bf16.mxu1 %v4619_v54 }
 0x10e   :  { %v1013_v59 = vpop.f32.mrb[0].mxu1 }
 0x10f   :  { %v1015_v62 = vpop.f32.mrb[1].mxu1  ;;  %2937 = vmatpush1.bf16.msra.mxu0 %v4614_v55 }
 0x110   :  { %v1017_v63 = vpop.f32.mrb[2].mxu1  ;;  %2978 = vmatpush1.bf16.msra.mxu1 %v4617_v56  ;;  %2938 = vmatprep.subr.bf16.mxu0 %v4622_v57 }
 0x111   :  { %v1018_v0 = vpop.f32.mrb[3].mxu1  ;;  %2979 = vmatprep.subr.bf16.mxu1 %v4625_v58 }
 0x113   :  { %2939 = vmatpush1.bf16.msra.mxu0 %v4620_v60 }
 0x114   :  { %2980 = vmatpush1.bf16.msra.mxu1 %v4623_v61  ;;  %2940 = vmatprep.subr.bf16.mxu0 %v4628_v1 }
 0x115   :  { %2981 = vmatprep.subr.bf16.mxu1 %v4631_v2  ;;  %v972_v7 = vpop.f32.mrb[0].mxu0 }
 0x116   :  { %v5882_v11 = vadd.f32 %v1013_v59, %v972_v7  ;;  %v974_v12 = vpop.f32.mrb[1].mxu0 }
 0x117   :  { %v5884_v13 = vadd.f32 %v1015_v62, %v974_v12  ;;  %v976_v14 = vpop.f32.mrb[2].mxu0  ;;  %2941 = vmatpush1.bf16.msra.mxu0 %v4626_v3 }
 0x118   :  { %2982 = vmatpush1.bf16.msra.mxu1 %v4629_v4  ;;  %v977_v18 = vpop.f32.mrb[3].mxu0  ;;  %2942 = vmatprep.subr.bf16.mxu0 %v4634_v5 }
 0x119   :  { %2983 = vmatprep.subr.bf16.mxu1 %v4637_v6 }
 0x11b   :  { %2943 = vmatpush1.bf16.msra.mxu0 %v4632_v9 }
 0x11c   :  { %2984 = vmatpush1.bf16.msra.mxu1 %v4635_v10  ;;  %2944 = vmatprep.subr.bf16.mxu0 %v4640_v20 }
 0x11d   :  { %2985 = vmatprep.subr.bf16.mxu1 %v4643_v22 }
 0x11f   :  { %2945 = vmatpush1.bf16.msra.mxu0 %v4638_v23 }
 0x120   :  { %2986 = vmatpush1.bf16.msra.mxu1 %v4641_v25  ;;  %2946 = vmatprep.subr.bf16.mxu0 %v4646_v46 }
 0x121   :  { %2987 = vmatprep.subr.bf16.mxu1 %v4649_v26 }
 0x123   :  { %2947 = vmatpush1.bf16.msra.mxu0 %v4644_v8 }
 0x124   :  { %2988 = vmatpush1.bf16.msra.mxu1 %v4647_v28  ;;  %2948 = vmatprep.subr.bf16.mxu0 %v4652_v24 }
 0x125   :  { %2989 = vmatprep.subr.bf16.mxu1 %v4655_v15 }
 0x127   :  { %2949 = vmatpush1.bf16.msra.mxu0 %v4650_v29 }
 0x128   :  { %2990 = vmatpush1.bf16.msra.mxu1 %v4653_v32  ;;  %2950 = vmatprep.subr.bf16.mxu0 %v4658_v33 }
 0x129   :  { %2991 = vmatprep.subr.bf16.mxu1 %v4661_v34 }
 0x12b   :  { %2951 = vmatpush1.bf16.msra.mxu0 %v4656_v16 }
 0x12c   :  { %2992 = vmatpush1.bf16.msra.mxu1 %v4659_v17  ;;  %2952 = vmatprep.subr.bf16.mxu0 %v4664_v35 }
 0x12d   :  { %2993 = vmatprep.subr.bf16.mxu1 %v4667_v27 }
 0x12e   :  { %16 = vsyncpa [#allocation3], 0  ;;  %v5961_v43 = vpack.c.bf16 %v5727_v21, %v5727_v21  ;;  %v5965_v44 = vpack.c.bf16 %v5730_v19, %v5730_v19  ;;  %v4669_v45 = vld [vmem:[%s6464_s6 + $0x400] ss:$16 sps:$4 sm:$0xff]   ;;  %v4672_v47 = vld [vmem:[%s6464_s6 + $0x8] ss:$16 sps:$4 sm:$0xff]   ;;  %v5979_v48 = vpack.c.bf16 %v1897_v42, %v1897_v42  ;;  %v6100_v27 = vpack.c.bf16 %v5943_v36, %v5943_v36 }
 0x12f   :  { %2953 = vmatpush1.bf16.msra.mxu0 %v4662_v37  ;;  %v4677_v21 = vld [vmem:[%s6464_s6 + $0x424] ss:$16 sps:$4 sm:$0xff]   ;;  %v4680_v19 = vld [vmem:[%s6464_s6 + $0x2c] ss:$16 sps:$4 sm:$0xff]   ;;  %vm2918_vm1 = vcmask 261120   ;;  %s4895_s13 = smov [#allocation2]  }
 0x130   :  { %2994 = vmatpush1.bf16.msra.mxu1 %v4665_v38  ;;  %3004 = vmatprep.subr.bf16.mxu0 %v4671_v39  ;;  %v4675_v49 = vld [vmem:[%s6464_s6 + $0x420] ss:$16 sps:$4 sm:$0xff]   ;;  %v4678_v50 = vld [vmem:[%s6464_s6 + $0x28] ss:$16 sps:$4 sm:$0xff]   ;;  %v4683_v51 = vld [vmem:[%s6464_s6 + $0x444] ss:$16 sps:$4 sm:$0xff]  }
 0x131   :  { %3045 = vmatprep.subr.bf16.mxu1 %v4674_v40  ;;  %v4686_v52 = vld [vmem:[%s6464_s6 + $0x4c] ss:$16 sps:$4 sm:$0xff]   ;;  %v4681_v53 = vld [vmem:[%s6464_s6 + $0x440] ss:$16 sps:$4 sm:$0xff]   ;;  %v4684_v54 = vld [vmem:[%s6464_s6 + $0x48] ss:$16 sps:$4 sm:$0xff]  }
 0x132   :  { %2955 = vmatmul.mubr.bf16.vlgmr.msra.gmra.mrb[16].mxu0 %v5961_v43  ;;  %v4689_v55 = vld [vmem:[%s6464_s6 + $0x464] ss:$16 sps:$4 sm:$0xff]   ;;  %v4687_v56 = vld [vmem:[%s6464_s6 + $0x460] ss:$16 sps:$4 sm:$0xff]   ;;  %v4690_v57 = vld [vmem:[%s6464_s6 + $0x68] ss:$16 sps:$4 sm:$0xff]  }
 0x133   :  { %2996 = vmatmul.mubr.bf16.vlgmr.msra.gmra.mrb[16].mxu1 %v5965_v44  ;;  %3005 = vmatpush1.bf16.msra.mxu0 %v4669_v45  ;;  %v4695_v58 = vld [vmem:[%s6464_s6 + $0x484] ss:$16 sps:$4 sm:$0xff]   ;;  %v4698_v59 = vld [vmem:[%s6464_s6 + $0x8c] ss:$16 sps:$4 sm:$0xff]   ;;  %v4693_v60 = vld [vmem:[%s6464_s6 + $0x480] ss:$16 sps:$4 sm:$0xff]  }
 0x134   :  { %3046 = vmatpush1.bf16.msra.mxu1 %v4672_v47  ;;  %3006 = vmatprep.subr.bf16.mxu0 %v4677_v21  ;;  %v4696_v61 = vld [vmem:[%s6464_s6 + $0x88] ss:$16 sps:$4 sm:$0xff]   ;;  %v4701_v62 = vld [vmem:[%s6464_s6 + $0x4a4] ss:$16 sps:$4 sm:$0xff]   ;;  %v4704_v63 = vld [vmem:[%s6464_s6 + $0xac] ss:$16 sps:$4 sm:$0xff]  }
 0x135   :  { %3047 = vmatprep.subr.bf16.mxu1 %v4680_v19  ;;  %4118 = vmatprep.mubr.msk.bf16.mxu0 %vm2918_vm1, %v5979_v48  ;;  %v4699_v0 = vld [vmem:[%s6464_s6 + $0x4a0] ss:$16 sps:$4 sm:$0xff]   ;;  %v4702_v1 = vld [vmem:[%s6464_s6 + $0xa8] ss:$16 sps:$4 sm:$0xff]   ;;  %v4707_v2 = vld [vmem:[%s6464_s6 + $0x4c4] ss:$16 sps:$4 sm:$0xff]  }
 0x136   :  { %3077 = vmatprep.mubr.bf16.mxu1 %v5760_v30  ;;  %v4692_v30 = vld [vmem:[%s6464_s6 + $0x6c] ss:$16 sps:$4 sm:$0xff]   ;;  %v4705_v4 = vld [vmem:[%s6464_s6 + $0x4c0] ss:$16 sps:$4 sm:$0xff]   ;;  %v4708_v5 = vld [vmem:[%s6464_s6 + $0xc8] ss:$16 sps:$4 sm:$0xff]  }
 0x137   :  { %3007 = vmatpush1.bf16.msra.mxu0 %v4675_v49  ;;  %v4710_v3 = vld [vmem:[%s6464_s6 + $0xcc] ss:$16 sps:$4 sm:$0xff]   ;;  %v4713_v6 = vld [vmem:[%s6464_s6 + $0x4e4] ss:$16 sps:$4 sm:$0xff]   ;;  %v4711_v9 = vld [vmem:[%s6464_s6 + $0x4e0] ss:$16 sps:$4 sm:$0xff]  }
 0x138   :  { %3048 = vmatpush1.bf16.msra.mxu1 %v4678_v50  ;;  %3008 = vmatprep.subr.bf16.mxu0 %v4683_v51  ;;  %v4716_v7 = vld [vmem:[%s6464_s6 + $0xec] ss:$16 sps:$4 sm:$0xff]   ;;  %v4714_v10 = vld [vmem:[%s6464_s6 + $0xe8] ss:$16 sps:$4 sm:$0xff]   ;;  %v4719_v12 = vld [vmem:[%s6464_s6 + $0x504] ss:$16 sps:$4 sm:$0xff]  }
 0x139   :  { %3049 = vmatprep.subr.bf16.mxu1 %v4686_v52  ;;  %v4722_v14 = vld [vmem:[%s6464_s6 + $0x10c] ss:$16 sps:$4 sm:$0xff]   ;;  %v4717_v28 = vld [vmem:[%s6464_s6 + $0x500] ss:$16 sps:$4 sm:$0xff]   ;;  %v4720_v24 = vld [vmem:[%s6464_s6 + $0x108] ss:$16 sps:$4 sm:$0xff]  }
 0x13a   :  { %v4725_v32 = vld [vmem:[%s6464_s6 + $0x524] ss:$16 sps:$4 sm:$0xff]   ;;  %v4728_v33 = vld [vmem:[%s6464_s6 + $0x12c] ss:$16 sps:$4 sm:$0xff]   ;;  %v4723_v34 = vld [vmem:[%s6464_s6 + $0x520] ss:$16 sps:$4 sm:$0xff]  }
 0x13b   :  { %3009 = vmatpush1.bf16.msra.mxu0 %v4681_v53  ;;  %v4726_v16 = vld [vmem:[%s6464_s6 + $0x128] ss:$16 sps:$4 sm:$0xff]   ;;  %v4731_v17 = vld [vmem:[%s6464_s6 + $0x14c] ss:$16 sps:$4 sm:$0xff]   ;;  %s3697_s1 = sshll.u32 %s4895_s13, 4  ;;  %vm3689_vm2 = vcmask 517120   ;;  %s3698_s1 = int_to_ptr.vmem [resolvable:$true] %s3697_s1 }
 0x13c   :  { %3050 = vmatpush1.bf16.msra.mxu1 %v4684_v54  ;;  %3010 = vmatprep.subr.bf16.mxu0 %v4689_v55  ;;  %v4734_v35 = vld [vmem:[%s6464_s6 + $0x20c] ss:$16 sps:$4 sm:$0xff]   ;;  %v4729_v37 = vld [vmem:[%s6464_s6 + $0x148] ss:$16 sps:$4 sm:$0xff]   ;;  %s4869_s14 = scalar_lea.vmem %s3698_s1, 32  ;;  %p4874_p1 = scmp.lt.s32.totalorder %s3698_s1, %s3698_s1 }
 0x13d   :  { %3051 = vmatprep.subr.bf16.mxu1 %v4692_v30  ;;  %v4732_v38 = vld [vmem:[%s6464_s6 + $0x208] ss:$16 sps:$4 sm:$0xff]   ;;  %v4737_v39 = vld [vmem:[%s6464_s6 + $0x16c] ss:$16 sps:$4 sm:$0xff]   ;;  %p4870_p0 = scmp.ne.s32.totalorder %s3698_s1, %s4869_s14  ;;  %p4875_p2 = scmp.lt.s32.totalorder %s4869_s14, %s4869_s14 }
 0x13e   :  { %v4740_v36 = vld [vmem:[%s6464_s6 + $0x22c] ss:$16 sps:$4 sm:$0xff]   ;;  %v4735_v40 = vld [vmem:[%s6464_s6 + $0x168] ss:$16 sps:$4 sm:$0xff]  }
 0x13f   :  { %3011 = vmatpush1.bf16.msra.mxu0 %v4687_v56  ;;  %v4738_v42 = vld [vmem:[%s6464_s6 + $0x228] ss:$16 sps:$4 sm:$0xff]   ;;  %v4743_v45 = vld [vmem:[%s6464_s6 + $0x18c] ss:$16 sps:$4 sm:$0xff]   ;;  %p4876_p3 = por %p4875_p2, %p4874_p1 }
 0x140   :  { %3052 = vmatpush1.bf16.msra.mxu1 %v4690_v57  ;;  %3012 = vmatprep.subr.bf16.mxu0 %v4695_v58  ;;  %v4746_v47 = vld [vmem:[%s6464_s6 + $0x24c] ss:$16 sps:$4 sm:$0xff]   ;;  %v4741_v21 = vld [vmem:[%s6464_s6 + $0x188] ss:$16 sps:$4 sm:$0xff]  }
 0x141   :  { %3053 = vmatprep.subr.bf16.mxu1 %v4698_v59  ;;  %v4744_v19 = vld [vmem:[%s6464_s6 + $0x248] ss:$16 sps:$4 sm:$0xff]   ;;  %v4749_v49 = vld [vmem:[%s6464_s6 + $0x1ac] ss:$16 sps:$4 sm:$0xff]   ;;  %p4877_p4 = pnand %p4876_p3, %p4870_p0 }
 0x142   :  { %v4747_v50 = vld [vmem:[%s6464_s6 + $0x1a8] ss:$16 sps:$4 sm:$0xff]   ;;  %v4755_v52 = vld [vmem:[%s6464_s6 + $0x1cc] ss:$16 sps:$4 sm:$0xff]  }
 0x143   :  { %3013 = vmatpush1.bf16.msra.mxu0 %v4693_v60  ;;  %v4750_v51 = vld [vmem:[%s6464_s6 + $0x268] ss:$16 sps:$4 sm:$0xff]   ;;  %v4758_v53 = vld [vmem:[%s6464_s6 + $0x28c] ss:$16 sps:$4 sm:$0xff]  }
 0x144   :  { %3054 = vmatpush1.bf16.msra.mxu1 %v4696_v61  ;;  %3014 = vmatprep.subr.bf16.mxu0 %v4701_v62  ;;  %v4753_v54 = vld [vmem:[%s6464_s6 + $0x1c8] ss:$16 sps:$4 sm:$0xff]   ;;  %v4761_v30 = vld [vmem:[%s6464_s6 + $0x1ec] ss:$16 sps:$4 sm:$0xff]  }
 0x145   :  { %3055 = vmatprep.subr.bf16.mxu1 %v4704_v63  ;;  %v4756_v55 = vld [vmem:[%s6464_s6 + $0x288] ss:$16 sps:$4 sm:$0xff]   ;;  %v4764_v56 = vld [vmem:[%s6464_s6 + $0x2ac] ss:$16 sps:$4 sm:$0xff]  }
 0x146   :  { %v4759_v57 = vld [vmem:[%s6464_s6 + $0x1e8] ss:$16 sps:$4 sm:$0xff]   ;;  %v4767_v59 = vld [vmem:[%s6464_s6 + $0x2cc] ss:$16 sps:$4 sm:$0xff]  }
 0x147   :  { %3015 = vmatpush1.bf16.msra.mxu0 %v4699_v0  ;;  %v4762_v58 = vld [vmem:[%s6464_s6 + $0x2a8] ss:$16 sps:$4 sm:$0xff]   ;;  %v4770_v60 = vld [vmem:[%s6464_s6 + $0x40c] ss:$16 sps:$4 sm:$0xff]  }
 0x148   :  { %3056 = vmatpush1.bf16.msra.mxu1 %v4702_v1  ;;  %3016 = vmatprep.subr.bf16.mxu0 %v4707_v2  ;;  %v4765_v61 = vld [vmem:[%s6464_s6 + $0x2c8] ss:$16 sps:$4 sm:$0xff]   ;;  %v4773_v63 = vld [vmem:[%s6464_s6 + $0x2ec] ss:$16 sps:$4 sm:$0xff]  }
 0x149   :  { %3057 = vmatprep.subr.bf16.mxu1 %v4710_v3  ;;  %v4768_v62 = vld [vmem:[%s6464_s6 + $0x408] ss:$16 sps:$4 sm:$0xff]   ;;  %v4776_v0 = vld [vmem:[%s6464_s6 + $0x42c] ss:$16 sps:$4 sm:$0xff]  }
 0x14a   :  { %v4771_v1 = vld [vmem:[%s6464_s6 + $0x2e8] ss:$16 sps:$4 sm:$0xff]   ;;  %v4779_v3 = vld [vmem:[%s6464_s6 + $0x30c] ss:$16 sps:$4 sm:$0xff]  }
 0x14b   :  { %3017 = vmatpush1.bf16.msra.mxu0 %v4705_v4  ;;  %v4774_v2 = vld [vmem:[%s6464_s6 + $0x428] ss:$16 sps:$4 sm:$0xff]  }
 0x14c   :  { %3058 = vmatpush1.bf16.msra.mxu1 %v4708_v5  ;;  %3018 = vmatprep.subr.bf16.mxu0 %v4713_v6  ;;  %v4777_v4 = vld [vmem:[%s6464_s6 + $0x308] ss:$16 sps:$4 sm:$0xff]   ;;  %v4785_v6 = vld [vmem:[%s6464_s6 + $0x32c] ss:$16 sps:$4 sm:$0xff]  }
 0x14d   :  { %3059 = vmatprep.subr.bf16.mxu1 %v4716_v7  ;;  %v1095_v20 = vpop.f32.mrb[4].mxu0  ;;  %v4780_v5 = vld [vmem:[%s6464_s6 + $0x448] ss:$16 sps:$4 sm:$0xff]  }
 0x14e   :  { %v1054_v18 = vpop.f32.mrb[4].mxu1  ;;  %v1097_v25 = vpop.f32.mrb[5].mxu0  ;;  %v4783_v7 = vld [vmem:[%s6464_s6 + $0x328] ss:$16 sps:$4 sm:$0xff]  }
 0x14f   :  { %v6070_v22 = vadd.f32 %v1095_v20, %v1054_v18  ;;  %v1056_v23 = vpop.f32.mrb[5].mxu1  ;;  %v1099_v8 = vpop.f32.mrb[6].mxu0  ;;  %3019 = vmatpush1.bf16.msra.mxu0 %v4711_v9  ;;  %v4786_v9 = vld [vmem:[%s6464_s6 + $0x468] ss:$16 sps:$4 sm:$0xff]   ;;  %v4797_v20 = vld [vmem:[%s6464_s6 + $0x36c] ss:$16 sps:$4 sm:$0xff]  }
 0x150   :  { %v6072_v46 = vadd.f32 %v1097_v25, %v1056_v23  ;;  %v1058_v26 = vpop.f32.mrb[6].mxu1  ;;  %3060 = vmatpush1.bf16.msra.mxu1 %v4714_v10  ;;  %v1100_v29 = vpop.f32.mrb[7].mxu0  ;;  %3020 = vmatprep.subr.bf16.mxu0 %v4719_v12  ;;  %v4791_v10 = vld [vmem:[%s6464_s6 + $0x34c] ss:$16 sps:$4 sm:$0xff]   ;;  %v4792_v18 = vld [vmem:[%s6464_s6 + $0x488] ss:$16 sps:$4 sm:$0xff]  }
 0x151   :  { %v1059_v15 = vpop.f32.mrb[7].mxu1  ;;  %3061 = vmatprep.subr.bf16.mxu1 %v4722_v14  ;;  %v4794_v12 = vld [vmem:[%s6464_s6 + $0x48c] ss:$16 sps:$4 sm:$0xff]   ;;  %v4789_v14 = vld [vmem:[%s6464_s6 + $0x348] ss:$16 sps:$4 sm:$0xff]  }
 0x152   :  { %v4800_v23 = vld [vmem:[%s6464_s6 + $0x4ac] ss:$16 sps:$4 sm:$0xff]   ;;  %v4795_v25 = vld [vmem:[%s6464_s6 + $0x368] ss:$16 sps:$4 sm:$0xff]  }
 0x153   :  { %3021 = vmatpush1.bf16.msra.mxu0 %v4717_v28  ;;  %v4798_v26 = vld [vmem:[%s6464_s6 + $0x4a8] ss:$16 sps:$4 sm:$0xff]   ;;  %v4803_v8 = vld [vmem:[%s6464_s6 + $0x38c] ss:$16 sps:$4 sm:$0xff]  }
 0x154   :  { %3062 = vmatpush1.bf16.msra.mxu1 %v4720_v24  ;;  %3022 = vmatprep.subr.bf16.mxu0 %v4725_v32  ;;  %v4806_v28 = vld [vmem:[%s6464_s6 + $0x4cc] ss:$16 sps:$4 sm:$0xff]   ;;  %v4801_v32 = vld [vmem:[%s6464_s6 + $0x388] ss:$16 sps:$4 sm:$0xff]  }
 0x155   :  { %3063 = vmatprep.subr.bf16.mxu1 %v4728_v33  ;;  %v4804_v33 = vld [vmem:[%s6464_s6 + $0x4c8] ss:$16 sps:$4 sm:$0xff]  }
 0x157   :  { %3023 = vmatpush1.bf16.msra.mxu0 %v4723_v34 }
 0x158   :  { %3064 = vmatpush1.bf16.msra.mxu1 %v4726_v16  ;;  %3086 = vmatprep.subr.bf16.mxu0 %v4734_v35  ;;  %v4809_v16 = vld [vmem:[%s6464_s6 + $0x3ac] ss:$16 sps:$4 sm:$0xff]   ;;  %v4807_v35 = vld [vmem:[%s6464_s6 + $0x3a8] ss:$16 sps:$4 sm:$0xff]  }
 0x159   :  { %3065 = vmatprep.subr.bf16.mxu1 %v4731_v17  ;;  %v4812_v17 = vld [vmem:[%s6464_s6 + $0x4ec] ss:$16 sps:$4 sm:$0xff]  }
 0x15a   :  { %3037 = vmatmul.mubr.bf16.vlgmr.msra.gmra.mrb[20].mxu0 %v6100_v27 }
 0x15b   :  { %3087 = vmatpush1.bf16.msra.mxu0 %v4732_v38  ;;  %3118 = vmatprep.mubr.bf16.mxu0 %v5762_v31  ;;  %v4752_v31 = vld [vmem:[%s6464_s6 + $0x26c] ss:$16 sps:$4 sm:$0xff]  }
 0x15c   :  { %3066 = vmatpush1.bf16.msra.mxu1 %v4729_v37  ;;  %3088 = vmatprep.subr.bf16.mxu0 %v4740_v36  ;;  %v4810_v37 = vld [vmem:[%s6464_s6 + $0x4e8] ss:$16 sps:$4 sm:$0xff]   ;;  %v4815_v38 = vld [vmem:[%s6464_s6 + $0x3cc] ss:$16 sps:$4 sm:$0xff]  }
 0x15d   :  { %3067 = vmatprep.subr.bf16.mxu1 %v4737_v39  ;;  %v4818_v39 = vld [vmem:[%s6464_s6 + $0x50c] ss:$16 sps:$4 sm:$0xff]  }
 0x15f   :  { %3089 = vmatpush1.bf16.msra.mxu0 %v4738_v42 }
 0x160   :  { %3068 = vmatpush1.bf16.msra.mxu1 %v4735_v40  ;;  %3090 = vmatprep.subr.bf16.mxu0 %v4746_v47 }
 0x161   :  { %3069 = vmatprep.subr.bf16.mxu1 %v4743_v45 }
 0x163   :  { %3091 = vmatpush1.bf16.msra.mxu0 %v4744_v19  ;;  %v4816_v19 = vld [vmem:[%s6464_s6 + $0x508] ss:$16 sps:$4 sm:$0xff]  }
 0x164   :  { %3070 = vmatpush1.bf16.msra.mxu1 %v4741_v21  ;;  %3092 = vmatprep.subr.bf16.mxu0 %v4752_v31  ;;  %v4813_v21 = vld [vmem:[%s6464_s6 + $0x3c8] ss:$16 sps:$4 sm:$0xff]  }
 0x165   :  { %3071 = vmatprep.subr.bf16.mxu1 %v4749_v49 }
 0x167   :  { %3093 = vmatpush1.bf16.msra.mxu0 %v4750_v51  ;;  %v4819_v51 = vld [vmem:[%s6464_s6 + $0x3e8] ss:$16 sps:$4 sm:$0xff]  }
 0x168   :  { %3072 = vmatpush1.bf16.msra.mxu1 %v4747_v50  ;;  %3094 = vmatprep.subr.bf16.mxu0 %v4758_v53  ;;  %v4827_v53 = vld [vmem:[%s6465_s7 + $0x4] ss:$16 sps:$4 sm:$0xff]  }
 0x169   :  { %3073 = vmatprep.subr.bf16.mxu1 %v4755_v52  ;;  %v4822_v52 = vld [vmem:[%s6464_s6 + $0x528] ss:$16 sps:$4 sm:$0xff]  }
 0x16b   :  { %3095 = vmatpush1.bf16.msra.mxu0 %v4756_v55  ;;  %v4825_v55 = vld [vmem:[%s6465_s7] ss:$16 sps:$4 sm:$0xff]  }
 0x16c   :  { %3074 = vmatpush1.bf16.msra.mxu1 %v4753_v54  ;;  %3096 = vmatprep.subr.bf16.mxu0 %v4764_v56  ;;  %v4830_v54 = vld [vmem:[%s6465_s7 + $0xc] ss:$16 sps:$4 sm:$0xff]   ;;  %v4833_v56 = vld [vmem:[%s6465_s7 + $0x24] ss:$16 sps:$4 sm:$0xff]  }
 0x16d   :  { %3075 = vmatprep.subr.bf16.mxu1 %v4761_v30  ;;  %v4828_v30 = vld [vmem:[%s6465_s7 + $0x8] ss:$16 sps:$4 sm:$0xff]  }
 0x16f   :  { %3097 = vmatpush1.bf16.msra.mxu0 %v4762_v58  ;;  %v4831_v58 = vld [vmem:[%s6465_s7 + $0x20] ss:$16 sps:$4 sm:$0xff]  }
 0x170   :  { %3076 = vmatpush1.bf16.msra.mxu1 %v4759_v57  ;;  %3098 = vmatprep.subr.bf16.mxu0 %v4767_v59  ;;  %v4836_v57 = vld [vmem:[%s6465_s7 + $0x2c] ss:$16 sps:$4 sm:$0xff]   ;;  %v4834_v59 = vld [vmem:[%s6465_s7 + $0x28] ss:$16 sps:$4 sm:$0xff]  }
 0x171   :  { %3127 = vmatprep.subr.bf16.mxu1 %v4770_v60  ;;  %v3172_v60 = vld [vmem:[%s6461_s3] sm:$0x3] }
 0x173   :  { %3078 = vmatmul.mubr.bf16.vlgmr.msra.gmra.mrb[20].mxu1 %v5961_v43  ;;  %3099 = vmatpush1.bf16.msra.mxu0 %v4765_v61  ;;  %v4782_v43 = vld [vmem:[%s6464_s6 + $0x44c] ss:$16 sps:$4 sm:$0xff]   ;;  %v4894_v61 = vmov 0  }
 0x174   :  { %3128 = vmatpush1.bf16.msra.mxu1 %v4768_v62  ;;  %3100 = vmatprep.subr.bf16.mxu0 %v4773_v63 }
 0x175   :  { %3129 = vmatprep.subr.bf16.mxu1 %v4776_v0  ;;  %4119 = vmatprep.mubr.msk.bf16.mxu1 %vm2918_vm1, %v5979_v48  ;;  %v4788_v48 = vld [vmem:[%s6464_s6 + $0x46c] ss:$16 sps:$4 sm:$0xff]  }
 0x177   :  { %3101 = vmatpush1.bf16.msra.mxu0 %v4771_v1 }
 0x178   :  { %3130 = vmatpush1.bf16.msra.mxu1 %v4774_v2  ;;  %3102 = vmatprep.subr.bf16.mxu0 %v4779_v3 }
 0x179   :  { %3131 = vmatprep.subr.bf16.mxu1 %v4782_v43 }
 0x17b   :  { %3103 = vmatpush1.bf16.msra.mxu0 %v4777_v4 }
 0x17c   :  { %3132 = vmatpush1.bf16.msra.mxu1 %v4780_v5  ;;  %3104 = vmatprep.subr.bf16.mxu0 %v4785_v6 }
 0x17d   :  { %3133 = vmatprep.subr.bf16.mxu1 %v4788_v48  ;;  %v4837_v48 = vld [vmem:[%s6467_s9 + $0x40] sm:$0xff]  }
 0x17f   :  { %3105 = vmatpush1.bf16.msra.mxu0 %v4783_v7  ;;  %v4838_v7 = vld [vmem:[%s6467_s9 + $0xc0] sm:$0xff]  }
 0x180   :  { %3134 = vmatpush1.bf16.msra.mxu1 %v4786_v9  ;;  %3106 = vmatprep.subr.bf16.mxu0 %v4791_v10  ;;  %v4841_v10 = vld [vmem:[%s6467_s9 + $0x48] sm:$0xff]  }
 0x181   :  { %3135 = vmatprep.subr.bf16.mxu1 %v4794_v12  ;;  %v4842_v12 = vld [vmem:[%s6467_s9 + $0xc8] sm:$0xff]  }
 0x183   :  { %3107 = vmatpush1.bf16.msra.mxu0 %v4789_v14  ;;  %v4843_v14 = vld [vmem:[%s6467_s9 + $0x8] sm:$0xff]  }
 0x184   :  { %3136 = vmatpush1.bf16.msra.mxu1 %v4792_v18  ;;  %3108 = vmatprep.subr.bf16.mxu0 %v4797_v20  ;;  %v4844_v18 = vld [vmem:[%s6467_s9 + $0x88] sm:$0xff]   ;;  %v4845_v20 = vld [vmem:[%s6467_s9 + $0x50] sm:$0xff]  }
 0x185   :  { %3137 = vmatprep.subr.bf16.mxu1 %v4800_v23  ;;  %v4846_v23 = vld [vmem:[%s6467_s9 + $0xd0] sm:$0xff]  }
 0x186   :  { %v1780_v24 = vpop.f32.mrb[8].mxu1 }
 0x187   :  { %v1782_v15 = vpop.f32.mrb[9].mxu1  ;;  %3109 = vmatpush1.bf16.msra.mxu0 %v4795_v25  ;;  %v4847_v25 = vld [vmem:[%s6467_s9 + $0x10] sm:$0xff]  }
 0x188   :  { %v1784_v29 = vpop.f32.mrb[10].mxu1  ;;  %3138 = vmatpush1.bf16.msra.mxu1 %v4798_v26  ;;  %3110 = vmatprep.subr.bf16.mxu0 %v4803_v8  ;;  %v4848_v26 = vld [vmem:[%s6467_s9 + $0x90] sm:$0xff]   ;;  %v4849_v8 = vld [vmem:[%s6467_s9 + $0x58] sm:$0xff]  }
 0x189   :  { %v1785_v34 = vpop.f32.mrb[11].mxu1  ;;  %3139 = vmatprep.subr.bf16.mxu1 %v4806_v28  ;;  %v4850_v28 = vld [vmem:[%s6467_s9 + $0xd8] sm:$0xff]   ;;  %v4853_v29 = vld [vmem:[%s6467_s9 + $0x60] sm:$0xff]  }
 0x18a   :  { %v4856_v34 = vld [vmem:[%s6467_s9 + $0xa0] sm:$0xff]  }
 0x18b   :  { %3111 = vmatpush1.bf16.msra.mxu0 %v4801_v32  ;;  %v4854_v32 = vld [vmem:[%s6467_s9 + $0xe0] sm:$0xff]  }
 0x18c   :  { %3140 = vmatpush1.bf16.msra.mxu1 %v4804_v33  ;;  %3112 = vmatprep.subr.bf16.mxu0 %v4809_v16  ;;  %v4855_v33 = vld [vmem:[%s6467_s9 + $0x20] sm:$0xff]   ;;  %v4857_v16 = vld [vmem:[%s6467_s9 + $0x68] sm:$0xff]  }
 0x18d   :  { %3141 = vmatprep.subr.bf16.mxu1 %v4812_v17  ;;  %v1739_v36 = vpop.f32.mrb[8].mxu0  ;;  %v4858_v17 = vld [vmem:[%s6467_s9 + $0xe8] sm:$0xff]  }
 0x18e   :  { %v1740_v40 = vadd.f32 %v1739_v36, %v5882_v11  ;;  %v1741_v42 = vpop.f32.mrb[9].mxu0  ;;  %v4821_v11 = vld [vmem:[%s6464_s6 + $0x3ec] ss:$16 sps:$4 sm:$0xff]   ;;  %v4863_v36 = vld [vmem:[%s6467_s9 + $0x30] sm:$0xff]  }
 0x18f   :  { %v1742_v45 = vadd.f32 %v1741_v42, %v5884_v13  ;;  %v1743_v47 = vpop.f32.mrb[10].mxu0  ;;  %3113 = vmatpush1.bf16.msra.mxu0 %v4807_v35  ;;  %v4824_v13 = vld [vmem:[%s6464_s6 + $0x52c] ss:$16 sps:$4 sm:$0xff]  }
 0x190   :  { %3142 = vmatpush1.bf16.msra.mxu1 %v4810_v37  ;;  %v6283_v49 = vadd.f32 %v1780_v24, %v1740_v40  ;;  %v1744_v31 = vpop.f32.mrb[11].mxu0  ;;  %3114 = vmatprep.subr.bf16.mxu0 %v4815_v38  ;;  %v4851_v24 = vld [vmem:[%s6467_s9 + $0x18] sm:$0xff]   ;;  %v4859_v35 = vld [vmem:[%s6467_s9 + $0x28] sm:$0xff]   ;;  %v4861_v38 = vld [vmem:[%s6467_s9 + $0x70] sm:$0xff]  }
 0x191   :  { %3143 = vmatprep.subr.bf16.mxu1 %v4818_v39  ;;  %v6291_v50 = vadd.f32 %v1782_v15, %v1742_v45  ;;  %v4852_v15 = vld [vmem:[%s6467_s9 + $0x98] sm:$0xff]   ;;  %v4860_v37 = vld [vmem:[%s6467_s9 + $0xa8] sm:$0xff]   ;;  %v4862_v39 = vld [vmem:[%s6467_s9 + $0xf0] sm:$0xff]  }
 0x192   :  { %v4864_v40 = vld [vmem:[%s6467_s9 + $0xb0] sm:$0xff]   ;;  %v4865_v42 = vld [vmem:[%s6467_s9 + $0x78] sm:$0xff]  }
 0x193   :  { %3115 = vmatpush1.bf16.msra.mxu0 %v4813_v21  ;;  %v4866_v45 = vld [vmem:[%s6467_s9 + $0xf8] sm:$0xff]  }
 0x194   :  { %3144 = vmatpush1.bf16.msra.mxu1 %v4816_v19  ;;  %3116 = vmatprep.subr.bf16.mxu0 %v4821_v11  ;;  %v4867_v47 = vld [vmem:[%s6467_s9 + $0x38] sm:$0xff]  }
 0x195   :  { %3145 = vmatprep.subr.bf16.mxu1 %v4824_v13  ;;  %v4868_v21 = vld [vmem:[%s6467_s9 + $0xb8] sm:$0xff]  }
 0x197   :  { %3117 = vmatpush1.bf16.msra.mxu0 %v4819_v51 }
 0x198   :  { %3146 = vmatpush1.bf16.msra.mxu1 %v4822_v52  ;;  %3225 = vmatprep.subr.bf16.mxu0 %v4827_v53 }
 0x199   :  { %3266 = vmatprep.subr.bf16.mxu1 %v4830_v54 }
 0x19a   :  { %3119 = vmatmul.mubr.bf16.vlgmr.msra.gmra.mrb[24].mxu0 %v5965_v44  ;;  %v3173_v44 = vpack.c.bf16 %v3172_v60, %v3172_v60 }
 0x19b   :  { %3160 = vmatmul.mubr.bf16.vlgmr.msra.gmra.mrb[24].mxu1 %v6100_v27  ;;  %3226 = vmatpush1.bf16.msra.mxu0 %v4825_v55 }
 0x19c   :  { %3267 = vmatpush1.bf16.msra.mxu1 %v4828_v30  ;;  %3227 = vmatprep.subr.bf16.mxu0 %v4833_v56 }
 0x19d   :  { %3268 = vmatprep.subr.bf16.mxu1 %v4836_v57  ;;  %3257 = vmatprep.mubr.bf16.mxu0 %v4894_v61 }
 0x19e   :  { %3298 = vmatprep.mubr.bf16.mxu1 %v4894_v61 }
 0x19f   :  { %3228 = vmatpush1.bf16.msra.mxu0 %v4831_v58 }
 0x1a0   :  { %3269 = vmatpush1.bf16.msra.mxu1 %v4834_v59  ;;  %4163 = vmatprep.subr.bf16.mxu0 %v4837_v48 }
 0x1a1   :  { %4185 = vmatprep.subr.bf16.mxu1 %v4838_v7 }
 0x1a2   :  { %4128 = vmatmul.mubr.msk.bf16.vlgmr.msra.gmra.mrb[28].mxu0 %vm2918_vm1, %v3173_v44 }
 0x1a3   :  { %4129 = vmatmul.mubr.msk.bf16.vlgmr.msra.gmra.mrb[28].mxu1 %vm2918_vm1, %v3173_v44 }
 0x1c5   :  { %v1862_v62 = vpop.f32.mrb[12].mxu0 }
 0x1c6   :  { %v1821_v27 = vpop.f32.mrb[12].mxu1  ;;  %v1864_v1 = vpop.f32.mrb[13].mxu0 }
 0x1c7   :  { %v1822_v63 = vadd.f32 %v1821_v27, %v6070_v22  ;;  %v1823_v0 = vpop.f32.mrb[13].mxu1  ;;  %v1866_v43 = vpop.f32.mrb[14].mxu0  ;;  %v4839_v22 = vld [vmem:[%s6467_s9] sm:$0xff]  }
 0x1c8   :  { %v1824_v2 = vadd.f32 %v1823_v0, %v6072_v46  ;;  %v1825_v3 = vpop.f32.mrb[14].mxu1  ;;  %v1867_v6 = vpop.f32.mrb[15].mxu0  ;;  %v4840_v46 = vld [vmem:[%s6467_s9 + $0x80] sm:$0xff]   ;;  %4164 = vmatpush3.bf16.msra.mxu0 %v4839_v22 }
 0x1c9   :  { %v6332_v4 = vadd.f32 %v1862_v62, %v1822_v63  ;;  %v1826_v5 = vpop.f32.mrb[15].mxu1  ;;  %4186 = vmatpush3.bf16.msra.mxu1 %v4840_v46  ;;  %4165 = vmatprep.subr.bf16.mxu0 %v4841_v10 }
 0x1ca   :  { %v6343_v9 = vadd.f32 %v1864_v1, %v1824_v2  ;;  %4187 = vmatprep.subr.bf16.mxu1 %v4842_v12 }
 0x1cc   :  { %4166 = vmatpush3.bf16.msra.mxu0 %v4843_v14  ;;  %v3315_v14 = vsub.s32 0, %v5067_v41 }
 0x1cd   :  { %4188 = vmatpush3.bf16.msra.mxu1 %v4844_v18  ;;  %4167 = vmatprep.subr.bf16.mxu0 %v4845_v20  ;;  %v3311_v18 = vld [vmem:[%s6466_s8] sm:$0xf]  ;;  %v3319_v20 = vsub.s32 1, %v5067_v41 }
 0x1ce   :  { %4189 = vmatprep.subr.bf16.mxu1 %v4846_v23  ;;  %v3327_v23 = vsub.s32 3, %v5067_v41 }
 0x1d0   :  { %4168 = vmatpush3.bf16.msra.mxu0 %v4847_v25 }
 0x1d1   :  { %4190 = vmatpush3.bf16.msra.mxu1 %v4848_v26  ;;  %4169 = vmatprep.subr.bf16.mxu0 %v4849_v8  ;;  %v3316_v8 = vrot.slane %v3311_v18, %v3315_v14 }
 0x1d2   :  { %4191 = vmatprep.subr.bf16.mxu1 %v4850_v28 }
 0x1d4   :  { %4170 = vmatpush3.bf16.msra.mxu0 %v4851_v24 }
 0x1d5   :  { %4192 = vmatpush3.bf16.msra.mxu1 %v4852_v15  ;;  %4171 = vmatprep.subr.bf16.mxu0 %v4853_v29  ;;  %v3320_v29 = vrot.slane %v3311_v18, %v3319_v20 }
 0x1d6   :  { %4193 = vmatprep.subr.bf16.mxu1 %v4854_v32  ;;  %v3328_v32 = vrot.slane %v3311_v18, %v3327_v23 }
 0x1d8   :  { %4172 = vmatpush3.bf16.msra.mxu0 %v4855_v33 }
 0x1d9   :  { %4194 = vmatpush3.bf16.msra.mxu1 %v4856_v34  ;;  %4173 = vmatprep.subr.bf16.mxu0 %v4857_v16 }
 0x1da   :  { %4195 = vmatprep.subr.bf16.mxu1 %v4858_v17 }
 0x1dc   :  { %4174 = vmatpush3.bf16.msra.mxu0 %v4859_v35 }
 0x1dd   :  { %4196 = vmatpush3.bf16.msra.mxu1 %v4860_v37  ;;  %4175 = vmatprep.subr.bf16.mxu0 %v4861_v38 }
 0x1de   :  { %4197 = vmatprep.subr.bf16.mxu1 %v4862_v39 }
 0x1e0   :  { %4176 = vmatpush3.bf16.msra.mxu0 %v4863_v36 }
 0x1e1   :  { %4198 = vmatpush3.bf16.msra.mxu1 %v4864_v40  ;;  %4177 = vmatprep.subr.bf16.mxu0 %v4865_v42 }
 0x1e2   :  { %4199 = vmatprep.subr.bf16.mxu1 %v4866_v45 }
 0x1e4   :  { %4178 = vmatpush3.bf16.msra.mxu0 %v4867_v47 }
 0x1e5   :  { %4200 = vmatpush3.bf16.msra.mxu1 %v4868_v21 }
 0x205   :  { %v2956_v19 = vpop.f32.mrb[16].mxu0 }
 0x206   :  { %v2997_v31 = vpop.f32.mrb[16].mxu1  ;;  %v2958_v13 = vpop.f32.mrb[17].mxu0 }
 0x207   :  { %v2998_v11 = vadd.f32 %v2997_v31, %v2956_v19  ;;  %v2999_v51 = vpop.f32.mrb[17].mxu1  ;;  %v2960_v53 = vpop.f32.mrb[18].mxu0 }
 0x208   :  { %v3000_v52 = vadd.f32 %v2999_v51, %v2958_v13  ;;  %v3001_v54 = vpop.f32.mrb[18].mxu1  ;;  %v2961_v55 = vpop.f32.mrb[19].mxu0 }
 0x209   :  { %v3002_v30 = vpop.f32.mrb[19].mxu1  ;;  %v4130_v54 = vld [vmem:[%s6468_s10] ss:$0 sm:$0xff] }
 0x22d   :  { %v3038_v56 = vpop.f32.mrb[20].mxu0 }
 0x22e   :  { %v3039_v57 = vadd.f32 %v3038_v56, %v2998_v11  ;;  %v3040_v58 = vpop.f32.mrb[21].mxu0 }
 0x22f   :  { %v3041_v59 = vadd.f32 %v3040_v58, %v3000_v52  ;;  %v3042_v60 = vpop.f32.mrb[22].mxu0 }
 0x230   :  { %v3043_v61 = vpop.f32.mrb[23].mxu0  ;;  %v3168_v44 = vadd.f32 %v3039_v57, %v6283_v49  ;;  %v3323_v49 = vsub.s32 2, %v5067_v41 }
 0x231   :  { %v3169_v27 = vadd.f32 %v3041_v59, %v6291_v50 }
 0x232   :  { %v3324_v28 = vrot.slane %v3311_v18, %v3323_v49 }
 0x246   :  { %v3079_v62 = vpop.f32.mrb[20].mxu1 }
 0x247   :  { %v3081_v63 = vpop.f32.mrb[21].mxu1 }
 0x248   :  { %v3083_v0 = vpop.f32.mrb[22].mxu1 }
 0x249   :  { %v3084_v1 = vpop.f32.mrb[23].mxu1 }
 0x26d   :  { %v3120_v2 = vpop.f32.mrb[24].mxu0 }
 0x26e   :  { %v3161_v3 = vpop.f32.mrb[24].mxu1  ;;  %v3121_v43 = vadd.f32 %v3120_v2, %v3079_v62  ;;  %v3122_v5 = vpop.f32.mrb[25].mxu0 }
 0x26f   :  { %v3163_v6 = vpop.f32.mrb[25].mxu1  ;;  %v3123_v48 = vadd.f32 %v3122_v5, %v3081_v63  ;;  %v3124_v7 = vpop.f32.mrb[26].mxu0 }
 0x270   :  { %v3165_v22 = vpop.f32.mrb[26].mxu1  ;;  %v3162_v46 = vadd.f32 %v3161_v3, %v3121_v43  ;;  %v3125_v10 = vpop.f32.mrb[27].mxu0 }
 0x271   :  { %v3166_v12 = vpop.f32.mrb[27].mxu1  ;;  %v3164_v50 = vadd.f32 %v3163_v6, %v3123_v48 }
 0x272   :  { %v3170_v25 = vadd.f32 %v3162_v46, %v6332_v4 }
 0x273   :  { %v3171_v26 = vadd.f32 %v3164_v50, %v6343_v9 }
 0x275   :  { %v3259_v24 = vpop.f32.mrb[28].mxu0 }
 0x276   :  { %v3300_v15 = vpop.f32.mrb[28].mxu1  ;;  %v3307_v33 = vadd.f32 %v3259_v24, %v3168_v44  ;;  %v3261_v16 = vpop.f32.mrb[29].mxu0 }
 0x277   :  { %v3309_v34 = vadd.f32 %v3300_v15, %v3170_v25  ;;  %v3302_v17 = vpop.f32.mrb[29].mxu1  ;;  %v3308_v35 = vadd.f32 %v3261_v16, %v3169_v27  ;;  %v3263_v38 = vpop.f32.mrb[30].mxu0 }
 0x278   :  { %v3310_v37 = vadd.f32 %v3302_v17, %v3171_v26  ;;  %v3304_v39 = vpop.f32.mrb[30].mxu1  ;;  %v3333_v36 = vadd.f32 %v3316_v8, %v3307_v33  ;;  %v3264_v40 = vpop.f32.mrb[31].mxu0 }
 0x279   :  { %v3335_v41 = vadd.f32 %v3324_v28, %v3309_v34  ;;  %v3305_v4 = vpop.f32.mrb[31].mxu1  ;;  %v3334_v42 = vadd.f32 %v3320_v29, %v3308_v35 }
 0x27a   :  { %v3336_v9 = vadd.f32 %v3328_v32, %v3310_v37  ;;  %v3337_v45 = vmax.f32 %v3333_v36, 0.0 }
 0x27b   :  { %v3339_v47 = vmax.f32 %v3335_v41, 0.0  ;;  %v3338_v21 = vmax.f32 %v3334_v42, 0.0 }
 0x27c   :  { %v3340_v19 = vmax.f32 %v3336_v9, 0.0  ;;  %v3341_v13 = vpack.c.bf16 %v3337_v45, %v3337_v45 }
 0x27d   :  { %v3342_v31 = vpack.c.bf16 %v3338_v21, %v3338_v21  ;;  %v3343_v51 = vpack.c.bf16 %v3339_v47, %v3339_v47 }
 0x27e   :  { %v3344_v11 = vpack.c.bf16 %v3340_v19, %v3340_v19 }
 0x27f   :  { %3640 = vmatprep.mubr.bf16.mxu0 %v3342_v31 }
 0x280   :  { %3680 = vmatprep.mubr.bf16.mxu1 %v3344_v11  ;;  %3641 = vmatmul.mubr.bf16.vlgmr.msra.gmra.mrb[32].mxu0 %v3341_v13 }
 0x281   :  { %3681 = vmatmul.mubr.bf16.vlgmr.msra.gmra.mrb[32].mxu1 %v3343_v51 }
 0x353   :  { %v4179_v52 = vpop.f32.mrb[32].mxu0 }
 0x354   :  { %v4201_v53 = vpop.f32.mrb[32].mxu1  ;;  %v4180_v55 = vpop.f32.mrb[33].mxu0 }
 0x355   :  { %v4202_v30 = vpop.f32.mrb[33].mxu1  ;;  %v4181_v56 = vadd.f32 %v4180_v55, %v4179_v52  ;;  %v4182_v58 = vpop.f32.mrb[34].mxu0 }
 0x356   :  { %v4203_v57 = vadd.f32 %v4202_v30, %v4201_v53  ;;  %v4204_v59 = vpop.f32.mrb[34].mxu1  ;;  %v4183_v60 = vpop.f32.mrb[35].mxu0 }
 0x357   :  { %v4205_v61 = vpop.f32.mrb[35].mxu1  ;;  %v3643_v44 = vadd.f32 %v4181_v56, %v4130_v54 }
 0x359   :  { %v3683_v27 = vadd.f32 %v4203_v57, %v3643_v44 }
 0x35b   :  { %v3688_v62 = vmax.f32 %v3683_v27, 0.0 }
 0x35d   :  { %3690 = vst.msk [vmem:[#allocation2] sm:$0x3] %vm3689_vm2, %v3688_v62 }
 0x35e   :  { %4880 = shalt.err (!%p4877_p4)
}
 0x35f   :  { %s4881_s16 = scalar_lea.hbm %s6469_s11, 32 }
 0x360   :  { %p4882_p5 = scmp.ne.s32.totalorder %s6469_s11, %s4881_s16  ;;  %p4885_p6 = scmp.lt.u32.totalorder %s4881_s16, %s6469_s11 }
 0x362   :  { %p4887_p7 = pnand %p4885_p6, %p4882_p5 }
 0x364   :  { %4890 = shalt.err (!%p4887_p7)
}
 0x365   :  { %3700 = dma.vmem_to_hbm [thread:$0]  %s3698_s1, 32, %s6469_s11, [#allocation3]  }
 0x366   :  { %4891 = dma.done.wait [#allocation3], 32  }
 0x367   :  { %4892 = vsyncadd [#allocation3], 4294967264 }
 0x368   :  { %3704 = vsyncpa [#allocation3], 1 }

// kernel: _lambda_.14
= control target key start
LH: loop header
LB: loop body
LE: loop exit
PB: predicated region body
PF: predicated region fallthrough
CT: control target
= control target key end

     0   :  { %v5522_v3 = vmov 0.0   ;;  %vm46_vm0 = vcmask 1041408   ;;  %vm39_vm1 = vcmask 146432   ;;  %v264_v36 = vlaneseq  ;;  %s6766_s2 = inlined_call_operand.vmem [shape: f32[64,256], index: 2, kind: input, shape index: {}]   ;;  %s6767_s1 = inlined_call_operand.vmem [shape: f32[18,256], index: 1, kind: input, shape index: {}]   ;;  %s6768_s0 = inlined_call_operand.vmem [shape: f32[2,14,18], index: 0, kind: input, shape index: {}]   ;;  %s6769_s3 = inlined_call_operand.vmem [shape: f32[1,256], index: 3, kind: input, shape index: {}]   ;;  %s6770_s5 = inlined_call_operand.vmem [shape: f32[1,256], index: 5, kind: input, shape index: {}]   ;;  %s6771_s4 = inlined_call_operand.vmem [shape: f32[128,256], index: 4, kind: input, shape index: {}]   ;;  %s6772_s6 = inlined_call_operand.vmem [shape: f32[64,32], index: 6, kind: input, shape index: {}]   ;;  %s6773_s7 = inlined_call_operand.vmem [shape: f32[1,32], index: 7, kind: input, shape index: {}]   ;;  %s6774_s8 = inlined_call_operand.vmem [shape: f32[2,32], index: 8, kind: output, shape index: {}]  }
   0x1   :  { %v214_v0 = vld [vmem:[%s6766_s2 + $0x8] sm:$0xff]  ;;  %v216_v1 = vld [vmem:[%s6766_s2 + $0x18] sm:$0xff]  ;;  %117 = vmatprep.mubr.f32.mxu1 %v5522_v3  ;;  %346 = vmatprep.mubr.f32.mxu0 %v5522_v3  ;;  %v213_v6 = vld [vmem:[%s6766_s2] sm:$0xff]  ;;  %vm428_vm2 = vcmask 1041409   ;;  %vm278_vm3 = vcmask 523264   ;;  %vm700_vm4 = vcmask 1042434  }
   0x2   :  { %v34_v2 = vld [vmem:[%s6767_s1 + $0x8] sm:$0xff]  ;;  %v5582_v4 = vpack.c.bf16 %v216_v1, %v214_v0  ;;  %v36_v5 = vld [vmem:[%s6767_s1 + $0x18] sm:$0xff]  ;;  %v215_v7 = vld [vmem:[%s6766_s2 + $0x10] sm:$0xff]  ;;  %v5692_v37 = vshrl.u32 %v264_v36, 7  ;;  %vm973_vm5 = vcmask 1043459   ;;  %vm1247_vm6 = vcmask 1044484  }
   0x3   :  { %v4322_v8 = vpack.c.bf16 %v36_v5, %v34_v2  ;;  %v5593_v9 = vpack.c.bf16 %v215_v7, %v213_v6  ;;  %v33_v10 = vld [vmem:[%s6767_s1] sm:$0xff]  ;;  %v35_v11 = vld [vmem:[%s6767_s1 + $0x10] sm:$0xff]  ;;  %v218_v12 = vld [vmem:[%s6766_s2 + $0x28] sm:$0xff]  ;;  %vm1521_vm7 = vcmask 1045509   ;;  %vm1795_vm8 = vcmask 1046534  }
   0x4   :  { %4331 = vmatprep.subr.bf16.mxu0 %v5582_v4  ;;  %v4324_v13 = vpack.c.bf16 %v35_v11, %v33_v10  ;;  %v220_v14 = vld [vmem:[%s6766_s2 + $0x38] sm:$0xff]  ;;  %v38_v15 = vld [vmem:[%s6767_s1 + $0x28] sm:$0x3]  ;;  %v217_v16 = vld [vmem:[%s6766_s2 + $0x20] sm:$0xff]  ;;  %v266_v38 = vsub.s32 0, %v5692_v37  ;;  %v270_v45 = vsub.s32 1, %v5692_v37 }
   0x5   :  { %4323 = vmatprep.subr.bf16.mxu1 %v4322_v8  ;;  %4333 = vmatpush1.bf16.msra.mxu0 %v5593_v9  ;;  %v5615_v17 = vpack.c.bf16 %v220_v14, %v218_v12  ;;  %v219_v18 = vld [vmem:[%s6766_s2 + $0x30] sm:$0xff]  ;;  %v222_v20 = vld [vmem:[%s6766_s2 + $0x48] sm:$0xff]  ;;  %v224_v21 = vld [vmem:[%s6766_s2 + $0x58] sm:$0xff]  ;;  %vm2069_vm9 = vcmask 1047559   ;;  %vm2354_vm10 = vcmask 1040384   ;;  %vm5525_vm11 = vmmov 0  }
   0x6   :  { %4325 = vmatpush1.bf16.msra.mxu1 %v4324_v13  ;;  %v5620_v19 = vpack.c.bf16 %v219_v18, %v217_v16  ;;  %v221_v22 = vld [vmem:[%s6766_s2 + $0x40] sm:$0xff]  ;;  %v5636_v24 = vpack.c.bf16 %v224_v21, %v222_v20  ;;  %v223_v25 = vld [vmem:[%s6766_s2 + $0x50] sm:$0xff]  ;;  %v226_v26 = vld [vmem:[%s6766_s2 + $0x68] sm:$0xff]  ;;  %vm4180_vm12 = vcmask 254976  }
   0x7   :  { %4335 = vmatprep.subr.bf16.mxu0 %v5615_v17  ;;  %4186 = vmatprep.subr.msk.mxu1 %vm46_vm0, %v38_v15  ;;  %v37_v23 = vld [vmem:[%s6767_s1 + $0x20] sm:$0x3]  ;;  %v228_v28 = vld [vmem:[%s6766_s2 + $0x78] sm:$0xff]  ;;  %v5651_v29 = vpack.c.bf16 %v223_v25, %v221_v22  ;;  %v227_v32 = vld [vmem:[%s6766_s2 + $0x70] sm:$0xff] }
   0x8   :  { %v29_v27 = vld [vmem:[%s6768_s0] sm:$0xff]  ;;  %v5655_v30 = vpack.c.bf16 %v228_v28, %v226_v26  ;;  %v30_v33 = vld [vmem:[%s6768_s0 + $0x8] sm:$0x3f]  ;;  %v31_v35 = vld [vmem:[%s6768_s0 + $0x10] sm:$0xff] }
   0x9   :  { %4337 = vmatpush1.bf16.msra.mxu0 %v5620_v19  ;;  %v225_v31 = vld [vmem:[%s6766_s2 + $0x60] sm:$0xff]  ;;  %v231_v16 = vld [vmem:[%s6771_s4 + $0x8] sm:$0xff]  ;;  %v233_v18 = vld [vmem:[%s6771_s4 + $0x18] sm:$0xff] }
   0xa   :  { %4187 = vmatpush1.msk.msra.mxu1 %vm46_vm0, %v37_v23  ;;  %4339 = vmatprep.subr.bf16.mxu0 %v5636_v24  ;;  %v5670_v34 = vpack.c.bf16 %v227_v32, %v225_v31  ;;  %v229_v39 = vld [vmem:[%s6769_s3] sm:$0x3]  ;;  %s5523_s3 = smov 64   ;;  %v5758_v21 = vpack.c.bf16 %v233_v18, %v231_v16  ;;  %v232_v22 = vld [vmem:[%s6771_s4 + $0x10] sm:$0xff]  ;;  %v237_v25 = vld [vmem:[%s6771_s4 + $0x38] sm:$0xff] }
   0xb   :  { %4188 = vmatmul.mubr.msk.f32.vlgmr.msra.gmra.mrb[0].mxu1 %vm39_vm1, %v29_v27  ;;  %4327 = vmatprep.subr.bf16.mxu1 %v4322_v8  ;;  %v5701_v40 = vld [vmem:[%s6770_s5] sm:$0x3]  ;;  %v5703_v41 = vrot.slane %v229_v39, %v266_v38  ;;  %v5715_v48 = vrot.slane %v229_v39, %v270_v45  ;;  %v236_v31 = vld [vmem:[%s6771_s4 + $0x30] sm:$0xff]  ;;  %v239_v32 = vld [vmem:[%s6771_s4 + $0x48] sm:$0xff] }
   0xc   :  { %4329 = vmatpush1.bf16.msra.mxu1 %v4324_v13  ;;  %123 = vmatprep.mubr.f32.mxu1 %v5522_v3  ;;  %v5706_v42 = vrot.slane %v5701_v40, %v266_v38  ;;  %v230_v20 = vld [vmem:[%s6771_s4] sm:$0xff]  ;;  %v240_v39 = vld [vmem:[%s6771_s4 + $0x50] sm:$0xff] }
   0xd   :  { %4341 = vmatpush1.bf16.msra.mxu0 %v5651_v29  ;;  %4190 = vmatprep.subr.msk.mxu1 %vm46_vm0, %v38_v15  ;;  %v5769_v26 = vpack.c.bf16 %v232_v22, %v230_v20  ;;  %v234_v28 = vld [vmem:[%s6771_s4 + $0x20] sm:$0xff]  ;;  %v256_v18 = vld [vmem:[%s6771_s4 + $0xd0] sm:$0xff] }
   0xe   :  { %4343 = vmatprep.subr.bf16.mxu0 %v5655_v30  ;;  %v238_v38 = vld [vmem:[%s6771_s4 + $0x40] sm:$0xff] }
   0xf   :  { %4189 = vmatmul.mubr.msk.f32.gmra.mrb[2].mxu1 %vm39_vm1, %v30_v33  ;;  %v241_v33 = vld [vmem:[%s6771_s4 + $0x58] sm:$0xff]  ;;  %v254_v16 = vld [vmem:[%s6771_s4 + $0xc0] sm:$0xff] }
  0x10   :  { %4191 = vmatpush1.msk.msra.mxu1 %vm46_vm0, %v37_v23  ;;  %200 = vmatprep.mubr.f32.mxu1 %v5522_v3  ;;  %v235_v23 = vld [vmem:[%s6771_s4 + $0x28] sm:$0xff]  ;;  %v5791_v36 = vpack.c.bf16 %v241_v33, %v239_v32  ;;  %v5874_v22 = vpack.c.bf16 %v256_v18, %v254_v16  ;;  %v32_v32 = vld [vmem:[%s6768_s0 + $0x18] sm:$0x3f]  ;;  %v258_v33 = vld [vmem:[%s6771_s4 + $0xe0] sm:$0xff] }
  0x11   :  { %4345 = vmatpush1.bf16.msra.mxu0 %v5670_v34  ;;  %v5771_v27 = vpack.c.bf16 %v237_v25, %v235_v23  ;;  %4347 = vmatprep.subr.bf16.mxu1 %v5758_v21 }
  0x12   :  { %4379 = vmatprep.subr.bf16.mxu0 %v5582_v4 }
  0x13   :  { %4192 = vmatmul.mubr.msk.f32.vlgmr.msra.gmra.mrb[4].mxu1 %vm39_vm1, %v31_v35  ;;  %v5788_v35 = vpack.c.bf16 %v236_v31, %v234_v28  ;;  %v259_v28 = vld [vmem:[%s6771_s4 + $0xe8] sm:$0xff]  ;;  %v261_v31 = vld [vmem:[%s6771_s4 + $0xf8] sm:$0xff] }
  0x14   :  { %347 = vmatmul.mubr.f32.vlgmr.msra.gmra.mrb[0].mxu0 %v5522_v3  ;;  %206 = vmatprep.mubr.f32.mxu1 %v5522_v3 }
  0x15   :  { %4381 = vmatpush1.bf16.msra.mxu0 %v5593_v9  ;;  %612 = vmatprep.mubr.f32.mxu0 %v5522_v3 }
  0x16   :  { %4383 = vmatprep.subr.bf16.mxu0 %v5615_v17  ;;  %4349 = vmatpush1.bf16.msra.mxu1 %v5769_v26 }
  0x17   :  { %4351 = vmatprep.subr.bf16.mxu1 %v5771_v27  ;;  %4193 = vmatmul.mubr.msk.f32.gmra.mrb[6].mxu1 %vm39_vm1, %v32_v32 }
  0x18   :  { %496 = vmatprep.mubr.f32.mxu1 %v5522_v3 }
  0x19   :  { %4385 = vmatpush1.bf16.msra.mxu0 %v5620_v19 }
  0x1a   :  { %4387 = vmatprep.subr.bf16.mxu0 %v5636_v24  ;;  %4353 = vmatpush1.bf16.msra.mxu1 %v5788_v35 }
  0x1b   :  { %4355 = vmatprep.subr.bf16.mxu1 %v5791_v36 }
  0x1d   :  { %4389 = vmatpush1.bf16.msra.mxu0 %v5651_v29 }
  0x1e   :  { %4391 = vmatprep.subr.bf16.mxu0 %v5655_v30 }
  0x21   :  { %4393 = vmatpush1.bf16.msra.mxu0 %v5670_v34 }
  0x22   :  { %4395 = vmatprep.subr.bf16.mxu0 %v5758_v21 }
  0xde   :  { %v119_v43 = vpop.f32.mrb[0].mxu1 }
  0xdf   :  { %v121_v44 = vpop.f32.mrb[1].mxu1  ;;  %v5738_v63 = vadd.f32 %v5703_v41, %v119_v43  ;;  %v243_v43 = vld [vmem:[%s6771_s4 + $0x68] sm:$0xff] }
  0xe0   :  { %v5724_v56 = vadd.f32 %v5715_v48, %v121_v44  ;;  %v245_v44 = vld [vmem:[%s6771_s4 + $0x78] sm:$0xff] }
  0xe2   :  { %v5709_v46 = vpop.f32.mrb[2].mxu1 }
  0xe3   :  { %v5711_v47 = vpop.f32.mrb[3].mxu1 }
  0xe6   :  { %v202_v49 = vpop.f32.mrb[4].mxu1 }
  0xe7   :  { %v204_v50 = vpop.f32.mrb[5].mxu1  ;;  %v348_v51 = vpop.f32.mrb[0].mxu0  ;;  %v5734_v60 = vadd.f32 %v5703_v41, %v202_v49  ;;  %v5806_v49 = vpack.c.bf16 %v240_v39, %v238_v38  ;;  %v260_v38 = vld [vmem:[%s6771_s4 + $0xf0] sm:$0xff] }
  0xe8   :  { %v5718_v52 = vadd.f32 %v5715_v48, %v204_v50  ;;  %v350_v53 = vpop.f32.mrb[1].mxu0  ;;  %v355_v61 = vrot.slane %v348_v51, 1  ;;  %v361_v0 = vadd.f32 %v348_v51, %v5738_v63  ;;  %v5809_v50 = vpack.c.bf16 %v245_v44, %v243_v43  ;;  %v242_v51 = vld [vmem:[%s6771_s4 + $0x60] sm:$0xff] }
  0xe9   :  { %v356_v54 = vrot.slane %v350_v53, 1  ;;  %v5727_v57 = vadd.f32 %v350_v53, %v5724_v56  ;;  %v244_v53 = vld [vmem:[%s6771_s4 + $0x70] sm:$0xff]  ;;  %4357 = vmatpush1.bf16.msra.mxu1 %v5806_v49  ;;  %v5899_v43 = vpack.c.bf16 %v260_v38, %v258_v33 }
  0xea   :  { %v363_v62 = vadd.f32 %v355_v61, %v5734_v60  ;;  %v4194_v2 = vmul.f32 -1.442695, %v361_v0  ;;  %4359 = vmatprep.subr.bf16.mxu1 %v5809_v50  ;;  %v248_v0 = vld [vmem:[%s6771_s4 + $0x90] sm:$0xff] }
  0xeb   :  { %v5721_v55 = vadd.f32 %v356_v54, %v5718_v52  ;;  %v247_v54 = vld [vmem:[%s6771_s4 + $0x88] sm:$0xff] }
  0xec   :  { %v4196_v1 = vmul.f32 -1.442695, %v363_v62  ;;  %v246_v62 = vld [vmem:[%s6771_s4 + $0x80] sm:$0xff] }
  0xed   :  { %5018 = vtanh.f32 %v5721_v55 }
  0xee   :  { %5020 = vtanh.f32 %v5727_v57 }
  0xef   :  { %5022 = vpow2.f32 %v4196_v1  ;;  %v251_v1 = vld [vmem:[%s6771_s4 + $0xa8] sm:$0xff] }
  0xf0   :  { %5024 = vpow2.f32 %v4194_v2  ;;  %v253_v2 = vld [vmem:[%s6771_s4 + $0xb8] sm:$0xff] }
  0xf7   :  { %v5019_v58 = vpop.eup %5018 }
  0xf8   :  { %397 = vrot.lane.b32.xlu0 %v5019_v58, %s5523_s3  ;;  %v5021_v59 = vpop.eup %5020  ;;  %v249_v58 = vld [vmem:[%s6771_s4 + $0x98] sm:$0xff] }
  0xf9   :  { %v5023_v5 = vpop.eup %5022  ;;  %v5827_v61 = vpack.c.bf16 %v249_v58, %v247_v54  ;;  %v4197_v54 = vmul.f32 -1.442695, %v5721_v55  ;;  %v4195_v58 = vmul.f32 -1.442695, %v5727_v57  ;;  %v5941_v57 = vpop.f32.mrb[6].mxu1 }
  0xfa   :  { %v379_v6 = vadd.f32 1.0, %v5023_v5  ;;  %v5025_v7 = vpop.eup %5024  ;;  %v5842_v5 = vpack.c.bf16 %v248_v0, %v246_v62 }
  0xfb   :  { %v377_v8 = vadd.f32 1.0, %v5025_v7  ;;  %v250_v7 = vld [vmem:[%s6771_s4 + $0xa0] sm:$0xff] }
  0xfc   :  { %395 = vrot.lane.b32.xlu0 %v5021_v59, %s5523_s3  ;;  %5026 = vrcp.f32 %v379_v6  ;;  %v5824_v59 = vpack.c.bf16 %v244_v53, %v242_v51  ;;  %v5845_v6 = vpack.c.bf16 %v253_v2, %v251_v1 }
  0xfd   :  { %5028 = vrcp.f32 %v377_v8  ;;  %v252_v8 = vld [vmem:[%s6771_s4 + $0xb0] sm:$0xff] }
  0xfe   :  { %4361 = vmatpush1.bf16.msra.mxu1 %v5824_v59 }
  0xff   :  { %4363 = vmatprep.subr.bf16.mxu1 %v5827_v61 }
 0x102   :  { %4365 = vmatpush1.bf16.msra.mxu1 %v5842_v5 }
 0x103   :  { %4367 = vmatprep.subr.bf16.mxu1 %v5845_v6 }
 0x106   :  { %v5741_v10 = vpop.eup %5026 }
 0x107   :  { %v5745_v13 = vpop.eup %5028  ;;  %v392_v20 = vmul.f32 0.0, %v5741_v10 }
 0x108   :  { %v391_v39 = vmul.f32 0.0, %v5745_v13 }
 0x16a   :  { %v398_v11 = vpop.permute.xlu0 %397 }
 0x16b   :  { %v402_v12 = vmul.f32 %v5741_v10, %v398_v11  ;;  %v255_v11 = vld [vmem:[%s6771_s4 + $0xc8] sm:$0xff]  ;;  %v5888_v10 = vpack.c.bf16 %v261_v31, %v259_v28  ;;  %v5948_v28 = vrot.slane %v5701_v40, %v270_v45 }
 0x16d   :  { %407 = vrot.lane.b32.xlu1 %v402_v12, %s5523_s3  ;;  %v257_v12 = vld [vmem:[%s6771_s4 + $0xd8] sm:$0xff] }
 0x16e   :  { %v396_v14 = vpop.permute.xlu0 %395 }
 0x16f   :  { %v401_v15 = vmul.f32 %v5745_v13, %v396_v14  ;;  %v5860_v14 = vpack.c.bf16 %v252_v8, %v250_v7 }
 0x171   :  { %405 = vrot.lane.b32.xlu1 %v401_v15, %s5523_s3  ;;  %v5863_v15 = vpack.c.bf16 %v257_v12, %v255_v11  ;;  %4369 = vmatpush1.bf16.msra.mxu1 %v5860_v14 }
 0x173   :  { %4371 = vmatprep.subr.bf16.mxu1 %v5863_v15 }
 0x175   :  { %4373 = vmatpush1.bf16.msra.mxu1 %v5874_v22 }
 0x176   :  { %4375 = vmatprep.subr.bf16.mxu1 %v5888_v10 }
 0x179   :  { %4377 = vmatpush1.bf16.msra.mxu1 %v5899_v43 }
 0x17a   :  { %4427 = vmatprep.subr.bf16.mxu1 %v5582_v4 }
 0x1df   :  { %v408_v23 = vpop.permute.xlu1 %407 }
 0x1e0   :  { %v5876_v25 = vadd.f32 %v408_v23, %v392_v20  ;;  %v5943_v23 = vpop.f32.mrb[7].mxu1 }
 0x1e2   :  { %5030 = vtanh.f32 %v5876_v25 }
 0x1e3   :  { %v406_v44 = vpop.permute.xlu1 %405 }
 0x1e4   :  { %v5903_v51 = vadd.f32 %v406_v44, %v391_v39 }
 0x1e6   :  { %5032 = vtanh.f32 %v5903_v51 }
 0x1e7   :  { %5034 = vpow2.f32 %v4197_v54 }
 0x1e8   :  { %5036 = vpow2.f32 %v4195_v58 }
 0x1ec   :  { %v5031_v53 = vpop.eup %5030 }
 0x1ed   :  { %419 = vrot.lane.b32.xlu0 %v5031_v53, %s5523_s3 }
 0x1f0   :  { %v5033_v13 = vpop.eup %5032 }
 0x1f1   :  { %417 = vrot.lane.b32.xlu1 %v5033_v13, %s5523_s3  ;;  %v5035_v62 = vpop.eup %5034 }
 0x1f2   :  { %v380_v0 = vadd.f32 1.0, %v5035_v62  ;;  %v5037_v1 = vpop.eup %5036 }
 0x1f3   :  { %v378_v2 = vadd.f32 1.0, %v5037_v1 }
 0x1f4   :  { %5038 = vrcp.f32 %v380_v0 }
 0x1f5   :  { %5040 = vrcp.f32 %v378_v2 }
 0x1fe   :  { %v5039_v7 = vpop.eup %5038 }
 0x1ff   :  { %v5041_v12 = vpop.eup %5040 }
 0x25f   :  { %v420_v8 = vpop.permute.xlu0 %419 }
 0x260   :  { %v424_v11 = vmul.f32 %v5039_v7, %v420_v8 }
 0x262   :  { %v427_v18 = vrot.slane %v424_v11, 7 }
 0x263   :  { %v418_v16 = vpop.permute.xlu1 %417 }
 0x264   :  { %v423_v20 = vmul.f32 %v5041_v12, %v418_v16 }
 0x266   :  { %v429_v55 = vsel %vm428_vm2, %v427_v18, %v423_v20 }
 0x267   :  { %4198 = vmatmul.mubr.msk.f32.vlgmr.msra.gmra.mrb[8].mxu1 %vm278_vm3, %v429_v55  ;;  %4201 = vmatmul.mubr.msk.f32.vlgmr.msra.gmra.mrb[2].mxu0 %vm278_vm3, %v429_v55 }
 0x268   :  { %4429 = vmatpush1.bf16.msra.mxu1 %v5593_v9  ;;  %883 = vmatprep.mubr.f32.mxu1 %v5522_v3 }
 0x269   :  { %4431 = vmatprep.subr.bf16.mxu1 %v5615_v17  ;;  %4397 = vmatpush1.bf16.msra.mxu0 %v5769_v26 }
 0x26a   :  { %4399 = vmatprep.subr.bf16.mxu0 %v5771_v27  ;;  %776 = vmatprep.mubr.f32.mxu0 %v5522_v3 }
 0x26c   :  { %4433 = vmatpush1.bf16.msra.mxu1 %v5620_v19 }
 0x26d   :  { %4435 = vmatprep.subr.bf16.mxu1 %v5636_v24  ;;  %4401 = vmatpush1.bf16.msra.mxu0 %v5788_v35 }
 0x26e   :  { %4403 = vmatprep.subr.bf16.mxu0 %v5791_v36 }
 0x270   :  { %4437 = vmatpush1.bf16.msra.mxu1 %v5651_v29 }
 0x271   :  { %4439 = vmatprep.subr.bf16.mxu1 %v5655_v30  ;;  %4405 = vmatpush1.bf16.msra.mxu0 %v5806_v49 }
 0x272   :  { %4407 = vmatprep.subr.bf16.mxu0 %v5809_v50 }
 0x274   :  { %4441 = vmatpush1.bf16.msra.mxu1 %v5670_v34 }
 0x275   :  { %4409 = vmatpush1.bf16.msra.mxu0 %v5824_v59  ;;  %4443 = vmatprep.subr.bf16.mxu1 %v5758_v21 }
 0x276   :  { %4411 = vmatprep.subr.bf16.mxu0 %v5827_v61 }
 0x279   :  { %4413 = vmatpush1.bf16.msra.mxu0 %v5842_v5 }
 0x27a   :  { %4415 = vmatprep.subr.bf16.mxu0 %v5845_v6 }
 0x27d   :  { %4417 = vmatpush1.bf16.msra.mxu0 %v5860_v14 }
 0x27e   :  { %4419 = vmatprep.subr.bf16.mxu0 %v5863_v15 }
 0x281   :  { %4421 = vmatpush1.bf16.msra.mxu0 %v5874_v22 }
 0x282   :  { %4423 = vmatprep.subr.bf16.mxu0 %v5888_v10 }
 0x285   :  { %4425 = vmatpush1.bf16.msra.mxu0 %v5899_v43 }
 0x286   :  { %4475 = vmatprep.subr.bf16.mxu0 %v5582_v4 }
 0x33a   :  { %v498_v31 = vpop.f32.mrb[8].mxu1  ;;  %v614_v32 = vpop.f32.mrb[2].mxu0 }
 0x33b   :  { %v500_v33 = vpop.f32.mrb[9].mxu1  ;;  %v616_v38 = vpop.f32.mrb[3].mxu0  ;;  %v514_v54 = vadd.f32 %v5706_v42, %v498_v31  ;;  %v621_v58 = vrot.slane %v614_v32, 7  ;;  %v629_v1 = vadd.f32 %v614_v32, %v5734_v60 }
 0x33c   :  { %v5951_v39 = vadd.f32 %v5948_v28, %v500_v33  ;;  %v622_v44 = vrot.slane %v616_v38, 7  ;;  %v630_v13 = vadd.f32 %v616_v38, %v5718_v52 }
 0x33d   :  { %v4199_v62 = vmul.f32 -1.442695, %v514_v54  ;;  %v627_v0 = vadd.f32 %v621_v58, %v5738_v63  ;;  %v4204_v7 = vmul.f32 -1.442695, %v629_v1  ;;  %v660_v1 = vrot.slane %v5876_v25, 7 }
 0x33e   :  { %5042 = vtanh.f32 %v5951_v39  ;;  %v628_v53 = vadd.f32 %v622_v44, %v5724_v56  ;;  %v4200_v25 = vmul.f32 -1.442695, %v5951_v39 }
 0x33f   :  { %v4202_v2 = vmul.f32 -1.442695, %v627_v0  ;;  %v659_v0 = vrot.slane %v5903_v51, 7 }
 0x340   :  { %5044 = vtanh.f32 %v628_v53  ;;  %v4203_v51 = vmul.f32 -1.442695, %v628_v53 }
 0x341   :  { %5046 = vtanh.f32 %v630_v13 }
 0x342   :  { %5048 = vpow2.f32 %v4199_v62 }
 0x343   :  { %5050 = vpow2.f32 %v4202_v2 }
 0x344   :  { %5052 = vpow2.f32 %v4204_v7 }
 0x348   :  { %v5043_v37 = vpop.eup %5042 }
 0x349   :  { %531 = vrot.lane.b32.xlu0 %v5043_v37, %s5523_s3 }
 0x34a   :  { %v5045_v40 = vpop.eup %5044 }
 0x34b   :  { %v5047_v45 = vpop.eup %5046 }
 0x34c   :  { %669 = vrot.lane.b32.xlu1 %v5047_v45, %s5523_s3  ;;  %v5049_v8 = vpop.eup %5048 }
 0x34d   :  { %667 = vrot.lane.b32.xlu0 %v5045_v40, %s5523_s3  ;;  %v522_v11 = vadd.f32 1.0, %v5049_v8  ;;  %v5051_v12 = vpop.eup %5050 }
 0x34e   :  { %v5053_v16 = vpop.eup %5052  ;;  %v643_v18 = vadd.f32 1.0, %v5051_v12 }
 0x34f   :  { %5054 = vrcp.f32 %v522_v11  ;;  %v645_v20 = vadd.f32 1.0, %v5053_v16 }
 0x350   :  { %5056 = vrcp.f32 %v643_v18 }
 0x351   :  { %5058 = vrcp.f32 %v645_v20 }
 0x359   :  { %v5055_v55 = vpop.eup %5054 }
 0x35a   :  { %v5057_v38 = vpop.eup %5056  ;;  %v529_v54 = vmul.f32 0.0, %v5055_v55 }
 0x35b   :  { %v5059_v44 = vpop.eup %5058  ;;  %v663_v2 = vmul.f32 %v5057_v38, %v659_v0 }
 0x35c   :  { %v664_v7 = vmul.f32 %v5059_v44, %v660_v1 }
 0x3bb   :  { %v532_v31 = vpop.permute.xlu0 %531 }
 0x3bc   :  { %v534_v33 = vmul.f32 %v5055_v55, %v532_v31  ;;  %v4205_v31 = vmul.f32 -1.442695, %v630_v13 }
 0x3be   :  { %536 = vrot.lane.b32.xlu1 %v534_v33, %s5523_s3  ;;  %v670_v37 = vpop.permute.xlu1 %669 }
 0x3bf   :  { %v668_v32 = vpop.permute.xlu0 %667  ;;  %v674_v45 = vmul.f32 %v5059_v44, %v670_v37 }
 0x3c0   :  { %v673_v40 = vmul.f32 %v5057_v38, %v668_v32 }
 0x3c1   :  { %679 = vrot.lane.b32.xlu0 %v674_v45, %s5523_s3 }
 0x3c2   :  { %677 = vrot.lane.b32.xlu1 %v673_v40, %s5523_s3 }
 0x430   :  { %v537_v58 = vpop.permute.xlu1 %536 }
 0x431   :  { %v5965_v62 = vadd.f32 %v537_v58, %v529_v54 }
 0x433   :  { %5060 = vtanh.f32 %v5965_v62  ;;  %v680_v11 = vpop.permute.xlu0 %679 }
 0x434   :  { %v678_v8 = vpop.permute.xlu1 %677  ;;  %v5972_v16 = vadd.f32 %v680_v11, %v664_v7 }
 0x435   :  { %v5970_v12 = vadd.f32 %v678_v8, %v663_v2 }
 0x437   :  { %5062 = vtanh.f32 %v5970_v12 }
 0x438   :  { %5064 = vtanh.f32 %v5972_v16 }
 0x439   :  { %5066 = vpow2.f32 %v4200_v25 }
 0x43a   :  { %5068 = vpow2.f32 %v4203_v51 }
 0x43b   :  { %5070 = vpow2.f32 %v4205_v31 }
 0x43d   :  { %v5061_v18 = vpop.eup %5060 }
 0x43e   :  { %542 = vrot.lane.b32.xlu0 %v5061_v18, %s5523_s3 }
 0x441   :  { %v5063_v20 = vpop.eup %5062 }
 0x442   :  { %v5065_v55 = vpop.eup %5064  ;;  %689 = vrot.lane.b32.xlu0 %v5063_v20, %s5523_s3 }
 0x443   :  { %691 = vrot.lane.b32.xlu1 %v5065_v55, %s5523_s3  ;;  %v5067_v33 = vpop.eup %5066 }
 0x444   :  { %v523_v38 = vadd.f32 1.0, %v5067_v33  ;;  %v5069_v32 = vpop.eup %5068 }
 0x445   :  { %v5071_v44 = vpop.eup %5070  ;;  %v644_v37 = vadd.f32 1.0, %v5069_v32 }
 0x446   :  { %5072 = vrcp.f32 %v523_v38  ;;  %v646_v40 = vadd.f32 1.0, %v5071_v44 }
 0x447   :  { %5074 = vrcp.f32 %v644_v37 }
 0x448   :  { %5076 = vrcp.f32 %v646_v40 }
 0x450   :  { %v5073_v45 = vpop.eup %5072 }
 0x451   :  { %v5075_v39 = vpop.eup %5074 }
 0x452   :  { %v5077_v13 = vpop.eup %5076 }
 0x4b0   :  { %v543_v54 = vpop.permute.xlu0 %542 }
 0x4b1   :  { %v545_v58 = vmul.f32 %v5073_v45, %v543_v54 }
 0x4b3   :  { %v704_v0 = vrot.slane %v545_v58, 7 }
 0x4b4   :  { %v690_v53 = vpop.permute.xlu0 %689 }
 0x4b5   :  { %705 = vrot.lane.b32.xlu1 %v704_v0, %s5523_s3  ;;  %v692_v1 = vpop.permute.xlu1 %691  ;;  %v695_v2 = vmul.f32 %v5075_v39, %v690_v53 }
 0x4b6   :  { %v696_v7 = vmul.f32 %v5077_v13, %v692_v1 }
 0x4b7   :  { %v815_v8 = vrot.slane %v695_v2, 1 }
 0x4b8   :  { %v699_v11 = vrot.slane %v696_v7, 7 }
 0x4b9   :  { %v816_v18 = vsel %vm428_vm2, %v696_v7, %v815_v8 }
 0x4ba   :  { %4208 = vmatmul.mubr.msk.f32.vlgmr.msra.gmra.mrb[10].mxu1 %vm278_vm3, %v816_v18  ;;  %v701_v20 = vsel %vm700_vm4, %v699_v11, %v695_v2 }
 0x4bb   :  { %4445 = vmatpush1.bf16.msra.mxu1 %v5769_v26  ;;  %1049 = vmatprep.mubr.f32.mxu1 %v5522_v3 }
 0x4bc   :  { %4447 = vmatprep.subr.bf16.mxu1 %v5771_v27 }
 0x4bf   :  { %4449 = vmatpush1.bf16.msra.mxu1 %v5788_v35 }
 0x4c0   :  { %4451 = vmatprep.subr.bf16.mxu1 %v5791_v36 }
 0x4c3   :  { %4453 = vmatpush1.bf16.msra.mxu1 %v5806_v49 }
 0x4c4   :  { %4455 = vmatprep.subr.bf16.mxu1 %v5809_v50 }
 0x4c7   :  { %4457 = vmatpush1.bf16.msra.mxu1 %v5824_v59 }
 0x4c8   :  { %4459 = vmatprep.subr.bf16.mxu1 %v5827_v61 }
 0x4cb   :  { %4461 = vmatpush1.bf16.msra.mxu1 %v5842_v5 }
 0x4cc   :  { %4463 = vmatprep.subr.bf16.mxu1 %v5845_v6 }
 0x4cf   :  { %4465 = vmatpush1.bf16.msra.mxu1 %v5860_v14 }
 0x4d0   :  { %4467 = vmatprep.subr.bf16.mxu1 %v5863_v15 }
 0x4d3   :  { %4469 = vmatpush1.bf16.msra.mxu1 %v5874_v22 }
 0x4d4   :  { %4471 = vmatprep.subr.bf16.mxu1 %v5888_v10 }
 0x4d7   :  { %4473 = vmatpush1.bf16.msra.mxu1 %v5899_v43 }
 0x4d8   :  { %4523 = vmatprep.subr.bf16.mxu1 %v5582_v4 }
 0x527   :  { %v706_v55 = vpop.permute.xlu1 %705 }
 0x528   :  { %v708_v25 = vsel %vm278_vm3, %v701_v20, %v706_v55 }
 0x529   :  { %v710_v51 = vrot.slane %v708_v25, 1 }
 0x52b   :  { %777 = vmatmul.mubr.f32.vlgmr.msra.gmra.mrb[4].mxu0 %v710_v51 }
 0x52c   :  { %4477 = vmatpush1.bf16.msra.mxu0 %v5593_v9  ;;  %1157 = vmatprep.mubr.f32.mxu0 %v5522_v3 }
 0x52d   :  { %4479 = vmatprep.subr.bf16.mxu0 %v5615_v17 }
 0x530   :  { %4481 = vmatpush1.bf16.msra.mxu0 %v5620_v19 }
 0x531   :  { %4483 = vmatprep.subr.bf16.mxu0 %v5636_v24 }
 0x534   :  { %4485 = vmatpush1.bf16.msra.mxu0 %v5651_v29 }
 0x535   :  { %4487 = vmatprep.subr.bf16.mxu0 %v5655_v30 }
 0x538   :  { %4489 = vmatpush1.bf16.msra.mxu0 %v5670_v34 }
 0x539   :  { %4491 = vmatprep.subr.bf16.mxu0 %v5758_v21 }
 0x58d   :  { %v885_v31 = vpop.f32.mrb[10].mxu1 }
 0x58e   :  { %v887_v33 = vpop.f32.mrb[11].mxu1  ;;  %v894_v37 = vrot.slane %v885_v31, 7  ;;  %v892_v20 = vrot.slane %v885_v31, 6 }
 0x58f   :  { %v895_v38 = vrot.slane %v887_v33, 7  ;;  %v893_v54 = vrot.slane %v887_v33, 6 }
 0x590   :  { %v902_v40 = vadd.f32 %v894_v37, %v5734_v60  ;;  %v900_v25 = vadd.f32 %v892_v20, %v5738_v63 }
 0x591   :  { %v6012_v32 = vadd.f32 %v895_v38, %v5718_v52  ;;  %v901_v53 = vadd.f32 %v893_v54, %v5724_v56 }
 0x592   :  { %v4211_v45 = vmul.f32 -1.442695, %v902_v40  ;;  %v4209_v33 = vmul.f32 -1.442695, %v900_v25  ;;  %v932_v25 = vrot.slane %v5970_v12, 7 }
 0x593   :  { %5078 = vtanh.f32 %v6012_v32  ;;  %v4210_v12 = vmul.f32 -1.442695, %v901_v53 }
 0x594   :  { %5080 = vpow2.f32 %v4211_v45 }
 0x59d   :  { %v5079_v44 = vpop.eup %5078 }
 0x59e   :  { %942 = vrot.lane.b32.xlu1 %v5079_v44, %s5523_s3  ;;  %v5081_v13 = vpop.eup %5080 }
 0x59f   :  { %v918_v1 = vadd.f32 1.0, %v5081_v13 }
 0x5fe   :  { %v778_v58 = vpop.f32.mrb[4].mxu0 }
 0x5ff   :  { %v780_v0 = vpop.f32.mrb[5].mxu0  ;;  %v783_v55 = vadd.f32 %v778_v58, %v5706_v42 }
 0x600   :  { %v784_v39 = vadd.f32 %v780_v0, %v5948_v28 }
 0x601   :  { %v4206_v51 = vmul.f32 -1.442695, %v783_v55 }
 0x602   :  { %5082 = vtanh.f32 %v784_v39 }
 0x603   :  { %5084 = vtanh.f32 %v901_v53 }
 0x604   :  { %5086 = vrcp.f32 %v918_v1  ;;  %v933_v1 = vrot.slane %v5972_v16, 7 }
 0x605   :  { %5088 = vpow2.f32 %v4206_v51 }
 0x606   :  { %5090 = vpow2.f32 %v4209_v33 }
 0x60c   :  { %v5083_v2 = vpop.eup %5082 }
 0x60d   :  { %800 = vrot.lane.b32.xlu0 %v5083_v2, %s5523_s3  ;;  %v5085_v7 = vpop.eup %5084 }
 0x60e   :  { %v5087_v8 = vpop.eup %5086 }
 0x60f   :  { %v5089_v38 = vpop.eup %5088  ;;  %v937_v2 = vmul.f32 %v5087_v8, %v933_v1 }
 0x610   :  { %v943_v11 = vpop.permute.xlu1 %942  ;;  %v791_v44 = vadd.f32 1.0, %v5089_v38  ;;  %v5091_v37 = vpop.eup %5090 }
 0x611   :  { %940 = vrot.lane.b32.xlu0 %v5085_v7, %s5523_s3  ;;  %v947_v18 = vmul.f32 %v5087_v8, %v943_v11  ;;  %v916_v40 = vadd.f32 1.0, %v5091_v37  ;;  %v4207_v37 = vmul.f32 -1.442695, %v784_v39 }
 0x612   :  { %5092 = vrcp.f32 %v791_v44 }
 0x613   :  { %5094 = vrcp.f32 %v916_v40 }
 0x615   :  { %952 = vrot.lane.b32.xlu0 %v947_v18, %s5523_s3 }
 0x61c   :  { %v5093_v45 = vpop.eup %5092 }
 0x61d   :  { %v5095_v31 = vpop.eup %5094  ;;  %v798_v20 = vmul.f32 %v5093_v45, %v5965_v62  ;;  %v4212_v62 = vmul.f32 -1.442695, %v6012_v32 }
 0x61e   :  { %v936_v33 = vmul.f32 %v5095_v31, %v932_v25 }
 0x67f   :  { %v801_v54 = vpop.permute.xlu0 %800 }
 0x680   :  { %v803_v0 = vmul.f32 %v5093_v45, %v801_v54 }
 0x682   :  { %805 = vrot.lane.b32.xlu1 %v803_v0, %s5523_s3 }
 0x683   :  { %v941_v13 = vpop.permute.xlu0 %940 }
 0x684   :  { %v946_v58 = vmul.f32 %v5095_v31, %v941_v13 }
 0x686   :  { %950 = vrot.lane.b32.xlu1 %v946_v58, %s5523_s3 }
 0x687   :  { %v953_v7 = vpop.permute.xlu0 %952 }
 0x688   :  { %v6027_v11 = vadd.f32 %v953_v7, %v937_v2 }
 0x68a   :  { %5096 = vtanh.f32 %v6027_v11 }
 0x694   :  { %v5097_v18 = vpop.eup %5096 }
 0x695   :  { %964 = vrot.lane.b32.xlu1 %v5097_v18, %s5523_s3 }
 0x6f4   :  { %v806_v55 = vpop.permute.xlu1 %805 }
 0x6f5   :  { %v6033_v51 = vadd.f32 %v806_v55, %v798_v20 }
 0x6f7   :  { %5098 = vtanh.f32 %v6033_v51 }
 0x6f8   :  { %v951_v16 = vpop.permute.xlu1 %950 }
 0x6f9   :  { %v6036_v8 = vadd.f32 %v951_v16, %v936_v33 }
 0x6fb   :  { %5100 = vtanh.f32 %v6036_v8 }
 0x6fc   :  { %5102 = vpow2.f32 %v4212_v62 }
 0x6fd   :  { %5104 = vpow2.f32 %v4207_v37 }
 0x6fe   :  { %5106 = vpow2.f32 %v4210_v12 }
 0x701   :  { %v5099_v38 = vpop.eup %5098 }
 0x702   :  { %811 = vrot.lane.b32.xlu0 %v5099_v38, %s5523_s3 }
 0x705   :  { %v5101_v44 = vpop.eup %5100 }
 0x706   :  { %962 = vrot.lane.b32.xlu0 %v5101_v44, %s5523_s3  ;;  %v5103_v40 = vpop.eup %5102 }
 0x707   :  { %v5105_v45 = vpop.eup %5104  ;;  %v919_v54 = vadd.f32 1.0, %v5103_v40  ;;  %v965_v58 = vpop.permute.xlu1 %964 }
 0x708   :  { %v792_v0 = vadd.f32 1.0, %v5105_v45  ;;  %v5107_v31 = vpop.eup %5106 }
 0x709   :  { %5108 = vrcp.f32 %v919_v54  ;;  %v917_v13 = vadd.f32 1.0, %v5107_v31 }
 0x70a   :  { %5110 = vrcp.f32 %v792_v0 }
 0x70b   :  { %5112 = vrcp.f32 %v917_v13 }
 0x713   :  { %v5109_v1 = vpop.eup %5108 }
 0x714   :  { %v5111_v2 = vpop.eup %5110  ;;  %v969_v18 = vmul.f32 %v5109_v1, %v965_v58 }
 0x715   :  { %v5113_v20 = vpop.eup %5112 }
 0x716   :  { %v972_v55 = vrot.slane %v969_v18, 7  ;;  %v1089_v33 = vrot.slane %v969_v18, 1 }
 0x774   :  { %v812_v7 = vpop.permute.xlu0 %811 }
 0x775   :  { %v814_v32 = vmul.f32 %v5111_v2, %v812_v7 }
 0x777   :  { %v977_v39 = vrot.slane %v814_v32, 6 }
 0x778   :  { %v963_v53 = vpop.permute.xlu0 %962 }
 0x779   :  { %v968_v25 = vmul.f32 %v5113_v20, %v963_v53  ;;  %978 = vrot.lane.b32.xlu1 %v977_v39, %s5523_s3 }
 0x77b   :  { %v1088_v16 = vrot.slane %v968_v25, 2  ;;  %v974_v38 = vsel %vm973_vm5, %v972_v55, %v968_v25 }
 0x77d   :  { %v1090_v44 = vsel %vm428_vm2, %v1089_v33, %v1088_v16 }
 0x77e   :  { %4215 = vmatmul.mubr.msk.f32.vlgmr.msra.gmra.mrb[6].mxu0 %vm278_vm3, %v1090_v44 }
 0x77f   :  { %4493 = vmatpush1.bf16.msra.mxu0 %v5769_v26  ;;  %1323 = vmatprep.mubr.f32.mxu0 %v5522_v3 }
 0x780   :  { %4495 = vmatprep.subr.bf16.mxu0 %v5771_v27 }
 0x783   :  { %4497 = vmatpush1.bf16.msra.mxu0 %v5788_v35 }
 0x784   :  { %4499 = vmatprep.subr.bf16.mxu0 %v5791_v36 }
 0x787   :  { %4501 = vmatpush1.bf16.msra.mxu0 %v5806_v49 }
 0x788   :  { %4503 = vmatprep.subr.bf16.mxu0 %v5809_v50 }
 0x78b   :  { %4505 = vmatpush1.bf16.msra.mxu0 %v5824_v59 }
 0x78c   :  { %4507 = vmatprep.subr.bf16.mxu0 %v5827_v61 }
 0x78f   :  { %4509 = vmatpush1.bf16.msra.mxu0 %v5842_v5 }
 0x790   :  { %4511 = vmatprep.subr.bf16.mxu0 %v5845_v6 }
 0x793   :  { %4513 = vmatpush1.bf16.msra.mxu0 %v5860_v14 }
 0x794   :  { %4515 = vmatprep.subr.bf16.mxu0 %v5863_v15 }
 0x797   :  { %4517 = vmatpush1.bf16.msra.mxu0 %v5874_v22 }
 0x798   :  { %4519 = vmatprep.subr.bf16.mxu0 %v5888_v10 }
 0x79b   :  { %4521 = vmatpush1.bf16.msra.mxu0 %v5899_v43 }
 0x79c   :  { %4571 = vmatprep.subr.bf16.mxu0 %v5582_v4 }
 0x7eb   :  { %v979_v62 = vpop.permute.xlu1 %978 }
 0x7ec   :  { %v981_v37 = vsel %vm278_vm3, %v974_v38, %v979_v62 }
 0x7ed   :  { %v983_v12 = vrot.slane %v981_v37, 2 }
 0x7ef   :  { %1050 = vmatmul.mubr.f32.vlgmr.msra.gmra.mrb[12].mxu1 %v983_v12 }
 0x7f0   :  { %4525 = vmatpush1.bf16.msra.mxu1 %v5593_v9  ;;  %1431 = vmatprep.mubr.f32.mxu1 %v5522_v3 }
 0x7f1   :  { %4527 = vmatprep.subr.bf16.mxu1 %v5615_v17 }
 0x7f4   :  { %4529 = vmatpush1.bf16.msra.mxu1 %v5620_v19 }
 0x7f5   :  { %4531 = vmatprep.subr.bf16.mxu1 %v5636_v24 }
 0x7f8   :  { %4533 = vmatpush1.bf16.msra.mxu1 %v5651_v29 }
 0x7f9   :  { %4535 = vmatprep.subr.bf16.mxu1 %v5655_v30 }
 0x7fc   :  { %4537 = vmatpush1.bf16.msra.mxu1 %v5670_v34 }
 0x7fd   :  { %4539 = vmatprep.subr.bf16.mxu1 %v5758_v21 }
 0x851   :  { %v1159_v40 = vpop.f32.mrb[6].mxu0 }
 0x852   :  { %v1161_v45 = vpop.f32.mrb[7].mxu0  ;;  %v1168_v13 = vrot.slane %v1159_v40, 6  ;;  %v1166_v44 = vrot.slane %v1159_v40, 5 }
 0x853   :  { %v1169_v54 = vrot.slane %v1161_v45, 6  ;;  %v1167_v2 = vrot.slane %v1161_v45, 5 }
 0x854   :  { %v1176_v58 = vadd.f32 %v1168_v13, %v5734_v60  ;;  %v1174_v37 = vadd.f32 %v1166_v44, %v5738_v63 }
 0x855   :  { %v6074_v0 = vadd.f32 %v1169_v54, %v5718_v52  ;;  %v1175_v39 = vadd.f32 %v1167_v2, %v5724_v56 }
 0x856   :  { %v4218_v1 = vmul.f32 -1.442695, %v1176_v58  ;;  %v4216_v45 = vmul.f32 -1.442695, %v1174_v37  ;;  %v1206_v37 = vrot.slane %v6036_v8, 7 }
 0x857   :  { %5114 = vtanh.f32 %v6074_v0  ;;  %v4217_v8 = vmul.f32 -1.442695, %v1175_v39 }
 0x858   :  { %5116 = vpow2.f32 %v4218_v1 }
 0x861   :  { %v5115_v31 = vpop.eup %5114 }
 0x862   :  { %1216 = vrot.lane.b32.xlu1 %v5115_v31, %s5523_s3  ;;  %v5117_v20 = vpop.eup %5116 }
 0x863   :  { %v1192_v53 = vadd.f32 1.0, %v5117_v20 }
 0x8c2   :  { %v1051_v7 = vpop.f32.mrb[12].mxu1 }
 0x8c3   :  { %v1053_v18 = vpop.f32.mrb[13].mxu1  ;;  %v1056_v62 = vadd.f32 %v1051_v7, %v5706_v42 }
 0x8c4   :  { %v1057_v32 = vadd.f32 %v1053_v18, %v5948_v28 }
 0x8c5   :  { %v4213_v12 = vmul.f32 -1.442695, %v1056_v62 }
 0x8c6   :  { %5118 = vtanh.f32 %v1057_v32 }
 0x8c7   :  { %5120 = vtanh.f32 %v1175_v39 }
 0x8c8   :  { %5122 = vrcp.f32 %v1192_v53  ;;  %v1207_v53 = vrot.slane %v6027_v11, 7 }
 0x8c9   :  { %5124 = vpow2.f32 %v4213_v12 }
 0x8ca   :  { %5126 = vpow2.f32 %v4216_v45 }
 0x8d0   :  { %v5119_v55 = vpop.eup %5118 }
 0x8d1   :  { %1073 = vrot.lane.b32.xlu0 %v5119_v55, %s5523_s3  ;;  %v5121_v25 = vpop.eup %5120 }
 0x8d2   :  { %v5123_v33 = vpop.eup %5122 }
 0x8d3   :  { %v5125_v54 = vpop.eup %5124  ;;  %v1211_v55 = vmul.f32 %v5123_v33, %v1207_v53 }
 0x8d4   :  { %v1217_v16 = vpop.permute.xlu1 %1216  ;;  %v1064_v31 = vadd.f32 1.0, %v5125_v54  ;;  %v5127_v13 = vpop.eup %5126 }
 0x8d5   :  { %1214 = vrot.lane.b32.xlu0 %v5121_v25, %s5523_s3  ;;  %v1221_v38 = vmul.f32 %v5123_v33, %v1217_v16  ;;  %v1190_v58 = vadd.f32 1.0, %v5127_v13  ;;  %v4214_v13 = vmul.f32 -1.442695, %v1057_v32 }
 0x8d6   :  { %5128 = vrcp.f32 %v1064_v31 }
 0x8d7   :  { %5130 = vrcp.f32 %v1190_v58 }
 0x8d9   :  { %1226 = vrot.lane.b32.xlu0 %v1221_v38, %s5523_s3 }
 0x8e0   :  { %v5129_v1 = vpop.eup %5128 }
 0x8e1   :  { %v5131_v40 = vpop.eup %5130  ;;  %v1071_v44 = vmul.f32 %v5129_v1, %v6033_v51  ;;  %v4219_v51 = vmul.f32 -1.442695, %v6074_v0 }
 0x8e2   :  { %v1210_v45 = vmul.f32 %v5131_v40, %v1206_v37 }
 0x943   :  { %v1074_v2 = vpop.permute.xlu0 %1073 }
 0x944   :  { %v1076_v18 = vmul.f32 %v5129_v1, %v1074_v2 }
 0x946   :  { %1078 = vrot.lane.b32.xlu1 %v1076_v18, %s5523_s3 }
 0x947   :  { %v1215_v20 = vpop.permute.xlu0 %1214 }
 0x948   :  { %v1220_v7 = vmul.f32 %v5131_v40, %v1215_v20 }
 0x94a   :  { %1224 = vrot.lane.b32.xlu1 %v1220_v7, %s5523_s3 }
 0x94b   :  { %v1227_v25 = vpop.permute.xlu0 %1226 }
 0x94c   :  { %v6089_v16 = vadd.f32 %v1227_v25, %v1211_v55 }
 0x94e   :  { %5132 = vtanh.f32 %v6089_v16 }
 0x958   :  { %v5133_v38 = vpop.eup %5132 }
 0x959   :  { %1238 = vrot.lane.b32.xlu1 %v5133_v38, %s5523_s3 }
 0x9b8   :  { %v1079_v62 = vpop.permute.xlu1 %1078 }
 0x9b9   :  { %v6095_v12 = vadd.f32 %v1079_v62, %v1071_v44 }
 0x9bb   :  { %5134 = vtanh.f32 %v6095_v12 }
 0x9bc   :  { %v1225_v11 = vpop.permute.xlu1 %1224 }
 0x9bd   :  { %v6098_v33 = vadd.f32 %v1225_v11, %v1210_v45 }
 0x9bf   :  { %5136 = vtanh.f32 %v6098_v33 }
 0x9c0   :  { %5138 = vpow2.f32 %v4219_v51 }
 0x9c1   :  { %5140 = vpow2.f32 %v4214_v13 }
 0x9c2   :  { %5142 = vpow2.f32 %v4217_v8 }
 0x9c5   :  { %v5135_v54 = vpop.eup %5134 }
 0x9c6   :  { %1084 = vrot.lane.b32.xlu0 %v5135_v54, %s5523_s3 }
 0x9c9   :  { %v5137_v31 = vpop.eup %5136 }
 0x9ca   :  { %1236 = vrot.lane.b32.xlu0 %v5137_v31, %s5523_s3  ;;  %v5139_v58 = vpop.eup %5138 }
 0x9cb   :  { %v5141_v1 = vpop.eup %5140  ;;  %v1193_v2 = vadd.f32 1.0, %v5139_v58  ;;  %v1239_v7 = vpop.permute.xlu1 %1238 }
 0x9cc   :  { %v1065_v18 = vadd.f32 1.0, %v5141_v1  ;;  %v5143_v40 = vpop.eup %5142 }
 0x9cd   :  { %5144 = vrcp.f32 %v1193_v2  ;;  %v1191_v20 = vadd.f32 1.0, %v5143_v40 }
 0x9ce   :  { %5146 = vrcp.f32 %v1065_v18 }
 0x9cf   :  { %5148 = vrcp.f32 %v1191_v20 }
 0x9d7   :  { %v5145_v53 = vpop.eup %5144 }
 0x9d8   :  { %v5147_v55 = vpop.eup %5146  ;;  %v1243_v38 = vmul.f32 %v5145_v53, %v1239_v7 }
 0x9d9   :  { %v5149_v44 = vpop.eup %5148 }
 0x9da   :  { %v1246_v62 = vrot.slane %v1243_v38, 7  ;;  %v1363_v45 = vrot.slane %v1243_v38, 2 }
 0xa38   :  { %v1085_v25 = vpop.permute.xlu0 %1084 }
 0xa39   :  { %v1087_v0 = vmul.f32 %v5147_v55, %v1085_v25 }
 0xa3b   :  { %v1251_v32 = vrot.slane %v1087_v0, 5 }
 0xa3c   :  { %v1237_v39 = vpop.permute.xlu0 %1236 }
 0xa3d   :  { %v1242_v37 = vmul.f32 %v5149_v44, %v1237_v39  ;;  %1252 = vrot.lane.b32.xlu1 %v1251_v32, %s5523_s3 }
 0xa3f   :  { %v1362_v11 = vrot.slane %v1242_v37, 3  ;;  %v1248_v54 = vsel %vm1247_vm6, %v1246_v62, %v1242_v37 }
 0xa41   :  { %v1364_v31 = vsel %vm428_vm2, %v1363_v45, %v1362_v11 }
 0xa42   :  { %4222 = vmatmul.mubr.msk.f32.vlgmr.msra.gmra.mrb[14].mxu1 %vm278_vm3, %v1364_v31 }
 0xa43   :  { %4541 = vmatpush1.bf16.msra.mxu1 %v5769_v26  ;;  %1597 = vmatprep.mubr.f32.mxu1 %v5522_v3 }
 0xa44   :  { %4543 = vmatprep.subr.bf16.mxu1 %v5771_v27 }
 0xa47   :  { %4545 = vmatpush1.bf16.msra.mxu1 %v5788_v35 }
 0xa48   :  { %4547 = vmatprep.subr.bf16.mxu1 %v5791_v36 }
 0xa4b   :  { %4549 = vmatpush1.bf16.msra.mxu1 %v5806_v49 }
 0xa4c   :  { %4551 = vmatprep.subr.bf16.mxu1 %v5809_v50 }
 0xa4f   :  { %4553 = vmatpush1.bf16.msra.mxu1 %v5824_v59 }
 0xa50   :  { %4555 = vmatprep.subr.bf16.mxu1 %v5827_v61 }
 0xa53   :  { %4557 = vmatpush1.bf16.msra.mxu1 %v5842_v5 }
 0xa54   :  { %4559 = vmatprep.subr.bf16.mxu1 %v5845_v6 }
 0xa57   :  { %4561 = vmatpush1.bf16.msra.mxu1 %v5860_v14 }
 0xa58   :  { %4563 = vmatprep.subr.bf16.mxu1 %v5863_v15 }
 0xa5b   :  { %4565 = vmatpush1.bf16.msra.mxu1 %v5874_v22 }
 0xa5c   :  { %4567 = vmatprep.subr.bf16.mxu1 %v5888_v10 }
 0xa5f   :  { %4569 = vmatpush1.bf16.msra.mxu1 %v5899_v43 }
 0xa60   :  { %4619 = vmatprep.subr.bf16.mxu1 %v5582_v4 }
 0xaaf   :  { %v1253_v51 = vpop.permute.xlu1 %1252 }
 0xab0   :  { %v1255_v13 = vsel %vm278_vm3, %v1248_v54, %v1253_v51 }
 0xab1   :  { %v1257_v8 = vrot.slane %v1255_v13, 3 }
 0xab3   :  { %1324 = vmatmul.mubr.f32.vlgmr.msra.gmra.mrb[8].mxu0 %v1257_v8 }
 0xab4   :  { %4573 = vmatpush1.bf16.msra.mxu0 %v5593_v9  ;;  %1705 = vmatprep.mubr.f32.mxu0 %v5522_v3 }
 0xab5   :  { %4575 = vmatprep.subr.bf16.mxu0 %v5615_v17 }
 0xab8   :  { %4577 = vmatpush1.bf16.msra.mxu0 %v5620_v19 }
 0xab9   :  { %4579 = vmatprep.subr.bf16.mxu0 %v5636_v24 }
 0xabc   :  { %4581 = vmatpush1.bf16.msra.mxu0 %v5651_v29 }
 0xabd   :  { %4583 = vmatprep.subr.bf16.mxu0 %v5655_v30 }
 0xac0   :  { %4585 = vmatpush1.bf16.msra.mxu0 %v5670_v34 }
 0xac1   :  { %4587 = vmatprep.subr.bf16.mxu0 %v5758_v21 }
 0xb15   :  { %v1433_v58 = vpop.f32.mrb[14].mxu1 }
 0xb16   :  { %v1435_v1 = vpop.f32.mrb[15].mxu1  ;;  %v1442_v20 = vrot.slane %v1433_v58, 5  ;;  %v1440_v31 = vrot.slane %v1433_v58, 4 }
 0xb17   :  { %v1443_v2 = vrot.slane %v1435_v1, 5  ;;  %v1441_v55 = vrot.slane %v1435_v1, 4 }
 0xb18   :  { %v1450_v7 = vadd.f32 %v1442_v20, %v5734_v60  ;;  %v1448_v13 = vadd.f32 %v1440_v31, %v5738_v63 }
 0xb19   :  { %v6136_v18 = vadd.f32 %v1443_v2, %v5718_v52  ;;  %v1449_v32 = vadd.f32 %v1441_v55, %v5724_v56 }
 0xb1a   :  { %v4225_v53 = vmul.f32 -1.442695, %v1450_v7  ;;  %v4223_v1 = vmul.f32 -1.442695, %v1448_v13  ;;  %v1480_v13 = vrot.slane %v6098_v33, 7 }
 0xb1b   :  { %5150 = vtanh.f32 %v6136_v18  ;;  %v4224_v33 = vmul.f32 -1.442695, %v1449_v32 }
 0xb1c   :  { %5152 = vpow2.f32 %v4225_v53 }
 0xb25   :  { %v5151_v40 = vpop.eup %5150 }
 0xb26   :  { %1490 = vrot.lane.b32.xlu1 %v5151_v40, %s5523_s3  ;;  %v5153_v44 = vpop.eup %5152 }
 0xb27   :  { %v1466_v39 = vadd.f32 1.0, %v5153_v44 }
 0xb86   :  { %v1325_v25 = vpop.f32.mrb[8].mxu0 }
 0xb87   :  { %v1327_v38 = vpop.f32.mrb[9].mxu0  ;;  %v1330_v51 = vadd.f32 %v1325_v25, %v5706_v42 }
 0xb88   :  { %v1331_v0 = vadd.f32 %v1327_v38, %v5948_v28 }
 0xb89   :  { %v4220_v8 = vmul.f32 -1.442695, %v1330_v51 }
 0xb8a   :  { %5154 = vtanh.f32 %v1331_v0 }
 0xb8b   :  { %5156 = vtanh.f32 %v1449_v32 }
 0xb8c   :  { %5158 = vrcp.f32 %v1466_v39  ;;  %v1481_v39 = vrot.slane %v6089_v16, 7 }
 0xb8d   :  { %5160 = vpow2.f32 %v4220_v8 }
 0xb8e   :  { %5162 = vpow2.f32 %v4223_v1 }
 0xb94   :  { %v5155_v62 = vpop.eup %5154 }
 0xb95   :  { %1347 = vrot.lane.b32.xlu0 %v5155_v62, %s5523_s3  ;;  %v5157_v37 = vpop.eup %5156 }
 0xb96   :  { %v5159_v45 = vpop.eup %5158 }
 0xb97   :  { %v5161_v2 = vpop.eup %5160  ;;  %v1485_v62 = vmul.f32 %v5159_v45, %v1481_v39 }
 0xb98   :  { %v1491_v11 = vpop.permute.xlu1 %1490  ;;  %v1338_v40 = vadd.f32 1.0, %v5161_v2  ;;  %v5163_v20 = vpop.eup %5162 }
 0xb99   :  { %1488 = vrot.lane.b32.xlu0 %v5157_v37, %s5523_s3  ;;  %v1495_v54 = vmul.f32 %v5159_v45, %v1491_v11  ;;  %v1464_v7 = vadd.f32 1.0, %v5163_v20  ;;  %v4221_v20 = vmul.f32 -1.442695, %v1331_v0 }
 0xb9a   :  { %5164 = vrcp.f32 %v1338_v40 }
 0xb9b   :  { %5166 = vrcp.f32 %v1464_v7 }
 0xb9d   :  { %1500 = vrot.lane.b32.xlu0 %v1495_v54, %s5523_s3 }
 0xba4   :  { %v5165_v53 = vpop.eup %5164 }
 0xba5   :  { %v5167_v58 = vpop.eup %5166  ;;  %v1345_v31 = vmul.f32 %v5165_v53, %v6095_v12  ;;  %v4226_v12 = vmul.f32 -1.442695, %v6136_v18 }
 0xba6   :  { %v1484_v1 = vmul.f32 %v5167_v58, %v1480_v13 }
 0xc07   :  { %v1348_v55 = vpop.permute.xlu0 %1347 }
 0xc08   :  { %v1350_v38 = vmul.f32 %v5165_v53, %v1348_v55 }
 0xc0a   :  { %1352 = vrot.lane.b32.xlu1 %v1350_v38, %s5523_s3 }
 0xc0b   :  { %v1489_v44 = vpop.permute.xlu0 %1488 }
 0xc0c   :  { %v1494_v25 = vmul.f32 %v5167_v58, %v1489_v44 }
 0xc0e   :  { %1498 = vrot.lane.b32.xlu1 %v1494_v25, %s5523_s3 }
 0xc0f   :  { %v1501_v37 = vpop.permute.xlu0 %1500 }
 0xc10   :  { %v6151_v11 = vadd.f32 %v1501_v37, %v1485_v62 }
 0xc12   :  { %5168 = vtanh.f32 %v6151_v11 }
 0xc1c   :  { %v5169_v54 = vpop.eup %5168 }
 0xc1d   :  { %1512 = vrot.lane.b32.xlu1 %v5169_v54, %s5523_s3 }
 0xc7c   :  { %v1353_v51 = vpop.permute.xlu1 %1352 }
 0xc7d   :  { %v6157_v8 = vadd.f32 %v1353_v51, %v1345_v31 }
 0xc7f   :  { %5170 = vtanh.f32 %v6157_v8 }
 0xc80   :  { %v1499_v16 = vpop.permute.xlu1 %1498 }
 0xc81   :  { %v6160_v45 = vadd.f32 %v1499_v16, %v1484_v1 }
 0xc83   :  { %5172 = vtanh.f32 %v6160_v45 }
 0xc84   :  { %5174 = vpow2.f32 %v4226_v12 }
 0xc85   :  { %5176 = vpow2.f32 %v4221_v20 }
 0xc86   :  { %5178 = vpow2.f32 %v4224_v33 }
 0xc89   :  { %v5171_v2 = vpop.eup %5170 }
 0xc8a   :  { %1358 = vrot.lane.b32.xlu0 %v5171_v2, %s5523_s3 }
 0xc8d   :  { %v5173_v40 = vpop.eup %5172 }
 0xc8e   :  { %1510 = vrot.lane.b32.xlu0 %v5173_v40, %s5523_s3  ;;  %v5175_v7 = vpop.eup %5174 }
 0xc8f   :  { %v5177_v53 = vpop.eup %5176  ;;  %v1467_v55 = vadd.f32 1.0, %v5175_v7  ;;  %v1513_v25 = vpop.permute.xlu1 %1512 }
 0xc90   :  { %v1339_v38 = vadd.f32 1.0, %v5177_v53  ;;  %v5179_v58 = vpop.eup %5178 }
 0xc91   :  { %5180 = vrcp.f32 %v1467_v55  ;;  %v1465_v44 = vadd.f32 1.0, %v5179_v58 }
 0xc92   :  { %5182 = vrcp.f32 %v1339_v38 }
 0xc93   :  { %5184 = vrcp.f32 %v1465_v44 }
 0xc9b   :  { %v5181_v39 = vpop.eup %5180 }
 0xc9c   :  { %v5183_v62 = vpop.eup %5182  ;;  %v1517_v54 = vmul.f32 %v5181_v39, %v1513_v25 }
 0xc9d   :  { %v5185_v31 = vpop.eup %5184 }
 0xc9e   :  { %v1520_v51 = vrot.slane %v1517_v54, 7  ;;  %v1637_v1 = vrot.slane %v1517_v54, 3 }
 0xcfc   :  { %v1359_v37 = vpop.permute.xlu0 %1358 }
 0xcfd   :  { %v1361_v18 = vmul.f32 %v5183_v62, %v1359_v37 }
 0xcff   :  { %v1525_v0 = vrot.slane %v1361_v18, 4 }
 0xd00   :  { %v1511_v32 = vpop.permute.xlu0 %1510 }
 0xd01   :  { %v1516_v13 = vmul.f32 %v5185_v31, %v1511_v32  ;;  %1526 = vrot.lane.b32.xlu1 %v1525_v0, %s5523_s3 }
 0xd03   :  { %v1636_v16 = vrot.slane %v1516_v13, 4  ;;  %v1522_v2 = vsel %vm1521_vm7, %v1520_v51, %v1516_v13 }
 0xd05   :  { %v1638_v40 = vsel %vm428_vm2, %v1637_v1, %v1636_v16 }
 0xd06   :  { %4229 = vmatmul.mubr.msk.f32.vlgmr.msra.gmra.mrb[10].mxu0 %vm278_vm3, %v1638_v40 }
 0xd07   :  { %4589 = vmatpush1.bf16.msra.mxu0 %v5769_v26  ;;  %1871 = vmatprep.mubr.f32.mxu0 %v5522_v3 }
 0xd08   :  { %4591 = vmatprep.subr.bf16.mxu0 %v5771_v27 }
 0xd0b   :  { %4593 = vmatpush1.bf16.msra.mxu0 %v5788_v35 }
 0xd0c   :  { %4595 = vmatprep.subr.bf16.mxu0 %v5791_v36 }
 0xd0f   :  { %4597 = vmatpush1.bf16.msra.mxu0 %v5806_v49 }
 0xd10   :  { %4599 = vmatprep.subr.bf16.mxu0 %v5809_v50 }
 0xd13   :  { %4601 = vmatpush1.bf16.msra.mxu0 %v5824_v59 }
 0xd14   :  { %4603 = vmatprep.subr.bf16.mxu0 %v5827_v61 }
 0xd17   :  { %4605 = vmatpush1.bf16.msra.mxu0 %v5842_v5 }
 0xd18   :  { %4607 = vmatprep.subr.bf16.mxu0 %v5845_v6 }
 0xd1b   :  { %4609 = vmatpush1.bf16.msra.mxu0 %v5860_v14 }
 0xd1c   :  { %4611 = vmatprep.subr.bf16.mxu0 %v5863_v15 }
 0xd1f   :  { %4613 = vmatpush1.bf16.msra.mxu0 %v5874_v22 }
 0xd20   :  { %4615 = vmatprep.subr.bf16.mxu0 %v5888_v10 }
 0xd23   :  { %4617 = vmatpush1.bf16.msra.mxu0 %v5899_v43 }
 0xd24   :  { %4667 = vmatprep.subr.bf16.mxu0 %v5582_v4 }
 0xd73   :  { %v1527_v12 = vpop.permute.xlu1 %1526 }
 0xd74   :  { %v1529_v20 = vsel %vm278_vm3, %v1522_v2, %v1527_v12 }
 0xd75   :  { %v1531_v33 = vrot.slane %v1529_v20, 4 }
 0xd77   :  { %1598 = vmatmul.mubr.f32.vlgmr.msra.gmra.mrb[16].mxu1 %v1531_v33 }
 0xd78   :  { %4621 = vmatpush1.bf16.msra.mxu1 %v5593_v9  ;;  %1979 = vmatprep.mubr.f32.mxu1 %v5522_v3 }
 0xd79   :  { %4623 = vmatprep.subr.bf16.mxu1 %v5615_v17 }
 0xd7c   :  { %4625 = vmatpush1.bf16.msra.mxu1 %v5620_v19 }
 0xd7d   :  { %4627 = vmatprep.subr.bf16.mxu1 %v5636_v24 }
 0xd80   :  { %4629 = vmatpush1.bf16.msra.mxu1 %v5651_v29 }
 0xd81   :  { %4631 = vmatprep.subr.bf16.mxu1 %v5655_v30 }
 0xd84   :  { %4633 = vmatpush1.bf16.msra.mxu1 %v5670_v34 }
 0xd85   :  { %4635 = vmatprep.subr.bf16.mxu1 %v5758_v21 }
 0xdd9   :  { %v1707_v7 = vpop.f32.mrb[10].mxu0 }
 0xdda   :  { %v1709_v53 = vpop.f32.mrb[11].mxu0  ;;  %v1716_v44 = vrot.slane %v1707_v7, 4  ;;  %v1714_v40 = vrot.slane %v1707_v7, 3 }
 0xddb   :  { %v1717_v55 = vrot.slane %v1709_v53, 4  ;;  %v1715_v62 = vrot.slane %v1709_v53, 3 }
 0xddc   :  { %v1724_v25 = vadd.f32 %v1716_v44, %v5734_v60  ;;  %v1722_v20 = vadd.f32 %v1714_v40, %v5738_v63 }
 0xddd   :  { %v6198_v38 = vadd.f32 %v1717_v55, %v5718_v52  ;;  %v1723_v0 = vadd.f32 %v1715_v62, %v5724_v56 }
 0xdde   :  { %v4232_v39 = vmul.f32 -1.442695, %v1724_v25  ;;  %v4230_v53 = vmul.f32 -1.442695, %v1722_v20  ;;  %v1754_v20 = vrot.slane %v6160_v45, 7 }
 0xddf   :  { %5186 = vtanh.f32 %v6198_v38  ;;  %v4231_v45 = vmul.f32 -1.442695, %v1723_v0 }
 0xde0   :  { %5188 = vpow2.f32 %v4232_v39 }
 0xde9   :  { %v5187_v58 = vpop.eup %5186 }
 0xdea   :  { %1764 = vrot.lane.b32.xlu1 %v5187_v58, %s5523_s3  ;;  %v5189_v31 = vpop.eup %5188 }
 0xdeb   :  { %v1740_v32 = vadd.f32 1.0, %v5189_v31 }
 0xe4a   :  { %v1599_v37 = vpop.f32.mrb[16].mxu1 }
 0xe4b   :  { %v1601_v54 = vpop.f32.mrb[17].mxu1  ;;  %v1604_v12 = vadd.f32 %v1599_v37, %v5706_v42 }
 0xe4c   :  { %v1605_v18 = vadd.f32 %v1601_v54, %v5948_v28 }
 0xe4d   :  { %v4227_v33 = vmul.f32 -1.442695, %v1604_v12 }
 0xe4e   :  { %5190 = vtanh.f32 %v1605_v18 }
 0xe4f   :  { %5192 = vtanh.f32 %v1723_v0 }
 0xe50   :  { %5194 = vrcp.f32 %v1740_v32  ;;  %v1755_v32 = vrot.slane %v6151_v11, 7 }
 0xe51   :  { %5196 = vpow2.f32 %v4227_v33 }
 0xe52   :  { %5198 = vpow2.f32 %v4230_v53 }
 0xe58   :  { %v5191_v51 = vpop.eup %5190 }
 0xe59   :  { %1621 = vrot.lane.b32.xlu0 %v5191_v51, %s5523_s3  ;;  %v5193_v13 = vpop.eup %5192 }
 0xe5a   :  { %v5195_v1 = vpop.eup %5194 }
 0xe5b   :  { %v5197_v55 = vpop.eup %5196  ;;  %v1759_v51 = vmul.f32 %v5195_v1, %v1755_v32 }
 0xe5c   :  { %v1765_v16 = vpop.permute.xlu1 %1764  ;;  %v1612_v58 = vadd.f32 1.0, %v5197_v55  ;;  %v5199_v44 = vpop.eup %5198 }
 0xe5d   :  { %1762 = vrot.lane.b32.xlu0 %v5193_v13, %s5523_s3  ;;  %v1769_v2 = vmul.f32 %v5195_v1, %v1765_v16  ;;  %v1738_v25 = vadd.f32 1.0, %v5199_v44  ;;  %v4228_v44 = vmul.f32 -1.442695, %v1605_v18 }
 0xe5e   :  { %5200 = vrcp.f32 %v1612_v58 }
 0xe5f   :  { %5202 = vrcp.f32 %v1738_v25 }
 0xe61   :  { %1774 = vrot.lane.b32.xlu0 %v1769_v2, %s5523_s3 }
 0xe68   :  { %v5201_v39 = vpop.eup %5200 }
 0xe69   :  { %v5203_v7 = vpop.eup %5202  ;;  %v1619_v40 = vmul.f32 %v5201_v39, %v6157_v8  ;;  %v4233_v8 = vmul.f32 -1.442695, %v6198_v38 }
 0xe6a   :  { %v1758_v53 = vmul.f32 %v5203_v7, %v1754_v20 }
 0xecb   :  { %v1622_v62 = vpop.permute.xlu0 %1621 }
 0xecc   :  { %v1624_v54 = vmul.f32 %v5201_v39, %v1622_v62 }
 0xece   :  { %1626 = vrot.lane.b32.xlu1 %v1624_v54, %s5523_s3 }
 0xecf   :  { %v1763_v31 = vpop.permute.xlu0 %1762 }
 0xed0   :  { %v1768_v37 = vmul.f32 %v5203_v7, %v1763_v31 }
 0xed2   :  { %1772 = vrot.lane.b32.xlu1 %v1768_v37, %s5523_s3 }
 0xed3   :  { %v1775_v13 = vpop.permute.xlu0 %1774 }
 0xed4   :  { %v6213_v16 = vadd.f32 %v1775_v13, %v1759_v51 }
 0xed6   :  { %5204 = vtanh.f32 %v6213_v16 }
 0xee0   :  { %v5205_v2 = vpop.eup %5204 }
 0xee1   :  { %1786 = vrot.lane.b32.xlu1 %v5205_v2, %s5523_s3 }
 0xf40   :  { %v1627_v12 = vpop.permute.xlu1 %1626 }
 0xf41   :  { %v6219_v33 = vadd.f32 %v1627_v12, %v1619_v40 }
 0xf43   :  { %5206 = vtanh.f32 %v6219_v33 }
 0xf44   :  { %v1773_v11 = vpop.permute.xlu1 %1772 }
 0xf45   :  { %v6222_v1 = vadd.f32 %v1773_v11, %v1758_v53 }
 0xf47   :  { %5208 = vtanh.f32 %v6222_v1 }
 0xf48   :  { %5210 = vpow2.f32 %v4233_v8 }
 0xf49   :  { %5212 = vpow2.f32 %v4228_v44 }
 0xf4a   :  { %5214 = vpow2.f32 %v4231_v45 }
 0xf4d   :  { %v5207_v55 = vpop.eup %5206 }
 0xf4e   :  { %1632 = vrot.lane.b32.xlu0 %v5207_v55, %s5523_s3 }
 0xf51   :  { %v5209_v58 = vpop.eup %5208 }
 0xf52   :  { %1784 = vrot.lane.b32.xlu0 %v5209_v58, %s5523_s3  ;;  %v5211_v25 = vpop.eup %5210 }
 0xf53   :  { %v5213_v39 = vpop.eup %5212  ;;  %v1741_v62 = vadd.f32 1.0, %v5211_v25  ;;  %v1787_v37 = vpop.permute.xlu1 %1786 }
 0xf54   :  { %v1613_v54 = vadd.f32 1.0, %v5213_v39  ;;  %v5215_v7 = vpop.eup %5214 }
 0xf55   :  { %5216 = vrcp.f32 %v1741_v62  ;;  %v1739_v31 = vadd.f32 1.0, %v5215_v7 }
 0xf56   :  { %5218 = vrcp.f32 %v1613_v54 }
 0xf57   :  { %5220 = vrcp.f32 %v1739_v31 }
 0xf5f   :  { %v5217_v32 = vpop.eup %5216 }
 0xf60   :  { %v5219_v51 = vpop.eup %5218  ;;  %v1791_v2 = vmul.f32 %v5217_v32, %v1787_v37 }
 0xf61   :  { %v5221_v40 = vpop.eup %5220 }
 0xf62   :  { %v1794_v12 = vrot.slane %v1791_v2, 7  ;;  %v1911_v53 = vrot.slane %v1791_v2, 4 }
 0xfc0   :  { %v1633_v13 = vpop.permute.xlu0 %1632 }
 0xfc1   :  { %v1635_v38 = vmul.f32 %v5219_v51, %v1633_v13 }
 0xfc3   :  { %v1799_v18 = vrot.slane %v1635_v38, 3 }
 0xfc4   :  { %v1785_v0 = vpop.permute.xlu0 %1784 }
 0xfc5   :  { %v1790_v20 = vmul.f32 %v5221_v40, %v1785_v0  ;;  %1800 = vrot.lane.b32.xlu1 %v1799_v18, %s5523_s3 }
 0xfc7   :  { %v1910_v11 = vrot.slane %v1790_v20, 5  ;;  %v1796_v55 = vsel %vm1795_vm8, %v1794_v12, %v1790_v20 }
 0xfc9   :  { %v1912_v58 = vsel %vm428_vm2, %v1911_v53, %v1910_v11 }
 0xfca   :  { %4236 = vmatmul.mubr.msk.f32.vlgmr.msra.gmra.mrb[18].mxu1 %vm278_vm3, %v1912_v58 }
 0xfcb   :  { %4637 = vmatpush1.bf16.msra.mxu1 %v5769_v26  ;;  %2145 = vmatprep.mubr.f32.mxu1 %v5522_v3 }
 0xfcc   :  { %4639 = vmatprep.subr.bf16.mxu1 %v5771_v27 }
 0xfcf   :  { %4641 = vmatpush1.bf16.msra.mxu1 %v5788_v35 }
 0xfd0   :  { %4643 = vmatprep.subr.bf16.mxu1 %v5791_v36 }
 0xfd3   :  { %4645 = vmatpush1.bf16.msra.mxu1 %v5806_v49 }
 0xfd4   :  { %4647 = vmatprep.subr.bf16.mxu1 %v5809_v50 }
 0xfd7   :  { %4649 = vmatpush1.bf16.msra.mxu1 %v5824_v59 }
 0xfd8   :  { %4651 = vmatprep.subr.bf16.mxu1 %v5827_v61 }
 0xfdb   :  { %4653 = vmatpush1.bf16.msra.mxu1 %v5842_v5 }
 0xfdc   :  { %4655 = vmatprep.subr.bf16.mxu1 %v5845_v6 }
 0xfdf   :  { %4657 = vmatpush1.bf16.msra.mxu1 %v5860_v14 }
 0xfe0   :  { %4659 = vmatprep.subr.bf16.mxu1 %v5863_v15 }
 0xfe3   :  { %4661 = vmatpush1.bf16.msra.mxu1 %v5874_v22 }
 0xfe4   :  { %4663 = vmatprep.subr.bf16.mxu1 %v5888_v10 }
 0xfe7   :  { %4665 = vmatpush1.bf16.msra.mxu1 %v5899_v43 }
 0xfe8   :  { %4715 = vmatprep.subr.bf16.mxu1 %v5582_v4 }
0x1037   :  { %v1801_v8 = vpop.permute.xlu1 %1800 }
0x1038   :  { %v1803_v44 = vsel %vm278_vm3, %v1796_v55, %v1801_v8 }
0x1039   :  { %v1805_v45 = vrot.slane %v1803_v44, 5 }
0x103b   :  { %1872 = vmatmul.mubr.f32.vlgmr.msra.gmra.mrb[12].mxu0 %v1805_v45 }
0x103c   :  { %4669 = vmatpush1.bf16.msra.mxu0 %v5593_v9  ;;  %2253 = vmatprep.mubr.f32.mxu0 %v5522_v3 }
0x103d   :  { %4671 = vmatprep.subr.bf16.mxu0 %v5615_v17 }
0x1040   :  { %4673 = vmatpush1.bf16.msra.mxu0 %v5620_v19 }
0x1041   :  { %4675 = vmatprep.subr.bf16.mxu0 %v5636_v24 }
0x1044   :  { %4677 = vmatpush1.bf16.msra.mxu0 %v5651_v29 }
0x1045   :  { %4679 = vmatprep.subr.bf16.mxu0 %v5655_v30 }
0x1048   :  { %4681 = vmatpush1.bf16.msra.mxu0 %v5670_v34 }
0x1049   :  { %4683 = vmatprep.subr.bf16.mxu0 %v5758_v21 }
0x109d   :  { %v1981_v25 = vpop.f32.mrb[18].mxu1 }
0x109e   :  { %v1983_v39 = vpop.f32.mrb[19].mxu1  ;;  %v1990_v31 = vrot.slane %v1981_v25, 3  ;;  %v1988_v58 = vrot.slane %v1981_v25, 2 }
0x109f   :  { %v1991_v62 = vrot.slane %v1983_v39, 3  ;;  %v1989_v51 = vrot.slane %v1983_v39, 2 }
0x10a0   :  { %v1998_v37 = vadd.f32 %v1990_v31, %v5734_v60  ;;  %v1996_v44 = vadd.f32 %v1988_v58, %v5738_v63 }
0x10a1   :  { %v6260_v54 = vadd.f32 %v1991_v62, %v5718_v52  ;;  %v1997_v18 = vadd.f32 %v1989_v51, %v5724_v56 }
0x10a2   :  { %v4239_v32 = vmul.f32 -1.442695, %v1998_v37  ;;  %v4237_v39 = vmul.f32 -1.442695, %v1996_v44  ;;  %v2028_v44 = vrot.slane %v6222_v1, 7 }
0x10a3   :  { %5222 = vtanh.f32 %v6260_v54  ;;  %v4238_v1 = vmul.f32 -1.442695, %v1997_v18 }
0x10a4   :  { %5224 = vpow2.f32 %v4239_v32 }
0x10ad   :  { %v5223_v7 = vpop.eup %5222 }
0x10ae   :  { %2038 = vrot.lane.b32.xlu1 %v5223_v7, %s5523_s3  ;;  %v5225_v40 = vpop.eup %5224 }
0x10af   :  { %v2014_v0 = vadd.f32 1.0, %v5225_v40 }
0x110e   :  { %v1873_v13 = vpop.f32.mrb[12].mxu0 }
0x110f   :  { %v1875_v2 = vpop.f32.mrb[13].mxu0  ;;  %v1878_v8 = vadd.f32 %v1873_v13, %v5706_v42 }
0x1110   :  { %v1879_v38 = vadd.f32 %v1875_v2, %v5948_v28 }
0x1111   :  { %v4234_v45 = vmul.f32 -1.442695, %v1878_v8 }
0x1112   :  { %5226 = vtanh.f32 %v1879_v38 }
0x1113   :  { %5228 = vtanh.f32 %v1997_v18 }
0x1114   :  { %5230 = vrcp.f32 %v2014_v0  ;;  %v2029_v0 = vrot.slane %v6213_v16, 7 }
0x1115   :  { %5232 = vpow2.f32 %v4234_v45 }
0x1116   :  { %5234 = vpow2.f32 %v4237_v39 }
0x111c   :  { %v5227_v12 = vpop.eup %5226 }
0x111d   :  { %1895 = vrot.lane.b32.xlu0 %v5227_v12, %s5523_s3  ;;  %v5229_v20 = vpop.eup %5228 }
0x111e   :  { %v5231_v53 = vpop.eup %5230 }
0x111f   :  { %v5233_v62 = vpop.eup %5232  ;;  %v2033_v12 = vmul.f32 %v5231_v53, %v2029_v0 }
0x1120   :  { %v2039_v11 = vpop.permute.xlu1 %2038  ;;  %v1886_v7 = vadd.f32 1.0, %v5233_v62  ;;  %v5235_v31 = vpop.eup %5234 }
0x1121   :  { %2036 = vrot.lane.b32.xlu0 %v5229_v20, %s5523_s3  ;;  %v2043_v55 = vmul.f32 %v5231_v53, %v2039_v11  ;;  %v2012_v37 = vadd.f32 1.0, %v5235_v31  ;;  %v4235_v31 = vmul.f32 -1.442695, %v1879_v38 }
0x1122   :  { %5236 = vrcp.f32 %v1886_v7 }
0x1123   :  { %5238 = vrcp.f32 %v2012_v37 }
0x1125   :  { %2048 = vrot.lane.b32.xlu0 %v2043_v55, %s5523_s3 }
0x112c   :  { %v5237_v32 = vpop.eup %5236 }
0x112d   :  { %v5239_v25 = vpop.eup %5238  ;;  %v1893_v58 = vmul.f32 %v5237_v32, %v6219_v33  ;;  %v4240_v33 = vmul.f32 -1.442695, %v6260_v54 }
0x112e   :  { %v2032_v39 = vmul.f32 %v5239_v25, %v2028_v44 }
0x118f   :  { %v1896_v51 = vpop.permute.xlu0 %1895 }
0x1190   :  { %v1898_v2 = vmul.f32 %v5237_v32, %v1896_v51 }
0x1192   :  { %1900 = vrot.lane.b32.xlu1 %v1898_v2, %s5523_s3 }
0x1193   :  { %v2037_v40 = vpop.permute.xlu0 %2036 }
0x1194   :  { %v2042_v13 = vmul.f32 %v5239_v25, %v2037_v40 }
0x1196   :  { %2046 = vrot.lane.b32.xlu1 %v2042_v13, %s5523_s3 }
0x1197   :  { %v2049_v20 = vpop.permute.xlu0 %2048 }
0x1198   :  { %v6275_v11 = vadd.f32 %v2049_v20, %v2033_v12 }
0x119a   :  { %5240 = vtanh.f32 %v6275_v11 }
0x11a4   :  { %v5241_v55 = vpop.eup %5240 }
0x11a5   :  { %2060 = vrot.lane.b32.xlu1 %v5241_v55, %s5523_s3 }
0x1204   :  { %v1901_v8 = vpop.permute.xlu1 %1900 }
0x1205   :  { %v6281_v45 = vadd.f32 %v1901_v8, %v1893_v58 }
0x1207   :  { %5242 = vtanh.f32 %v6281_v45 }
0x1208   :  { %v2047_v16 = vpop.permute.xlu1 %2046 }
0x1209   :  { %v6284_v53 = vadd.f32 %v2047_v16, %v2032_v39 }
0x120b   :  { %5244 = vtanh.f32 %v6284_v53 }
0x120c   :  { %5246 = vpow2.f32 %v4240_v33 }
0x120d   :  { %5248 = vpow2.f32 %v4235_v31 }
0x120e   :  { %5250 = vpow2.f32 %v4238_v1 }
0x1211   :  { %v5243_v62 = vpop.eup %5242 }
0x1212   :  { %1906 = vrot.lane.b32.xlu0 %v5243_v62, %s5523_s3 }
0x1215   :  { %v5245_v7 = vpop.eup %5244 }
0x1216   :  { %2058 = vrot.lane.b32.xlu0 %v5245_v7, %s5523_s3  ;;  %v5247_v37 = vpop.eup %5246 }
0x1217   :  { %v5249_v32 = vpop.eup %5248  ;;  %v2015_v51 = vadd.f32 1.0, %v5247_v37  ;;  %v2061_v13 = vpop.permute.xlu1 %2060 }
0x1218   :  { %v1887_v2 = vadd.f32 1.0, %v5249_v32  ;;  %v5251_v25 = vpop.eup %5250 }
0x1219   :  { %5252 = vrcp.f32 %v2015_v51  ;;  %v2013_v40 = vadd.f32 1.0, %v5251_v25 }
0x121a   :  { %5254 = vrcp.f32 %v1887_v2 }
0x121b   :  { %5256 = vrcp.f32 %v2013_v40 }
0x1223   :  { %v5253_v0 = vpop.eup %5252 }
0x1224   :  { %v5255_v12 = vpop.eup %5254  ;;  %v2065_v55 = vmul.f32 %v5253_v0, %v2061_v13 }
0x1225   :  { %v5257_v58 = vpop.eup %5256 }
0x1226   :  { %v2068_v8 = vrot.slane %v2065_v55, 7  ;;  %v2185_v39 = vrot.slane %v2065_v55, 5 }
0x1284   :  { %v1907_v20 = vpop.permute.xlu0 %1906 }
0x1285   :  { %v1909_v54 = vmul.f32 %v5255_v12, %v1907_v20 }
0x1287   :  { %v2073_v38 = vrot.slane %v1909_v54, 2 }
0x1288   :  { %v2059_v18 = vpop.permute.xlu0 %2058 }
0x1289   :  { %v2064_v44 = vmul.f32 %v5257_v58, %v2059_v18  ;;  %2074 = vrot.lane.b32.xlu1 %v2073_v38, %s5523_s3 }
0x128b   :  { %v2184_v16 = vrot.slane %v2064_v44, 6  ;;  %v2070_v62 = vsel %vm2069_vm9, %v2068_v8, %v2064_v44 }
0x128d   :  { %v2186_v7 = vsel %vm428_vm2, %v2185_v39, %v2184_v16 }
0x128e   :  { %4243 = vmatmul.mubr.msk.f32.vlgmr.msra.gmra.mrb[14].mxu0 %vm278_vm3, %v2186_v7 }
0x128f   :  { %4685 = vmatpush1.bf16.msra.mxu0 %v5769_v26  ;;  %2423 = vmatprep.mubr.f32.mxu0 %v5522_v3 }
0x1290   :  { %4687 = vmatprep.subr.bf16.mxu0 %v5771_v27 }
0x1293   :  { %4689 = vmatpush1.bf16.msra.mxu0 %v5788_v35 }
0x1294   :  { %4691 = vmatprep.subr.bf16.mxu0 %v5791_v36 }
0x1297   :  { %4693 = vmatpush1.bf16.msra.mxu0 %v5806_v49 }
0x1298   :  { %4695 = vmatprep.subr.bf16.mxu0 %v5809_v50 }
0x129b   :  { %4697 = vmatpush1.bf16.msra.mxu0 %v5824_v59 }
0x129c   :  { %4699 = vmatprep.subr.bf16.mxu0 %v5827_v61 }
0x129f   :  { %4701 = vmatpush1.bf16.msra.mxu0 %v5842_v5 }
0x12a0   :  { %4703 = vmatprep.subr.bf16.mxu0 %v5845_v6 }
0x12a3   :  { %4705 = vmatpush1.bf16.msra.mxu0 %v5860_v14 }
0x12a4   :  { %4707 = vmatprep.subr.bf16.mxu0 %v5863_v15 }
0x12a7   :  { %4709 = vmatpush1.bf16.msra.mxu0 %v5874_v22 }
0x12a8   :  { %4711 = vmatprep.subr.bf16.mxu0 %v5888_v10 }
0x12ab   :  { %4713 = vmatpush1.bf16.msra.mxu0 %v5899_v43 }
0x12ac   :  { %4763 = vmatprep.subr.bf16.mxu0 %v5582_v4 }
0x12fb   :  { %v2075_v33 = vpop.permute.xlu1 %2074 }
0x12fc   :  { %v2077_v31 = vsel %vm278_vm3, %v2070_v62, %v2075_v33 }
0x12fd   :  { %v2079_v1 = vrot.slane %v2077_v31, 6 }
0x12ff   :  { %2146 = vmatmul.mubr.f32.vlgmr.msra.gmra.mrb[20].mxu1 %v2079_v1 }
0x1300   :  { %4717 = vmatpush1.bf16.msra.mxu1 %v5593_v9  ;;  %2535 = vmatprep.mubr.f32.mxu1 %v5522_v3 }
0x1301   :  { %4719 = vmatprep.subr.bf16.mxu1 %v5615_v17 }
0x1304   :  { %4721 = vmatpush1.bf16.msra.mxu1 %v5620_v19 }
0x1305   :  { %4723 = vmatprep.subr.bf16.mxu1 %v5636_v24 }
0x1308   :  { %4725 = vmatpush1.bf16.msra.mxu1 %v5651_v29 }
0x1309   :  { %4727 = vmatprep.subr.bf16.mxu1 %v5655_v30 }
0x130c   :  { %4729 = vmatpush1.bf16.msra.mxu1 %v5670_v34 }
0x130d   :  { %4731 = vmatprep.subr.bf16.mxu1 %v5758_v21 }
0x1361   :  { %v2255_v37 = vpop.f32.mrb[14].mxu0 }
0x1362   :  { %v2257_v32 = vpop.f32.mrb[15].mxu0  ;;  %v2262_v12 = vrot.slane %v2255_v37, 1 }
0x1363   :  { %v2265_v51 = vrot.slane %v2257_v32, 2  ;;  %v2263_v2 = vrot.slane %v2257_v32, 1 }
0x1364   :  { %v2270_v20 = vadd.f32 %v2262_v12, %v5738_v63  ;;  %v2264_v63 = vrot.slane %v2255_v37, 2 }
0x1365   :  { %v6321_v25 = vadd.f32 %v2265_v51, %v5718_v52  ;;  %v6324_v40 = vadd.f32 %v2263_v2, %v5724_v56 }
0x1366   :  { %v4244_v55 = vmul.f32 -1.442695, %v2270_v20  ;;  %v2272_v7 = vadd.f32 %v2264_v63, %v5734_v60  ;;  %v2302_v60 = vrot.slane %v6284_v53, 7 }
0x1367   :  { %5258 = vtanh.f32 %v6321_v25 }
0x1368   :  { %5260 = vtanh.f32 %v6324_v40  ;;  %v4246_v31 = vmul.f32 -1.442695, %v2272_v7  ;;  %v4247_v7 = vmul.f32 -1.442695, %v6321_v25 }
0x1369   :  { %5262 = vpow2.f32 %v4244_v55 }
0x1371   :  { %v5259_v13 = vpop.eup %5258 }
0x1372   :  { %2312 = vrot.lane.b32.xlu1 %v5259_v13, %s5523_s3  ;;  %v5261_v0 = vpop.eup %5260 }
0x1373   :  { %v5263_v38 = vpop.eup %5262 }
0x1374   :  { %v2286_v58 = vadd.f32 1.0, %v5263_v38 }
0x1376   :  { %2310 = vrot.lane.b32.xlu1 %v5261_v0, %s5523_s3 }
0x13d2   :  { %v2147_v52 = vpop.f32.mrb[20].mxu1 }
0x13d3   :  { %v2149_v54 = vpop.f32.mrb[21].mxu1  ;;  %v2152_v62 = vadd.f32 %v2147_v52, %v5706_v42 }
0x13d4   :  { %v2153_v56 = vadd.f32 %v2149_v54, %v5948_v28 }
0x13d5   :  { %v4241_v33 = vmul.f32 -1.442695, %v2152_v62  ;;  %v4245_v62 = vmul.f32 -1.442695, %v6324_v40 }
0x13d6   :  { %5264 = vtanh.f32 %v2153_v56 }
0x13d7   :  { %5266 = vrcp.f32 %v2286_v58  ;;  %v2303_v58 = vrot.slane %v6275_v11, 7  ;;  %v4242_v11 = vmul.f32 -1.442695, %v2153_v56 }
0x13d8   :  { %5268 = vpow2.f32 %v4241_v33 }
0x13d9   :  { %5270 = vpow2.f32 %v4246_v31 }
0x13e0   :  { %v5265_v18 = vpop.eup %5264 }
0x13e1   :  { %2169 = vrot.lane.b32.xlu0 %v5265_v18, %s5523_s3  ;;  %v5267_v44 = vpop.eup %5266 }
0x13e2   :  { %v5269_v1 = vpop.eup %5268  ;;  %v2306_v54 = vmul.f32 %v5267_v44, %v2302_v60 }
0x13e3   :  { %v2160_v32 = vadd.f32 1.0, %v5269_v1  ;;  %v5271_v51 = vpop.eup %5270 }
0x13e4   :  { %v2313_v8 = vpop.permute.xlu1 %2312  ;;  %v2288_v2 = vadd.f32 1.0, %v5271_v51 }
0x13e5   :  { %5272 = vrcp.f32 %v2160_v32 }
0x13e6   :  { %5274 = vrcp.f32 %v2288_v2 }
0x13e8   :  { %v2311_v39 = vpop.permute.xlu1 %2310 }
0x13e9   :  { %v2316_v16 = vmul.f32 %v5267_v44, %v2311_v39 }
0x13eb   :  { %2320 = vrot.lane.b32.xlu1 %v2316_v16, %s5523_s3 }
0x13ef   :  { %v5273_v13 = vpop.eup %5272 }
0x13f0   :  { %v5275_v37 = vpop.eup %5274  ;;  %v2167_v52 = vmul.f32 %v5273_v13, %v6281_v45 }
0x13f1   :  { %v2317_v20 = vmul.f32 %v5275_v37, %v2313_v8  ;;  %v2307_v16 = vmul.f32 %v5275_v37, %v2303_v58 }
0x1453   :  { %v2170_v0 = vpop.permute.xlu0 %2169 }
0x1454   :  { %v2172_v12 = vmul.f32 %v5273_v13, %v2170_v0 }
0x1456   :  { %2174 = vrot.lane.b32.xlu0 %v2172_v12, %s5523_s3 }
0x145a   :  { %2322 = vrot.lane.b32.xlu0 %v2317_v20, %s5523_s3 }
0x145d   :  { %v2321_v55 = vpop.permute.xlu1 %2320 }
0x145e   :  { %v6343_v39 = vadd.f32 %v2321_v55, %v2306_v54 }
0x14c8   :  { %v2175_v38 = vpop.permute.xlu0 %2174 }
0x14c9   :  { %v6341_v18 = vadd.f32 %v2175_v38, %v2167_v52 }
0x14cb   :  { %5276 = vtanh.f32 %v6341_v18 }
0x14cc   :  { %v2323_v63 = vpop.permute.xlu0 %2322  ;;  %5278 = vtanh.f32 %v6343_v39 }
0x14cd   :  { %v6346_v8 = vadd.f32 %v2323_v63, %v2307_v16 }
0x14cf   :  { %5280 = vtanh.f32 %v6346_v8 }
0x14d0   :  { %5282 = vpow2.f32 %v4242_v11 }
0x14d1   :  { %5284 = vpow2.f32 %v4245_v62 }
0x14d2   :  { %5286 = vpow2.f32 %v4247_v7 }
0x14d5   :  { %v5277_v53 = vpop.eup %5276 }
0x14d6   :  { %2180 = vrot.lane.b32.xlu0 %v5277_v53, %s5523_s3  ;;  %v5279_v45 = vpop.eup %5278 }
0x14d9   :  { %v5281_v44 = vpop.eup %5280 }
0x14da   :  { %2334 = vrot.lane.b32.xlu1 %v5281_v44, %s5523_s3  ;;  %2332 = vrot.lane.b32.xlu0 %v5279_v45, %s5523_s3  ;;  %v5283_v33 = vpop.eup %5282 }
0x14db   :  { %v5285_v31 = vpop.eup %5284  ;;  %v2161_v1 = vadd.f32 1.0, %v5283_v33 }
0x14dc   :  { %v5287_v32 = vpop.eup %5286  ;;  %v2287_v51 = vadd.f32 1.0, %v5285_v31  ;;  %v6388_v31 = vadd.f32 %v5715_v48, %v5943_v23 }
0x14dd   :  { %v2289_v2 = vadd.f32 1.0, %v5287_v32  ;;  %5288 = vrcp.f32 %v2161_v1 }
0x14de   :  { %5290 = vrcp.f32 %v2287_v51 }
0x14df   :  { %5292 = vrcp.f32 %v2289_v2  ;;  %v6397_v2 = vadd.f32 %v5703_v41, %v5941_v57 }
0x14e7   :  { %v5289_v13 = vpop.eup %5288 }
0x14e8   :  { %v5291_v56 = vpop.eup %5290 }
0x14e9   :  { %v5293_v40 = vpop.eup %5292 }
0x1548   :  { %v2181_v0 = vpop.permute.xlu0 %2180 }
0x1549   :  { %v2183_v12 = vmul.f32 %v5289_v13, %v2181_v0 }
0x154b   :  { %v2346_v37 = vrot.slane %v2183_v12, 1 }
0x154c   :  { %v2333_v20 = vpop.permute.xlu0 %2332  ;;  %v2335_v25 = vpop.permute.xlu1 %2334 }
0x154d   :  { %v2338_v60 = vmul.f32 %v5291_v56, %v2333_v20  ;;  %v2339_v55 = vmul.f32 %v5293_v40, %v2335_v25  ;;  %2347 = vrot.lane.b32.xlu1 %v2346_v37, %s5523_s3  ;;  %v6402_v56 = vadd.f32 %v5715_v48, %v5711_v47  ;;  %v6412_v48 = vadd.f32 %v5703_v41, %v5709_v46 }
0x154e   :  { %v2583_v46 = vrot.slane %v6346_v8, 7 }
0x154f   :  { %v2466_v52 = vrot.slane %v2338_v60, 7  ;;  %v2467_v54 = vrot.slane %v2339_v55, 6  ;;  %v2342_v58 = vrot.slane %v2339_v55, 7 }
0x1551   :  { %v2468_v38 = vsel %vm428_vm2, %v2467_v54, %v2466_v52 }
0x1552   :  { %4250 = vmatmul.mubr.msk.f32.vlgmr.msra.gmra.mrb[22].mxu1 %vm278_vm3, %v2468_v38 }
0x1553   :  { %4733 = vmatpush1.bf16.msra.mxu1 %v5769_v26  ;;  %2694 = vmatprep.mubr.f32.mxu1 %v5522_v3 }
0x1554   :  { %4735 = vmatprep.subr.bf16.mxu1 %v5771_v27 }
0x1557   :  { %4737 = vmatpush1.bf16.msra.mxu1 %v5788_v35 }
0x1558   :  { %4739 = vmatprep.subr.bf16.mxu1 %v5791_v36 }
0x155b   :  { %4741 = vmatpush1.bf16.msra.mxu1 %v5806_v49 }
0x155c   :  { %4743 = vmatprep.subr.bf16.mxu1 %v5809_v50 }
0x155f   :  { %4745 = vmatpush1.bf16.msra.mxu1 %v5824_v59 }
0x1560   :  { %4747 = vmatprep.subr.bf16.mxu1 %v5827_v61 }
0x1563   :  { %4749 = vmatpush1.bf16.msra.mxu1 %v5842_v5 }
0x1564   :  { %4751 = vmatprep.subr.bf16.mxu1 %v5845_v6 }
0x1567   :  { %4753 = vmatpush1.bf16.msra.mxu1 %v5860_v14 }
0x1568   :  { %4755 = vmatprep.subr.bf16.mxu1 %v5863_v15 }
0x156b   :  { %4757 = vmatpush1.bf16.msra.mxu1 %v5874_v22 }
0x156c   :  { %4759 = vmatprep.subr.bf16.mxu1 %v5888_v10 }
0x156f   :  { %4761 = vmatpush1.bf16.msra.mxu1 %v5899_v43 }
0x1570   :  { %4811 = vmatprep.subr.bf16.mxu1 %v5582_v4 }
0x15bf   :  { %v2348_v16 = vpop.permute.xlu1 %2347 }
0x15c0   :  { %v2350_v63 = vsel %vm278_vm3, %v2338_v60, %v2348_v16  ;;  %v2351_v53 = vsel %vm278_vm3, %v2342_v58, %v2348_v16 }
0x15c1   :  { %v2355_v45 = vrot.slane %v2350_v63, 7  ;;  %v2356_v44 = vrot.slane %v2351_v53, 7 }
0x15c3   :  { %v2357_v11 = vsel %vm2354_vm10, %v2355_v45, %v2356_v44 }
0x15c4   :  { %2424 = vmatmul.mubr.f32.vlgmr.msra.gmra.mrb[16].mxu0 %v2357_v11 }
0x15c5   :  { %4765 = vmatpush1.bf16.msra.mxu0 %v5593_v9  ;;  %2799 = vmatprep.mubr.f32.mxu0 %v5522_v3 }
0x15c6   :  { %4767 = vmatprep.subr.bf16.mxu0 %v5615_v17 }
0x15c9   :  { %4769 = vmatpush1.bf16.msra.mxu0 %v5620_v19 }
0x15ca   :  { %4771 = vmatprep.subr.bf16.mxu0 %v5636_v24 }
0x15cd   :  { %4773 = vmatpush1.bf16.msra.mxu0 %v5651_v29 }
0x15ce   :  { %4775 = vmatprep.subr.bf16.mxu0 %v5655_v30 }
0x15d1   :  { %4777 = vmatpush1.bf16.msra.mxu0 %v5670_v34 }
0x15d2   :  { %4779 = vmatprep.subr.bf16.mxu0 %v5758_v21 }
0x1625   :  { %v2537_v62 = vpop.f32.mrb[22].mxu1 }
0x1626   :  { %v2539_v7 = vpop.f32.mrb[23].mxu1  ;;  %v2544_v51 = vrot.slane %v2537_v62, 1  ;;  %v2550_v38 = vadd.f32 %v2537_v62, %v6412_v48 }
0x1627   :  { %v2545_v33 = vrot.slane %v2539_v7, 1  ;;  %v2551_v20 = vadd.f32 %v2539_v7, %v6402_v56 }
0x1628   :  { %v2552_v13 = vadd.f32 %v2544_v51, %v6397_v2  ;;  %v4251_v16 = vmul.f32 -1.442695, %v2550_v38 }
0x1629   :  { %v6391_v1 = vadd.f32 %v2545_v33, %v6388_v31 }
0x162a   :  { %v4253_v0 = vmul.f32 -1.442695, %v2552_v13 }
0x162b   :  { %5294 = vtanh.f32 %v6391_v1 }
0x162c   :  { %5296 = vpow2.f32 %v4253_v0 }
0x1635   :  { %v5295_v32 = vpop.eup %5294 }
0x1636   :  { %2592 = vrot.lane.b32.xlu1 %v5295_v32, %s5523_s3  ;;  %v5297_v40 = vpop.eup %5296 }
0x1637   :  { %v2568_v25 = vadd.f32 1.0, %v5297_v40 }
0x1697   :  { %v2425_v12 = vpop.f32.mrb[16].mxu0 }
0x1698   :  { %v2427_v23 = vpop.f32.mrb[17].mxu0  ;;  %v2430_v47 = vadd.f32 %v2425_v12, %v5706_v42 }
0x1699   :  { %v2431_v37 = vadd.f32 %v2427_v23, %v5948_v28 }
0x169a   :  { %v4248_v58 = vmul.f32 -1.442695, %v2430_v47 }
0x169b   :  { %5298 = vtanh.f32 %v2431_v37  ;;  %v4249_v47 = vmul.f32 -1.442695, %v2431_v37 }
0x169c   :  { %5300 = vtanh.f32 %v2551_v20 }
0x169d   :  { %5302 = vrcp.f32 %v2568_v25  ;;  %v2582_v25 = vrot.slane %v6343_v39, 7  ;;  %v4252_v39 = vmul.f32 -1.442695, %v2551_v20 }
0x169e   :  { %5304 = vpow2.f32 %v4248_v58 }
0x169f   :  { %5306 = vpow2.f32 %v4251_v16 }
0x16a5   :  { %v5299_v57 = vpop.eup %5298 }
0x16a6   :  { %2447 = vrot.lane.b32.xlu0 %v5299_v57, %s5523_s3  ;;  %v5301_v60 = vpop.eup %5300 }
0x16a7   :  { %v5303_v55 = vpop.eup %5302 }
0x16a8   :  { %v2593_v52 = vpop.permute.xlu1 %2592  ;;  %v5305_v63 = vpop.eup %5304  ;;  %v2587_v51 = vmul.f32 %v5303_v55, %v2583_v46 }
0x16a9   :  { %v2597_v54 = vmul.f32 %v5303_v55, %v2593_v52  ;;  %v2438_v53 = vadd.f32 1.0, %v5305_v63  ;;  %v5307_v45 = vpop.eup %5306 }
0x16aa   :  { %2590 = vrot.lane.b32.xlu0 %v5301_v60, %s5523_s3  ;;  %v2566_v44 = vadd.f32 1.0, %v5307_v45 }
0x16ab   :  { %5308 = vrcp.f32 %v2438_v53 }
0x16ac   :  { %5310 = vrcp.f32 %v2566_v44 }
0x16ae   :  { %2602 = vrot.lane.b32.xlu0 %v2597_v54, %s5523_s3 }
0x16b5   :  { %v5309_v11 = vpop.eup %5308 }
0x16b6   :  { %v5311_v32 = vpop.eup %5310  ;;  %v2445_v23 = vmul.f32 %v5309_v11, %v6341_v18  ;;  %v4254_v18 = vmul.f32 -1.442695, %v6391_v1 }
0x16b7   :  { %v2586_v8 = vmul.f32 %v5311_v32, %v2582_v25 }
0x1718   :  { %v2448_v7 = vpop.permute.xlu0 %2447 }
0x1719   :  { %v2450_v33 = vmul.f32 %v5309_v11, %v2448_v7 }
0x171b   :  { %2452 = vrot.lane.b32.xlu1 %v2450_v33, %s5523_s3 }
0x171c   :  { %v2591_v41 = vpop.permute.xlu0 %2590 }
0x171d   :  { %v2596_v62 = vmul.f32 %v5311_v32, %v2591_v41 }
0x171f   :  { %2600 = vrot.lane.b32.xlu1 %v2596_v62, %s5523_s3 }
0x1720   :  { %v2603_v13 = vpop.permute.xlu0 %2602 }
0x1721   :  { %v6418_v0 = vadd.f32 %v2603_v13, %v2587_v51 }
0x1723   :  { %5312 = vtanh.f32 %v6418_v0 }
0x172d   :  { %v5313_v12 = vpop.eup %5312 }
0x172e   :  { %2614 = vrot.lane.b32.xlu1 %v5313_v12, %s5523_s3 }
0x178d   :  { %v2453_v40 = vpop.permute.xlu1 %2452 }
0x178e   :  { %v6424_v57 = vadd.f32 %v2453_v40, %v2445_v23 }
0x1790   :  { %5314 = vtanh.f32 %v6424_v57 }
0x1791   :  { %v2601_v60 = vpop.permute.xlu1 %2600 }
0x1792   :  { %v6427_v55 = vadd.f32 %v2601_v60, %v2586_v8 }
0x1794   :  { %5316 = vtanh.f32 %v6427_v55 }
0x1795   :  { %5318 = vpow2.f32 %v4254_v18 }
0x1796   :  { %5320 = vpow2.f32 %v4249_v47 }
0x1797   :  { %5322 = vpow2.f32 %v4252_v39 }
0x179a   :  { %v5315_v52 = vpop.eup %5314 }
0x179b   :  { %2458 = vrot.lane.b32.xlu0 %v5315_v52, %s5523_s3 }
0x179e   :  { %v5317_v54 = vpop.eup %5316 }
0x179f   :  { %2612 = vrot.lane.b32.xlu0 %v5317_v54, %s5523_s3  ;;  %v5319_v38 = vpop.eup %5318 }
0x17a0   :  { %v5321_v58 = vpop.eup %5320  ;;  %v2569_v16 = vadd.f32 1.0, %v5319_v38  ;;  %v2615_v44 = vpop.permute.xlu1 %2614 }
0x17a1   :  { %v2439_v63 = vadd.f32 1.0, %v5321_v58  ;;  %v5323_v53 = vpop.eup %5322 }
0x17a2   :  { %5324 = vrcp.f32 %v2569_v16  ;;  %v2567_v45 = vadd.f32 1.0, %v5323_v53 }
0x17a3   :  { %5326 = vrcp.f32 %v2439_v63 }
0x17a4   :  { %5328 = vrcp.f32 %v2567_v45 }
0x17ac   :  { %v5325_v11 = vpop.eup %5324 }
0x17ad   :  { %v5327_v7 = vpop.eup %5326  ;;  %v2619_v32 = vmul.f32 %v5325_v11, %v2615_v44 }
0x17ae   :  { %v5329_v37 = vpop.eup %5328 }
0x17af   :  { %v2622_v41 = vrot.slane %v2619_v32, 7 }
0x180d   :  { %v2459_v33 = vpop.permute.xlu0 %2458 }
0x180e   :  { %v2461_v1 = vmul.f32 %v5327_v7, %v2459_v33 }
0x1810   :  { %2626 = vrot.lane.b32.xlu1 %v2461_v1, %s5523_s3 }
0x1811   :  { %v2613_v20 = vpop.permute.xlu0 %2612 }
0x1812   :  { %v2618_v46 = vmul.f32 %v5329_v37, %v2613_v20 }
0x1814   :  { %v2623_v62 = vsel %vm428_vm2, %v2622_v41, %v2618_v46 }
0x1815   :  { %4257 = vmatmul.mubr.msk.f32.vlgmr.msra.gmra.mrb[18].mxu0 %vm278_vm3, %v2623_v62 }
0x1816   :  { %4781 = vmatpush1.bf16.msra.mxu0 %v5769_v26  ;;  %2962 = vmatprep.mubr.f32.mxu0 %v5522_v3 }
0x1817   :  { %4783 = vmatprep.subr.bf16.mxu0 %v5771_v27 }
0x181a   :  { %4785 = vmatpush1.bf16.msra.mxu0 %v5788_v35 }
0x181b   :  { %4787 = vmatprep.subr.bf16.mxu0 %v5791_v36 }
0x181e   :  { %4789 = vmatpush1.bf16.msra.mxu0 %v5806_v49 }
0x181f   :  { %4791 = vmatprep.subr.bf16.mxu0 %v5809_v50 }
0x1822   :  { %4793 = vmatpush1.bf16.msra.mxu0 %v5824_v59 }
0x1823   :  { %4795 = vmatprep.subr.bf16.mxu0 %v5827_v61 }
0x1826   :  { %4797 = vmatpush1.bf16.msra.mxu0 %v5842_v5 }
0x1827   :  { %4799 = vmatprep.subr.bf16.mxu0 %v5845_v6 }
0x182a   :  { %4801 = vmatpush1.bf16.msra.mxu0 %v5860_v14 }
0x182b   :  { %4803 = vmatprep.subr.bf16.mxu0 %v5863_v15 }
0x182e   :  { %4805 = vmatpush1.bf16.msra.mxu0 %v5874_v22 }
0x182f   :  { %4807 = vmatprep.subr.bf16.mxu0 %v5888_v10 }
0x1832   :  { %4809 = vmatpush1.bf16.msra.mxu0 %v5899_v43 }
0x1833   :  { %4859 = vmatprep.subr.bf16.mxu0 %v5582_v4 }
0x1882   :  { %v2627_v51 = vpop.permute.xlu1 %2626 }
0x1883   :  { %v2629_v13 = vsel %vm278_vm3, %v2623_v62, %v2627_v51 }
0x1884   :  { %2695 = vmatmul.mubr.f32.vlgmr.msra.gmra.mrb[24].mxu1 %v2629_v13 }
0x1885   :  { %4813 = vmatpush1.bf16.msra.mxu1 %v5593_v9  ;;  %3069 = vmatprep.mubr.f32.mxu1 %v5522_v3 }
0x1886   :  { %4815 = vmatprep.subr.bf16.mxu1 %v5615_v17 }
0x1889   :  { %4817 = vmatpush1.bf16.msra.mxu1 %v5620_v19 }
0x188a   :  { %4819 = vmatprep.subr.bf16.mxu1 %v5636_v24 }
0x188d   :  { %4821 = vmatpush1.bf16.msra.mxu1 %v5651_v29 }
0x188e   :  { %4823 = vmatprep.subr.bf16.mxu1 %v5655_v30 }
0x1891   :  { %4825 = vmatpush1.bf16.msra.mxu1 %v5670_v34 }
0x1892   :  { %4827 = vmatprep.subr.bf16.mxu1 %v5758_v21 }
0x18e8   :  { %v2801_v12 = vpop.f32.mrb[18].mxu0 }
0x18e9   :  { %v2803_v23 = vpop.f32.mrb[19].mxu0  ;;  %v2816_v8 = vadd.f32 %v2801_v12, %v6397_v2  ;;  %v2808_v11 = vrot.slane %v2801_v12, 7 }
0x18ea   :  { %v6464_v40 = vadd.f32 %v2803_v23, %v6388_v31  ;;  %v2809_v52 = vrot.slane %v2803_v23, 7 }
0x18eb   :  { %v4260_v60 = vmul.f32 -1.442695, %v2816_v8  ;;  %v2814_v33 = vadd.f32 %v2808_v11, %v6412_v48 }
0x18ec   :  { %5330 = vtanh.f32 %v6464_v40  ;;  %v2815_v38 = vadd.f32 %v2809_v52, %v6402_v56 }
0x18ed   :  { %5332 = vpow2.f32 %v4260_v60  ;;  %v4258_v1 = vmul.f32 -1.442695, %v2814_v33 }
0x18f6   :  { %v5331_v25 = vpop.eup %5330 }
0x18f7   :  { %2856 = vrot.lane.b32.xlu1 %v5331_v25, %s5523_s3  ;;  %v5333_v39 = vpop.eup %5332  ;;  %v2847_v25 = vrot.slane %v6418_v0, 7 }
0x18f8   :  { %v2832_v58 = vadd.f32 1.0, %v5333_v39 }
0x1957   :  { %v2696_v54 = vpop.f32.mrb[24].mxu1 }
0x1958   :  { %v2698_v18 = vpop.f32.mrb[25].mxu1  ;;  %v2701_v7 = vadd.f32 %v2696_v54, %v5706_v42 }
0x1959   :  { %v2702_v47 = vadd.f32 %v2698_v18, %v5948_v28 }
0x195a   :  { %v4255_v32 = vmul.f32 -1.442695, %v2701_v7  ;;  %v4259_v7 = vmul.f32 -1.442695, %v2815_v38 }
0x195b   :  { %5334 = vtanh.f32 %v2702_v47 }
0x195c   :  { %5336 = vtanh.f32 %v2815_v38 }
0x195d   :  { %5338 = vrcp.f32 %v2832_v58 }
0x195e   :  { %5340 = vpow2.f32 %v4255_v32 }
0x195f   :  { %5342 = vpow2.f32 %v4258_v1 }
0x1965   :  { %v5335_v16 = vpop.eup %5334 }
0x1966   :  { %2718 = vrot.lane.b32.xlu0 %v5335_v16, %s5523_s3  ;;  %v5337_v63 = vpop.eup %5336  ;;  %v2846_v16 = vrot.slane %v6427_v55, 7  ;;  %v4261_v55 = vmul.f32 -1.442695, %v6464_v40 }
0x1967   :  { %v5339_v45 = vpop.eup %5338 }
0x1968   :  { %v5341_v37 = vpop.eup %5340  ;;  %v2851_v60 = vmul.f32 %v5339_v45, %v2847_v25 }
0x1969   :  { %v2857_v53 = vpop.permute.xlu1 %2856  ;;  %v2709_v20 = vadd.f32 1.0, %v5341_v37  ;;  %v5343_v41 = vpop.eup %5342 }
0x196a   :  { %2854 = vrot.lane.b32.xlu0 %v5337_v63, %s5523_s3  ;;  %v2861_v44 = vmul.f32 %v5339_v45, %v2857_v53  ;;  %v2830_v46 = vadd.f32 1.0, %v5343_v41 }
0x196b   :  { %5344 = vrcp.f32 %v2709_v20 }
0x196c   :  { %5346 = vrcp.f32 %v2830_v46 }
0x196e   :  { %2866 = vrot.lane.b32.xlu0 %v2861_v44, %s5523_s3 }
0x1975   :  { %v5345_v62 = vpop.eup %5344 }
0x1976   :  { %v5347_v12 = vpop.eup %5346  ;;  %v2716_v39 = vmul.f32 %v5345_v62, %v6424_v57  ;;  %v4256_v57 = vmul.f32 -1.442695, %v2702_v47 }
0x1977   :  { %v2850_v0 = vmul.f32 %v5347_v12, %v2846_v16 }
0x19d8   :  { %v2719_v51 = vpop.permute.xlu0 %2718 }
0x19d9   :  { %v2721_v13 = vmul.f32 %v5345_v62, %v2719_v51 }
0x19db   :  { %2723 = vrot.lane.b32.xlu1 %v2721_v13, %s5523_s3 }
0x19dc   :  { %v2855_v23 = vpop.permute.xlu0 %2854 }
0x19dd   :  { %v2860_v8 = vmul.f32 %v5347_v12, %v2855_v23 }
0x19df   :  { %2864 = vrot.lane.b32.xlu1 %v2860_v8, %s5523_s3 }
0x19e0   :  { %v2867_v52 = vpop.permute.xlu0 %2866 }
0x19e1   :  { %v6479_v54 = vadd.f32 %v2867_v52, %v2851_v60 }
0x19e3   :  { %5348 = vtanh.f32 %v6479_v54 }
0x19ed   :  { %v5349_v18 = vpop.eup %5348 }
0x19ee   :  { %2878 = vrot.lane.b32.xlu1 %v5349_v18, %s5523_s3 }
0x1a4d   :  { %v2724_v58 = vpop.permute.xlu1 %2723 }
0x1a4e   :  { %v6485_v63 = vadd.f32 %v2724_v58, %v2716_v39 }
0x1a50   :  { %5350 = vtanh.f32 %v6485_v63 }
0x1a51   :  { %v2865_v53 = vpop.permute.xlu1 %2864 }
0x1a52   :  { %v6488_v45 = vadd.f32 %v2865_v53, %v2850_v0 }
0x1a54   :  { %5352 = vtanh.f32 %v6488_v45 }
0x1a55   :  { %5354 = vpow2.f32 %v4256_v57 }
0x1a56   :  { %5356 = vpow2.f32 %v4259_v7 }
0x1a57   :  { %5358 = vpow2.f32 %v4261_v55 }
0x1a5a   :  { %v5351_v44 = vpop.eup %5350 }
0x1a5b   :  { %2729 = vrot.lane.b32.xlu0 %v5351_v44, %s5523_s3 }
0x1a5e   :  { %v5353_v11 = vpop.eup %5352 }
0x1a5f   :  { %2876 = vrot.lane.b32.xlu0 %v5353_v11, %s5523_s3  ;;  %v5355_v33 = vpop.eup %5354 }
0x1a60   :  { %v2710_v32 = vadd.f32 1.0, %v5355_v33  ;;  %v5357_v1 = vpop.eup %5356  ;;  %v2879_v38 = vpop.permute.xlu1 %2878 }
0x1a61   :  { %v5359_v37 = vpop.eup %5358  ;;  %v2831_v20 = vadd.f32 1.0, %v5357_v1 }
0x1a62   :  { %5360 = vrcp.f32 %v2710_v32  ;;  %v2833_v41 = vadd.f32 1.0, %v5359_v37 }
0x1a63   :  { %5362 = vrcp.f32 %v2831_v20 }
0x1a64   :  { %5364 = vrcp.f32 %v2833_v41 }
0x1a6c   :  { %v5361_v46 = vpop.eup %5360 }
0x1a6d   :  { %v5363_v47 = vpop.eup %5362 }
0x1a6e   :  { %v5365_v40 = vpop.eup %5364 }
0x1a6f   :  { %v2883_v25 = vmul.f32 %v5365_v40, %v2879_v38 }
0x1a71   :  { %v2886_v52 = vrot.slane %v2883_v25, 7 }
0x1acd   :  { %v2730_v62 = vpop.permute.xlu0 %2729 }
0x1ace   :  { %v2732_v51 = vmul.f32 %v5361_v46, %v2730_v62 }
0x1ad0   :  { %v2890_v13 = vrot.slane %v2732_v51, 7 }
0x1ad1   :  { %v2877_v12 = vpop.permute.xlu0 %2876 }
0x1ad2   :  { %v2882_v23 = vmul.f32 %v5363_v47, %v2877_v12  ;;  %2891 = vrot.lane.b32.xlu1 %v2890_v13, %s5523_s3 }
0x1ad4   :  { %v3001_v8 = vrot.slane %v2882_v23, 1  ;;  %v2887_v18 = vsel %vm700_vm4, %v2886_v52, %v2882_v23 }
0x1ad6   :  { %v3002_v60 = vsel %vm428_vm2, %v2883_v25, %v3001_v8 }
0x1ad7   :  { %4264 = vmatmul.mubr.msk.f32.vlgmr.msra.gmra.mrb[26].mxu1 %vm278_vm3, %v3002_v60 }
0x1ad8   :  { %4829 = vmatpush1.bf16.msra.mxu1 %v5769_v26  ;;  %3234 = vmatprep.mubr.f32.mxu1 %v5522_v3 }
0x1ad9   :  { %4831 = vmatprep.subr.bf16.mxu1 %v5771_v27 }
0x1adc   :  { %4833 = vmatpush1.bf16.msra.mxu1 %v5788_v35 }
0x1add   :  { %4835 = vmatprep.subr.bf16.mxu1 %v5791_v36 }
0x1ae0   :  { %4837 = vmatpush1.bf16.msra.mxu1 %v5806_v49 }
0x1ae1   :  { %4839 = vmatprep.subr.bf16.mxu1 %v5809_v50 }
0x1ae4   :  { %4841 = vmatpush1.bf16.msra.mxu1 %v5824_v59 }
0x1ae5   :  { %4843 = vmatprep.subr.bf16.mxu1 %v5827_v61 }
0x1ae8   :  { %4845 = vmatpush1.bf16.msra.mxu1 %v5842_v5 }
0x1ae9   :  { %4847 = vmatprep.subr.bf16.mxu1 %v5845_v6 }
0x1aec   :  { %4849 = vmatpush1.bf16.msra.mxu1 %v5860_v14 }
0x1aed   :  { %4851 = vmatprep.subr.bf16.mxu1 %v5863_v15 }
0x1af0   :  { %4853 = vmatpush1.bf16.msra.mxu1 %v5874_v22 }
0x1af1   :  { %4855 = vmatprep.subr.bf16.mxu1 %v5888_v10 }
0x1af4   :  { %4857 = vmatpush1.bf16.msra.mxu1 %v5899_v43 }
0x1af5   :  { %4907 = vmatprep.subr.bf16.mxu1 %v5582_v4 }
0x1b44   :  { %v2892_v39 = vpop.permute.xlu1 %2891 }
0x1b45   :  { %v2894_v58 = vsel %vm278_vm3, %v2887_v18, %v2892_v39 }
0x1b46   :  { %v2896_v16 = vrot.slane %v2894_v58, 1 }
0x1b48   :  { %2963 = vmatmul.mubr.f32.vlgmr.msra.gmra.mrb[20].mxu0 %v2896_v16 }
0x1b49   :  { %4861 = vmatpush1.bf16.msra.mxu0 %v5593_v9  ;;  %3342 = vmatprep.mubr.f32.mxu0 %v5522_v3 }
0x1b4a   :  { %4863 = vmatprep.subr.bf16.mxu0 %v5615_v17 }
0x1b4d   :  { %4865 = vmatpush1.bf16.msra.mxu0 %v5620_v19 }
0x1b4e   :  { %4867 = vmatprep.subr.bf16.mxu0 %v5636_v24 }
0x1b51   :  { %4869 = vmatpush1.bf16.msra.mxu0 %v5651_v29 }
0x1b52   :  { %4871 = vmatprep.subr.bf16.mxu0 %v5655_v30 }
0x1b55   :  { %4873 = vmatpush1.bf16.msra.mxu0 %v5670_v34 }
0x1b56   :  { %4875 = vmatprep.subr.bf16.mxu0 %v5758_v21 }
0x1baa   :  { %v3071_v0 = vpop.f32.mrb[26].mxu1 }
0x1bab   :  { %v3073_v53 = vpop.f32.mrb[27].mxu1  ;;  %v3080_v7 = vrot.slane %v3071_v0, 7  ;;  %v3078_v23 = vrot.slane %v3071_v0, 6 }
0x1bac   :  { %v3081_v44 = vrot.slane %v3073_v53, 7  ;;  %v3079_v32 = vrot.slane %v3073_v53, 6 }
0x1bad   :  { %v3088_v55 = vadd.f32 %v3080_v7, %v6397_v2  ;;  %v3086_v25 = vadd.f32 %v3078_v23, %v6412_v48 }
0x1bae   :  { %v6526_v11 = vadd.f32 %v3081_v44, %v6388_v31  ;;  %v3087_v41 = vadd.f32 %v3079_v32, %v6402_v56 }
0x1baf   :  { %v4267_v33 = vmul.f32 -1.442695, %v3088_v55  ;;  %v4265_v60 = vmul.f32 -1.442695, %v3086_v25  ;;  %v3119_v55 = vrot.slane %v6479_v54, 7 }
0x1bb0   :  { %5366 = vtanh.f32 %v6526_v11 }
0x1bb1   :  { %5368 = vpow2.f32 %v4267_v33 }
0x1bba   :  { %v5367_v57 = vpop.eup %5366 }
0x1bbb   :  { %3128 = vrot.lane.b32.xlu1 %v5367_v57, %s5523_s3  ;;  %v5369_v46 = vpop.eup %5368 }
0x1bbc   :  { %v3104_v62 = vadd.f32 1.0, %v5369_v46 }
0x1c1b   :  { %v2964_v1 = vpop.f32.mrb[20].mxu0 }
0x1c1c   :  { %v2966_v37 = vpop.f32.mrb[21].mxu0  ;;  %v2969_v40 = vadd.f32 %v2964_v1, %v5706_v42 }
0x1c1d   :  { %v2970_v20 = vadd.f32 %v2966_v37, %v5948_v28 }
0x1c1e   :  { %v4262_v8 = vmul.f32 -1.442695, %v2969_v40 }
0x1c1f   :  { %5370 = vtanh.f32 %v2970_v20  ;;  %v4263_v40 = vmul.f32 -1.442695, %v2970_v20 }
0x1c20   :  { %5372 = vtanh.f32 %v3087_v41 }
0x1c21   :  { %5374 = vrcp.f32 %v3104_v62 }
0x1c22   :  { %5376 = vpow2.f32 %v4262_v8 }
0x1c23   :  { %5378 = vpow2.f32 %v4265_v60 }
0x1c29   :  { %v5371_v51 = vpop.eup %5370 }
0x1c2a   :  { %2986 = vrot.lane.b32.xlu0 %v5371_v51, %s5523_s3  ;;  %v5373_v13 = vpop.eup %5372  ;;  %v3118_v51 = vrot.slane %v6488_v45, 7  ;;  %v4266_v45 = vmul.f32 -1.442695, %v3087_v41 }
0x1c2b   :  { %v5375_v47 = vpop.eup %5374 }
0x1c2c   :  { %v5377_v52 = vpop.eup %5376  ;;  %v3123_v33 = vmul.f32 %v5375_v47, %v3119_v55 }
0x1c2d   :  { %v3129_v38 = vpop.permute.xlu1 %3128  ;;  %v2977_v18 = vadd.f32 1.0, %v5377_v52  ;;  %v5379_v39 = vpop.eup %5378 }
0x1c2e   :  { %3126 = vrot.lane.b32.xlu0 %v5373_v13, %s5523_s3  ;;  %v3133_v12 = vmul.f32 %v5375_v47, %v3129_v38  ;;  %v3102_v58 = vadd.f32 1.0, %v5379_v39 }
0x1c2f   :  { %5380 = vrcp.f32 %v2977_v18 }
0x1c30   :  { %5382 = vrcp.f32 %v3102_v58 }
0x1c32   :  { %3138 = vrot.lane.b32.xlu0 %v3133_v12, %s5523_s3 }
0x1c39   :  { %v5381_v16 = vpop.eup %5380 }
0x1c3a   :  { %v5383_v0 = vpop.eup %5382  ;;  %v2984_v46 = vmul.f32 %v5381_v16, %v6485_v63  ;;  %v4268_v63 = vmul.f32 -1.442695, %v6526_v11 }
0x1c3b   :  { %v3122_v38 = vmul.f32 %v5383_v0, %v3118_v51 }
0x1c9c   :  { %v2987_v53 = vpop.permute.xlu0 %2986 }
0x1c9d   :  { %v2989_v44 = vmul.f32 %v5381_v16, %v2987_v53 }
0x1c9f   :  { %2991 = vrot.lane.b32.xlu1 %v2989_v44, %s5523_s3 }
0x1ca0   :  { %v3127_v57 = vpop.permute.xlu0 %3126 }
0x1ca1   :  { %v3132_v7 = vmul.f32 %v5383_v0, %v3127_v57 }
0x1ca3   :  { %3136 = vrot.lane.b32.xlu1 %v3132_v7, %s5523_s3 }
0x1ca4   :  { %v3139_v32 = vpop.permute.xlu0 %3138 }
0x1ca5   :  { %v6541_v1 = vadd.f32 %v3139_v32, %v3123_v33 }
0x1ca7   :  { %5384 = vtanh.f32 %v6541_v1 }
0x1cb1   :  { %v5385_v37 = vpop.eup %5384 }
0x1cb2   :  { %3150 = vrot.lane.b32.xlu1 %v5385_v37, %s5523_s3 }
0x1d11   :  { %v2992_v62 = vpop.permute.xlu1 %2991 }
0x1d12   :  { %v6547_v13 = vadd.f32 %v2992_v62, %v2984_v46 }
0x1d14   :  { %5386 = vtanh.f32 %v6547_v13 }
0x1d15   :  { %v3137_v54 = vpop.permute.xlu1 %3136 }
0x1d16   :  { %v6550_v47 = vadd.f32 %v3137_v54, %v3122_v38 }
0x1d18   :  { %5388 = vtanh.f32 %v6550_v47 }
0x1d19   :  { %5390 = vpow2.f32 %v4268_v63 }
0x1d1a   :  { %5392 = vpow2.f32 %v4263_v40 }
0x1d1b   :  { %5394 = vpow2.f32 %v4266_v45 }
0x1d1e   :  { %v5387_v12 = vpop.eup %5386 }
0x1d1f   :  { %2997 = vrot.lane.b32.xlu0 %v5387_v12, %s5523_s3 }
0x1d22   :  { %v5389_v23 = vpop.eup %5388 }
0x1d23   :  { %3148 = vrot.lane.b32.xlu0 %v5389_v23, %s5523_s3  ;;  %v5391_v25 = vpop.eup %5390 }
0x1d24   :  { %v5393_v8 = vpop.eup %5392  ;;  %v3105_v60 = vadd.f32 1.0, %v5391_v25  ;;  %v3151_v58 = vpop.permute.xlu1 %3150 }
0x1d25   :  { %v2978_v52 = vadd.f32 1.0, %v5393_v8  ;;  %v5395_v18 = vpop.eup %5394 }
0x1d26   :  { %5396 = vrcp.f32 %v3105_v60  ;;  %v3103_v39 = vadd.f32 1.0, %v5395_v18 }
0x1d27   :  { %5398 = vrcp.f32 %v2978_v52 }
0x1d28   :  { %5400 = vrcp.f32 %v3103_v39 }
0x1d30   :  { %v5397_v16 = vpop.eup %5396 }
0x1d31   :  { %v5399_v53 = vpop.eup %5398  ;;  %v3155_v0 = vmul.f32 %v5397_v16, %v3151_v58 }
0x1d32   :  { %v5401_v57 = vpop.eup %5400 }
0x1d33   :  { %v3158_v7 = vrot.slane %v3155_v0, 7  ;;  %v3274_v33 = vrot.slane %v3155_v0, 1 }
0x1d91   :  { %v2998_v44 = vpop.permute.xlu0 %2997 }
0x1d92   :  { %v3000_v11 = vmul.f32 %v5399_v53, %v2998_v44 }
0x1d94   :  { %v3162_v20 = vrot.slane %v3000_v11, 6 }
0x1d95   :  { %v3149_v41 = vpop.permute.xlu0 %3148 }
0x1d96   :  { %v3154_v55 = vmul.f32 %v5401_v57, %v3149_v41  ;;  %3163 = vrot.lane.b32.xlu1 %v3162_v20, %s5523_s3 }
0x1d98   :  { %v3273_v32 = vrot.slane %v3154_v55, 2  ;;  %v3159_v37 = vsel %vm973_vm5, %v3158_v7, %v3154_v55 }
0x1d9a   :  { %v3275_v46 = vsel %vm428_vm2, %v3274_v33, %v3273_v32 }
0x1d9b   :  { %4271 = vmatmul.mubr.msk.f32.vlgmr.msra.gmra.mrb[22].mxu0 %vm278_vm3, %v3275_v46 }
0x1d9c   :  { %4877 = vmatpush1.bf16.msra.mxu0 %v5769_v26  ;;  %3507 = vmatprep.mubr.f32.mxu0 %v5522_v3 }
0x1d9d   :  { %4879 = vmatprep.subr.bf16.mxu0 %v5771_v27 }
0x1da0   :  { %4881 = vmatpush1.bf16.msra.mxu0 %v5788_v35 }
0x1da1   :  { %4883 = vmatprep.subr.bf16.mxu0 %v5791_v36 }
0x1da4   :  { %4885 = vmatpush1.bf16.msra.mxu0 %v5806_v49 }
0x1da5   :  { %4887 = vmatprep.subr.bf16.mxu0 %v5809_v50 }
0x1da8   :  { %4889 = vmatpush1.bf16.msra.mxu0 %v5824_v59 }
0x1da9   :  { %4891 = vmatprep.subr.bf16.mxu0 %v5827_v61 }
0x1dac   :  { %4893 = vmatpush1.bf16.msra.mxu0 %v5842_v5 }
0x1dad   :  { %4895 = vmatprep.subr.bf16.mxu0 %v5845_v6 }
0x1db0   :  { %4897 = vmatpush1.bf16.msra.mxu0 %v5860_v14 }
0x1db1   :  { %4899 = vmatprep.subr.bf16.mxu0 %v5863_v15 }
0x1db4   :  { %4901 = vmatpush1.bf16.msra.mxu0 %v5874_v22 }
0x1db5   :  { %4903 = vmatprep.subr.bf16.mxu0 %v5888_v10 }
0x1db8   :  { %4905 = vmatpush1.bf16.msra.mxu0 %v5899_v43 }
0x1db9   :  { %4955 = vmatprep.subr.bf16.mxu0 %v5582_v4 }
0x1e08   :  { %v3164_v62 = vpop.permute.xlu1 %3163 }
0x1e09   :  { %v3166_v51 = vsel %vm278_vm3, %v3159_v37, %v3164_v62 }
0x1e0a   :  { %v3168_v38 = vrot.slane %v3166_v51, 2 }
0x1e0c   :  { %3235 = vmatmul.mubr.f32.vlgmr.msra.gmra.mrb[28].mxu1 %v3168_v38 }
0x1e0d   :  { %4909 = vmatpush1.bf16.msra.mxu1 %v5593_v9  ;;  %3615 = vmatprep.mubr.f32.mxu1 %v5522_v3 }
0x1e0e   :  { %4911 = vmatprep.subr.bf16.mxu1 %v5615_v17 }
0x1e11   :  { %4913 = vmatpush1.bf16.msra.mxu1 %v5620_v19 }
0x1e12   :  { %4915 = vmatprep.subr.bf16.mxu1 %v5636_v24 }
0x1e15   :  { %4917 = vmatpush1.bf16.msra.mxu1 %v5651_v29 }
0x1e16   :  { %4919 = vmatprep.subr.bf16.mxu1 %v5655_v30 }
0x1e19   :  { %4921 = vmatpush1.bf16.msra.mxu1 %v5670_v34 }
0x1e1a   :  { %4923 = vmatprep.subr.bf16.mxu1 %v5758_v21 }
0x1e6e   :  { %v3344_v4 = vpop.f32.mrb[22].mxu0 }
0x1e6f   :  { %v3346_v54 = vpop.f32.mrb[23].mxu0  ;;  %v3353_v40 = vrot.slane %v3344_v4, 6  ;;  %v3351_v57 = vrot.slane %v3344_v4, 5 }
0x1e70   :  { %v3354_v12 = vrot.slane %v3346_v54, 6  ;;  %v3352_v8 = vrot.slane %v3346_v54, 5 }
0x1e71   :  { %v3361_v45 = vadd.f32 %v3353_v40, %v6397_v2  ;;  %v3359_v7 = vadd.f32 %v3351_v57, %v6412_v48  ;;  %v3392_v40 = vrot.slane %v6541_v1, 7 }
0x1e72   :  { %v6588_v23 = vadd.f32 %v3354_v12, %v6388_v31  ;;  %v3360_v39 = vadd.f32 %v3352_v8, %v6402_v56 }
0x1e73   :  { %v4274_v25 = vmul.f32 -1.442695, %v3361_v45  ;;  %v4272_v33 = vmul.f32 -1.442695, %v3359_v7 }
0x1e74   :  { %5402 = vtanh.f32 %v6588_v23 }
0x1e75   :  { %5404 = vpow2.f32 %v4274_v25 }
0x1e7e   :  { %v5403_v63 = vpop.eup %5402 }
0x1e7f   :  { %3401 = vrot.lane.b32.xlu1 %v5403_v63, %s5523_s3  ;;  %v5405_v58 = vpop.eup %5404 }
0x1e80   :  { %v3377_v16 = vadd.f32 1.0, %v5405_v58 }
0x1edf   :  { %v3236_v60 = vpop.f32.mrb[28].mxu1 }
0x1ee0   :  { %v3238_v52 = vpop.f32.mrb[29].mxu1  ;;  %v3241_v41 = vadd.f32 %v3236_v60, %v5706_v42 }
0x1ee1   :  { %v3242_v18 = vadd.f32 %v3238_v52, %v5948_v28 }
0x1ee2   :  { %v4269_v55 = vmul.f32 -1.442695, %v3241_v41 }
0x1ee3   :  { %5406 = vtanh.f32 %v3242_v18  ;;  %v4270_v57 = vmul.f32 -1.442695, %v3242_v18 }
0x1ee4   :  { %5408 = vtanh.f32 %v3360_v39 }
0x1ee5   :  { %5410 = vrcp.f32 %v3377_v16  ;;  %v3391_v16 = vrot.slane %v6550_v47, 7  ;;  %v4273_v47 = vmul.f32 -1.442695, %v3360_v39 }
0x1ee6   :  { %5412 = vpow2.f32 %v4269_v55 }
0x1ee7   :  { %5414 = vpow2.f32 %v4272_v33 }
0x1eed   :  { %v5407_v53 = vpop.eup %5406 }
0x1eee   :  { %3258 = vrot.lane.b32.xlu0 %v5407_v53, %s5523_s3  ;;  %v5409_v44 = vpop.eup %5408 }
0x1eef   :  { %v5411_v0 = vpop.eup %5410 }
0x1ef0   :  { %v5413_v32 = vpop.eup %5412  ;;  %v3396_v45 = vmul.f32 %v5411_v0, %v3392_v40 }
0x1ef1   :  { %v3402_v11 = vpop.permute.xlu1 %3401  ;;  %v3249_v37 = vadd.f32 1.0, %v5413_v32  ;;  %v5415_v46 = vpop.eup %5414 }
0x1ef2   :  { %3399 = vrot.lane.b32.xlu0 %v5409_v44, %s5523_s3  ;;  %v3406_v20 = vmul.f32 %v5411_v0, %v3402_v11  ;;  %v3375_v62 = vadd.f32 1.0, %v5415_v46 }
0x1ef3   :  { %5416 = vrcp.f32 %v3249_v37 }
0x1ef4   :  { %5418 = vrcp.f32 %v3375_v62 }
0x1ef6   :  { %3411 = vrot.lane.b32.xlu0 %v3406_v20, %s5523_s3 }
0x1efd   :  { %v5417_v51 = vpop.eup %5416 }
0x1efe   :  { %v5419_v4 = vpop.eup %5418  ;;  %v3256_v52 = vmul.f32 %v5417_v51, %v6547_v13  ;;  %v4275_v13 = vmul.f32 -1.442695, %v6588_v23 }
0x1eff   :  { %v3395_v44 = vmul.f32 %v5419_v4, %v3391_v16 }
0x1f60   :  { %v3259_v38 = vpop.permute.xlu0 %3258 }
0x1f61   :  { %v3261_v54 = vmul.f32 %v5417_v51, %v3259_v38 }
0x1f63   :  { %3263 = vrot.lane.b32.xlu1 %v3261_v54, %s5523_s3 }
0x1f64   :  { %v3400_v12 = vpop.permute.xlu0 %3399 }
0x1f65   :  { %v3405_v63 = vmul.f32 %v5419_v4, %v3400_v12 }
0x1f67   :  { %3409 = vrot.lane.b32.xlu1 %v3405_v63, %s5523_s3 }
0x1f68   :  { %v3412_v25 = vpop.permute.xlu0 %3411 }
0x1f69   :  { %v6603_v8 = vadd.f32 %v3412_v25, %v3396_v45 }
0x1f6b   :  { %5420 = vtanh.f32 %v6603_v8 }
0x1f75   :  { %v5421_v60 = vpop.eup %5420 }
0x1f76   :  { %3423 = vrot.lane.b32.xlu1 %v5421_v60, %s5523_s3 }
0x1fd5   :  { %v3264_v58 = vpop.permute.xlu1 %3263 }
0x1fd6   :  { %v6609_v53 = vadd.f32 %v3264_v58, %v3256_v52 }
0x1fd8   :  { %5422 = vtanh.f32 %v6609_v53 }
0x1fd9   :  { %v3410_v1 = vpop.permute.xlu1 %3409 }
0x1fda   :  { %v6612_v0 = vadd.f32 %v3410_v1, %v3395_v44 }
0x1fdc   :  { %5424 = vtanh.f32 %v6612_v0 }
0x1fdd   :  { %5426 = vpow2.f32 %v4275_v13 }
0x1fde   :  { %5428 = vpow2.f32 %v4270_v57 }
0x1fdf   :  { %5430 = vpow2.f32 %v4273_v47 }
0x1fe2   :  { %v5423_v11 = vpop.eup %5422 }
0x1fe3   :  { %3269 = vrot.lane.b32.xlu0 %v5423_v11, %s5523_s3 }
0x1fe6   :  { %v5425_v20 = vpop.eup %5424 }
0x1fe7   :  { %3421 = vrot.lane.b32.xlu0 %v5425_v20, %s5523_s3  ;;  %v5427_v41 = vpop.eup %5426 }
0x1fe8   :  { %v5429_v7 = vpop.eup %5428  ;;  %v3378_v55 = vadd.f32 1.0, %v5427_v41  ;;  %v3424_v46 = vpop.permute.xlu1 %3423 }
0x1fe9   :  { %v3250_v33 = vadd.f32 1.0, %v5429_v7  ;;  %v5431_v32 = vpop.eup %5430 }
0x1fea   :  { %5432 = vrcp.f32 %v3378_v55  ;;  %v3376_v37 = vadd.f32 1.0, %v5431_v32 }
0x1feb   :  { %5434 = vrcp.f32 %v3250_v33 }
0x1fec   :  { %5436 = vrcp.f32 %v3376_v37 }
0x1ff4   :  { %v5433_v62 = vpop.eup %5432 }
0x1ff5   :  { %v5435_v51 = vpop.eup %5434  ;;  %v3428_v54 = vmul.f32 %v5433_v62, %v3424_v46 }
0x1ff6   :  { %v5437_v4 = vpop.eup %5436 }
0x1ff7   :  { %v3431_v12 = vrot.slane %v3428_v54, 7  ;;  %v3547_v40 = vrot.slane %v3428_v54, 2 }
0x2055   :  { %v3270_v38 = vpop.permute.xlu0 %3269 }
0x2056   :  { %v3272_v23 = vmul.f32 %v5435_v51, %v3270_v38 }
0x2058   :  { %v3435_v18 = vrot.slane %v3272_v23, 5 }
0x2059   :  { %v3422_v39 = vpop.permute.xlu0 %3421 }
0x205a   :  { %v3427_v63 = vmul.f32 %v5437_v4, %v3422_v39  ;;  %3436 = vrot.lane.b32.xlu1 %v3435_v18, %s5523_s3 }
0x205c   :  { %v3546_v45 = vrot.slane %v3427_v63, 3  ;;  %v3432_v25 = vsel %vm1247_vm6, %v3431_v12, %v3427_v63 }
0x205e   :  { %v3548_v60 = vsel %vm428_vm2, %v3547_v40, %v3546_v45 }
0x205f   :  { %4278 = vmatmul.mubr.msk.f32.vlgmr.msra.gmra.mrb[30].mxu1 %vm278_vm3, %v3548_v60  ;;  %v3665_v60 = vrot.slane %v6603_v8, 7 }
0x2060   :  { %4925 = vmatpush1.bf16.msra.mxu1 %v5769_v26  ;;  %3780 = vmatprep.mubr.f32.mxu1 %v5522_v3 }
0x2061   :  { %4927 = vmatprep.subr.bf16.mxu1 %v5771_v27 }
0x2064   :  { %4929 = vmatpush1.bf16.msra.mxu1 %v5788_v35 }
0x2065   :  { %4931 = vmatprep.subr.bf16.mxu1 %v5791_v36 }
0x2068   :  { %4933 = vmatpush1.bf16.msra.mxu1 %v5806_v49 }
0x2069   :  { %4935 = vmatprep.subr.bf16.mxu1 %v5809_v50 }
0x206c   :  { %4937 = vmatpush1.bf16.msra.mxu1 %v5824_v59 }
0x206d   :  { %4939 = vmatprep.subr.bf16.mxu1 %v5827_v61 }
0x2070   :  { %4941 = vmatpush1.bf16.msra.mxu1 %v5842_v5 }
0x2071   :  { %4943 = vmatprep.subr.bf16.mxu1 %v5845_v6 }
0x2074   :  { %4945 = vmatpush1.bf16.msra.mxu1 %v5860_v14 }
0x2075   :  { %4947 = vmatprep.subr.bf16.mxu1 %v5863_v15 }
0x2078   :  { %4949 = vmatpush1.bf16.msra.mxu1 %v5874_v22 }
0x2079   :  { %4951 = vmatprep.subr.bf16.mxu1 %v5888_v10 }
0x207c   :  { %4953 = vmatpush1.bf16.msra.mxu1 %v5899_v43 }
0x20cc   :  { %v3437_v52 = vpop.permute.xlu1 %3436 }
0x20cd   :  { %v3439_v58 = vsel %vm278_vm3, %v3432_v25, %v3437_v52 }
0x20ce   :  { %v3441_v16 = vrot.slane %v3439_v58, 3 }
0x20d0   :  { %3508 = vmatmul.mubr.f32.vlgmr.msra.gmra.mrb[24].mxu0 %v3441_v16 }
0x20d1   :  { %4957 = vmatpush1.bf16.msra.mxu0 %v5593_v9  ;;  %3888 = vmatprep.mubr.f32.mxu0 %v5522_v3 }
0x20d2   :  { %4959 = vmatprep.subr.bf16.mxu0 %v5615_v17 }
0x20d5   :  { %4961 = vmatpush1.bf16.msra.mxu0 %v5620_v19 }
0x20d6   :  { %4963 = vmatprep.subr.bf16.mxu0 %v5636_v24 }
0x20d9   :  { %4965 = vmatpush1.bf16.msra.mxu0 %v5651_v29 }
0x20da   :  { %4967 = vmatprep.subr.bf16.mxu0 %v5655_v30 }
0x20dd   :  { %4969 = vmatpush1.bf16.msra.mxu0 %v5670_v34 }
0x20de   :  { %4971 = vmatprep.subr.bf16.mxu0 %v5758_v21 }
0x2132   :  { %v3617_v44 = vpop.f32.mrb[30].mxu1 }
0x2133   :  { %v3619_v1 = vpop.f32.mrb[31].mxu1  ;;  %v3626_v19 = vrot.slane %v3617_v44, 5  ;;  %v3624_v37 = vrot.slane %v3617_v44, 4 }
0x2134   :  { %v3627_v11 = vrot.slane %v3619_v1, 5  ;;  %v3625_v30 = vrot.slane %v3619_v1, 4 }
0x2135   :  { %v3634_v24 = vadd.f32 %v3626_v19, %v6397_v2  ;;  %v3632_v62 = vadd.f32 %v3624_v37, %v6412_v48 }
0x2136   :  { %v6649_v9 = vadd.f32 %v3627_v11, %v6388_v31  ;;  %v3633_v13 = vadd.f32 %v3625_v30, %v6402_v56 }
0x2137   :  { %v4281_v29 = vmul.f32 -1.442695, %v3634_v24  ;;  %v4279_v38 = vmul.f32 -1.442695, %v3632_v62 }
0x2138   :  { %5438 = vtanh.f32 %v6649_v9 }
0x2139   :  { %5440 = vpow2.f32 %v4281_v29 }
0x2142   :  { %v5439_v17 = vpop.eup %5438 }
0x2143   :  { %3674 = vrot.lane.b32.xlu1 %v5439_v17, %s5523_s3  ;;  %v5441_v57 = vpop.eup %5440  ;;  %v3664_v17 = vrot.slane %v6612_v0, 7  ;;  %v4280_v0 = vmul.f32 -1.442695, %v3633_v13 }
0x2144   :  { %v3650_v47 = vadd.f32 1.0, %v5441_v57 }
0x21a3   :  { %v3509_v34 = vpop.f32.mrb[24].mxu0 }
0x21a4   :  { %v3511_v20 = vpop.f32.mrb[25].mxu0  ;;  %v3514_v46 = vadd.f32 %v3509_v34, %v5706_v42 }
0x21a5   :  { %v3515_v21 = vadd.f32 %v3511_v20, %v5948_v28 }
0x21a6   :  { %v4276_v51 = vmul.f32 -1.442695, %v3514_v46 }
0x21a7   :  { %5442 = vtanh.f32 %v3515_v21  ;;  %v4277_v20 = vmul.f32 -1.442695, %v3515_v21 }
0x21a8   :  { %5444 = vtanh.f32 %v3633_v13 }
0x21a9   :  { %5446 = vrcp.f32 %v3650_v47 }
0x21aa   :  { %5448 = vpow2.f32 %v4276_v51 }
0x21ab   :  { %5450 = vpow2.f32 %v4279_v38 }
0x21b1   :  { %v5443_v41 = vpop.eup %5442 }
0x21b2   :  { %3531 = vrot.lane.b32.xlu0 %v5443_v41, %s5523_s3  ;;  %v5445_v7 = vpop.eup %5444 }
0x21b3   :  { %v5447_v55 = vpop.eup %5446 }
0x21b4   :  { %v5449_v54 = vpop.eup %5448  ;;  %v3669_v52 = vmul.f32 %v5447_v55, %v3665_v60 }
0x21b5   :  { %v3675_v33 = vpop.permute.xlu1 %3674  ;;  %v3522_v23 = vadd.f32 1.0, %v5449_v54  ;;  %v5451_v18 = vpop.eup %5450 }
0x21b6   :  { %3672 = vrot.lane.b32.xlu0 %v5445_v7, %s5523_s3  ;;  %v3679_v32 = vmul.f32 %v5447_v55, %v3675_v33  ;;  %v3648_v4 = vadd.f32 1.0, %v5451_v18 }
0x21b7   :  { %5452 = vrcp.f32 %v3522_v23 }
0x21b8   :  { %5454 = vrcp.f32 %v3648_v4 }
0x21ba   :  { %3684 = vrot.lane.b32.xlu0 %v3679_v32, %s5523_s3 }
0x21c1   :  { %v5453_v39 = vpop.eup %5452 }
0x21c2   :  { %v5455_v40 = vpop.eup %5454  ;;  %v3529_v1 = vmul.f32 %v5453_v39, %v6609_v53  ;;  %v4282_v53 = vmul.f32 -1.442695, %v6649_v9 }
0x21c3   :  { %v3668_v24 = vmul.f32 %v5455_v40, %v3664_v17 }
0x2224   :  { %v3532_v12 = vpop.permute.xlu0 %3531 }
0x2225   :  { %v3534_v63 = vmul.f32 %v5453_v39, %v3532_v12 }
0x2227   :  { %3536 = vrot.lane.b32.xlu1 %v3534_v63, %s5523_s3 }
0x2228   :  { %v3673_v45 = vpop.permute.xlu0 %3672 }
0x2229   :  { %v3678_v25 = vmul.f32 %v5455_v40, %v3673_v45 }
0x222b   :  { %3682 = vrot.lane.b32.xlu1 %v3678_v25, %s5523_s3 }
0x222c   :  { %v3685_v58 = vpop.permute.xlu0 %3684 }
0x222d   :  { %v6664_v16 = vadd.f32 %v3685_v58, %v3669_v52 }
0x222f   :  { %5456 = vtanh.f32 %v6664_v16 }
0x2239   :  { %v5457_v44 = vpop.eup %5456 }
0x223a   :  { %3696 = vrot.lane.b32.xlu1 %v5457_v44, %s5523_s3 }
0x2299   :  { %v3537_v11 = vpop.permute.xlu1 %3536 }
0x229a   :  { %v6670_v19 = vadd.f32 %v3537_v11, %v3529_v1 }
0x229c   :  { %5458 = vtanh.f32 %v6670_v19 }
0x229d   :  { %v3683_v8 = vpop.permute.xlu1 %3682 }
0x229e   :  { %v6673_v29 = vadd.f32 %v3683_v8, %v3668_v24 }
0x22a0   :  { %5460 = vtanh.f32 %v6673_v29 }
0x22a1   :  { %5462 = vpow2.f32 %v4282_v53 }
0x22a2   :  { %5464 = vpow2.f32 %v4277_v20 }
0x22a3   :  { %5466 = vpow2.f32 %v4280_v0 }
0x22a6   :  { %v5459_v30 = vpop.eup %5458 }
0x22a7   :  { %3542 = vrot.lane.b32.xlu0 %v5459_v30, %s5523_s3 }
0x22aa   :  { %v5461_v34 = vpop.eup %5460 }
0x22ab   :  { %3694 = vrot.lane.b32.xlu0 %v5461_v34, %s5523_s3  ;;  %v5463_v57 = vpop.eup %5462 }
0x22ac   :  { %v5465_v47 = vpop.eup %5464  ;;  %v3651_v41 = vadd.f32 1.0, %v5463_v57  ;;  %v3697_v32 = vpop.permute.xlu1 %3696 }
0x22ad   :  { %v3523_v7 = vadd.f32 1.0, %v5465_v47  ;;  %v5467_v55 = vpop.eup %5466 }
0x22ae   :  { %5468 = vrcp.f32 %v3651_v41  ;;  %v3649_v33 = vadd.f32 1.0, %v5467_v55 }
0x22af   :  { %5470 = vrcp.f32 %v3523_v7 }
0x22b0   :  { %5472 = vrcp.f32 %v3649_v33 }
0x22b8   :  { %v5469_v37 = vpop.eup %5468 }
0x22b9   :  { %v5471_v46 = vpop.eup %5470  ;;  %v3701_v51 = vmul.f32 %v5469_v37, %v3697_v32 }
0x22ba   :  { %v5473_v38 = vpop.eup %5472 }
0x22bb   :  { %v3704_v54 = vrot.slane %v3701_v51, 7  ;;  %v3820_v18 = vrot.slane %v3701_v51, 3 }
0x2319   :  { %v3543_v62 = vpop.permute.xlu0 %3542 }
0x231a   :  { %v3545_v9 = vmul.f32 %v5471_v46, %v3543_v62  ;;  %v3937_v46 = vrot.slane %v6673_v29, 7 }
0x231c   :  { %v3708_v21 = vrot.slane %v3545_v9, 4 }
0x231d   :  { %v3695_v13 = vpop.permute.xlu0 %3694 }
0x231e   :  { %v3700_v23 = vmul.f32 %v5473_v38, %v3695_v13  ;;  %3709 = vrot.lane.b32.xlu1 %v3708_v21, %s5523_s3 }
0x2320   :  { %v3819_v4 = vrot.slane %v3700_v23, 4  ;;  %v3705_v39 = vsel %vm1521_vm7, %v3704_v54, %v3700_v23 }
0x2322   :  { %v3821_v12 = vsel %vm428_vm2, %v3820_v18, %v3819_v4 }
0x2323   :  { %4285 = vmatmul.mubr.msk.f32.vlgmr.msra.gmra.mrb[26].mxu0 %vm278_vm3, %v3821_v12 }
0x2324   :  { %4973 = vmatpush1.bf16.msra.mxu0 %v5769_v26  ;;  %4053 = vmatprep.mubr.f32.mxu0 %v5522_v3 }
0x2325   :  { %4975 = vmatprep.subr.bf16.mxu0 %v5771_v27 }
0x2328   :  { %4977 = vmatpush1.bf16.msra.mxu0 %v5788_v35 }
0x2329   :  { %4979 = vmatprep.subr.bf16.mxu0 %v5791_v36 }
0x232c   :  { %4981 = vmatpush1.bf16.msra.mxu0 %v5806_v49 }
0x232d   :  { %4983 = vmatprep.subr.bf16.mxu0 %v5809_v50 }
0x2330   :  { %4985 = vmatpush1.bf16.msra.mxu0 %v5824_v59 }
0x2331   :  { %4987 = vmatprep.subr.bf16.mxu0 %v5827_v61 }
0x2334   :  { %4989 = vmatpush1.bf16.msra.mxu0 %v5842_v5 }
0x2335   :  { %4991 = vmatprep.subr.bf16.mxu0 %v5845_v6 }
0x2338   :  { %4993 = vmatpush1.bf16.msra.mxu0 %v5860_v14 }
0x2339   :  { %4995 = vmatprep.subr.bf16.mxu0 %v5863_v15 }
0x233c   :  { %4997 = vmatpush1.bf16.msra.mxu0 %v5874_v22 }
0x233d   :  { %4999 = vmatprep.subr.bf16.mxu0 %v5888_v10 }
0x2340   :  { %5001 = vmatpush1.bf16.msra.mxu0 %v5899_v43 }
0x2390   :  { %v3710_v26 = vpop.permute.xlu1 %3709 }
0x2391   :  { %v3712_v27 = vsel %vm278_vm3, %v3705_v39, %v3710_v26 }
0x2392   :  { %v3714_v35 = vrot.slane %v3712_v27, 4 }
0x2394   :  { %3781 = vmatmul.mubr.f32.vlgmr.msra.gmra.mrb[32].mxu1 %v3714_v35 }
0x2395   :  { %4319 = vmatprep.mubr.msk.f32.mxu1 %vm5525_vm11, %v5522_v3 }
0x23f6   :  { %v3890_v36 = vpop.f32.mrb[26].mxu0 }
0x23f7   :  { %v3892_v49 = vpop.f32.mrb[27].mxu0  ;;  %v3899_v5 = vrot.slane %v3890_v36, 4  ;;  %v3897_v58 = vrot.slane %v3890_v36, 3 }
0x23f8   :  { %v3900_v50 = vrot.slane %v3892_v49, 4  ;;  %v3898_v15 = vrot.slane %v3892_v49, 3 }
0x23f9   :  { %v3907_v6 = vadd.f32 %v3899_v5, %v6397_v2 }
0x23fa   :  { %v6701_v59 = vadd.f32 %v3900_v50, %v6388_v31  ;;  %v3906_v63 = vadd.f32 %v3898_v15, %v6402_v56  ;;  %v3905_v56 = vadd.f32 %v3897_v58, %v6412_v48  ;;  %v3938_v48 = vrot.slane %v6664_v16, 7 }
0x23fb   :  { %v4288_v14 = vmul.f32 -1.442695, %v3907_v6 }
0x23fc   :  { %5474 = vtanh.f32 %v6701_v59  ;;  %v4286_v11 = vmul.f32 -1.442695, %v3905_v56  ;;  %v4289_v13 = vmul.f32 -1.442695, %v6701_v59  ;;  %v4287_v54 = vmul.f32 -1.442695, %v3906_v63 }
0x23fd   :  { %5476 = vpow2.f32 %v4288_v14 }
0x2406   :  { %v5475_v61 = vpop.eup %5474 }
0x2407   :  { %3947 = vrot.lane.b32.xlu1 %v5475_v61, %s5523_s3  ;;  %v5477_v31 = vpop.eup %5476 }
0x2408   :  { %v3923_v40 = vadd.f32 1.0, %v5477_v31 }
0x2467   :  { %v3782_v22 = vpop.f32.mrb[32].mxu1 }
0x2468   :  { %v3784_v10 = vpop.f32.mrb[33].mxu1  ;;  %v3787_v44 = vadd.f32 %v3782_v22, %v5706_v42 }
0x2469   :  { %v3788_v43 = vadd.f32 %v3784_v10, %v5948_v28 }
0x246a   :  { %v4283_v1 = vmul.f32 -1.442695, %v3787_v44 }
0x246b   :  { %5478 = vtanh.f32 %v3788_v43 }
0x246c   :  { %5480 = vtanh.f32 %v3906_v63 }
0x246d   :  { %5482 = vrcp.f32 %v3923_v40 }
0x246e   :  { %5484 = vpow2.f32 %v4283_v1  ;;  %v5524_v1 = vmov 0.0|0.0  }
0x246f   :  { %5486 = vpow2.f32 %v4286_v11  ;;  %5002 = vmatprep.subr.bf16.mxu1 %v5524_v1  ;;  %v4094_v11 = vld [vmem:[%s6772_s6 + $0x10] sm:$0xff] }
0x2475   :  { %v5479_v45 = vpop.eup %5478 }
0x2476   :  { %3804 = vrot.lane.b32.xlu0 %v5479_v45, %s5523_s3  ;;  %v5481_v25 = vpop.eup %5480 }
0x2477   :  { %v5483_v2 = vpop.eup %5482 }
0x2478   :  { %v5485_v17 = vpop.eup %5484  ;;  %v3942_v41 = vmul.f32 %v5483_v2, %v3938_v48 }
0x2479   :  { %v3948_v60 = vpop.permute.xlu1 %3947  ;;  %v3795_v24 = vadd.f32 1.0, %v5485_v17  ;;  %v5487_v8 = vpop.eup %5486 }
0x247a   :  { %3945 = vrot.lane.b32.xlu0 %v5481_v25, %s5523_s3  ;;  %v3952_v52 = vmul.f32 %v5483_v2, %v3948_v60  ;;  %v3921_v30 = vadd.f32 1.0, %v5487_v8 }
0x247b   :  { %5488 = vrcp.f32 %v3795_v24  ;;  %v4095_v24 = vld [vmem:[%s6772_s6 + $0x18] sm:$0xff] }
0x247c   :  { %5490 = vrcp.f32 %v3921_v30  ;;  %v5006_v8 = vpack.c.bf16 %v4095_v24, %v4094_v11  ;;  %v4096_v30 = vld [vmem:[%s6772_s6 + $0x20] sm:$0xff] }
0x247e   :  { %3957 = vrot.lane.b32.xlu0 %v3952_v52, %s5523_s3 }
0x2485   :  { %v5489_v34 = vpop.eup %5488 }
0x2486   :  { %v5491_v0 = vpop.eup %5490  ;;  %v3802_v32 = vmul.f32 %v5489_v34, %v6670_v19  ;;  %v4284_v19 = vmul.f32 -1.442695, %v3788_v43 }
0x2487   :  { %v3941_v51 = vmul.f32 %v5491_v0, %v3937_v46 }
0x24e8   :  { %v3805_v53 = vpop.permute.xlu0 %3804 }
0x24e9   :  { %v3807_v20 = vmul.f32 %v5489_v34, %v3805_v53  ;;  %v4097_v34 = vld [vmem:[%s6772_s6 + $0x28] sm:$0xff] }
0x24ea   :  { %v5009_v53 = vpack.c.bf16 %v4097_v34, %v4096_v30 }
0x24eb   :  { %3809 = vrot.lane.b32.xlu1 %v3807_v20, %s5523_s3  ;;  %v4098_v20 = vld [vmem:[%s6772_s6 + $0x30] sm:$0xff] }
0x24ec   :  { %v3946_v57 = vpop.permute.xlu0 %3945 }
0x24ed   :  { %v3951_v47 = vmul.f32 %v5491_v0, %v3946_v57  ;;  %v4099_v0 = vld [vmem:[%s6772_s6 + $0x38] sm:$0xff] }
0x24ee   :  { %v5012_v57 = vpack.c.bf16 %v4099_v0, %v4098_v20 }
0x24ef   :  { %3955 = vrot.lane.b32.xlu1 %v3951_v47, %s5523_s3 }
0x24f0   :  { %v3958_v7 = vpop.permute.xlu0 %3957 }
0x24f1   :  { %v3962_v55 = vadd.f32 %v3958_v7, %v3942_v41 }
0x24f3   :  { %5492 = vtanh.f32 %v3962_v55 }
0x24fd   :  { %v5493_v33 = vpop.eup %5492 }
0x24fe   :  { %3969 = vrot.lane.b32.xlu1 %v5493_v33, %s5523_s3 }
0x255d   :  { %v3810_v37 = vpop.permute.xlu1 %3809 }
0x255e   :  { %v6719_v62 = vadd.f32 %v3810_v37, %v3802_v32 }
0x2560   :  { %5494 = vtanh.f32 %v6719_v62 }
0x2561   :  { %v3956_v9 = vpop.permute.xlu1 %3955 }
0x2562   :  { %v3961_v21 = vadd.f32 %v3956_v9, %v3941_v51 }
0x2564   :  { %5496 = vtanh.f32 %v3961_v21 }
0x2565   :  { %5498 = vpow2.f32 %v4289_v13 }
0x2566   :  { %5500 = vpow2.f32 %v4284_v19 }
0x2567   :  { %5502 = vpow2.f32 %v4287_v54 }
0x256a   :  { %v5495_v16 = vpop.eup %5494 }
0x256b   :  { %3815 = vrot.lane.b32.xlu0 %v5495_v16, %s5523_s3 }
0x256e   :  { %v5497_v38 = vpop.eup %5496 }
0x256f   :  { %3967 = vrot.lane.b32.xlu0 %v5497_v38, %s5523_s3  ;;  %v5499_v29 = vpop.eup %5498 }
0x2570   :  { %v5501_v23 = vpop.eup %5500  ;;  %v3924_v18 = vadd.f32 1.0, %v5499_v29  ;;  %v3970_v26 = vpop.permute.xlu1 %3969 }
0x2571   :  { %v3796_v4 = vadd.f32 1.0, %v5501_v23  ;;  %v5503_v39 = vpop.eup %5502 }
0x2572   :  { %5504 = vrcp.f32 %v3924_v18  ;;  %v3922_v12 = vadd.f32 1.0, %v5503_v39 }
0x2573   :  { %5506 = vrcp.f32 %v3796_v4 }
0x2574   :  { %5508 = vrcp.f32 %v3922_v12 }
0x257c   :  { %v5505_v27 = vpop.eup %5504 }
0x257d   :  { %v5507_v35 = vpop.eup %5506  ;;  %v3974_v49 = vmul.f32 %v5505_v27, %v3970_v26 }
0x257e   :  { %v5509_v61 = vpop.eup %5508 }
0x257f   :  { %v3977_v6 = vrot.slane %v3974_v49, 7 }
0x25dd   :  { %v3816_v36 = vpop.permute.xlu0 %3815 }
0x25de   :  { %v3818_v50 = vmul.f32 %v5507_v35, %v3816_v36 }
0x25e0   :  { %v3981_v59 = vrot.slane %v3818_v50, 3 }
0x25e1   :  { %v3968_v5 = vpop.permute.xlu0 %3967 }
0x25e2   :  { %v3973_v14 = vmul.f32 %v5509_v61, %v3968_v5  ;;  %3982 = vrot.lane.b32.xlu1 %v3981_v59, %s5523_s3 }
0x25e4   :  { %v3978_v15 = vsel %vm1795_vm8, %v3977_v6, %v3973_v14 }
0x2654   :  { %v3983_v22 = vpop.permute.xlu1 %3982 }
0x2655   :  { %v3985_v10 = vsel %vm278_vm3, %v3978_v15, %v3983_v22 }
0x2656   :  { %v3987_v43 = vrot.slane %v3985_v10, 5 }
0x2658   :  { %4054 = vmatmul.mubr.f32.vlgmr.msra.gmra.mrb[28].mxu0 %v3987_v43 }
0x272b   :  { %v4055_v63 = vpop.f32.mrb[28].mxu0 }
0x272c   :  { %v4057_v31 = vpop.f32.mrb[29].mxu0  ;;  %v4060_v25 = vadd.f32 %v4055_v63, %v5706_v42  ;;  %v4093_v42 = vld [vmem:[%s6772_s6 + $0x8] sm:$0xff] }
0x272d   :  { %v4061_v40 = vadd.f32 %v4057_v31, %v5948_v28  ;;  %v4092_v28 = vld [vmem:[%s6772_s6] sm:$0xff] }
0x272e   :  { %v4290_v2 = vmul.f32 -1.442695, %v4060_v25  ;;  %v5003_v17 = vpack.c.bf16 %v4093_v42, %v4092_v28 }
0x272f   :  { %5510 = vtanh.f32 %v4061_v40  ;;  %v4291_v55 = vmul.f32 -1.442695, %v4061_v40 }
0x2730   :  { %5512 = vpow2.f32 %v4290_v2  ;;  %5004 = vmatpush3.bf16.msra.mxu1 %v5003_v17 }
0x2731   :  { %5005 = vmatprep.subr.bf16.mxu1 %v5524_v1 }
0x2734   :  { %5007 = vmatpush3.bf16.msra.mxu1 %v5006_v8 }
0x2735   :  { %5008 = vmatprep.subr.bf16.mxu1 %v5524_v1 }
0x2738   :  { %5010 = vmatpush3.bf16.msra.mxu1 %v5009_v53 }
0x2739   :  { %v5511_v45 = vpop.eup %5510  ;;  %5011 = vmatprep.subr.bf16.mxu1 %v5524_v1 }
0x273a   :  { %4077 = vrot.lane.b32.xlu0 %v5511_v45, %s5523_s3  ;;  %v5513_v60 = vpop.eup %5512 }
0x273b   :  { %v4068_v52 = vadd.f32 1.0, %v5513_v60 }
0x273c   :  { %5013 = vmatpush3.bf16.msra.mxu1 %v5012_v57 }
0x273d   :  { %5514 = vrcp.f32 %v4068_v52 }
0x2747   :  { %v5515_v58 = vpop.eup %5514 }
0x2748   :  { %v4075_v47 = vmul.f32 %v5515_v58, %v6719_v62  ;;  %v4292_v62 = vld [vmem:[%s6773_s7] ss:$0 sm:$0xff] }
0x27ac   :  { %v4078_v44 = vpop.permute.xlu0 %4077 }
0x27ad   :  { %v4080_v56 = vmul.f32 %v5515_v58, %v4078_v44 }
0x27af   :  { %4082 = vrot.lane.b32.xlu1 %v4080_v56, %s5523_s3 }
0x2821   :  { %v4083_v48 = vpop.permute.xlu1 %4082 }
0x2822   :  { %v4085_v41 = vadd.f32 %v4083_v48, %v4075_v47 }
0x2824   :  { %5516 = vtanh.f32 %v4085_v41 }
0x2825   :  { %5518 = vpow2.f32 %v4291_v55 }
0x282e   :  { %v5517_v7 = vpop.eup %5516 }
0x282f   :  { %4088 = vrot.lane.b32.xlu0 %v5517_v7, %s5523_s3  ;;  %v5519_v33 = vpop.eup %5518 }
0x2830   :  { %v4069_v32 = vadd.f32 1.0, %v5519_v33 }
0x2832   :  { %5520 = vrcp.f32 %v4069_v32 }
0x283c   :  { %v5521_v37 = vpop.eup %5520 }
0x28a1   :  { %v4089_v46 = vpop.permute.xlu0 %4088 }
0x28a2   :  { %v4091_v51 = vmul.f32 %v5521_v37, %v4089_v46 }
0x28a4   :  { %4320 = vmatmul.mubr.msk.f32.vlgmr.msra.gmra.mrb[34].mxu1 %vm278_vm3, %v4091_v51 }
0x2977   :  { %v4176_v9 = vpop.f32.mrb[34].mxu1 }
0x2978   :  { %v4177_v3 = vadd.f32 %v4292_v62, %v4176_v9  ;;  %v4321_v21 = vpop.f32.mrb[35].mxu1 }
0x297a   :  { %4181 = vst.msk [vmem:[%s6774_s8] sm:$0x3] %vm4180_vm12, %v4177_v3 }

</bundles_post_ra>
